<compile_context>
chip_gen: v7x
topology: tpu7x:2x2x1
jax: 0.10.0
libtpu: 0.0.40
codegen_flags: <defaults>
</compile_context>

<pallas_src>
import functools
from collections import namedtuple

import jax
import jax.numpy as jnp
from jax import lax
from jax.experimental import pallas as pl
from jax.experimental.pallas import tpu as pltpu

INITRANGE = 0.04

Genotype = namedtuple("Genotype", ["recurrent", "concat"])
# DARTS-V1 recurrent genotype (8 intermediate nodes).
DARTS_GENOTYPE = Genotype(
    recurrent=[('sigmoid', 0), ('relu', 1), ('relu', 1), ('identity', 1),
               ('tanh', 2), ('sigmoid', 5), ('tanh', 3), ('relu', 5)],
    concat=list(range(1, 9)),
)

# Small test shapes consistent with the module (ninp == nhid == nhidlast).
NTOKEN = 128
NINP = NHID = NHIDLAST = 64
SEQ_T = 8
BATCH = 4


def _act(name, x):
    if name == 'tanh':
        return jnp.tanh(x)
    if name == 'relu':
        return jnp.maximum(x, 0.0)
    if name == 'sigmoid':
        return jax.nn.sigmoid(x)
    if name == 'identity':
        return x
    raise NotImplementedError(name)


# ----------------------------------------------------------------------------
# Kernel 1: full DARTS recurrence in a single kernel invocation.
#   - time loop = in-kernel fori_loop (no per-step grid dispatch overhead)
#   - hidden state = loop carry (read h_init once)
#   - weights pre-split so every matmul output is already the c-part or h-part
#     (no concat, no mid-vreg column slices)
#   - output slab (T, B, nhid) written to VMEM per step, DMA'd to HBM once.
# ----------------------------------------------------------------------------
def darts_rnn_kernel(emb_ref, hinit_ref,
                     w0xc_ref, w0xh_ref, w0hc_ref, w0hh_ref,
                     wsc_ref, wsh_ref, out_ref, *, genotype):
    T = emb_ref.shape[0]
    inv_n = jnp.float32(1.0 / len(genotype.concat))

    # Small weights reused every step: load once, keep in vregs.
    w0xc = w0xc_ref[...]
    w0xh = w0xh_ref[...]
    w0hc = w0hc_ref[...]
    w0hh = w0hh_ref[...]

    def step(t, h_prev):
        x = emb_ref[t]                                        # (B, ninp)

        # _compute_init_state (eval mode): two dots per gate instead of
        # concat([x, h]) @ W0 followed by a mid-vreg split.
        c0 = jax.nn.sigmoid(
            jnp.dot(x, w0xc, preferred_element_type=jnp.float32)
            + jnp.dot(h_prev, w0hc, preferred_element_type=jnp.float32))
        h0 = jnp.tanh(
            jnp.dot(x, w0xh, preferred_element_type=jnp.float32)
            + jnp.dot(h_prev, w0hh, preferred_element_type=jnp.float32))
        s0 = h_prev + c0 * (h0 - h_prev)

        states = [s0]
        for i, (name, pred) in enumerate(genotype.recurrent):
            s_prev = states[pred]
            c = jax.nn.sigmoid(
                jnp.dot(s_prev, wsc_ref[i], preferred_element_type=jnp.float32))
            hh = _act(
                name,
                jnp.dot(s_prev, wsh_ref[i], preferred_element_type=jnp.float32))
            states.append(s_prev + c * (hh - s_prev))

        # Running VPU sum over the concat nodes (no stack / XLU reduce).
        out = states[genotype.concat[0]]
        for idx in genotype.concat[1:]:
            out = out + states[idx]
        out = out * inv_n

        out_ref[t] = out.astype(out_ref.dtype)
        return out

    # Short, fixed trip count -> fully unroll for LLO scheduler visibility.
    lax.fori_loop(0, T, step, hinit_ref[...], unroll=True)


def darts_rnn_forward(emb, h_init, w0x_c, w0x_h, w0h_c, w0h_h, ws_c, ws_h,
                      *, genotype):
    T, B, _ = emb.shape
    nhid = h_init.shape[-1]
    kernel = functools.partial(darts_rnn_kernel, genotype=genotype)
    # Single grid point: every operand lives fully in VMEM for the call
    # (T*B*nhid and weights are tiny here; still small at realistic T, B).
    return pl.pallas_call(
        kernel,
        out_shape=jax.ShapeDtypeStruct((T, B, nhid), jnp.float32),
    )(emb, h_init, w0x_c, w0x_h, w0h_c, w0h_h, ws_c, ws_h)


# ----------------------------------------------------------------------------
# Kernel 2: tied decoder (Linear) + log_softmax, tiled over rows.
# Row axis is 'parallel' (megacore split on v7x); weight/bias blocks are
# revisited per row tile, output block is lane-dense (row_tile, ntoken).
# ----------------------------------------------------------------------------
def decoder_kernel(x_ref, wt_ref, b_ref, out_ref):
    logits = jnp.dot(x_ref[...], wt_ref[...],
                     preferred_element_type=jnp.float32) + b_ref[...]
    m = jnp.max(logits, axis=-1, keepdims=True)
    z = logits - m
    lse = jnp.log(jnp.sum(jnp.exp(z), axis=-1, keepdims=True))
    out_ref[...] = (z - lse).astype(out_ref.dtype)


def _pick_row_tile(n):
    for cand in (256, 128, 64, 32, 16, 8):
        if n % cand == 0:
            return cand
    return n


def decoder_log_softmax(x2d, weight_t, bias2d):
    n, ninp = x2d.shape
    ntoken = weight_t.shape[-1]
    row_tile = _pick_row_tile(n)
    # TODO(synk): for realistic ntoken (~10k+), also block the vocab axis with
    # an online (flash-style) max/logsumexp and keep weight_t in bf16; at the
    # test vocab (128) the full row of logits fits trivially in VMEM.
    return pl.pallas_call(
        decoder_kernel,
        out_shape=jax.ShapeDtypeStruct((n, ntoken), jnp.float32),
        grid_spec=pltpu.PrefetchScalarGridSpec(
            num_scalar_prefetch=0,
            grid=(n // row_tile,),
            in_specs=[
                pl.BlockSpec((row_tile, ninp), lambda i: (i, 0)),
                pl.BlockSpec((ninp, ntoken), lambda i: (0, 0)),
                pl.BlockSpec((1, ntoken), lambda i: (0, 0)),
            ],
            out_specs=pl.BlockSpec((row_tile, ntoken), lambda i: (i, 0)),
        ),
        compiler_params=pltpu.CompilerParams(
            dimension_semantics=("parallel",)),
    )(x2d, weight_t, bias2d)


# ----------------------------------------------------------------------------
# Model container (parameter setup + glue in plain JAX).
# ----------------------------------------------------------------------------
class RNNModelPallas:
    def __init__(self, key, ntoken, ninp, nhid, nhidlast, genotype):
        assert ninp == nhid == nhidlast
        self.ntoken, self.ninp, self.nhid = ntoken, ninp, nhid
        self.genotype = genotype
        steps = len(genotype.recurrent)
        k_enc, k_w0, k_ws = jax.random.split(key, 3)
        self.encoder_weight = jax.random.uniform(
            k_enc, (ntoken, ninp), jnp.float32, -INITRANGE, INITRANGE)
        self.w0 = jax.random.uniform(
            k_w0, (ninp + nhid, 2 * nhid), jnp.float32, -INITRANGE, INITRANGE)
        self.ws = jax.random.uniform(
            k_ws, (steps, nhid, 2 * nhid), jnp.float32, -INITRANGE, INITRANGE)

        # Pre-split weights once (no per-call / per-step reshuffling):
        #   rows:   [:ninp] acts on x, [ninp:] acts on h_prev
        #   cols:   [:, :nhid] -> gate c, [:, nhid:] -> candidate h
        self.w0x_c = self.w0[:ninp, :nhid]
        self.w0x_h = self.w0[:ninp, nhid:]
        self.w0h_c = self.w0[ninp:, :nhid]
        self.w0h_h = self.w0[ninp:, nhid:]
        self.ws_c = self.ws[:, :, :nhid]
        self.ws_h = self.ws[:, :, nhid:]

        # decoder.weight is tied to encoder.weight; bias initialized to 0.
        # Cache the transposed tied weight once (no per-forward transpose).
        self.decoder_weight = self.encoder_weight
        self.decoder_weight_t = jnp.transpose(self.encoder_weight)
        self.decoder_bias = jnp.zeros((1, ntoken), jnp.float32)

    def init_hidden(self, bsz):
        return [jnp.zeros((1, bsz, self.nhid), jnp.float32)]

    def __call__(self, tokens, hidden):
        T, B = tokens.shape
        # Embedding gather (glue; no dropout in eval mode).
        # TODO(synk): could fuse this gather into the RNN kernel via
        # scalar-prefetch tokens + pl.Element row gather on encoder_weight.
        emb = self.encoder_weight[tokens]                     # (T, B, ninp)
        # Single DARTS recurrent layer (hot path in Pallas, one invocation).
        raw_output = darts_rnn_forward(
            emb, hidden[0][0],
            self.w0x_c, self.w0x_h, self.w0h_c, self.w0h_h,
            self.ws_c, self.ws_h, genotype=self.genotype)
        new_hidden = [raw_output[-1][None]]                   # (1, B, nhid)
        # Tied decoder + log_softmax (hot path in Pallas, row-tiled).
        out2d = raw_output.reshape(-1, self.ninp)
        log_prob = decoder_log_softmax(
            out2d, self.decoder_weight_t, self.decoder_bias)
        model_output = log_prob.reshape(-1, B, self.ntoken)
        return model_output, new_hidden


# ----------------------------------------------------------------------------
# Pure-JAX reference for verification.
# ----------------------------------------------------------------------------
def reference_forward(model, tokens, hidden):
    T, B = tokens.shape
    emb = model.encoder_weight[tokens]
    h = hidden[0][0]
    outs = []
    for t in range(T):
        x = emb[t]
        xh = jnp.concatenate([x, h], axis=-1)
        ch0 = xh @ model.w0
        c0 = jax.nn.sigmoid(ch0[:, :model.nhid])
        h0 = jnp.tanh(ch0[:, model.nhid:])
        s0 = h + c0 * (h0 - h)
        states = [s0]
        for i, (name, pred) in enumerate(model.genotype.recurrent):
            s_prev = states[pred]
            ch = s_prev @ model.ws[i]
            c = jax.nn.sigmoid(ch[:, :model.nhid])
            hh = _act(name, ch[:, model.nhid:])
            states.append(s_prev + c * (hh - s_prev))
        h = jnp.mean(jnp.stack([states[i] for i in model.genotype.concat], -1), -1)
        outs.append(h)
    raw = jnp.stack(outs)
    logits = raw.reshape(-1, model.ninp) @ model.decoder_weight.T + model.decoder_bias
    log_prob = jax.nn.log_softmax(logits, axis=-1)
    return log_prob.reshape(-1, B, model.ntoken), [raw[-1][None]]


if __name__ == "__main__":
    key = jax.random.PRNGKey(0)
    pkey, tkey = jax.random.split(key)
    model = RNNModelPallas(pkey, NTOKEN, NINP, NHID, NHIDLAST, DARTS_GENOTYPE)

    tokens = jax.random.randint(tkey, (SEQ_T, BATCH), 0, NTOKEN, dtype=jnp.int32)
    hidden = model.init_hidden(BATCH)

    model_output, new_hidden = model(tokens, hidden)
    jax.block_until_ready(model_output)
    jax.block_until_ready(new_hidden[0])

    ref_out, ref_hidden = reference_forward(model, tokens, hidden)
    assert model_output.shape == (SEQ_T, BATCH, NTOKEN)
    assert new_hidden[0].shape == (1, BATCH, NHID)
    assert jnp.allclose(model_output, ref_out, atol=1e-4, rtol=1e-4)
    assert jnp.allclose(new_hidden[0], ref_hidden[0], atol=1e-4, rtol=1e-4)

    print("KERNEL_OK")
</pallas_src>

<mosaic_0001>
module attributes {stable_mosaic.version = 11 : i64} {
  func.func @darts_rnn_kernel(%arg0: memref<8x4x64xf32, #tpu.memory_space<vmem>>, %arg1: memref<4x64xf32, #tpu.memory_space<vmem>>, %arg2: memref<64x64xf32, #tpu.memory_space<vmem>>, %arg3: memref<64x64xf32, #tpu.memory_space<vmem>>, %arg4: memref<64x64xf32, #tpu.memory_space<vmem>>, %arg5: memref<64x64xf32, #tpu.memory_space<vmem>>, %arg6: memref<8x64x64xf32, #tpu.memory_space<vmem>>, %arg7: memref<8x64x64xf32, #tpu.memory_space<vmem>>, %arg8: memref<8x4x64xf32, #tpu.memory_space<vmem>>) attributes {dimension_semantics = [], scalar_prefetch = 0 : i64, scratch_operands = 0 : i64, tpu.core_type = #tpu.core_type<tc>} {
    %c0 = arith.constant 0 : index
    %c0_0 = arith.constant 0 : index
    %0 = vector.load %arg2[%c0, %c0_0] : memref<64x64xf32, #tpu.memory_space<vmem>>, vector<64x64xf32>
    %c0_1 = arith.constant 0 : index
    %c0_2 = arith.constant 0 : index
    %1 = vector.load %arg3[%c0_1, %c0_2] : memref<64x64xf32, #tpu.memory_space<vmem>>, vector<64x64xf32>
    %c0_3 = arith.constant 0 : index
    %c0_4 = arith.constant 0 : index
    %2 = vector.load %arg4[%c0_3, %c0_4] : memref<64x64xf32, #tpu.memory_space<vmem>>, vector<64x64xf32>
    %c0_5 = arith.constant 0 : index
    %c0_6 = arith.constant 0 : index
    %3 = vector.load %arg5[%c0_5, %c0_6] : memref<64x64xf32, #tpu.memory_space<vmem>>, vector<64x64xf32>
    %c0_7 = arith.constant 0 : index
    %c0_8 = arith.constant 0 : index
    %4 = vector.load %arg1[%c0_7, %c0_8] : memref<4x64xf32, #tpu.memory_space<vmem>>, vector<4x64xf32>
    %cst = arith.constant 1.250000e-01 : f32
    %c0_i32 = arith.constant 0 : i32
    %5 = arith.index_cast %c0_i32 : i32 to index
    %c0_9 = arith.constant 0 : index
    %c0_10 = arith.constant 0 : index
    %6 = vector.load %arg0[%5, %c0_9, %c0_10] : memref<8x4x64xf32, #tpu.memory_space<vmem>>, vector<1x4x64xf32>
    %7 = vector.shape_cast %6 : vector<1x4x64xf32> to vector<4x64xf32>
    %cst_11 = arith.constant dense<0.000000e+00> : vector<4x64xf32>
    %8 = tpu.matmul %7, %0, %cst_11 {dimension_numbers = #tpu.dot_dimension_numbers<[1], [0], [0], [1], [0, 0, 1, 1], [], []>} : vector<4x64xf32>, vector<64x64xf32>, vector<4x64xf32> -> vector<4x64xf32>
    %cst_12 = arith.constant dense<0.000000e+00> : vector<4x64xf32>
    %9 = tpu.matmul %4, %2, %cst_12 {dimension_numbers = #tpu.dot_dimension_numbers<[1], [0], [0], [1], [0, 0, 1, 1], [], []>} : vector<4x64xf32>, vector<64x64xf32>, vector<4x64xf32> -> vector<4x64xf32>
    %10 = arith.addf %8, %9 : vector<4x64xf32>
    %11 = arith.negf %10 : vector<4x64xf32>
    %12 = math.exp %11 : vector<4x64xf32>
    %cst_13 = arith.constant 1.000000e+00 : f32
    %13 = vector.broadcast %cst_13 : f32 to vector<4x64xf32>
    %14 = arith.addf %13, %12 : vector<4x64xf32>
    %15 = arith.divf %13, %14 : vector<4x64xf32>
    %cst_14 = arith.constant dense<0.000000e+00> : vector<4x64xf32>
    %16 = tpu.matmul %7, %1, %cst_14 {dimension_numbers = #tpu.dot_dimension_numbers<[1], [0], [0], [1], [0, 0, 1, 1], [], []>} : vector<4x64xf32>, vector<64x64xf32>, vector<4x64xf32> -> vector<4x64xf32>
    %cst_15 = arith.constant dense<0.000000e+00> : vector<4x64xf32>
    %17 = tpu.matmul %4, %3, %cst_15 {dimension_numbers = #tpu.dot_dimension_numbers<[1], [0], [0], [1], [0, 0, 1, 1], [], []>} : vector<4x64xf32>, vector<64x64xf32>, vector<4x64xf32> -> vector<4x64xf32>
    %18 = arith.addf %16, %17 : vector<4x64xf32>
    %19 = math.tanh %18 : vector<4x64xf32>
    %20 = arith.subf %19, %4 : vector<4x64xf32>
    %21 = arith.mulf %15, %20 : vector<4x64xf32>
    %22 = arith.addf %4, %21 : vector<4x64xf32>
    %c0_16 = arith.constant 0 : index
    %c0_17 = arith.constant 0 : index
    %c0_18 = arith.constant 0 : index
    %23 = vector.load %arg6[%c0_16, %c0_17, %c0_18] : memref<8x64x64xf32, #tpu.memory_space<vmem>>, vector<1x64x64xf32>
    %24 = vector.shape_cast %23 : vector<1x64x64xf32> to vector<64x64xf32>
    %cst_19 = arith.constant dense<0.000000e+00> : vector<4x64xf32>
    %25 = tpu.matmul %22, %24, %cst_19 {dimension_numbers = #tpu.dot_dimension_numbers<[1], [0], [0], [1], [0, 0, 1, 1], [], []>} : vector<4x64xf32>, vector<64x64xf32>, vector<4x64xf32> -> vector<4x64xf32>
    %26 = arith.negf %25 : vector<4x64xf32>
    %27 = math.exp %26 : vector<4x64xf32>
    %cst_20 = arith.constant 1.000000e+00 : f32
    %28 = vector.broadcast %cst_20 : f32 to vector<4x64xf32>
    %29 = arith.addf %28, %27 : vector<4x64xf32>
    %30 = arith.divf %28, %29 : vector<4x64xf32>
    %c0_21 = arith.constant 0 : index
    %c0_22 = arith.constant 0 : index
    %c0_23 = arith.constant 0 : index
    %31 = vector.load %arg7[%c0_21, %c0_22, %c0_23] : memref<8x64x64xf32, #tpu.memory_space<vmem>>, vector<1x64x64xf32>
    %32 = vector.shape_cast %31 : vector<1x64x64xf32> to vector<64x64xf32>
    %cst_24 = arith.constant dense<0.000000e+00> : vector<4x64xf32>
    %33 = tpu.matmul %22, %32, %cst_24 {dimension_numbers = #tpu.dot_dimension_numbers<[1], [0], [0], [1], [0, 0, 1, 1], [], []>} : vector<4x64xf32>, vector<64x64xf32>, vector<4x64xf32> -> vector<4x64xf32>
    %34 = arith.negf %33 : vector<4x64xf32>
    %35 = math.exp %34 : vector<4x64xf32>
    %cst_25 = arith.constant 1.000000e+00 : f32
    %36 = vector.broadcast %cst_25 : f32 to vector<4x64xf32>
    %37 = arith.addf %36, %35 : vector<4x64xf32>
    %38 = arith.divf %36, %37 : vector<4x64xf32>
    %39 = arith.subf %38, %22 : vector<4x64xf32>
    %40 = arith.mulf %30, %39 : vector<4x64xf32>
    %41 = arith.addf %22, %40 : vector<4x64xf32>
    %c1 = arith.constant 1 : index
    %c0_26 = arith.constant 0 : index
    %c0_27 = arith.constant 0 : index
    %42 = vector.load %arg6[%c1, %c0_26, %c0_27] : memref<8x64x64xf32, #tpu.memory_space<vmem>>, vector<1x64x64xf32>
    %43 = vector.shape_cast %42 : vector<1x64x64xf32> to vector<64x64xf32>
    %cst_28 = arith.constant dense<0.000000e+00> : vector<4x64xf32>
    %44 = tpu.matmul %41, %43, %cst_28 {dimension_numbers = #tpu.dot_dimension_numbers<[1], [0], [0], [1], [0, 0, 1, 1], [], []>} : vector<4x64xf32>, vector<64x64xf32>, vector<4x64xf32> -> vector<4x64xf32>
    %45 = arith.negf %44 : vector<4x64xf32>
    %46 = math.exp %45 : vector<4x64xf32>
    %cst_29 = arith.constant 1.000000e+00 : f32
    %47 = vector.broadcast %cst_29 : f32 to vector<4x64xf32>
    %48 = arith.addf %47, %46 : vector<4x64xf32>
    %49 = arith.divf %47, %48 : vector<4x64xf32>
    %c1_30 = arith.constant 1 : index
    %c0_31 = arith.constant 0 : index
    %c0_32 = arith.constant 0 : index
    %50 = vector.load %arg7[%c1_30, %c0_31, %c0_32] : memref<8x64x64xf32, #tpu.memory_space<vmem>>, vector<1x64x64xf32>
    %51 = vector.shape_cast %50 : vector<1x64x64xf32> to vector<64x64xf32>
    %cst_33 = arith.constant dense<0.000000e+00> : vector<4x64xf32>
    %52 = tpu.matmul %41, %51, %cst_33 {dimension_numbers = #tpu.dot_dimension_numbers<[1], [0], [0], [1], [0, 0, 1, 1], [], []>} : vector<4x64xf32>, vector<64x64xf32>, vector<4x64xf32> -> vector<4x64xf32>
    %cst_34 = arith.constant 0.000000e+00 : f32
    %53 = vector.broadcast %cst_34 : f32 to vector<4x64xf32>
    %54 = arith.maximumf %52, %53 : vector<4x64xf32>
    %55 = arith.subf %54, %41 : vector<4x64xf32>
    %56 = arith.mulf %49, %55 : vector<4x64xf32>
    %57 = arith.addf %41, %56 : vector<4x64xf32>
    %c2 = arith.constant 2 : index
    %c0_35 = arith.constant 0 : index
    %c0_36 = arith.constant 0 : index
    %58 = vector.load %arg6[%c2, %c0_35, %c0_36] : memref<8x64x64xf32, #tpu.memory_space<vmem>>, vector<1x64x64xf32>
    %59 = vector.shape_cast %58 : vector<1x64x64xf32> to vector<64x64xf32>
    %cst_37 = arith.constant dense<0.000000e+00> : vector<4x64xf32>
    %60 = tpu.matmul %41, %59, %cst_37 {dimension_numbers = #tpu.dot_dimension_numbers<[1], [0], [0], [1], [0, 0, 1, 1], [], []>} : vector<4x64xf32>, vector<64x64xf32>, vector<4x64xf32> -> vector<4x64xf32>
    %61 = arith.negf %60 : vector<4x64xf32>
    %62 = math.exp %61 : vector<4x64xf32>
    %cst_38 = arith.constant 1.000000e+00 : f32
    %63 = vector.broadcast %cst_38 : f32 to vector<4x64xf32>
    %64 = arith.addf %63, %62 : vector<4x64xf32>
    %65 = arith.divf %63, %64 : vector<4x64xf32>
    %c2_39 = arith.constant 2 : index
    %c0_40 = arith.constant 0 : index
    %c0_41 = arith.constant 0 : index
    %66 = vector.load %arg7[%c2_39, %c0_40, %c0_41] : memref<8x64x64xf32, #tpu.memory_space<vmem>>, vector<1x64x64xf32>
    %67 = vector.shape_cast %66 : vector<1x64x64xf32> to vector<64x64xf32>
    %cst_42 = arith.constant dense<0.000000e+00> : vector<4x64xf32>
    %68 = tpu.matmul %41, %67, %cst_42 {dimension_numbers = #tpu.dot_dimension_numbers<[1], [0], [0], [1], [0, 0, 1, 1], [], []>} : vector<4x64xf32>, vector<64x64xf32>, vector<4x64xf32> -> vector<4x64xf32>
    %cst_43 = arith.constant 0.000000e+00 : f32
    %69 = vector.broadcast %cst_43 : f32 to vector<4x64xf32>
    %70 = arith.maximumf %68, %69 : vector<4x64xf32>
    %71 = arith.subf %70, %41 : vector<4x64xf32>
    %72 = arith.mulf %65, %71 : vector<4x64xf32>
    %73 = arith.addf %41, %72 : vector<4x64xf32>
    %c3 = arith.constant 3 : index
    %c0_44 = arith.constant 0 : index
    %c0_45 = arith.constant 0 : index
    %74 = vector.load %arg6[%c3, %c0_44, %c0_45] : memref<8x64x64xf32, #tpu.memory_space<vmem>>, vector<1x64x64xf32>
    %75 = vector.shape_cast %74 : vector<1x64x64xf32> to vector<64x64xf32>
    %cst_46 = arith.constant dense<0.000000e+00> : vector<4x64xf32>
    %76 = tpu.matmul %41, %75, %cst_46 {dimension_numbers = #tpu.dot_dimension_numbers<[1], [0], [0], [1], [0, 0, 1, 1], [], []>} : vector<4x64xf32>, vector<64x64xf32>, vector<4x64xf32> -> vector<4x64xf32>
    %77 = arith.negf %76 : vector<4x64xf32>
    %78 = math.exp %77 : vector<4x64xf32>
    %cst_47 = arith.constant 1.000000e+00 : f32
    %79 = vector.broadcast %cst_47 : f32 to vector<4x64xf32>
    %80 = arith.addf %79, %78 : vector<4x64xf32>
    %81 = arith.divf %79, %80 : vector<4x64xf32>
    %c3_48 = arith.constant 3 : index
    %c0_49 = arith.constant 0 : index
    %c0_50 = arith.constant 0 : index
    %82 = vector.load %arg7[%c3_48, %c0_49, %c0_50] : memref<8x64x64xf32, #tpu.memory_space<vmem>>, vector<1x64x64xf32>
    %83 = vector.shape_cast %82 : vector<1x64x64xf32> to vector<64x64xf32>
    %cst_51 = arith.constant dense<0.000000e+00> : vector<4x64xf32>
    %84 = tpu.matmul %41, %83, %cst_51 {dimension_numbers = #tpu.dot_dimension_numbers<[1], [0], [0], [1], [0, 0, 1, 1], [], []>} : vector<4x64xf32>, vector<64x64xf32>, vector<4x64xf32> -> vector<4x64xf32>
    %85 = arith.subf %84, %41 : vector<4x64xf32>
    %86 = arith.mulf %81, %85 : vector<4x64xf32>
    %87 = arith.addf %41, %86 : vector<4x64xf32>
    %c4 = arith.constant 4 : index
    %c0_52 = arith.constant 0 : index
    %c0_53 = arith.constant 0 : index
    %88 = vector.load %arg6[%c4, %c0_52, %c0_53] : memref<8x64x64xf32, #tpu.memory_space<vmem>>, vector<1x64x64xf32>
    %89 = vector.shape_cast %88 : vector<1x64x64xf32> to vector<64x64xf32>
    %cst_54 = arith.constant dense<0.000000e+00> : vector<4x64xf32>
    %90 = tpu.matmul %57, %89, %cst_54 {dimension_numbers = #tpu.dot_dimension_numbers<[1], [0], [0], [1], [0, 0, 1, 1], [], []>} : vector<4x64xf32>, vector<64x64xf32>, vector<4x64xf32> -> vector<4x64xf32>
    %91 = arith.negf %90 : vector<4x64xf32>
    %92 = math.exp %91 : vector<4x64xf32>
    %cst_55 = arith.constant 1.000000e+00 : f32
    %93 = vector.broadcast %cst_55 : f32 to vector<4x64xf32>
    %94 = arith.addf %93, %92 : vector<4x64xf32>
    %95 = arith.divf %93, %94 : vector<4x64xf32>
    %c4_56 = arith.constant 4 : index
    %c0_57 = arith.constant 0 : index
    %c0_58 = arith.constant 0 : index
    %96 = vector.load %arg7[%c4_56, %c0_57, %c0_58] : memref<8x64x64xf32, #tpu.memory_space<vmem>>, vector<1x64x64xf32>
    %97 = vector.shape_cast %96 : vector<1x64x64xf32> to vector<64x64xf32>
    %cst_59 = arith.constant dense<0.000000e+00> : vector<4x64xf32>
    %98 = tpu.matmul %57, %97, %cst_59 {dimension_numbers = #tpu.dot_dimension_numbers<[1], [0], [0], [1], [0, 0, 1, 1], [], []>} : vector<4x64xf32>, vector<64x64xf32>, vector<4x64xf32> -> vector<4x64xf32>
    %99 = math.tanh %98 : vector<4x64xf32>
    %100 = arith.subf %99, %57 : vector<4x64xf32>
    %101 = arith.mulf %95, %100 : vector<4x64xf32>
    %102 = arith.addf %57, %101 : vector<4x64xf32>
    %c5 = arith.constant 5 : index
    %c0_60 = arith.constant 0 : index
    %c0_61 = arith.constant 0 : index
    %103 = vector.load %arg6[%c5, %c0_60, %c0_61] : memref<8x64x64xf32, #tpu.memory_space<vmem>>, vector<1x64x64xf32>
    %104 = vector.shape_cast %103 : vector<1x64x64xf32> to vector<64x64xf32>
    %cst_62 = arith.constant dense<0.000000e+00> : vector<4x64xf32>
    %105 = tpu.matmul %102, %104, %cst_62 {dimension_numbers = #tpu.dot_dimension_numbers<[1], [0], [0], [1], [0, 0, 1, 1], [], []>} : vector<4x64xf32>, vector<64x64xf32>, vector<4x64xf32> -> vector<4x64xf32>
    %106 = arith.negf %105 : vector<4x64xf32>
    %107 = math.exp %106 : vector<4x64xf32>
    %cst_63 = arith.constant 1.000000e+00 : f32
    %108 = vector.broadcast %cst_63 : f32 to vector<4x64xf32>
    %109 = arith.addf %108, %107 : vector<4x64xf32>
    %110 = arith.divf %108, %109 : vector<4x64xf32>
    %c5_64 = arith.constant 5 : index
    %c0_65 = arith.constant 0 : index
    %c0_66 = arith.constant 0 : index
    %111 = vector.load %arg7[%c5_64, %c0_65, %c0_66] : memref<8x64x64xf32, #tpu.memory_space<vmem>>, vector<1x64x64xf32>
    %112 = vector.shape_cast %111 : vector<1x64x64xf32> to vector<64x64xf32>
    %cst_67 = arith.constant dense<0.000000e+00> : vector<4x64xf32>
    %113 = tpu.matmul %102, %112, %cst_67 {dimension_numbers = #tpu.dot_dimension_numbers<[1], [0], [0], [1], [0, 0, 1, 1], [], []>} : vector<4x64xf32>, vector<64x64xf32>, vector<4x64xf32> -> vector<4x64xf32>
    %114 = arith.negf %113 : vector<4x64xf32>
    %115 = math.exp %114 : vector<4x64xf32>
    %cst_68 = arith.constant 1.000000e+00 : f32
    %116 = vector.broadcast %cst_68 : f32 to vector<4x64xf32>
    %117 = arith.addf %116, %115 : vector<4x64xf32>
    %118 = arith.divf %116, %117 : vector<4x64xf32>
    %119 = arith.subf %118, %102 : vector<4x64xf32>
    %120 = arith.mulf %110, %119 : vector<4x64xf32>
    %121 = arith.addf %102, %120 : vector<4x64xf32>
    %c6 = arith.constant 6 : index
    %c0_69 = arith.constant 0 : index
    %c0_70 = arith.constant 0 : index
    %122 = vector.load %arg6[%c6, %c0_69, %c0_70] : memref<8x64x64xf32, #tpu.memory_space<vmem>>, vector<1x64x64xf32>
    %123 = vector.shape_cast %122 : vector<1x64x64xf32> to vector<64x64xf32>
    %cst_71 = arith.constant dense<0.000000e+00> : vector<4x64xf32>
    %124 = tpu.matmul %73, %123, %cst_71 {dimension_numbers = #tpu.dot_dimension_numbers<[1], [0], [0], [1], [0, 0, 1, 1], [], []>} : vector<4x64xf32>, vector<64x64xf32>, vector<4x64xf32> -> vector<4x64xf32>
    %125 = arith.negf %124 : vector<4x64xf32>
    %126 = math.exp %125 : vector<4x64xf32>
    %cst_72 = arith.constant 1.000000e+00 : f32
    %127 = vector.broadcast %cst_72 : f32 to vector<4x64xf32>
    %128 = arith.addf %127, %126 : vector<4x64xf32>
    %129 = arith.divf %127, %128 : vector<4x64xf32>
    %c6_73 = arith.constant 6 : index
    %c0_74 = arith.constant 0 : index
    %c0_75 = arith.constant 0 : index
    %130 = vector.load %arg7[%c6_73, %c0_74, %c0_75] : memref<8x64x64xf32, #tpu.memory_space<vmem>>, vector<1x64x64xf32>
    %131 = vector.shape_cast %130 : vector<1x64x64xf32> to vector<64x64xf32>
    %cst_76 = arith.constant dense<0.000000e+00> : vector<4x64xf32>
    %132 = tpu.matmul %73, %131, %cst_76 {dimension_numbers = #tpu.dot_dimension_numbers<[1], [0], [0], [1], [0, 0, 1, 1], [], []>} : vector<4x64xf32>, vector<64x64xf32>, vector<4x64xf32> -> vector<4x64xf32>
    %133 = math.tanh %132 : vector<4x64xf32>
    %134 = arith.subf %133, %73 : vector<4x64xf32>
    %135 = arith.mulf %129, %134 : vector<4x64xf32>
    %136 = arith.addf %73, %135 : vector<4x64xf32>
    %c7 = arith.constant 7 : index
    %c0_77 = arith.constant 0 : index
    %c0_78 = arith.constant 0 : index
    %137 = vector.load %arg6[%c7, %c0_77, %c0_78] : memref<8x64x64xf32, #tpu.memory_space<vmem>>, vector<1x64x64xf32>
    %138 = vector.shape_cast %137 : vector<1x64x64xf32> to vector<64x64xf32>
    %cst_79 = arith.constant dense<0.000000e+00> : vector<4x64xf32>
    %139 = tpu.matmul %102, %138, %cst_79 {dimension_numbers = #tpu.dot_dimension_numbers<[1], [0], [0], [1], [0, 0, 1, 1], [], []>} : vector<4x64xf32>, vector<64x64xf32>, vector<4x64xf32> -> vector<4x64xf32>
    %140 = arith.negf %139 : vector<4x64xf32>
    %141 = math.exp %140 : vector<4x64xf32>
    %cst_80 = arith.constant 1.000000e+00 : f32
    %142 = vector.broadcast %cst_80 : f32 to vector<4x64xf32>
    %143 = arith.addf %142, %141 : vector<4x64xf32>
    %144 = arith.divf %142, %143 : vector<4x64xf32>
    %c7_81 = arith.constant 7 : index
    %c0_82 = arith.constant 0 : index
    %c0_83 = arith.constant 0 : index
    %145 = vector.load %arg7[%c7_81, %c0_82, %c0_83] : memref<8x64x64xf32, #tpu.memory_space<vmem>>, vector<1x64x64xf32>
    %146 = vector.shape_cast %145 : vector<1x64x64xf32> to vector<64x64xf32>
    %cst_84 = arith.constant dense<0.000000e+00> : vector<4x64xf32>
    %147 = tpu.matmul %102, %146, %cst_84 {dimension_numbers = #tpu.dot_dimension_numbers<[1], [0], [0], [1], [0, 0, 1, 1], [], []>} : vector<4x64xf32>, vector<64x64xf32>, vector<4x64xf32> -> vector<4x64xf32>
    %cst_85 = arith.constant 0.000000e+00 : f32
    %148 = vector.broadcast %cst_85 : f32 to vector<4x64xf32>
    %149 = arith.maximumf %147, %148 : vector<4x64xf32>
    %150 = arith.subf %149, %102 : vector<4x64xf32>
    %151 = arith.mulf %144, %150 : vector<4x64xf32>
    %152 = arith.addf %102, %151 : vector<4x64xf32>
    %153 = arith.addf %41, %57 : vector<4x64xf32>
    %154 = arith.addf %153, %73 : vector<4x64xf32>
    %155 = arith.addf %154, %87 : vector<4x64xf32>
    %156 = arith.addf %155, %102 : vector<4x64xf32>
    %157 = arith.addf %156, %121 : vector<4x64xf32>
    %158 = arith.addf %157, %136 : vector<4x64xf32>
    %159 = arith.addf %158, %152 : vector<4x64xf32>
    %160 = vector.broadcast %cst : f32 to vector<4x64xf32>
    %161 = arith.mulf %159, %160 : vector<4x64xf32>
    %162 = arith.index_cast %c0_i32 : i32 to index
    %c0_86 = arith.constant 0 : index
    %c0_87 = arith.constant 0 : index
    %163 = vector.load %arg8[%162, %c0_86, %c0_87] : memref<8x4x64xf32, #tpu.memory_space<vmem>>, vector<1x4x64xf32>
    %164 = vector.shape_cast %163 : vector<1x4x64xf32> to vector<4x64xf32>
    %165 = vector.shape_cast %161 : vector<4x64xf32> to vector<1x4x64xf32>
    tpu.vector_store %arg8[%162, %c0_86, %c0_87], %165 {strides = array<i32>} : memref<8x4x64xf32, #tpu.memory_space<vmem>>, vector<1x4x64xf32>,
    %c1_i32 = arith.constant 1 : i32
    %166 = arith.index_cast %c1_i32 : i32 to index
    %c0_88 = arith.constant 0 : index
    %c0_89 = arith.constant 0 : index
    %167 = vector.load %arg0[%166, %c0_88, %c0_89] : memref<8x4x64xf32, #tpu.memory_space<vmem>>, vector<1x4x64xf32>
    %168 = vector.shape_cast %167 : vector<1x4x64xf32> to vector<4x64xf32>
    %cst_90 = arith.constant dense<0.000000e+00> : vector<4x64xf32>
    %169 = tpu.matmul %168, %0, %cst_90 {dimension_numbers = #tpu.dot_dimension_numbers<[1], [0], [0], [1], [0, 0, 1, 1], [], []>} : vector<4x64xf32>, vector<64x64xf32>, vector<4x64xf32> -> vector<4x64xf32>
    %cst_91 = arith.constant dense<0.000000e+00> : vector<4x64xf32>
    %170 = tpu.matmul %161, %2, %cst_91 {dimension_numbers = #tpu.dot_dimension_numbers<[1], [0], [0], [1], [0, 0, 1, 1], [], []>} : vector<4x64xf32>, vector<64x64xf32>, vector<4x64xf32> -> vector<4x64xf32>
    %171 = arith.addf %169, %170 : vector<4x64xf32>
    %172 = arith.negf %171 : vector<4x64xf32>
    %173 = math.exp %172 : vector<4x64xf32>
    %cst_92 = arith.constant 1.000000e+00 : f32
    %174 = vector.broadcast %cst_92 : f32 to vector<4x64xf32>
    %175 = arith.addf %174, %173 : vector<4x64xf32>
    %176 = arith.divf %174, %175 : vector<4x64xf32>
    %cst_93 = arith.constant dense<0.000000e+00> : vector<4x64xf32>
    %177 = tpu.matmul %168, %1, %cst_93 {dimension_numbers = #tpu.dot_dimension_numbers<[1], [0], [0], [1], [0, 0, 1, 1], [], []>} : vector<4x64xf32>, vector<64x64xf32>, vector<4x64xf32> -> vector<4x64xf32>
    %cst_94 = arith.constant dense<0.000000e+00> : vector<4x64xf32>
    %178 = tpu.matmul %161, %3, %cst_94 {dimension_numbers = #tpu.dot_dimension_numbers<[1], [0], [0], [1], [0, 0, 1, 1], [], []>} : vector<4x64xf32>, vector<64x64xf32>, vector<4x64xf32> -> vector<4x64xf32>
    %179 = arith.addf %177, %178 : vector<4x64xf32>
    %180 = math.tanh %179 : vector<4x64xf32>
    %181 = arith.subf %180, %161 : vector<4x64xf32>
    %182 = arith.mulf %176, %181 : vector<4x64xf32>
    %183 = arith.addf %161, %182 : vector<4x64xf32>
    %c0_95 = arith.constant 0 : index
    %c0_96 = arith.constant 0 : index
    %c0_97 = arith.constant 0 : index
    %184 = vector.load %arg6[%c0_95, %c0_96, %c0_97] : memref<8x64x64xf32, #tpu.memory_space<vmem>>, vector<1x64x64xf32>
    %185 = vector.shape_cast %184 : vector<1x64x64xf32> to vector<64x64xf32>
    %cst_98 = arith.constant dense<0.000000e+00> : vector<4x64xf32>
    %186 = tpu.matmul %183, %185, %cst_98 {dimension_numbers = #tpu.dot_dimension_numbers<[1], [0], [0], [1], [0, 0, 1, 1], [], []>} : vector<4x64xf32>, vector<64x64xf32>, vector<4x64xf32> -> vector<4x64xf32>
    %187 = arith.negf %186 : vector<4x64xf32>
    %188 = math.exp %187 : vector<4x64xf32>
    %cst_99 = arith.constant 1.000000e+00 : f32
    %189 = vector.broadcast %cst_99 : f32 to vector<4x64xf32>
    %190 = arith.addf %189, %188 : vector<4x64xf32>
    %191 = arith.divf %189, %190 : vector<4x64xf32>
    %c0_100 = arith.constant 0 : index
    %c0_101 = arith.constant 0 : index
    %c0_102 = arith.constant 0 : index
    %192 = vector.load %arg7[%c0_100, %c0_101, %c0_102] : memref<8x64x64xf32, #tpu.memory_space<vmem>>, vector<1x64x64xf32>
    %193 = vector.shape_cast %192 : vector<1x64x64xf32> to vector<64x64xf32>
    %cst_103 = arith.constant dense<0.000000e+00> : vector<4x64xf32>
    %194 = tpu.matmul %183, %193, %cst_103 {dimension_numbers = #tpu.dot_dimension_numbers<[1], [0], [0], [1], [0, 0, 1, 1], [], []>} : vector<4x64xf32>, vector<64x64xf32>, vector<4x64xf32> -> vector<4x64xf32>
    %195 = arith.negf %194 : vector<4x64xf32>
    %196 = math.exp %195 : vector<4x64xf32>
    %cst_104 = arith.constant 1.000000e+00 : f32
    %197 = vector.broadcast %cst_104 : f32 to vector<4x64xf32>
    %198 = arith.addf %197, %196 : vector<4x64xf32>
    %199 = arith.divf %197, %198 : vector<4x64xf32>
    %200 = arith.subf %199, %183 : vector<4x64xf32>
    %201 = arith.mulf %191, %200 : vector<4x64xf32>
    %202 = arith.addf %183, %201 : vector<4x64xf32>
    %c1_105 = arith.constant 1 : index
    %c0_106 = arith.constant 0 : index
    %c0_107 = arith.constant 0 : index
    %203 = vector.load %arg6[%c1_105, %c0_106, %c0_107] : memref<8x64x64xf32, #tpu.memory_space<vmem>>, vector<1x64x64xf32>
    %204 = vector.shape_cast %203 : vector<1x64x64xf32> to vector<64x64xf32>
    %cst_108 = arith.constant dense<0.000000e+00> : vector<4x64xf32>
    %205 = tpu.matmul %202, %204, %cst_108 {dimension_numbers = #tpu.dot_dimension_numbers<[1], [0], [0], [1], [0, 0, 1, 1], [], []>} : vector<4x64xf32>, vector<64x64xf32>, vector<4x64xf32> -> vector<4x64xf32>
    %206 = arith.negf %205 : vector<4x64xf32>
    %207 = math.exp %206 : vector<4x64xf32>
    %cst_109 = arith.constant 1.000000e+00 : f32
    %208 = vector.broadcast %cst_109 : f32 to vector<4x64xf32>
    %209 = arith.addf %208, %207 : vector<4x64xf32>
    %210 = arith.divf %208, %209 : vector<4x64xf32>
    %c1_110 = arith.constant 1 : index
    %c0_111 = arith.constant 0 : index
    %c0_112 = arith.constant 0 : index
    %211 = vector.load %arg7[%c1_110, %c0_111, %c0_112] : memref<8x64x64xf32, #tpu.memory_space<vmem>>, vector<1x64x64xf32>
    %212 = vector.shape_cast %211 : vector<1x64x64xf32> to vector<64x64xf32>
    %cst_113 = arith.constant dense<0.000000e+00> : vector<4x64xf32>
    %213 = tpu.matmul %202, %212, %cst_113 {dimension_numbers = #tpu.dot_dimension_numbers<[1], [0], [0], [1], [0, 0, 1, 1], [], []>} : vector<4x64xf32>, vector<64x64xf32>, vector<4x64xf32> -> vector<4x64xf32>
    %cst_114 = arith.constant 0.000000e+00 : f32
    %214 = vector.broadcast %cst_114 : f32 to vector<4x64xf32>
    %215 = arith.maximumf %213, %214 : vector<4x64xf32>
    %216 = arith.subf %215, %202 : vector<4x64xf32>
    %217 = arith.mulf %210, %216 : vector<4x64xf32>
    %218 = arith.addf %202, %217 : vector<4x64xf32>
    %c2_115 = arith.constant 2 : index
    %c0_116 = arith.constant 0 : index
    %c0_117 = arith.constant 0 : index
    %219 = vector.load %arg6[%c2_115, %c0_116, %c0_117] : memref<8x64x64xf32, #tpu.memory_space<vmem>>, vector<1x64x64xf32>
    %220 = vector.shape_cast %219 : vector<1x64x64xf32> to vector<64x64xf32>
    %cst_118 = arith.constant dense<0.000000e+00> : vector<4x64xf32>
    %221 = tpu.matmul %202, %220, %cst_118 {dimension_numbers = #tpu.dot_dimension_numbers<[1], [0], [0], [1], [0, 0, 1, 1], [], []>} : vector<4x64xf32>, vector<64x64xf32>, vector<4x64xf32> -> vector<4x64xf32>
    %222 = arith.negf %221 : vector<4x64xf32>
    %223 = math.exp %222 : vector<4x64xf32>
    %cst_119 = arith.constant 1.000000e+00 : f32
    %224 = vector.broadcast %cst_119 : f32 to vector<4x64xf32>
    %225 = arith.addf %224, %223 : vector<4x64xf32>
    %226 = arith.divf %224, %225 : vector<4x64xf32>
    %c2_120 = arith.constant 2 : index
    %c0_121 = arith.constant 0 : index
    %c0_122 = arith.constant 0 : index
    %227 = vector.load %arg7[%c2_120, %c0_121, %c0_122] : memref<8x64x64xf32, #tpu.memory_space<vmem>>, vector<1x64x64xf32>
    %228 = vector.shape_cast %227 : vector<1x64x64xf32> to vector<64x64xf32>
    %cst_123 = arith.constant dense<0.000000e+00> : vector<4x64xf32>
    %229 = tpu.matmul %202, %228, %cst_123 {dimension_numbers = #tpu.dot_dimension_numbers<[1], [0], [0], [1], [0, 0, 1, 1], [], []>} : vector<4x64xf32>, vector<64x64xf32>, vector<4x64xf32> -> vector<4x64xf32>
    %cst_124 = arith.constant 0.000000e+00 : f32
    %230 = vector.broadcast %cst_124 : f32 to vector<4x64xf32>
    %231 = arith.maximumf %229, %230 : vector<4x64xf32>
    %232 = arith.subf %231, %202 : vector<4x64xf32>
    %233 = arith.mulf %226, %232 : vector<4x64xf32>
    %234 = arith.addf %202, %233 : vector<4x64xf32>
    %c3_125 = arith.constant 3 : index
    %c0_126 = arith.constant 0 : index
    %c0_127 = arith.constant 0 : index
    %235 = vector.load %arg6[%c3_125, %c0_126, %c0_127] : memref<8x64x64xf32, #tpu.memory_space<vmem>>, vector<1x64x64xf32>
    %236 = vector.shape_cast %235 : vector<1x64x64xf32> to vector<64x64xf32>
    %cst_128 = arith.constant dense<0.000000e+00> : vector<4x64xf32>
    %237 = tpu.matmul %202, %236, %cst_128 {dimension_numbers = #tpu.dot_dimension_numbers<[1], [0], [0], [1], [0, 0, 1, 1], [], []>} : vector<4x64xf32>, vector<64x64xf32>, vector<4x64xf32> -> vector<4x64xf32>
    %238 = arith.negf %237 : vector<4x64xf32>
    %239 = math.exp %238 : vector<4x64xf32>
    %cst_129 = arith.constant 1.000000e+00 : f32
    %240 = vector.broadcast %cst_129 : f32 to vector<4x64xf32>
    %241 = arith.addf %240, %239 : vector<4x64xf32>
    %242 = arith.divf %240, %241 : vector<4x64xf32>
    %c3_130 = arith.constant 3 : index
    %c0_131 = arith.constant 0 : index
    %c0_132 = arith.constant 0 : index
    %243 = vector.load %arg7[%c3_130, %c0_131, %c0_132] : memref<8x64x64xf32, #tpu.memory_space<vmem>>, vector<1x64x64xf32>
    %244 = vector.shape_cast %243 : vector<1x64x64xf32> to vector<64x64xf32>
    %cst_133 = arith.constant dense<0.000000e+00> : vector<4x64xf32>
    %245 = tpu.matmul %202, %244, %cst_133 {dimension_numbers = #tpu.dot_dimension_numbers<[1], [0], [0], [1], [0, 0, 1, 1], [], []>} : vector<4x64xf32>, vector<64x64xf32>, vector<4x64xf32> -> vector<4x64xf32>
    %246 = arith.subf %245, %202 : vector<4x64xf32>
    %247 = arith.mulf %242, %246 : vector<4x64xf32>
    %248 = arith.addf %202, %247 : vector<4x64xf32>
    %c4_134 = arith.constant 4 : index
    %c0_135 = arith.constant 0 : index
    %c0_136 = arith.constant 0 : index
    %249 = vector.load %arg6[%c4_134, %c0_135, %c0_136] : memref<8x64x64xf32, #tpu.memory_space<vmem>>, vector<1x64x64xf32>
    %250 = vector.shape_cast %249 : vector<1x64x64xf32> to vector<64x64xf32>
    %cst_137 = arith.constant dense<0.000000e+00> : vector<4x64xf32>
    %251 = tpu.matmul %218, %250, %cst_137 {dimension_numbers = #tpu.dot_dimension_numbers<[1], [0], [0], [1], [0, 0, 1, 1], [], []>} : vector<4x64xf32>, vector<64x64xf32>, vector<4x64xf32> -> vector<4x64xf32>
    %252 = arith.negf %251 : vector<4x64xf32>
    %253 = math.exp %252 : vector<4x64xf32>
    %cst_138 = arith.constant 1.000000e+00 : f32
    %254 = vector.broadcast %cst_138 : f32 to vector<4x64xf32>
    %255 = arith.addf %254, %253 : vector<4x64xf32>
    %256 = arith.divf %254, %255 : vector<4x64xf32>
    %c4_139 = arith.constant 4 : index
    %c0_140 = arith.constant 0 : index
    %c0_141 = arith.constant 0 : index
    %257 = vector.load %arg7[%c4_139, %c0_140, %c0_141] : memref<8x64x64xf32, #tpu.memory_space<vmem>>, vector<1x64x64xf32>
    %258 = vector.shape_cast %257 : vector<1x64x64xf32> to vector<64x64xf32>
    %cst_142 = arith.constant dense<0.000000e+00> : vector<4x64xf32>
    %259 = tpu.matmul %218, %258, %cst_142 {dimension_numbers = #tpu.dot_dimension_numbers<[1], [0], [0], [1], [0, 0, 1, 1], [], []>} : vector<4x64xf32>, vector<64x64xf32>, vector<4x64xf32> -> vector<4x64xf32>
    %260 = math.tanh %259 : vector<4x64xf32>
    %261 = arith.subf %260, %218 : vector<4x64xf32>
    %262 = arith.mulf %256, %261 : vector<4x64xf32>
    %263 = arith.addf %218, %262 : vector<4x64xf32>
    %c5_143 = arith.constant 5 : index
    %c0_144 = arith.constant 0 : index
    %c0_145 = arith.constant 0 : index
    %264 = vector.load %arg6[%c5_143, %c0_144, %c0_145] : memref<8x64x64xf32, #tpu.memory_space<vmem>>, vector<1x64x64xf32>
    %265 = vector.shape_cast %264 : vector<1x64x64xf32> to vector<64x64xf32>
    %cst_146 = arith.constant dense<0.000000e+00> : vector<4x64xf32>
    %266 = tpu.matmul %263, %265, %cst_146 {dimension_numbers = #tpu.dot_dimension_numbers<[1], [0], [0], [1], [0, 0, 1, 1], [], []>} : vector<4x64xf32>, vector<64x64xf32>, vector<4x64xf32> -> vector<4x64xf32>
    %267 = arith.negf %266 : vector<4x64xf32>
    %268 = math.exp %267 : vector<4x64xf32>
    %cst_147 = arith.constant 1.000000e+00 : f32
    %269 = vector.broadcast %cst_147 : f32 to vector<4x64xf32>
    %270 = arith.addf %269, %268 : vector<4x64xf32>
    %271 = arith.divf %269, %270 : vector<4x64xf32>
    %c5_148 = arith.constant 5 : index
    %c0_149 = arith.constant 0 : index
    %c0_150 = arith.constant 0 : index
    %272 = vector.load %arg7[%c5_148, %c0_149, %c0_150] : memref<8x64x64xf32, #tpu.memory_space<vmem>>, vector<1x64x64xf32>
    %273 = vector.shape_cast %272 : vector<1x64x64xf32> to vector<64x64xf32>
    %cst_151 = arith.constant dense<0.000000e+00> : vector<4x64xf32>
    %274 = tpu.matmul %263, %273, %cst_151 {dimension_numbers = #tpu.dot_dimension_numbers<[1], [0], [0], [1], [0, 0, 1, 1], [], []>} : vector<4x64xf32>, vector<64x64xf32>, vector<4x64xf32> -> vector<4x64xf32>
    %275 = arith.negf %274 : vector<4x64xf32>
    %276 = math.exp %275 : vector<4x64xf32>
    %cst_152 = arith.constant 1.000000e+00 : f32
    %277 = vector.broadcast %cst_152 : f32 to vector<4x64xf32>
    %278 = arith.addf %277, %276 : vector<4x64xf32>
    %279 = arith.divf %277, %278 : vector<4x64xf32>
    %280 = arith.subf %279, %263 : vector<4x64xf32>
    %281 = arith.mulf %271, %280 : vector<4x64xf32>
    %282 = arith.addf %263, %281 : vector<4x64xf32>
    %c6_153 = arith.constant 6 : index
    %c0_154 = arith.constant 0 : index
    %c0_155 = arith.constant 0 : index
    %283 = vector.load %arg6[%c6_153, %c0_154, %c0_155] : memref<8x64x64xf32, #tpu.memory_space<vmem>>, vector<1x64x64xf32>
    %284 = vector.shape_cast %283 : vector<1x64x64xf32> to vector<64x64xf32>
    %cst_156 = arith.constant dense<0.000000e+00> : vector<4x64xf32>
    %285 = tpu.matmul %234, %284, %cst_156 {dimension_numbers = #tpu.dot_dimension_numbers<[1], [0], [0], [1], [0, 0, 1, 1], [], []>} : vector<4x64xf32>, vector<64x64xf32>, vector<4x64xf32> -> vector<4x64xf32>
    %286 = arith.negf %285 : vector<4x64xf32>
    %287 = math.exp %286 : vector<4x64xf32>
    %cst_157 = arith.constant 1.000000e+00 : f32
    %288 = vector.broadcast %cst_157 : f32 to vector<4x64xf32>
    %289 = arith.addf %288, %287 : vector<4x64xf32>
    %290 = arith.divf %288, %289 : vector<4x64xf32>
    %c6_158 = arith.constant 6 : index
    %c0_159 = arith.constant 0 : index
    %c0_160 = arith.constant 0 : index
    %291 = vector.load %arg7[%c6_158, %c0_159, %c0_160] : memref<8x64x64xf32, #tpu.memory_space<vmem>>, vector<1x64x64xf32>
    %292 = vector.shape_cast %291 : vector<1x64x64xf32> to vector<64x64xf32>
    %cst_161 = arith.constant dense<0.000000e+00> : vector<4x64xf32>
    %293 = tpu.matmul %234, %292, %cst_161 {dimension_numbers = #tpu.dot_dimension_numbers<[1], [0], [0], [1], [0, 0, 1, 1], [], []>} : vector<4x64xf32>, vector<64x64xf32>, vector<4x64xf32> -> vector<4x64xf32>
    %294 = math.tanh %293 : vector<4x64xf32>
    %295 = arith.subf %294, %234 : vector<4x64xf32>
    %296 = arith.mulf %290, %295 : vector<4x64xf32>
    %297 = arith.addf %234, %296 : vector<4x64xf32>
    %c7_162 = arith.constant 7 : index
    %c0_163 = arith.constant 0 : index
    %c0_164 = arith.constant 0 : index
    %298 = vector.load %arg6[%c7_162, %c0_163, %c0_164] : memref<8x64x64xf32, #tpu.memory_space<vmem>>, vector<1x64x64xf32>
    %299 = vector.shape_cast %298 : vector<1x64x64xf32> to vector<64x64xf32>
    %cst_165 = arith.constant dense<0.000000e+00> : vector<4x64xf32>
    %300 = tpu.matmul %263, %299, %cst_165 {dimension_numbers = #tpu.dot_dimension_numbers<[1], [0], [0], [1], [0, 0, 1, 1], [], []>} : vector<4x64xf32>, vector<64x64xf32>, vector<4x64xf32> -> vector<4x64xf32>
    %301 = arith.negf %300 : vector<4x64xf32>
    %302 = math.exp %301 : vector<4x64xf32>
    %cst_166 = arith.constant 1.000000e+00 : f32
    %303 = vector.broadcast %cst_166 : f32 to vector<4x64xf32>
    %304 = arith.addf %303, %302 : vector<4x64xf32>
    %305 = arith.divf %303, %304 : vector<4x64xf32>
    %c7_167 = arith.constant 7 : index
    %c0_168 = arith.constant 0 : index
    %c0_169 = arith.constant 0 : index
    %306 = vector.load %arg7[%c7_167, %c0_168, %c0_169] : memref<8x64x64xf32, #tpu.memory_space<vmem>>, vector<1x64x64xf32>
    %307 = vector.shape_cast %306 : vector<1x64x64xf32> to vector<64x64xf32>
    %cst_170 = arith.constant dense<0.000000e+00> : vector<4x64xf32>
    %308 = tpu.matmul %263, %307, %cst_170 {dimension_numbers = #tpu.dot_dimension_numbers<[1], [0], [0], [1], [0, 0, 1, 1], [], []>} : vector<4x64xf32>, vector<64x64xf32>, vector<4x64xf32> -> vector<4x64xf32>
    %cst_171 = arith.constant 0.000000e+00 : f32
    %309 = vector.broadcast %cst_171 : f32 to vector<4x64xf32>
    %310 = arith.maximumf %308, %309 : vector<4x64xf32>
    %311 = arith.subf %310, %263 : vector<4x64xf32>
    %312 = arith.mulf %305, %311 : vector<4x64xf32>
    %313 = arith.addf %263, %312 : vector<4x64xf32>
    %314 = arith.addf %202, %218 : vector<4x64xf32>
    %315 = arith.addf %314, %234 : vector<4x64xf32>
    %316 = arith.addf %315, %248 : vector<4x64xf32>
    %317 = arith.addf %316, %263 : vector<4x64xf32>
    %318 = arith.addf %317, %282 : vector<4x64xf32>
    %319 = arith.addf %318, %297 : vector<4x64xf32>
    %320 = arith.addf %319, %313 : vector<4x64xf32>
    %321 = vector.broadcast %cst : f32 to vector<4x64xf32>
    %322 = arith.mulf %320, %321 : vector<4x64xf32>
    %323 = arith.index_cast %c1_i32 : i32 to index
    %c0_172 = arith.constant 0 : index
    %c0_173 = arith.constant 0 : index
    %324 = vector.load %arg8[%323, %c0_172, %c0_173] : memref<8x4x64xf32, #tpu.memory_space<vmem>>, vector<1x4x64xf32>
    %325 = vector.shape_cast %324 : vector<1x4x64xf32> to vector<4x64xf32>
    %326 = vector.shape_cast %322 : vector<4x64xf32> to vector<1x4x64xf32>
    tpu.vector_store %arg8[%323, %c0_172, %c0_173], %326 {strides = array<i32>} : memref<8x4x64xf32, #tpu.memory_space<vmem>>, vector<1x4x64xf32>,
    %c2_i32 = arith.constant 2 : i32
    %327 = arith.index_cast %c2_i32 : i32 to index
    %c0_174 = arith.constant 0 : index
    %c0_175 = arith.constant 0 : index
    %328 = vector.load %arg0[%327, %c0_174, %c0_175] : memref<8x4x64xf32, #tpu.memory_space<vmem>>, vector<1x4x64xf32>
    %329 = vector.shape_cast %328 : vector<1x4x64xf32> to vector<4x64xf32>
    %cst_176 = arith.constant dense<0.000000e+00> : vector<4x64xf32>
    %330 = tpu.matmul %329, %0, %cst_176 {dimension_numbers = #tpu.dot_dimension_numbers<[1], [0], [0], [1], [0, 0, 1, 1], [], []>} : vector<4x64xf32>, vector<64x64xf32>, vector<4x64xf32> -> vector<4x64xf32>
    %cst_177 = arith.constant dense<0.000000e+00> : vector<4x64xf32>
    %331 = tpu.matmul %322, %2, %cst_177 {dimension_numbers = #tpu.dot_dimension_numbers<[1], [0], [0], [1], [0, 0, 1, 1], [], []>} : vector<4x64xf32>, vector<64x64xf32>, vector<4x64xf32> -> vector<4x64xf32>
    %332 = arith.addf %330, %331 : vector<4x64xf32>
    %333 = arith.negf %332 : vector<4x64xf32>
    %334 = math.exp %333 : vector<4x64xf32>
    %cst_178 = arith.constant 1.000000e+00 : f32
    %335 = vector.broadcast %cst_178 : f32 to vector<4x64xf32>
    %336 = arith.addf %335, %334 : vector<4x64xf32>
    %337 = arith.divf %335, %336 : vector<4x64xf32>
    %cst_179 = arith.constant dense<0.000000e+00> : vector<4x64xf32>
    %338 = tpu.matmul %329, %1, %cst_179 {dimension_numbers = #tpu.dot_dimension_numbers<[1], [0], [0], [1], [0, 0, 1, 1], [], []>} : vector<4x64xf32>, vector<64x64xf32>, vector<4x64xf32> -> vector<4x64xf32>
    %cst_180 = arith.constant dense<0.000000e+00> : vector<4x64xf32>
    %339 = tpu.matmul %322, %3, %cst_180 {dimension_numbers = #tpu.dot_dimension_numbers<[1], [0], [0], [1], [0, 0, 1, 1], [], []>} : vector<4x64xf32>, vector<64x64xf32>, vector<4x64xf32> -> vector<4x64xf32>
    %340 = arith.addf %338, %339 : vector<4x64xf32>
    %341 = math.tanh %340 : vector<4x64xf32>
    %342 = arith.subf %341, %322 : vector<4x64xf32>
    %343 = arith.mulf %337, %342 : vector<4x64xf32>
    %344 = arith.addf %322, %343 : vector<4x64xf32>
    %c0_181 = arith.constant 0 : index
    %c0_182 = arith.constant 0 : index
    %c0_183 = arith.constant 0 : index
    %345 = vector.load %arg6[%c0_181, %c0_182, %c0_183] : memref<8x64x64xf32, #tpu.memory_space<vmem>>, vector<1x64x64xf32>
    %346 = vector.shape_cast %345 : vector<1x64x64xf32> to vector<64x64xf32>
    %cst_184 = arith.constant dense<0.000000e+00> : vector<4x64xf32>
    %347 = tpu.matmul %344, %346, %cst_184 {dimension_numbers = #tpu.dot_dimension_numbers<[1], [0], [0], [1], [0, 0, 1, 1], [], []>} : vector<4x64xf32>, vector<64x64xf32>, vector<4x64xf32> -> vector<4x64xf32>
    %348 = arith.negf %347 : vector<4x64xf32>
    %349 = math.exp %348 : vector<4x64xf32>
    %cst_185 = arith.constant 1.000000e+00 : f32
    %350 = vector.broadcast %cst_185 : f32 to vector<4x64xf32>
    %351 = arith.addf %350, %349 : vector<4x64xf32>
    %352 = arith.divf %350, %351 : vector<4x64xf32>
    %c0_186 = arith.constant 0 : index
    %c0_187 = arith.constant 0 : index
    %c0_188 = arith.constant 0 : index
    %353 = vector.load %arg7[%c0_186, %c0_187, %c0_188] : memref<8x64x64xf32, #tpu.memory_space<vmem>>, vector<1x64x64xf32>
    %354 = vector.shape_cast %353 : vector<1x64x64xf32> to vector<64x64xf32>
    %cst_189 = arith.constant dense<0.000000e+00> : vector<4x64xf32>
    %355 = tpu.matmul %344, %354, %cst_189 {dimension_numbers = #tpu.dot_dimension_numbers<[1], [0], [0], [1], [0, 0, 1, 1], [], []>} : vector<4x64xf32>, vector<64x64xf32>, vector<4x64xf32> -> vector<4x64xf32>
    %356 = arith.negf %355 : vector<4x64xf32>
    %357 = math.exp %356 : vector<4x64xf32>
    %cst_190 = arith.constant 1.000000e+00 : f32
    %358 = vector.broadcast %cst_190 : f32 to vector<4x64xf32>
    %359 = arith.addf %358, %357 : vector<4x64xf32>
    %360 = arith.divf %358, %359 : vector<4x64xf32>
    %361 = arith.subf %360, %344 : vector<4x64xf32>
    %362 = arith.mulf %352, %361 : vector<4x64xf32>
    %363 = arith.addf %344, %362 : vector<4x64xf32>
    %c1_191 = arith.constant 1 : index
    %c0_192 = arith.constant 0 : index
    %c0_193 = arith.constant 0 : index
    %364 = vector.load %arg6[%c1_191, %c0_192, %c0_193] : memref<8x64x64xf32, #tpu.memory_space<vmem>>, vector<1x64x64xf32>
    %365 = vector.shape_cast %364 : vector<1x64x64xf32> to vector<64x64xf32>
    %cst_194 = arith.constant dense<0.000000e+00> : vector<4x64xf32>
    %366 = tpu.matmul %363, %365, %cst_194 {dimension_numbers = #tpu.dot_dimension_numbers<[1], [0], [0], [1], [0, 0, 1, 1], [], []>} : vector<4x64xf32>, vector<64x64xf32>, vector<4x64xf32> -> vector<4x64xf32>
    %367 = arith.negf %366 : vector<4x64xf32>
    %368 = math.exp %367 : vector<4x64xf32>
    %cst_195 = arith.constant 1.000000e+00 : f32
    %369 = vector.broadcast %cst_195 : f32 to vector<4x64xf32>
    %370 = arith.addf %369, %368 : vector<4x64xf32>
    %371 = arith.divf %369, %370 : vector<4x64xf32>
    %c1_196 = arith.constant 1 : index
    %c0_197 = arith.constant 0 : index
    %c0_198 = arith.constant 0 : index
    %372 = vector.load %arg7[%c1_196, %c0_197, %c0_198] : memref<8x64x64xf32, #tpu.memory_space<vmem>>, vector<1x64x64xf32>
    %373 = vector.shape_cast %372 : vector<1x64x64xf32> to vector<64x64xf32>
    %cst_199 = arith.constant dense<0.000000e+00> : vector<4x64xf32>
    %374 = tpu.matmul %363, %373, %cst_199 {dimension_numbers = #tpu.dot_dimension_numbers<[1], [0], [0], [1], [0, 0, 1, 1], [], []>} : vector<4x64xf32>, vector<64x64xf32>, vector<4x64xf32> -> vector<4x64xf32>
    %cst_200 = arith.constant 0.000000e+00 : f32
    %375 = vector.broadcast %cst_200 : f32 to vector<4x64xf32>
    %376 = arith.maximumf %374, %375 : vector<4x64xf32>
    %377 = arith.subf %376, %363 : vector<4x64xf32>
    %378 = arith.mulf %371, %377 : vector<4x64xf32>
    %379 = arith.addf %363, %378 : vector<4x64xf32>
    %c2_201 = arith.constant 2 : index
    %c0_202 = arith.constant 0 : index
    %c0_203 = arith.constant 0 : index
    %380 = vector.load %arg6[%c2_201, %c0_202, %c0_203] : memref<8x64x64xf32, #tpu.memory_space<vmem>>, vector<1x64x64xf32>
    %381 = vector.shape_cast %380 : vector<1x64x64xf32> to vector<64x64xf32>
    %cst_204 = arith.constant dense<0.000000e+00> : vector<4x64xf32>
    %382 = tpu.matmul %363, %381, %cst_204 {dimension_numbers = #tpu.dot_dimension_numbers<[1], [0], [0], [1], [0, 0, 1, 1], [], []>} : vector<4x64xf32>, vector<64x64xf32>, vector<4x64xf32> -> vector<4x64xf32>
    %383 = arith.negf %382 : vector<4x64xf32>
    %384 = math.exp %383 : vector<4x64xf32>
    %cst_205 = arith.constant 1.000000e+00 : f32
    %385 = vector.broadcast %cst_205 : f32 to vector<4x64xf32>
    %386 = arith.addf %385, %384 : vector<4x64xf32>
    %387 = arith.divf %385, %386 : vector<4x64xf32>
    %c2_206 = arith.constant 2 : index
    %c0_207 = arith.constant 0 : index
    %c0_208 = arith.constant 0 : index
    %388 = vector.load %arg7[%c2_206, %c0_207, %c0_208] : memref<8x64x64xf32, #tpu.memory_space<vmem>>, vector<1x64x64xf32>
    %389 = vector.shape_cast %388 : vector<1x64x64xf32> to vector<64x64xf32>
    %cst_209 = arith.constant dense<0.000000e+00> : vector<4x64xf32>
    %390 = tpu.matmul %363, %389, %cst_209 {dimension_numbers = #tpu.dot_dimension_numbers<[1], [0], [0], [1], [0, 0, 1, 1], [], []>} : vector<4x64xf32>, vector<64x64xf32>, vector<4x64xf32> -> vector<4x64xf32>
    %cst_210 = arith.constant 0.000000e+00 : f32
    %391 = vector.broadcast %cst_210 : f32 to vector<4x64xf32>
    %392 = arith.maximumf %390, %391 : vector<4x64xf32>
    %393 = arith.subf %392, %363 : vector<4x64xf32>
    %394 = arith.mulf %387, %393 : vector<4x64xf32>
    %395 = arith.addf %363, %394 : vector<4x64xf32>
    %c3_211 = arith.constant 3 : index
    %c0_212 = arith.constant 0 : index
    %c0_213 = arith.constant 0 : index
    %396 = vector.load %arg6[%c3_211, %c0_212, %c0_213] : memref<8x64x64xf32, #tpu.memory_space<vmem>>, vector<1x64x64xf32>
    %397 = vector.shape_cast %396 : vector<1x64x64xf32> to vector<64x64xf32>
    %cst_214 = arith.constant dense<0.000000e+00> : vector<4x64xf32>
    %398 = tpu.matmul %363, %397, %cst_214 {dimension_numbers = #tpu.dot_dimension_numbers<[1], [0], [0], [1], [0, 0, 1, 1], [], []>} : vector<4x64xf32>, vector<64x64xf32>, vector<4x64xf32> -> vector<4x64xf32>
    %399 = arith.negf %398 : vector<4x64xf32>
    %400 = math.exp %399 : vector<4x64xf32>
    %cst_215 = arith.constant 1.000000e+00 : f32
    %401 = vector.broadcast %cst_215 : f32 to vector<4x64xf32>
    %402 = arith.addf %401, %400 : vector<4x64xf32>
    %403 = arith.divf %401, %402 : vector<4x64xf32>
    %c3_216 = arith.constant 3 : index
    %c0_217 = arith.constant 0 : index
    %c0_218 = arith.constant 0 : index
    %404 = vector.load %arg7[%c3_216, %c0_217, %c0_218] : memref<8x64x64xf32, #tpu.memory_space<vmem>>, vector<1x64x64xf32>
    %405 = vector.shape_cast %404 : vector<1x64x64xf32> to vector<64x64xf32>
    %cst_219 = arith.constant dense<0.000000e+00> : vector<4x64xf32>
    %406 = tpu.matmul %363, %405, %cst_219 {dimension_numbers = #tpu.dot_dimension_numbers<[1], [0], [0], [1], [0, 0, 1, 1], [], []>} : vector<4x64xf32>, vector<64x64xf32>, vector<4x64xf32> -> vector<4x64xf32>
    %407 = arith.subf %406, %363 : vector<4x64xf32>
    %408 = arith.mulf %403, %407 : vector<4x64xf32>
    %409 = arith.addf %363, %408 : vector<4x64xf32>
    %c4_220 = arith.constant 4 : index
    %c0_221 = arith.constant 0 : index
    %c0_222 = arith.constant 0 : index
    %410 = vector.load %arg6[%c4_220, %c0_221, %c0_222] : memref<8x64x64xf32, #tpu.memory_space<vmem>>, vector<1x64x64xf32>
    %411 = vector.shape_cast %410 : vector<1x64x64xf32> to vector<64x64xf32>
    %cst_223 = arith.constant dense<0.000000e+00> : vector<4x64xf32>
    %412 = tpu.matmul %379, %411, %cst_223 {dimension_numbers = #tpu.dot_dimension_numbers<[1], [0], [0], [1], [0, 0, 1, 1], [], []>} : vector<4x64xf32>, vector<64x64xf32>, vector<4x64xf32> -> vector<4x64xf32>
    %413 = arith.negf %412 : vector<4x64xf32>
    %414 = math.exp %413 : vector<4x64xf32>
    %cst_224 = arith.constant 1.000000e+00 : f32
    %415 = vector.broadcast %cst_224 : f32 to vector<4x64xf32>
    %416 = arith.addf %415, %414 : vector<4x64xf32>
    %417 = arith.divf %415, %416 : vector<4x64xf32>
    %c4_225 = arith.constant 4 : index
    %c0_226 = arith.constant 0 : index
    %c0_227 = arith.constant 0 : index
    %418 = vector.load %arg7[%c4_225, %c0_226, %c0_227] : memref<8x64x64xf32, #tpu.memory_space<vmem>>, vector<1x64x64xf32>
    %419 = vector.shape_cast %418 : vector<1x64x64xf32> to vector<64x64xf32>
    %cst_228 = arith.constant dense<0.000000e+00> : vector<4x64xf32>
    %420 = tpu.matmul %379, %419, %cst_228 {dimension_numbers = #tpu.dot_dimension_numbers<[1], [0], [0], [1], [0, 0, 1, 1], [], []>} : vector<4x64xf32>, vector<64x64xf32>, vector<4x64xf32> -> vector<4x64xf32>
    %421 = math.tanh %420 : vector<4x64xf32>
    %422 = arith.subf %421, %379 : vector<4x64xf32>
    %423 = arith.mulf %417, %422 : vector<4x64xf32>
    %424 = arith.addf %379, %423 : vector<4x64xf32>
    %c5_229 = arith.constant 5 : index
    %c0_230 = arith.constant 0 : index
    %c0_231 = arith.constant 0 : index
    %425 = vector.load %arg6[%c5_229, %c0_230, %c0_231] : memref<8x64x64xf32, #tpu.memory_space<vmem>>, vector<1x64x64xf32>
    %426 = vector.shape_cast %425 : vector<1x64x64xf32> to vector<64x64xf32>
    %cst_232 = arith.constant dense<0.000000e+00> : vector<4x64xf32>
    %427 = tpu.matmul %424, %426, %cst_232 {dimension_numbers = #tpu.dot_dimension_numbers<[1], [0], [0], [1], [0, 0, 1, 1], [], []>} : vector<4x64xf32>, vector<64x64xf32>, vector<4x64xf32> -> vector<4x64xf32>
    %428 = arith.negf %427 : vector<4x64xf32>
    %429 = math.exp %428 : vector<4x64xf32>
    %cst_233 = arith.constant 1.000000e+00 : f32
    %430 = vector.broadcast %cst_233 : f32 to vector<4x64xf32>
    %431 = arith.addf %430, %429 : vector<4x64xf32>
    %432 = arith.divf %430, %431 : vector<4x64xf32>
    %c5_234 = arith.constant 5 : index
    %c0_235 = arith.constant 0 : index
    %c0_236 = arith.constant 0 : index
    %433 = vector.load %arg7[%c5_234, %c0_235, %c0_236] : memref<8x64x64xf32, #tpu.memory_space<vmem>>, vector<1x64x64xf32>
    %434 = vector.shape_cast %433 : vector<1x64x64xf32> to vector<64x64xf32>
    %cst_237 = arith.constant dense<0.000000e+00> : vector<4x64xf32>
    %435 = tpu.matmul %424, %434, %cst_237 {dimension_numbers = #tpu.dot_dimension_numbers<[1], [0], [0], [1], [0, 0, 1, 1], [], []>} : vector<4x64xf32>, vector<64x64xf32>, vector<4x64xf32> -> vector<4x64xf32>
    %436 = arith.negf %435 : vector<4x64xf32>
    %437 = math.exp %436 : vector<4x64xf32>
    %cst_238 = arith.constant 1.000000e+00 : f32
    %438 = vector.broadcast %cst_238 : f32 to vector<4x64xf32>
    %439 = arith.addf %438, %437 : vector<4x64xf32>
    %440 = arith.divf %438, %439 : vector<4x64xf32>
    %441 = arith.subf %440, %424 : vector<4x64xf32>
    %442 = arith.mulf %432, %441 : vector<4x64xf32>
    %443 = arith.addf %424, %442 : vector<4x64xf32>
    %c6_239 = arith.constant 6 : index
    %c0_240 = arith.constant 0 : index
    %c0_241 = arith.constant 0 : index
    %444 = vector.load %arg6[%c6_239, %c0_240, %c0_241] : memref<8x64x64xf32, #tpu.memory_space<vmem>>, vector<1x64x64xf32>
    %445 = vector.shape_cast %444 : vector<1x64x64xf32> to vector<64x64xf32>
    %cst_242 = arith.constant dense<0.000000e+00> : vector<4x64xf32>
    %446 = tpu.matmul %395, %445, %cst_242 {dimension_numbers = #tpu.dot_dimension_numbers<[1], [0], [0], [1], [0, 0, 1, 1], [], []>} : vector<4x64xf32>, vector<64x64xf32>, vector<4x64xf32> -> vector<4x64xf32>
    %447 = arith.negf %446 : vector<4x64xf32>
    %448 = math.exp %447 : vector<4x64xf32>
    %cst_243 = arith.constant 1.000000e+00 : f32
    %449 = vector.broadcast %cst_243 : f32 to vector<4x64xf32>
    %450 = arith.addf %449, %448 : vector<4x64xf32>
    %451 = arith.divf %449, %450 : vector<4x64xf32>
    %c6_244 = arith.constant 6 : index
    %c0_245 = arith.constant 0 : index
    %c0_246 = arith.constant 0 : index
    %452 = vector.load %arg7[%c6_244, %c0_245, %c0_246] : memref<8x64x64xf32, #tpu.memory_space<vmem>>, vector<1x64x64xf32>
    %453 = vector.shape_cast %452 : vector<1x64x64xf32> to vector<64x64xf32>
    %cst_247 = arith.constant dense<0.000000e+00> : vector<4x64xf32>
    %454 = tpu.matmul %395, %453, %cst_247 {dimension_numbers = #tpu.dot_dimension_numbers<[1], [0], [0], [1], [0, 0, 1, 1], [], []>} : vector<4x64xf32>, vector<64x64xf32>, vector<4x64xf32> -> vector<4x64xf32>
    %455 = math.tanh %454 : vector<4x64xf32>
    %456 = arith.subf %455, %395 : vector<4x64xf32>
    %457 = arith.mulf %451, %456 : vector<4x64xf32>
    %458 = arith.addf %395, %457 : vector<4x64xf32>
    %c7_248 = arith.constant 7 : index
    %c0_249 = arith.constant 0 : index
    %c0_250 = arith.constant 0 : index
    %459 = vector.load %arg6[%c7_248, %c0_249, %c0_250] : memref<8x64x64xf32, #tpu.memory_space<vmem>>, vector<1x64x64xf32>
    %460 = vector.shape_cast %459 : vector<1x64x64xf32> to vector<64x64xf32>
    %cst_251 = arith.constant dense<0.000000e+00> : vector<4x64xf32>
    %461 = tpu.matmul %424, %460, %cst_251 {dimension_numbers = #tpu.dot_dimension_numbers<[1], [0], [0], [1], [0, 0, 1, 1], [], []>} : vector<4x64xf32>, vector<64x64xf32>, vector<4x64xf32> -> vector<4x64xf32>
    %462 = arith.negf %461 : vector<4x64xf32>
    %463 = math.exp %462 : vector<4x64xf32>
    %cst_252 = arith.constant 1.000000e+00 : f32
    %464 = vector.broadcast %cst_252 : f32 to vector<4x64xf32>
    %465 = arith.addf %464, %463 : vector<4x64xf32>
    %466 = arith.divf %464, %465 : vector<4x64xf32>
    %c7_253 = arith.constant 7 : index
    %c0_254 = arith.constant 0 : index
    %c0_255 = arith.constant 0 : index
    %467 = vector.load %arg7[%c7_253, %c0_254, %c0_255] : memref<8x64x64xf32, #tpu.memory_space<vmem>>, vector<1x64x64xf32>
    %468 = vector.shape_cast %467 : vector<1x64x64xf32> to vector<64x64xf32>
    %cst_256 = arith.constant dense<0.000000e+00> : vector<4x64xf32>
    %469 = tpu.matmul %424, %468, %cst_256 {dimension_numbers = #tpu.dot_dimension_numbers<[1], [0], [0], [1], [0, 0, 1, 1], [], []>} : vector<4x64xf32>, vector<64x64xf32>, vector<4x64xf32> -> vector<4x64xf32>
    %cst_257 = arith.constant 0.000000e+00 : f32
    %470 = vector.broadcast %cst_257 : f32 to vector<4x64xf32>
    %471 = arith.maximumf %469, %470 : vector<4x64xf32>
    %472 = arith.subf %471, %424 : vector<4x64xf32>
    %473 = arith.mulf %466, %472 : vector<4x64xf32>
    %474 = arith.addf %424, %473 : vector<4x64xf32>
    %475 = arith.addf %363, %379 : vector<4x64xf32>
    %476 = arith.addf %475, %395 : vector<4x64xf32>
    %477 = arith.addf %476, %409 : vector<4x64xf32>
    %478 = arith.addf %477, %424 : vector<4x64xf32>
    %479 = arith.addf %478, %443 : vector<4x64xf32>
    %480 = arith.addf %479, %458 : vector<4x64xf32>
    %481 = arith.addf %480, %474 : vector<4x64xf32>
    %482 = vector.broadcast %cst : f32 to vector<4x64xf32>
    %483 = arith.mulf %481, %482 : vector<4x64xf32>
    %484 = arith.index_cast %c2_i32 : i32 to index
    %c0_258 = arith.constant 0 : index
    %c0_259 = arith.constant 0 : index
    %485 = vector.load %arg8[%484, %c0_258, %c0_259] : memref<8x4x64xf32, #tpu.memory_space<vmem>>, vector<1x4x64xf32>
    %486 = vector.shape_cast %485 : vector<1x4x64xf32> to vector<4x64xf32>
    %487 = vector.shape_cast %483 : vector<4x64xf32> to vector<1x4x64xf32>
    tpu.vector_store %arg8[%484, %c0_258, %c0_259], %487 {strides = array<i32>} : memref<8x4x64xf32, #tpu.memory_space<vmem>>, vector<1x4x64xf32>,
    %c3_i32 = arith.constant 3 : i32
    %488 = arith.index_cast %c3_i32 : i32 to index
    %c0_260 = arith.constant 0 : index
    %c0_261 = arith.constant 0 : index
    %489 = vector.load %arg0[%488, %c0_260, %c0_261] : memref<8x4x64xf32, #tpu.memory_space<vmem>>, vector<1x4x64xf32>
    %490 = vector.shape_cast %489 : vector<1x4x64xf32> to vector<4x64xf32>
    %cst_262 = arith.constant dense<0.000000e+00> : vector<4x64xf32>
    %491 = tpu.matmul %490, %0, %cst_262 {dimension_numbers = #tpu.dot_dimension_numbers<[1], [0], [0], [1], [0, 0, 1, 1], [], []>} : vector<4x64xf32>, vector<64x64xf32>, vector<4x64xf32> -> vector<4x64xf32>
    %cst_263 = arith.constant dense<0.000000e+00> : vector<4x64xf32>
    %492 = tpu.matmul %483, %2, %cst_263 {dimension_numbers = #tpu.dot_dimension_numbers<[1], [0], [0], [1], [0, 0, 1, 1], [], []>} : vector<4x64xf32>, vector<64x64xf32>, vector<4x64xf32> -> vector<4x64xf32>
    %493 = arith.addf %491, %492 : vector<4x64xf32>
    %494 = arith.negf %493 : vector<4x64xf32>
    %495 = math.exp %494 : vector<4x64xf32>
    %cst_264 = arith.constant 1.000000e+00 : f32
    %496 = vector.broadcast %cst_264 : f32 to vector<4x64xf32>
    %497 = arith.addf %496, %495 : vector<4x64xf32>
    %498 = arith.divf %496, %497 : vector<4x64xf32>
    %cst_265 = arith.constant dense<0.000000e+00> : vector<4x64xf32>
    %499 = tpu.matmul %490, %1, %cst_265 {dimension_numbers = #tpu.dot_dimension_numbers<[1], [0], [0], [1], [0, 0, 1, 1], [], []>} : vector<4x64xf32>, vector<64x64xf32>, vector<4x64xf32> -> vector<4x64xf32>
    %cst_266 = arith.constant dense<0.000000e+00> : vector<4x64xf32>
    %500 = tpu.matmul %483, %3, %cst_266 {dimension_numbers = #tpu.dot_dimension_numbers<[1], [0], [0], [1], [0, 0, 1, 1], [], []>} : vector<4x64xf32>, vector<64x64xf32>, vector<4x64xf32> -> vector<4x64xf32>
    %501 = arith.addf %499, %500 : vector<4x64xf32>
    %502 = math.tanh %501 : vector<4x64xf32>
    %503 = arith.subf %502, %483 : vector<4x64xf32>
    %504 = arith.mulf %498, %503 : vector<4x64xf32>
    %505 = arith.addf %483, %504 : vector<4x64xf32>
    %c0_267 = arith.constant 0 : index
    %c0_268 = arith.constant 0 : index
    %c0_269 = arith.constant 0 : index
    %506 = vector.load %arg6[%c0_267, %c0_268, %c0_269] : memref<8x64x64xf32, #tpu.memory_space<vmem>>, vector<1x64x64xf32>
    %507 = vector.shape_cast %506 : vector<1x64x64xf32> to vector<64x64xf32>
    %cst_270 = arith.constant dense<0.000000e+00> : vector<4x64xf32>
    %508 = tpu.matmul %505, %507, %cst_270 {dimension_numbers = #tpu.dot_dimension_numbers<[1], [0], [0], [1], [0, 0, 1, 1], [], []>} : vector<4x64xf32>, vector<64x64xf32>, vector<4x64xf32> -> vector<4x64xf32>
    %509 = arith.negf %508 : vector<4x64xf32>
    %510 = math.exp %509 : vector<4x64xf32>
    %cst_271 = arith.constant 1.000000e+00 : f32
    %511 = vector.broadcast %cst_271 : f32 to vector<4x64xf32>
    %512 = arith.addf %511, %510 : vector<4x64xf32>
    %513 = arith.divf %511, %512 : vector<4x64xf32>
    %c0_272 = arith.constant 0 : index
    %c0_273 = arith.constant 0 : index
    %c0_274 = arith.constant 0 : index
    %514 = vector.load %arg7[%c0_272, %c0_273, %c0_274] : memref<8x64x64xf32, #tpu.memory_space<vmem>>, vector<1x64x64xf32>
    %515 = vector.shape_cast %514 : vector<1x64x64xf32> to vector<64x64xf32>
    %cst_275 = arith.constant dense<0.000000e+00> : vector<4x64xf32>
    %516 = tpu.matmul %505, %515, %cst_275 {dimension_numbers = #tpu.dot_dimension_numbers<[1], [0], [0], [1], [0, 0, 1, 1], [], []>} : vector<4x64xf32>, vector<64x64xf32>, vector<4x64xf32> -> vector<4x64xf32>
    %517 = arith.negf %516 : vector<4x64xf32>
    %518 = math.exp %517 : vector<4x64xf32>
    %cst_276 = arith.constant 1.000000e+00 : f32
    %519 = vector.broadcast %cst_276 : f32 to vector<4x64xf32>
    %520 = arith.addf %519, %518 : vector<4x64xf32>
    %521 = arith.divf %519, %520 : vector<4x64xf32>
    %522 = arith.subf %521, %505 : vector<4x64xf32>
    %523 = arith.mulf %513, %522 : vector<4x64xf32>
    %524 = arith.addf %505, %523 : vector<4x64xf32>
    %c1_277 = arith.constant 1 : index
    %c0_278 = arith.constant 0 : index
    %c0_279 = arith.constant 0 : index
    %525 = vector.load %arg6[%c1_277, %c0_278, %c0_279] : memref<8x64x64xf32, #tpu.memory_space<vmem>>, vector<1x64x64xf32>
    %526 = vector.shape_cast %525 : vector<1x64x64xf32> to vector<64x64xf32>
    %cst_280 = arith.constant dense<0.000000e+00> : vector<4x64xf32>
    %527 = tpu.matmul %524, %526, %cst_280 {dimension_numbers = #tpu.dot_dimension_numbers<[1], [0], [0], [1], [0, 0, 1, 1], [], []>} : vector<4x64xf32>, vector<64x64xf32>, vector<4x64xf32> -> vector<4x64xf32>
    %528 = arith.negf %527 : vector<4x64xf32>
    %529 = math.exp %528 : vector<4x64xf32>
    %cst_281 = arith.constant 1.000000e+00 : f32
    %530 = vector.broadcast %cst_281 : f32 to vector<4x64xf32>
    %531 = arith.addf %530, %529 : vector<4x64xf32>
    %532 = arith.divf %530, %531 : vector<4x64xf32>
    %c1_282 = arith.constant 1 : index
    %c0_283 = arith.constant 0 : index
    %c0_284 = arith.constant 0 : index
    %533 = vector.load %arg7[%c1_282, %c0_283, %c0_284] : memref<8x64x64xf32, #tpu.memory_space<vmem>>, vector<1x64x64xf32>
    %534 = vector.shape_cast %533 : vector<1x64x64xf32> to vector<64x64xf32>
    %cst_285 = arith.constant dense<0.000000e+00> : vector<4x64xf32>
    %535 = tpu.matmul %524, %534, %cst_285 {dimension_numbers = #tpu.dot_dimension_numbers<[1], [0], [0], [1], [0, 0, 1, 1], [], []>} : vector<4x64xf32>, vector<64x64xf32>, vector<4x64xf32> -> vector<4x64xf32>
    %cst_286 = arith.constant 0.000000e+00 : f32
    %536 = vector.broadcast %cst_286 : f32 to vector<4x64xf32>
    %537 = arith.maximumf %535, %536 : vector<4x64xf32>
    %538 = arith.subf %537, %524 : vector<4x64xf32>
    %539 = arith.mulf %532, %538 : vector<4x64xf32>
    %540 = arith.addf %524, %539 : vector<4x64xf32>
    %c2_287 = arith.constant 2 : index
    %c0_288 = arith.constant 0 : index
    %c0_289 = arith.constant 0 : index
    %541 = vector.load %arg6[%c2_287, %c0_288, %c0_289] : memref<8x64x64xf32, #tpu.memory_space<vmem>>, vector<1x64x64xf32>
    %542 = vector.shape_cast %541 : vector<1x64x64xf32> to vector<64x64xf32>
    %cst_290 = arith.constant dense<0.000000e+00> : vector<4x64xf32>
    %543 = tpu.matmul %524, %542, %cst_290 {dimension_numbers = #tpu.dot_dimension_numbers<[1], [0], [0], [1], [0, 0, 1, 1], [], []>} : vector<4x64xf32>, vector<64x64xf32>, vector<4x64xf32> -> vector<4x64xf32>
    %544 = arith.negf %543 : vector<4x64xf32>
    %545 = math.exp %544 : vector<4x64xf32>
    %cst_291 = arith.constant 1.000000e+00 : f32
    %546 = vector.broadcast %cst_291 : f32 to vector<4x64xf32>
    %547 = arith.addf %546, %545 : vector<4x64xf32>
    %548 = arith.divf %546, %547 : vector<4x64xf32>
    %c2_292 = arith.constant 2 : index
    %c0_293 = arith.constant 0 : index
    %c0_294 = arith.constant 0 : index
    %549 = vector.load %arg7[%c2_292, %c0_293, %c0_294] : memref<8x64x64xf32, #tpu.memory_space<vmem>>, vector<1x64x64xf32>
    %550 = vector.shape_cast %549 : vector<1x64x64xf32> to vector<64x64xf32>
    %cst_295 = arith.constant dense<0.000000e+00> : vector<4x64xf32>
    %551 = tpu.matmul %524, %550, %cst_295 {dimension_numbers = #tpu.dot_dimension_numbers<[1], [0], [0], [1], [0, 0, 1, 1], [], []>} : vector<4x64xf32>, vector<64x64xf32>, vector<4x64xf32> -> vector<4x64xf32>
    %cst_296 = arith.constant 0.000000e+00 : f32
    %552 = vector.broadcast %cst_296 : f32 to vector<4x64xf32>
    %553 = arith.maximumf %551, %552 : vector<4x64xf32>
    %554 = arith.subf %553, %524 : vector<4x64xf32>
    %555 = arith.mulf %548, %554 : vector<4x64xf32>
    %556 = arith.addf %524, %555 : vector<4x64xf32>
    %c3_297 = arith.constant 3 : index
    %c0_298 = arith.constant 0 : index
    %c0_299 = arith.constant 0 : index
    %557 = vector.load %arg6[%c3_297, %c0_298, %c0_299] : memref<8x64x64xf32, #tpu.memory_space<vmem>>, vector<1x64x64xf32>
    %558 = vector.shape_cast %557 : vector<1x64x64xf32> to vector<64x64xf32>
    %cst_300 = arith.constant dense<0.000000e+00> : vector<4x64xf32>
    %559 = tpu.matmul %524, %558, %cst_300 {dimension_numbers = #tpu.dot_dimension_numbers<[1], [0], [0], [1], [0, 0, 1, 1], [], []>} : vector<4x64xf32>, vector<64x64xf32>, vector<4x64xf32> -> vector<4x64xf32>
    %560 = arith.negf %559 : vector<4x64xf32>
    %561 = math.exp %560 : vector<4x64xf32>
    %cst_301 = arith.constant 1.000000e+00 : f32
    %562 = vector.broadcast %cst_301 : f32 to vector<4x64xf32>
    %563 = arith.addf %562, %561 : vector<4x64xf32>
    %564 = arith.divf %562, %563 : vector<4x64xf32>
    %c3_302 = arith.constant 3 : index
    %c0_303 = arith.constant 0 : index
    %c0_304 = arith.constant 0 : index
    %565 = vector.load %arg7[%c3_302, %c0_303, %c0_304] : memref<8x64x64xf32, #tpu.memory_space<vmem>>, vector<1x64x64xf32>
    %566 = vector.shape_cast %565 : vector<1x64x64xf32> to vector<64x64xf32>
    %cst_305 = arith.constant dense<0.000000e+00> : vector<4x64xf32>
    %567 = tpu.matmul %524, %566, %cst_305 {dimension_numbers = #tpu.dot_dimension_numbers<[1], [0], [0], [1], [0, 0, 1, 1], [], []>} : vector<4x64xf32>, vector<64x64xf32>, vector<4x64xf32> -> vector<4x64xf32>
    %568 = arith.subf %567, %524 : vector<4x64xf32>
    %569 = arith.mulf %564, %568 : vector<4x64xf32>
    %570 = arith.addf %524, %569 : vector<4x64xf32>
    %c4_306 = arith.constant 4 : index
    %c0_307 = arith.constant 0 : index
    %c0_308 = arith.constant 0 : index
    %571 = vector.load %arg6[%c4_306, %c0_307, %c0_308] : memref<8x64x64xf32, #tpu.memory_space<vmem>>, vector<1x64x64xf32>
    %572 = vector.shape_cast %571 : vector<1x64x64xf32> to vector<64x64xf32>
    %cst_309 = arith.constant dense<0.000000e+00> : vector<4x64xf32>
    %573 = tpu.matmul %540, %572, %cst_309 {dimension_numbers = #tpu.dot_dimension_numbers<[1], [0], [0], [1], [0, 0, 1, 1], [], []>} : vector<4x64xf32>, vector<64x64xf32>, vector<4x64xf32> -> vector<4x64xf32>
    %574 = arith.negf %573 : vector<4x64xf32>
    %575 = math.exp %574 : vector<4x64xf32>
    %cst_310 = arith.constant 1.000000e+00 : f32
    %576 = vector.broadcast %cst_310 : f32 to vector<4x64xf32>
    %577 = arith.addf %576, %575 : vector<4x64xf32>
    %578 = arith.divf %576, %577 : vector<4x64xf32>
    %c4_311 = arith.constant 4 : index
    %c0_312 = arith.constant 0 : index
    %c0_313 = arith.constant 0 : index
    %579 = vector.load %arg7[%c4_311, %c0_312, %c0_313] : memref<8x64x64xf32, #tpu.memory_space<vmem>>, vector<1x64x64xf32>
    %580 = vector.shape_cast %579 : vector<1x64x64xf32> to vector<64x64xf32>
    %cst_314 = arith.constant dense<0.000000e+00> : vector<4x64xf32>
    %581 = tpu.matmul %540, %580, %cst_314 {dimension_numbers = #tpu.dot_dimension_numbers<[1], [0], [0], [1], [0, 0, 1, 1], [], []>} : vector<4x64xf32>, vector<64x64xf32>, vector<4x64xf32> -> vector<4x64xf32>
    %582 = math.tanh %581 : vector<4x64xf32>
    %583 = arith.subf %582, %540 : vector<4x64xf32>
    %584 = arith.mulf %578, %583 : vector<4x64xf32>
    %585 = arith.addf %540, %584 : vector<4x64xf32>
    %c5_315 = arith.constant 5 : index
    %c0_316 = arith.constant 0 : index
    %c0_317 = arith.constant 0 : index
    %586 = vector.load %arg6[%c5_315, %c0_316, %c0_317] : memref<8x64x64xf32, #tpu.memory_space<vmem>>, vector<1x64x64xf32>
    %587 = vector.shape_cast %586 : vector<1x64x64xf32> to vector<64x64xf32>
    %cst_318 = arith.constant dense<0.000000e+00> : vector<4x64xf32>
    %588 = tpu.matmul %585, %587, %cst_318 {dimension_numbers = #tpu.dot_dimension_numbers<[1], [0], [0], [1], [0, 0, 1, 1], [], []>} : vector<4x64xf32>, vector<64x64xf32>, vector<4x64xf32> -> vector<4x64xf32>
    %589 = arith.negf %588 : vector<4x64xf32>
    %590 = math.exp %589 : vector<4x64xf32>
    %cst_319 = arith.constant 1.000000e+00 : f32
    %591 = vector.broadcast %cst_319 : f32 to vector<4x64xf32>
    %592 = arith.addf %591, %590 : vector<4x64xf32>
    %593 = arith.divf %591, %592 : vector<4x64xf32>
    %c5_320 = arith.constant 5 : index
    %c0_321 = arith.constant 0 : index
    %c0_322 = arith.constant 0 : index
    %594 = vector.load %arg7[%c5_320, %c0_321, %c0_322] : memref<8x64x64xf32, #tpu.memory_space<vmem>>, vector<1x64x64xf32>
    %595 = vector.shape_cast %594 : vector<1x64x64xf32> to vector<64x64xf32>
    %cst_323 = arith.constant dense<0.000000e+00> : vector<4x64xf32>
    %596 = tpu.matmul %585, %595, %cst_323 {dimension_numbers = #tpu.dot_dimension_numbers<[1], [0], [0], [1], [0, 0, 1, 1], [], []>} : vector<4x64xf32>, vector<64x64xf32>, vector<4x64xf32> -> vector<4x64xf32>
    %597 = arith.negf %596 : vector<4x64xf32>
    %598 = math.exp %597 : vector<4x64xf32>
    %cst_324 = arith.constant 1.000000e+00 : f32
    %599 = vector.broadcast %cst_324 : f32 to vector<4x64xf32>
    %600 = arith.addf %599, %598 : vector<4x64xf32>
    %601 = arith.divf %599, %600 : vector<4x64xf32>
    %602 = arith.subf %601, %585 : vector<4x64xf32>
    %603 = arith.mulf %593, %602 : vector<4x64xf32>
    %604 = arith.addf %585, %603 : vector<4x64xf32>
    %c6_325 = arith.constant 6 : index
    %c0_326 = arith.constant 0 : index
    %c0_327 = arith.constant 0 : index
    %605 = vector.load %arg6[%c6_325, %c0_326, %c0_327] : memref<8x64x64xf32, #tpu.memory_space<vmem>>, vector<1x64x64xf32>
    %606 = vector.shape_cast %605 : vector<1x64x64xf32> to vector<64x64xf32>
    %cst_328 = arith.constant dense<0.000000e+00> : vector<4x64xf32>
    %607 = tpu.matmul %556, %606, %cst_328 {dimension_numbers = #tpu.dot_dimension_numbers<[1], [0], [0], [1], [0, 0, 1, 1], [], []>} : vector<4x64xf32>, vector<64x64xf32>, vector<4x64xf32> -> vector<4x64xf32>
    %608 = arith.negf %607 : vector<4x64xf32>
    %609 = math.exp %608 : vector<4x64xf32>
    %cst_329 = arith.constant 1.000000e+00 : f32
    %610 = vector.broadcast %cst_329 : f32 to vector<4x64xf32>
    %611 = arith.addf %610, %609 : vector<4x64xf32>
    %612 = arith.divf %610, %611 : vector<4x64xf32>
    %c6_330 = arith.constant 6 : index
    %c0_331 = arith.constant 0 : index
    %c0_332 = arith.constant 0 : index
    %613 = vector.load %arg7[%c6_330, %c0_331, %c0_332] : memref<8x64x64xf32, #tpu.memory_space<vmem>>, vector<1x64x64xf32>
    %614 = vector.shape_cast %613 : vector<1x64x64xf32> to vector<64x64xf32>
    %cst_333 = arith.constant dense<0.000000e+00> : vector<4x64xf32>
    %615 = tpu.matmul %556, %614, %cst_333 {dimension_numbers = #tpu.dot_dimension_numbers<[1], [0], [0], [1], [0, 0, 1, 1], [], []>} : vector<4x64xf32>, vector<64x64xf32>, vector<4x64xf32> -> vector<4x64xf32>
    %616 = math.tanh %615 : vector<4x64xf32>
    %617 = arith.subf %616, %556 : vector<4x64xf32>
    %618 = arith.mulf %612, %617 : vector<4x64xf32>
    %619 = arith.addf %556, %618 : vector<4x64xf32>
    %c7_334 = arith.constant 7 : index
    %c0_335 = arith.constant 0 : index
    %c0_336 = arith.constant 0 : index
    %620 = vector.load %arg6[%c7_334, %c0_335, %c0_336] : memref<8x64x64xf32, #tpu.memory_space<vmem>>, vector<1x64x64xf32>
    %621 = vector.shape_cast %620 : vector<1x64x64xf32> to vector<64x64xf32>
    %cst_337 = arith.constant dense<0.000000e+00> : vector<4x64xf32>
    %622 = tpu.matmul %585, %621, %cst_337 {dimension_numbers = #tpu.dot_dimension_numbers<[1], [0], [0], [1], [0, 0, 1, 1], [], []>} : vector<4x64xf32>, vector<64x64xf32>, vector<4x64xf32> -> vector<4x64xf32>
    %623 = arith.negf %622 : vector<4x64xf32>
    %624 = math.exp %623 : vector<4x64xf32>
    %cst_338 = arith.constant 1.000000e+00 : f32
    %625 = vector.broadcast %cst_338 : f32 to vector<4x64xf32>
    %626 = arith.addf %625, %624 : vector<4x64xf32>
    %627 = arith.divf %625, %626 : vector<4x64xf32>
    %c7_339 = arith.constant 7 : index
    %c0_340 = arith.constant 0 : index
    %c0_341 = arith.constant 0 : index
    %628 = vector.load %arg7[%c7_339, %c0_340, %c0_341] : memref<8x64x64xf32, #tpu.memory_space<vmem>>, vector<1x64x64xf32>
    %629 = vector.shape_cast %628 : vector<1x64x64xf32> to vector<64x64xf32>
    %cst_342 = arith.constant dense<0.000000e+00> : vector<4x64xf32>
    %630 = tpu.matmul %585, %629, %cst_342 {dimension_numbers = #tpu.dot_dimension_numbers<[1], [0], [0], [1], [0, 0, 1, 1], [], []>} : vector<4x64xf32>, vector<64x64xf32>, vector<4x64xf32> -> vector<4x64xf32>
    %cst_343 = arith.constant 0.000000e+00 : f32
    %631 = vector.broadcast %cst_343 : f32 to vector<4x64xf32>
    %632 = arith.maximumf %630, %631 : vector<4x64xf32>
    %633 = arith.subf %632, %585 : vector<4x64xf32>
    %634 = arith.mulf %627, %633 : vector<4x64xf32>
    %635 = arith.addf %585, %634 : vector<4x64xf32>
    %636 = arith.addf %524, %540 : vector<4x64xf32>
    %637 = arith.addf %636, %556 : vector<4x64xf32>
    %638 = arith.addf %637, %570 : vector<4x64xf32>
    %639 = arith.addf %638, %585 : vector<4x64xf32>
    %640 = arith.addf %639, %604 : vector<4x64xf32>
    %641 = arith.addf %640, %619 : vector<4x64xf32>
    %642 = arith.addf %641, %635 : vector<4x64xf32>
    %643 = vector.broadcast %cst : f32 to vector<4x64xf32>
    %644 = arith.mulf %642, %643 : vector<4x64xf32>
    %645 = arith.index_cast %c3_i32 : i32 to index
    %c0_344 = arith.constant 0 : index
    %c0_345 = arith.constant 0 : index
    %646 = vector.load %arg8[%645, %c0_344, %c0_345] : memref<8x4x64xf32, #tpu.memory_space<vmem>>, vector<1x4x64xf32>
    %647 = vector.shape_cast %646 : vector<1x4x64xf32> to vector<4x64xf32>
    %648 = vector.shape_cast %644 : vector<4x64xf32> to vector<1x4x64xf32>
    tpu.vector_store %arg8[%645, %c0_344, %c0_345], %648 {strides = array<i32>} : memref<8x4x64xf32, #tpu.memory_space<vmem>>, vector<1x4x64xf32>,
    %c4_i32 = arith.constant 4 : i32
    %649 = arith.index_cast %c4_i32 : i32 to index
    %c0_346 = arith.constant 0 : index
    %c0_347 = arith.constant 0 : index
    %650 = vector.load %arg0[%649, %c0_346, %c0_347] : memref<8x4x64xf32, #tpu.memory_space<vmem>>, vector<1x4x64xf32>
    %651 = vector.shape_cast %650 : vector<1x4x64xf32> to vector<4x64xf32>
    %cst_348 = arith.constant dense<0.000000e+00> : vector<4x64xf32>
    %652 = tpu.matmul %651, %0, %cst_348 {dimension_numbers = #tpu.dot_dimension_numbers<[1], [0], [0], [1], [0, 0, 1, 1], [], []>} : vector<4x64xf32>, vector<64x64xf32>, vector<4x64xf32> -> vector<4x64xf32>
    %cst_349 = arith.constant dense<0.000000e+00> : vector<4x64xf32>
    %653 = tpu.matmul %644, %2, %cst_349 {dimension_numbers = #tpu.dot_dimension_numbers<[1], [0], [0], [1], [0, 0, 1, 1], [], []>} : vector<4x64xf32>, vector<64x64xf32>, vector<4x64xf32> -> vector<4x64xf32>
    %654 = arith.addf %652, %653 : vector<4x64xf32>
    %655 = arith.negf %654 : vector<4x64xf32>
    %656 = math.exp %655 : vector<4x64xf32>
    %cst_350 = arith.constant 1.000000e+00 : f32
    %657 = vector.broadcast %cst_350 : f32 to vector<4x64xf32>
    %658 = arith.addf %657, %656 : vector<4x64xf32>
    %659 = arith.divf %657, %658 : vector<4x64xf32>
    %cst_351 = arith.constant dense<0.000000e+00> : vector<4x64xf32>
    %660 = tpu.matmul %651, %1, %cst_351 {dimension_numbers = #tpu.dot_dimension_numbers<[1], [0], [0], [1], [0, 0, 1, 1], [], []>} : vector<4x64xf32>, vector<64x64xf32>, vector<4x64xf32> -> vector<4x64xf32>
    %cst_352 = arith.constant dense<0.000000e+00> : vector<4x64xf32>
    %661 = tpu.matmul %644, %3, %cst_352 {dimension_numbers = #tpu.dot_dimension_numbers<[1], [0], [0], [1], [0, 0, 1, 1], [], []>} : vector<4x64xf32>, vector<64x64xf32>, vector<4x64xf32> -> vector<4x64xf32>
    %662 = arith.addf %660, %661 : vector<4x64xf32>
    %663 = math.tanh %662 : vector<4x64xf32>
    %664 = arith.subf %663, %644 : vector<4x64xf32>
    %665 = arith.mulf %659, %664 : vector<4x64xf32>
    %666 = arith.addf %644, %665 : vector<4x64xf32>
    %c0_353 = arith.constant 0 : index
    %c0_354 = arith.constant 0 : index
    %c0_355 = arith.constant 0 : index
    %667 = vector.load %arg6[%c0_353, %c0_354, %c0_355] : memref<8x64x64xf32, #tpu.memory_space<vmem>>, vector<1x64x64xf32>
    %668 = vector.shape_cast %667 : vector<1x64x64xf32> to vector<64x64xf32>
    %cst_356 = arith.constant dense<0.000000e+00> : vector<4x64xf32>
    %669 = tpu.matmul %666, %668, %cst_356 {dimension_numbers = #tpu.dot_dimension_numbers<[1], [0], [0], [1], [0, 0, 1, 1], [], []>} : vector<4x64xf32>, vector<64x64xf32>, vector<4x64xf32> -> vector<4x64xf32>
    %670 = arith.negf %669 : vector<4x64xf32>
    %671 = math.exp %670 : vector<4x64xf32>
    %cst_357 = arith.constant 1.000000e+00 : f32
    %672 = vector.broadcast %cst_357 : f32 to vector<4x64xf32>
    %673 = arith.addf %672, %671 : vector<4x64xf32>
    %674 = arith.divf %672, %673 : vector<4x64xf32>
    %c0_358 = arith.constant 0 : index
    %c0_359 = arith.constant 0 : index
    %c0_360 = arith.constant 0 : index
    %675 = vector.load %arg7[%c0_358, %c0_359, %c0_360] : memref<8x64x64xf32, #tpu.memory_space<vmem>>, vector<1x64x64xf32>
    %676 = vector.shape_cast %675 : vector<1x64x64xf32> to vector<64x64xf32>
    %cst_361 = arith.constant dense<0.000000e+00> : vector<4x64xf32>
    %677 = tpu.matmul %666, %676, %cst_361 {dimension_numbers = #tpu.dot_dimension_numbers<[1], [0], [0], [1], [0, 0, 1, 1], [], []>} : vector<4x64xf32>, vector<64x64xf32>, vector<4x64xf32> -> vector<4x64xf32>
    %678 = arith.negf %677 : vector<4x64xf32>
    %679 = math.exp %678 : vector<4x64xf32>
    %cst_362 = arith.constant 1.000000e+00 : f32
    %680 = vector.broadcast %cst_362 : f32 to vector<4x64xf32>
    %681 = arith.addf %680, %679 : vector<4x64xf32>
    %682 = arith.divf %680, %681 : vector<4x64xf32>
    %683 = arith.subf %682, %666 : vector<4x64xf32>
    %684 = arith.mulf %674, %683 : vector<4x64xf32>
    %685 = arith.addf %666, %684 : vector<4x64xf32>
    %c1_363 = arith.constant 1 : index
    %c0_364 = arith.constant 0 : index
    %c0_365 = arith.constant 0 : index
    %686 = vector.load %arg6[%c1_363, %c0_364, %c0_365] : memref<8x64x64xf32, #tpu.memory_space<vmem>>, vector<1x64x64xf32>
    %687 = vector.shape_cast %686 : vector<1x64x64xf32> to vector<64x64xf32>
    %cst_366 = arith.constant dense<0.000000e+00> : vector<4x64xf32>
    %688 = tpu.matmul %685, %687, %cst_366 {dimension_numbers = #tpu.dot_dimension_numbers<[1], [0], [0], [1], [0, 0, 1, 1], [], []>} : vector<4x64xf32>, vector<64x64xf32>, vector<4x64xf32> -> vector<4x64xf32>
    %689 = arith.negf %688 : vector<4x64xf32>
    %690 = math.exp %689 : vector<4x64xf32>
    %cst_367 = arith.constant 1.000000e+00 : f32
    %691 = vector.broadcast %cst_367 : f32 to vector<4x64xf32>
    %692 = arith.addf %691, %690 : vector<4x64xf32>
    %693 = arith.divf %691, %692 : vector<4x64xf32>
    %c1_368 = arith.constant 1 : index
    %c0_369 = arith.constant 0 : index
    %c0_370 = arith.constant 0 : index
    %694 = vector.load %arg7[%c1_368, %c0_369, %c0_370] : memref<8x64x64xf32, #tpu.memory_space<vmem>>, vector<1x64x64xf32>
    %695 = vector.shape_cast %694 : vector<1x64x64xf32> to vector<64x64xf32>
    %cst_371 = arith.constant dense<0.000000e+00> : vector<4x64xf32>
    %696 = tpu.matmul %685, %695, %cst_371 {dimension_numbers = #tpu.dot_dimension_numbers<[1], [0], [0], [1], [0, 0, 1, 1], [], []>} : vector<4x64xf32>, vector<64x64xf32>, vector<4x64xf32> -> vector<4x64xf32>
    %cst_372 = arith.constant 0.000000e+00 : f32
    %697 = vector.broadcast %cst_372 : f32 to vector<4x64xf32>
    %698 = arith.maximumf %696, %697 : vector<4x64xf32>
    %699 = arith.subf %698, %685 : vector<4x64xf32>
    %700 = arith.mulf %693, %699 : vector<4x64xf32>
    %701 = arith.addf %685, %700 : vector<4x64xf32>
    %c2_373 = arith.constant 2 : index
    %c0_374 = arith.constant 0 : index
    %c0_375 = arith.constant 0 : index
    %702 = vector.load %arg6[%c2_373, %c0_374, %c0_375] : memref<8x64x64xf32, #tpu.memory_space<vmem>>, vector<1x64x64xf32>
    %703 = vector.shape_cast %702 : vector<1x64x64xf32> to vector<64x64xf32>
    %cst_376 = arith.constant dense<0.000000e+00> : vector<4x64xf32>
    %704 = tpu.matmul %685, %703, %cst_376 {dimension_numbers = #tpu.dot_dimension_numbers<[1], [0], [0], [1], [0, 0, 1, 1], [], []>} : vector<4x64xf32>, vector<64x64xf32>, vector<4x64xf32> -> vector<4x64xf32>
    %705 = arith.negf %704 : vector<4x64xf32>
    %706 = math.exp %705 : vector<4x64xf32>
    %cst_377 = arith.constant 1.000000e+00 : f32
    %707 = vector.broadcast %cst_377 : f32 to vector<4x64xf32>
    %708 = arith.addf %707, %706 : vector<4x64xf32>
    %709 = arith.divf %707, %708 : vector<4x64xf32>
    %c2_378 = arith.constant 2 : index
    %c0_379 = arith.constant 0 : index
    %c0_380 = arith.constant 0 : index
    %710 = vector.load %arg7[%c2_378, %c0_379, %c0_380] : memref<8x64x64xf32, #tpu.memory_space<vmem>>, vector<1x64x64xf32>
    %711 = vector.shape_cast %710 : vector<1x64x64xf32> to vector<64x64xf32>
    %cst_381 = arith.constant dense<0.000000e+00> : vector<4x64xf32>
    %712 = tpu.matmul %685, %711, %cst_381 {dimension_numbers = #tpu.dot_dimension_numbers<[1], [0], [0], [1], [0, 0, 1, 1], [], []>} : vector<4x64xf32>, vector<64x64xf32>, vector<4x64xf32> -> vector<4x64xf32>
    %cst_382 = arith.constant 0.000000e+00 : f32
    %713 = vector.broadcast %cst_382 : f32 to vector<4x64xf32>
    %714 = arith.maximumf %712, %713 : vector<4x64xf32>
    %715 = arith.subf %714, %685 : vector<4x64xf32>
    %716 = arith.mulf %709, %715 : vector<4x64xf32>
    %717 = arith.addf %685, %716 : vector<4x64xf32>
    %c3_383 = arith.constant 3 : index
    %c0_384 = arith.constant 0 : index
    %c0_385 = arith.constant 0 : index
    %718 = vector.load %arg6[%c3_383, %c0_384, %c0_385] : memref<8x64x64xf32, #tpu.memory_space<vmem>>, vector<1x64x64xf32>
    %719 = vector.shape_cast %718 : vector<1x64x64xf32> to vector<64x64xf32>
    %cst_386 = arith.constant dense<0.000000e+00> : vector<4x64xf32>
    %720 = tpu.matmul %685, %719, %cst_386 {dimension_numbers = #tpu.dot_dimension_numbers<[1], [0], [0], [1], [0, 0, 1, 1], [], []>} : vector<4x64xf32>, vector<64x64xf32>, vector<4x64xf32> -> vector<4x64xf32>
    %721 = arith.negf %720 : vector<4x64xf32>
    %722 = math.exp %721 : vector<4x64xf32>
    %cst_387 = arith.constant 1.000000e+00 : f32
    %723 = vector.broadcast %cst_387 : f32 to vector<4x64xf32>
    %724 = arith.addf %723, %722 : vector<4x64xf32>
    %725 = arith.divf %723, %724 : vector<4x64xf32>
    %c3_388 = arith.constant 3 : index
    %c0_389 = arith.constant 0 : index
    %c0_390 = arith.constant 0 : index
    %726 = vector.load %arg7[%c3_388, %c0_389, %c0_390] : memref<8x64x64xf32, #tpu.memory_space<vmem>>, vector<1x64x64xf32>
    %727 = vector.shape_cast %726 : vector<1x64x64xf32> to vector<64x64xf32>
    %cst_391 = arith.constant dense<0.000000e+00> : vector<4x64xf32>
    %728 = tpu.matmul %685, %727, %cst_391 {dimension_numbers = #tpu.dot_dimension_numbers<[1], [0], [0], [1], [0, 0, 1, 1], [], []>} : vector<4x64xf32>, vector<64x64xf32>, vector<4x64xf32> -> vector<4x64xf32>
    %729 = arith.subf %728, %685 : vector<4x64xf32>
    %730 = arith.mulf %725, %729 : vector<4x64xf32>
    %731 = arith.addf %685, %730 : vector<4x64xf32>
    %c4_392 = arith.constant 4 : index
    %c0_393 = arith.constant 0 : index
    %c0_394 = arith.constant 0 : index
    %732 = vector.load %arg6[%c4_392, %c0_393, %c0_394] : memref<8x64x64xf32, #tpu.memory_space<vmem>>, vector<1x64x64xf32>
    %733 = vector.shape_cast %732 : vector<1x64x64xf32> to vector<64x64xf32>
    %cst_395 = arith.constant dense<0.000000e+00> : vector<4x64xf32>
    %734 = tpu.matmul %701, %733, %cst_395 {dimension_numbers = #tpu.dot_dimension_numbers<[1], [0], [0], [1], [0, 0, 1, 1], [], []>} : vector<4x64xf32>, vector<64x64xf32>, vector<4x64xf32> -> vector<4x64xf32>
    %735 = arith.negf %734 : vector<4x64xf32>
    %736 = math.exp %735 : vector<4x64xf32>
    %cst_396 = arith.constant 1.000000e+00 : f32
    %737 = vector.broadcast %cst_396 : f32 to vector<4x64xf32>
    %738 = arith.addf %737, %736 : vector<4x64xf32>
    %739 = arith.divf %737, %738 : vector<4x64xf32>
    %c4_397 = arith.constant 4 : index
    %c0_398 = arith.constant 0 : index
    %c0_399 = arith.constant 0 : index
    %740 = vector.load %arg7[%c4_397, %c0_398, %c0_399] : memref<8x64x64xf32, #tpu.memory_space<vmem>>, vector<1x64x64xf32>
    %741 = vector.shape_cast %740 : vector<1x64x64xf32> to vector<64x64xf32>
    %cst_400 = arith.constant dense<0.000000e+00> : vector<4x64xf32>
    %742 = tpu.matmul %701, %741, %cst_400 {dimension_numbers = #tpu.dot_dimension_numbers<[1], [0], [0], [1], [0, 0, 1, 1], [], []>} : vector<4x64xf32>, vector<64x64xf32>, vector<4x64xf32> -> vector<4x64xf32>
    %743 = math.tanh %742 : vector<4x64xf32>
    %744 = arith.subf %743, %701 : vector<4x64xf32>
    %745 = arith.mulf %739, %744 : vector<4x64xf32>
    %746 = arith.addf %701, %745 : vector<4x64xf32>
    %c5_401 = arith.constant 5 : index
    %c0_402 = arith.constant 0 : index
    %c0_403 = arith.constant 0 : index
    %747 = vector.load %arg6[%c5_401, %c0_402, %c0_403] : memref<8x64x64xf32, #tpu.memory_space<vmem>>, vector<1x64x64xf32>
    %748 = vector.shape_cast %747 : vector<1x64x64xf32> to vector<64x64xf32>
    %cst_404 = arith.constant dense<0.000000e+00> : vector<4x64xf32>
    %749 = tpu.matmul %746, %748, %cst_404 {dimension_numbers = #tpu.dot_dimension_numbers<[1], [0], [0], [1], [0, 0, 1, 1], [], []>} : vector<4x64xf32>, vector<64x64xf32>, vector<4x64xf32> -> vector<4x64xf32>
    %750 = arith.negf %749 : vector<4x64xf32>
    %751 = math.exp %750 : vector<4x64xf32>
    %cst_405 = arith.constant 1.000000e+00 : f32
    %752 = vector.broadcast %cst_405 : f32 to vector<4x64xf32>
    %753 = arith.addf %752, %751 : vector<4x64xf32>
    %754 = arith.divf %752, %753 : vector<4x64xf32>
    %c5_406 = arith.constant 5 : index
    %c0_407 = arith.constant 0 : index
    %c0_408 = arith.constant 0 : index
    %755 = vector.load %arg7[%c5_406, %c0_407, %c0_408] : memref<8x64x64xf32, #tpu.memory_space<vmem>>, vector<1x64x64xf32>
    %756 = vector.shape_cast %755 : vector<1x64x64xf32> to vector<64x64xf32>
    %cst_409 = arith.constant dense<0.000000e+00> : vector<4x64xf32>
    %757 = tpu.matmul %746, %756, %cst_409 {dimension_numbers = #tpu.dot_dimension_numbers<[1], [0], [0], [1], [0, 0, 1, 1], [], []>} : vector<4x64xf32>, vector<64x64xf32>, vector<4x64xf32> -> vector<4x64xf32>
    %758 = arith.negf %757 : vector<4x64xf32>
    %759 = math.exp %758 : vector<4x64xf32>
    %cst_410 = arith.constant 1.000000e+00 : f32
    %760 = vector.broadcast %cst_410 : f32 to vector<4x64xf32>
    %761 = arith.addf %760, %759 : vector<4x64xf32>
    %762 = arith.divf %760, %761 : vector<4x64xf32>
    %763 = arith.subf %762, %746 : vector<4x64xf32>
    %764 = arith.mulf %754, %763 : vector<4x64xf32>
    %765 = arith.addf %746, %764 : vector<4x64xf32>
    %c6_411 = arith.constant 6 : index
    %c0_412 = arith.constant 0 : index
    %c0_413 = arith.constant 0 : index
    %766 = vector.load %arg6[%c6_411, %c0_412, %c0_413] : memref<8x64x64xf32, #tpu.memory_space<vmem>>, vector<1x64x64xf32>
    %767 = vector.shape_cast %766 : vector<1x64x64xf32> to vector<64x64xf32>
    %cst_414 = arith.constant dense<0.000000e+00> : vector<4x64xf32>
    %768 = tpu.matmul %717, %767, %cst_414 {dimension_numbers = #tpu.dot_dimension_numbers<[1], [0], [0], [1], [0, 0, 1, 1], [], []>} : vector<4x64xf32>, vector<64x64xf32>, vector<4x64xf32> -> vector<4x64xf32>
    %769 = arith.negf %768 : vector<4x64xf32>
    %770 = math.exp %769 : vector<4x64xf32>
    %cst_415 = arith.constant 1.000000e+00 : f32
    %771 = vector.broadcast %cst_415 : f32 to vector<4x64xf32>
    %772 = arith.addf %771, %770 : vector<4x64xf32>
    %773 = arith.divf %771, %772 : vector<4x64xf32>
    %c6_416 = arith.constant 6 : index
    %c0_417 = arith.constant 0 : index
    %c0_418 = arith.constant 0 : index
    %774 = vector.load %arg7[%c6_416, %c0_417, %c0_418] : memref<8x64x64xf32, #tpu.memory_space<vmem>>, vector<1x64x64xf32>
    %775 = vector.shape_cast %774 : vector<1x64x64xf32> to vector<64x64xf32>
    %cst_419 = arith.constant dense<0.000000e+00> : vector<4x64xf32>
    %776 = tpu.matmul %717, %775, %cst_419 {dimension_numbers = #tpu.dot_dimension_numbers<[1], [0], [0], [1], [0, 0, 1, 1], [], []>} : vector<4x64xf32>, vector<64x64xf32>, vector<4x64xf32> -> vector<4x64xf32>
    %777 = math.tanh %776 : vector<4x64xf32>
    %778 = arith.subf %777, %717 : vector<4x64xf32>
    %779 = arith.mulf %773, %778 : vector<4x64xf32>
    %780 = arith.addf %717, %779 : vector<4x64xf32>
    %c7_420 = arith.constant 7 : index
    %c0_421 = arith.constant 0 : index
    %c0_422 = arith.constant 0 : index
    %781 = vector.load %arg6[%c7_420, %c0_421, %c0_422] : memref<8x64x64xf32, #tpu.memory_space<vmem>>, vector<1x64x64xf32>
    %782 = vector.shape_cast %781 : vector<1x64x64xf32> to vector<64x64xf32>
    %cst_423 = arith.constant dense<0.000000e+00> : vector<4x64xf32>
    %783 = tpu.matmul %746, %782, %cst_423 {dimension_numbers = #tpu.dot_dimension_numbers<[1], [0], [0], [1], [0, 0, 1, 1], [], []>} : vector<4x64xf32>, vector<64x64xf32>, vector<4x64xf32> -> vector<4x64xf32>
    %784 = arith.negf %783 : vector<4x64xf32>
    %785 = math.exp %784 : vector<4x64xf32>
    %cst_424 = arith.constant 1.000000e+00 : f32
    %786 = vector.broadcast %cst_424 : f32 to vector<4x64xf32>
    %787 = arith.addf %786, %785 : vector<4x64xf32>
    %788 = arith.divf %786, %787 : vector<4x64xf32>
    %c7_425 = arith.constant 7 : index
    %c0_426 = arith.constant 0 : index
    %c0_427 = arith.constant 0 : index
    %789 = vector.load %arg7[%c7_425, %c0_426, %c0_427] : memref<8x64x64xf32, #tpu.memory_space<vmem>>, vector<1x64x64xf32>
    %790 = vector.shape_cast %789 : vector<1x64x64xf32> to vector<64x64xf32>
    %cst_428 = arith.constant dense<0.000000e+00> : vector<4x64xf32>
    %791 = tpu.matmul %746, %790, %cst_428 {dimension_numbers = #tpu.dot_dimension_numbers<[1], [0], [0], [1], [0, 0, 1, 1], [], []>} : vector<4x64xf32>, vector<64x64xf32>, vector<4x64xf32> -> vector<4x64xf32>
    %cst_429 = arith.constant 0.000000e+00 : f32
    %792 = vector.broadcast %cst_429 : f32 to vector<4x64xf32>
    %793 = arith.maximumf %791, %792 : vector<4x64xf32>
    %794 = arith.subf %793, %746 : vector<4x64xf32>
    %795 = arith.mulf %788, %794 : vector<4x64xf32>
    %796 = arith.addf %746, %795 : vector<4x64xf32>
    %797 = arith.addf %685, %701 : vector<4x64xf32>
    %798 = arith.addf %797, %717 : vector<4x64xf32>
    %799 = arith.addf %798, %731 : vector<4x64xf32>
    %800 = arith.addf %799, %746 : vector<4x64xf32>
    %801 = arith.addf %800, %765 : vector<4x64xf32>
    %802 = arith.addf %801, %780 : vector<4x64xf32>
    %803 = arith.addf %802, %796 : vector<4x64xf32>
    %804 = vector.broadcast %cst : f32 to vector<4x64xf32>
    %805 = arith.mulf %803, %804 : vector<4x64xf32>
    %806 = arith.index_cast %c4_i32 : i32 to index
    %c0_430 = arith.constant 0 : index
    %c0_431 = arith.constant 0 : index
    %807 = vector.load %arg8[%806, %c0_430, %c0_431] : memref<8x4x64xf32, #tpu.memory_space<vmem>>, vector<1x4x64xf32>
    %808 = vector.shape_cast %807 : vector<1x4x64xf32> to vector<4x64xf32>
    %809 = vector.shape_cast %805 : vector<4x64xf32> to vector<1x4x64xf32>
    tpu.vector_store %arg8[%806, %c0_430, %c0_431], %809 {strides = array<i32>} : memref<8x4x64xf32, #tpu.memory_space<vmem>>, vector<1x4x64xf32>,
    %c5_i32 = arith.constant 5 : i32
    %810 = arith.index_cast %c5_i32 : i32 to index
    %c0_432 = arith.constant 0 : index
    %c0_433 = arith.constant 0 : index
    %811 = vector.load %arg0[%810, %c0_432, %c0_433] : memref<8x4x64xf32, #tpu.memory_space<vmem>>, vector<1x4x64xf32>
    %812 = vector.shape_cast %811 : vector<1x4x64xf32> to vector<4x64xf32>
    %cst_434 = arith.constant dense<0.000000e+00> : vector<4x64xf32>
    %813 = tpu.matmul %812, %0, %cst_434 {dimension_numbers = #tpu.dot_dimension_numbers<[1], [0], [0], [1], [0, 0, 1, 1], [], []>} : vector<4x64xf32>, vector<64x64xf32>, vector<4x64xf32> -> vector<4x64xf32>
    %cst_435 = arith.constant dense<0.000000e+00> : vector<4x64xf32>
    %814 = tpu.matmul %805, %2, %cst_435 {dimension_numbers = #tpu.dot_dimension_numbers<[1], [0], [0], [1], [0, 0, 1, 1], [], []>} : vector<4x64xf32>, vector<64x64xf32>, vector<4x64xf32> -> vector<4x64xf32>
    %815 = arith.addf %813, %814 : vector<4x64xf32>
    %816 = arith.negf %815 : vector<4x64xf32>
    %817 = math.exp %816 : vector<4x64xf32>
    %cst_436 = arith.constant 1.000000e+00 : f32
    %818 = vector.broadcast %cst_436 : f32 to vector<4x64xf32>
    %819 = arith.addf %818, %817 : vector<4x64xf32>
    %820 = arith.divf %818, %819 : vector<4x64xf32>
    %cst_437 = arith.constant dense<0.000000e+00> : vector<4x64xf32>
    %821 = tpu.matmul %812, %1, %cst_437 {dimension_numbers = #tpu.dot_dimension_numbers<[1], [0], [0], [1], [0, 0, 1, 1], [], []>} : vector<4x64xf32>, vector<64x64xf32>, vector<4x64xf32> -> vector<4x64xf32>
    %cst_438 = arith.constant dense<0.000000e+00> : vector<4x64xf32>
    %822 = tpu.matmul %805, %3, %cst_438 {dimension_numbers = #tpu.dot_dimension_numbers<[1], [0], [0], [1], [0, 0, 1, 1], [], []>} : vector<4x64xf32>, vector<64x64xf32>, vector<4x64xf32> -> vector<4x64xf32>
    %823 = arith.addf %821, %822 : vector<4x64xf32>
    %824 = math.tanh %823 : vector<4x64xf32>
    %825 = arith.subf %824, %805 : vector<4x64xf32>
    %826 = arith.mulf %820, %825 : vector<4x64xf32>
    %827 = arith.addf %805, %826 : vector<4x64xf32>
    %c0_439 = arith.constant 0 : index
    %c0_440 = arith.constant 0 : index
    %c0_441 = arith.constant 0 : index
    %828 = vector.load %arg6[%c0_439, %c0_440, %c0_441] : memref<8x64x64xf32, #tpu.memory_space<vmem>>, vector<1x64x64xf32>
    %829 = vector.shape_cast %828 : vector<1x64x64xf32> to vector<64x64xf32>
    %cst_442 = arith.constant dense<0.000000e+00> : vector<4x64xf32>
    %830 = tpu.matmul %827, %829, %cst_442 {dimension_numbers = #tpu.dot_dimension_numbers<[1], [0], [0], [1], [0, 0, 1, 1], [], []>} : vector<4x64xf32>, vector<64x64xf32>, vector<4x64xf32> -> vector<4x64xf32>
    %831 = arith.negf %830 : vector<4x64xf32>
    %832 = math.exp %831 : vector<4x64xf32>
    %cst_443 = arith.constant 1.000000e+00 : f32
    %833 = vector.broadcast %cst_443 : f32 to vector<4x64xf32>
    %834 = arith.addf %833, %832 : vector<4x64xf32>
    %835 = arith.divf %833, %834 : vector<4x64xf32>
    %c0_444 = arith.constant 0 : index
    %c0_445 = arith.constant 0 : index
    %c0_446 = arith.constant 0 : index
    %836 = vector.load %arg7[%c0_444, %c0_445, %c0_446] : memref<8x64x64xf32, #tpu.memory_space<vmem>>, vector<1x64x64xf32>
    %837 = vector.shape_cast %836 : vector<1x64x64xf32> to vector<64x64xf32>
    %cst_447 = arith.constant dense<0.000000e+00> : vector<4x64xf32>
    %838 = tpu.matmul %827, %837, %cst_447 {dimension_numbers = #tpu.dot_dimension_numbers<[1], [0], [0], [1], [0, 0, 1, 1], [], []>} : vector<4x64xf32>, vector<64x64xf32>, vector<4x64xf32> -> vector<4x64xf32>
    %839 = arith.negf %838 : vector<4x64xf32>
    %840 = math.exp %839 : vector<4x64xf32>
    %cst_448 = arith.constant 1.000000e+00 : f32
    %841 = vector.broadcast %cst_448 : f32 to vector<4x64xf32>
    %842 = arith.addf %841, %840 : vector<4x64xf32>
    %843 = arith.divf %841, %842 : vector<4x64xf32>
    %844 = arith.subf %843, %827 : vector<4x64xf32>
    %845 = arith.mulf %835, %844 : vector<4x64xf32>
    %846 = arith.addf %827, %845 : vector<4x64xf32>
    %c1_449 = arith.constant 1 : index
    %c0_450 = arith.constant 0 : index
    %c0_451 = arith.constant 0 : index
    %847 = vector.load %arg6[%c1_449, %c0_450, %c0_451] : memref<8x64x64xf32, #tpu.memory_space<vmem>>, vector<1x64x64xf32>
    %848 = vector.shape_cast %847 : vector<1x64x64xf32> to vector<64x64xf32>
    %cst_452 = arith.constant dense<0.000000e+00> : vector<4x64xf32>
    %849 = tpu.matmul %846, %848, %cst_452 {dimension_numbers = #tpu.dot_dimension_numbers<[1], [0], [0], [1], [0, 0, 1, 1], [], []>} : vector<4x64xf32>, vector<64x64xf32>, vector<4x64xf32> -> vector<4x64xf32>
    %850 = arith.negf %849 : vector<4x64xf32>
    %851 = math.exp %850 : vector<4x64xf32>
    %cst_453 = arith.constant 1.000000e+00 : f32
    %852 = vector.broadcast %cst_453 : f32 to vector<4x64xf32>
    %853 = arith.addf %852, %851 : vector<4x64xf32>
    %854 = arith.divf %852, %853 : vector<4x64xf32>
    %c1_454 = arith.constant 1 : index
    %c0_455 = arith.constant 0 : index
    %c0_456 = arith.constant 0 : index
    %855 = vector.load %arg7[%c1_454, %c0_455, %c0_456] : memref<8x64x64xf32, #tpu.memory_space<vmem>>, vector<1x64x64xf32>
    %856 = vector.shape_cast %855 : vector<1x64x64xf32> to vector<64x64xf32>
    %cst_457 = arith.constant dense<0.000000e+00> : vector<4x64xf32>
    %857 = tpu.matmul %846, %856, %cst_457 {dimension_numbers = #tpu.dot_dimension_numbers<[1], [0], [0], [1], [0, 0, 1, 1], [], []>} : vector<4x64xf32>, vector<64x64xf32>, vector<4x64xf32> -> vector<4x64xf32>
    %cst_458 = arith.constant 0.000000e+00 : f32
    %858 = vector.broadcast %cst_458 : f32 to vector<4x64xf32>
    %859 = arith.maximumf %857, %858 : vector<4x64xf32>
    %860 = arith.subf %859, %846 : vector<4x64xf32>
    %861 = arith.mulf %854, %860 : vector<4x64xf32>
    %862 = arith.addf %846, %861 : vector<4x64xf32>
    %c2_459 = arith.constant 2 : index
    %c0_460 = arith.constant 0 : index
    %c0_461 = arith.constant 0 : index
    %863 = vector.load %arg6[%c2_459, %c0_460, %c0_461] : memref<8x64x64xf32, #tpu.memory_space<vmem>>, vector<1x64x64xf32>
    %864 = vector.shape_cast %863 : vector<1x64x64xf32> to vector<64x64xf32>
    %cst_462 = arith.constant dense<0.000000e+00> : vector<4x64xf32>
    %865 = tpu.matmul %846, %864, %cst_462 {dimension_numbers = #tpu.dot_dimension_numbers<[1], [0], [0], [1], [0, 0, 1, 1], [], []>} : vector<4x64xf32>, vector<64x64xf32>, vector<4x64xf32> -> vector<4x64xf32>
    %866 = arith.negf %865 : vector<4x64xf32>
    %867 = math.exp %866 : vector<4x64xf32>
    %cst_463 = arith.constant 1.000000e+00 : f32
    %868 = vector.broadcast %cst_463 : f32 to vector<4x64xf32>
    %869 = arith.addf %868, %867 : vector<4x64xf32>
    %870 = arith.divf %868, %869 : vector<4x64xf32>
    %c2_464 = arith.constant 2 : index
    %c0_465 = arith.constant 0 : index
    %c0_466 = arith.constant 0 : index
    %871 = vector.load %arg7[%c2_464, %c0_465, %c0_466] : memref<8x64x64xf32, #tpu.memory_space<vmem>>, vector<1x64x64xf32>
    %872 = vector.shape_cast %871 : vector<1x64x64xf32> to vector<64x64xf32>
    %cst_467 = arith.constant dense<0.000000e+00> : vector<4x64xf32>
    %873 = tpu.matmul %846, %872, %cst_467 {dimension_numbers = #tpu.dot_dimension_numbers<[1], [0], [0], [1], [0, 0, 1, 1], [], []>} : vector<4x64xf32>, vector<64x64xf32>, vector<4x64xf32> -> vector<4x64xf32>
    %cst_468 = arith.constant 0.000000e+00 : f32
    %874 = vector.broadcast %cst_468 : f32 to vector<4x64xf32>
    %875 = arith.maximumf %873, %874 : vector<4x64xf32>
    %876 = arith.subf %875, %846 : vector<4x64xf32>
    %877 = arith.mulf %870, %876 : vector<4x64xf32>
    %878 = arith.addf %846, %877 : vector<4x64xf32>
    %c3_469 = arith.constant 3 : index
    %c0_470 = arith.constant 0 : index
    %c0_471 = arith.constant 0 : index
    %879 = vector.load %arg6[%c3_469, %c0_470, %c0_471] : memref<8x64x64xf32, #tpu.memory_space<vmem>>, vector<1x64x64xf32>
    %880 = vector.shape_cast %879 : vector<1x64x64xf32> to vector<64x64xf32>
    %cst_472 = arith.constant dense<0.000000e+00> : vector<4x64xf32>
    %881 = tpu.matmul %846, %880, %cst_472 {dimension_numbers = #tpu.dot_dimension_numbers<[1], [0], [0], [1], [0, 0, 1, 1], [], []>} : vector<4x64xf32>, vector<64x64xf32>, vector<4x64xf32> -> vector<4x64xf32>
    %882 = arith.negf %881 : vector<4x64xf32>
    %883 = math.exp %882 : vector<4x64xf32>
    %cst_473 = arith.constant 1.000000e+00 : f32
    %884 = vector.broadcast %cst_473 : f32 to vector<4x64xf32>
    %885 = arith.addf %884, %883 : vector<4x64xf32>
    %886 = arith.divf %884, %885 : vector<4x64xf32>
    %c3_474 = arith.constant 3 : index
    %c0_475 = arith.constant 0 : index
    %c0_476 = arith.constant 0 : index
    %887 = vector.load %arg7[%c3_474, %c0_475, %c0_476] : memref<8x64x64xf32, #tpu.memory_space<vmem>>, vector<1x64x64xf32>
    %888 = vector.shape_cast %887 : vector<1x64x64xf32> to vector<64x64xf32>
    %cst_477 = arith.constant dense<0.000000e+00> : vector<4x64xf32>
    %889 = tpu.matmul %846, %888, %cst_477 {dimension_numbers = #tpu.dot_dimension_numbers<[1], [0], [0], [1], [0, 0, 1, 1], [], []>} : vector<4x64xf32>, vector<64x64xf32>, vector<4x64xf32> -> vector<4x64xf32>
    %890 = arith.subf %889, %846 : vector<4x64xf32>
    %891 = arith.mulf %886, %890 : vector<4x64xf32>
    %892 = arith.addf %846, %891 : vector<4x64xf32>
    %c4_478 = arith.constant 4 : index
    %c0_479 = arith.constant 0 : index
    %c0_480 = arith.constant 0 : index
    %893 = vector.load %arg6[%c4_478, %c0_479, %c0_480] : memref<8x64x64xf32, #tpu.memory_space<vmem>>, vector<1x64x64xf32>
    %894 = vector.shape_cast %893 : vector<1x64x64xf32> to vector<64x64xf32>
    %cst_481 = arith.constant dense<0.000000e+00> : vector<4x64xf32>
    %895 = tpu.matmul %862, %894, %cst_481 {dimension_numbers = #tpu.dot_dimension_numbers<[1], [0], [0], [1], [0, 0, 1, 1], [], []>} : vector<4x64xf32>, vector<64x64xf32>, vector<4x64xf32> -> vector<4x64xf32>
    %896 = arith.negf %895 : vector<4x64xf32>
    %897 = math.exp %896 : vector<4x64xf32>
    %cst_482 = arith.constant 1.000000e+00 : f32
    %898 = vector.broadcast %cst_482 : f32 to vector<4x64xf32>
    %899 = arith.addf %898, %897 : vector<4x64xf32>
    %900 = arith.divf %898, %899 : vector<4x64xf32>
    %c4_483 = arith.constant 4 : index
    %c0_484 = arith.constant 0 : index
    %c0_485 = arith.constant 0 : index
    %901 = vector.load %arg7[%c4_483, %c0_484, %c0_485] : memref<8x64x64xf32, #tpu.memory_space<vmem>>, vector<1x64x64xf32>
    %902 = vector.shape_cast %901 : vector<1x64x64xf32> to vector<64x64xf32>
    %cst_486 = arith.constant dense<0.000000e+00> : vector<4x64xf32>
    %903 = tpu.matmul %862, %902, %cst_486 {dimension_numbers = #tpu.dot_dimension_numbers<[1], [0], [0], [1], [0, 0, 1, 1], [], []>} : vector<4x64xf32>, vector<64x64xf32>, vector<4x64xf32> -> vector<4x64xf32>
    %904 = math.tanh %903 : vector<4x64xf32>
    %905 = arith.subf %904, %862 : vector<4x64xf32>
    %906 = arith.mulf %900, %905 : vector<4x64xf32>
    %907 = arith.addf %862, %906 : vector<4x64xf32>
    %c5_487 = arith.constant 5 : index
    %c0_488 = arith.constant 0 : index
    %c0_489 = arith.constant 0 : index
    %908 = vector.load %arg6[%c5_487, %c0_488, %c0_489] : memref<8x64x64xf32, #tpu.memory_space<vmem>>, vector<1x64x64xf32>
    %909 = vector.shape_cast %908 : vector<1x64x64xf32> to vector<64x64xf32>
    %cst_490 = arith.constant dense<0.000000e+00> : vector<4x64xf32>
    %910 = tpu.matmul %907, %909, %cst_490 {dimension_numbers = #tpu.dot_dimension_numbers<[1], [0], [0], [1], [0, 0, 1, 1], [], []>} : vector<4x64xf32>, vector<64x64xf32>, vector<4x64xf32> -> vector<4x64xf32>
    %911 = arith.negf %910 : vector<4x64xf32>
    %912 = math.exp %911 : vector<4x64xf32>
    %cst_491 = arith.constant 1.000000e+00 : f32
    %913 = vector.broadcast %cst_491 : f32 to vector<4x64xf32>
    %914 = arith.addf %913, %912 : vector<4x64xf32>
    %915 = arith.divf %913, %914 : vector<4x64xf32>
    %c5_492 = arith.constant 5 : index
    %c0_493 = arith.constant 0 : index
    %c0_494 = arith.constant 0 : index
    %916 = vector.load %arg7[%c5_492, %c0_493, %c0_494] : memref<8x64x64xf32, #tpu.memory_space<vmem>>, vector<1x64x64xf32>
    %917 = vector.shape_cast %916 : vector<1x64x64xf32> to vector<64x64xf32>
    %cst_495 = arith.constant dense<0.000000e+00> : vector<4x64xf32>
    %918 = tpu.matmul %907, %917, %cst_495 {dimension_numbers = #tpu.dot_dimension_numbers<[1], [0], [0], [1], [0, 0, 1, 1], [], []>} : vector<4x64xf32>, vector<64x64xf32>, vector<4x64xf32> -> vector<4x64xf32>
    %919 = arith.negf %918 : vector<4x64xf32>
    %920 = math.exp %919 : vector<4x64xf32>
    %cst_496 = arith.constant 1.000000e+00 : f32
    %921 = vector.broadcast %cst_496 : f32 to vector<4x64xf32>
    %922 = arith.addf %921, %920 : vector<4x64xf32>
    %923 = arith.divf %921, %922 : vector<4x64xf32>
    %924 = arith.subf %923, %907 : vector<4x64xf32>
    %925 = arith.mulf %915, %924 : vector<4x64xf32>
    %926 = arith.addf %907, %925 : vector<4x64xf32>
    %c6_497 = arith.constant 6 : index
    %c0_498 = arith.constant 0 : index
    %c0_499 = arith.constant 0 : index
    %927 = vector.load %arg6[%c6_497, %c0_498, %c0_499] : memref<8x64x64xf32, #tpu.memory_space<vmem>>, vector<1x64x64xf32>
    %928 = vector.shape_cast %927 : vector<1x64x64xf32> to vector<64x64xf32>
    %cst_500 = arith.constant dense<0.000000e+00> : vector<4x64xf32>
    %929 = tpu.matmul %878, %928, %cst_500 {dimension_numbers = #tpu.dot_dimension_numbers<[1], [0], [0], [1], [0, 0, 1, 1], [], []>} : vector<4x64xf32>, vector<64x64xf32>, vector<4x64xf32> -> vector<4x64xf32>
    %930 = arith.negf %929 : vector<4x64xf32>
    %931 = math.exp %930 : vector<4x64xf32>
    %cst_501 = arith.constant 1.000000e+00 : f32
    %932 = vector.broadcast %cst_501 : f32 to vector<4x64xf32>
    %933 = arith.addf %932, %931 : vector<4x64xf32>
    %934 = arith.divf %932, %933 : vector<4x64xf32>
    %c6_502 = arith.constant 6 : index
    %c0_503 = arith.constant 0 : index
    %c0_504 = arith.constant 0 : index
    %935 = vector.load %arg7[%c6_502, %c0_503, %c0_504] : memref<8x64x64xf32, #tpu.memory_space<vmem>>, vector<1x64x64xf32>
    %936 = vector.shape_cast %935 : vector<1x64x64xf32> to vector<64x64xf32>
    %cst_505 = arith.constant dense<0.000000e+00> : vector<4x64xf32>
    %937 = tpu.matmul %878, %936, %cst_505 {dimension_numbers = #tpu.dot_dimension_numbers<[1], [0], [0], [1], [0, 0, 1, 1], [], []>} : vector<4x64xf32>, vector<64x64xf32>, vector<4x64xf32> -> vector<4x64xf32>
    %938 = math.tanh %937 : vector<4x64xf32>
    %939 = arith.subf %938, %878 : vector<4x64xf32>
    %940 = arith.mulf %934, %939 : vector<4x64xf32>
    %941 = arith.addf %878, %940 : vector<4x64xf32>
    %c7_506 = arith.constant 7 : index
    %c0_507 = arith.constant 0 : index
    %c0_508 = arith.constant 0 : index
    %942 = vector.load %arg6[%c7_506, %c0_507, %c0_508] : memref<8x64x64xf32, #tpu.memory_space<vmem>>, vector<1x64x64xf32>
    %943 = vector.shape_cast %942 : vector<1x64x64xf32> to vector<64x64xf32>
    %cst_509 = arith.constant dense<0.000000e+00> : vector<4x64xf32>
    %944 = tpu.matmul %907, %943, %cst_509 {dimension_numbers = #tpu.dot_dimension_numbers<[1], [0], [0], [1], [0, 0, 1, 1], [], []>} : vector<4x64xf32>, vector<64x64xf32>, vector<4x64xf32> -> vector<4x64xf32>
    %945 = arith.negf %944 : vector<4x64xf32>
    %946 = math.exp %945 : vector<4x64xf32>
    %cst_510 = arith.constant 1.000000e+00 : f32
    %947 = vector.broadcast %cst_510 : f32 to vector<4x64xf32>
    %948 = arith.addf %947, %946 : vector<4x64xf32>
    %949 = arith.divf %947, %948 : vector<4x64xf32>
    %c7_511 = arith.constant 7 : index
    %c0_512 = arith.constant 0 : index
    %c0_513 = arith.constant 0 : index
    %950 = vector.load %arg7[%c7_511, %c0_512, %c0_513] : memref<8x64x64xf32, #tpu.memory_space<vmem>>, vector<1x64x64xf32>
    %951 = vector.shape_cast %950 : vector<1x64x64xf32> to vector<64x64xf32>
    %cst_514 = arith.constant dense<0.000000e+00> : vector<4x64xf32>
    %952 = tpu.matmul %907, %951, %cst_514 {dimension_numbers = #tpu.dot_dimension_numbers<[1], [0], [0], [1], [0, 0, 1, 1], [], []>} : vector<4x64xf32>, vector<64x64xf32>, vector<4x64xf32> -> vector<4x64xf32>
    %cst_515 = arith.constant 0.000000e+00 : f32
    %953 = vector.broadcast %cst_515 : f32 to vector<4x64xf32>
    %954 = arith.maximumf %952, %953 : vector<4x64xf32>
    %955 = arith.subf %954, %907 : vector<4x64xf32>
    %956 = arith.mulf %949, %955 : vector<4x64xf32>
    %957 = arith.addf %907, %956 : vector<4x64xf32>
    %958 = arith.addf %846, %862 : vector<4x64xf32>
    %959 = arith.addf %958, %878 : vector<4x64xf32>
    %960 = arith.addf %959, %892 : vector<4x64xf32>
    %961 = arith.addf %960, %907 : vector<4x64xf32>
    %962 = arith.addf %961, %926 : vector<4x64xf32>
    %963 = arith.addf %962, %941 : vector<4x64xf32>
    %964 = arith.addf %963, %957 : vector<4x64xf32>
    %965 = vector.broadcast %cst : f32 to vector<4x64xf32>
    %966 = arith.mulf %964, %965 : vector<4x64xf32>
    %967 = arith.index_cast %c5_i32 : i32 to index
    %c0_516 = arith.constant 0 : index
    %c0_517 = arith.constant 0 : index
    %968 = vector.load %arg8[%967, %c0_516, %c0_517] : memref<8x4x64xf32, #tpu.memory_space<vmem>>, vector<1x4x64xf32>
    %969 = vector.shape_cast %968 : vector<1x4x64xf32> to vector<4x64xf32>
    %970 = vector.shape_cast %966 : vector<4x64xf32> to vector<1x4x64xf32>
    tpu.vector_store %arg8[%967, %c0_516, %c0_517], %970 {strides = array<i32>} : memref<8x4x64xf32, #tpu.memory_space<vmem>>, vector<1x4x64xf32>,
    %c6_i32 = arith.constant 6 : i32
    %971 = arith.index_cast %c6_i32 : i32 to index
    %c0_518 = arith.constant 0 : index
    %c0_519 = arith.constant 0 : index
    %972 = vector.load %arg0[%971, %c0_518, %c0_519] : memref<8x4x64xf32, #tpu.memory_space<vmem>>, vector<1x4x64xf32>
    %973 = vector.shape_cast %972 : vector<1x4x64xf32> to vector<4x64xf32>
    %cst_520 = arith.constant dense<0.000000e+00> : vector<4x64xf32>
    %974 = tpu.matmul %973, %0, %cst_520 {dimension_numbers = #tpu.dot_dimension_numbers<[1], [0], [0], [1], [0, 0, 1, 1], [], []>} : vector<4x64xf32>, vector<64x64xf32>, vector<4x64xf32> -> vector<4x64xf32>
    %cst_521 = arith.constant dense<0.000000e+00> : vector<4x64xf32>
    %975 = tpu.matmul %966, %2, %cst_521 {dimension_numbers = #tpu.dot_dimension_numbers<[1], [0], [0], [1], [0, 0, 1, 1], [], []>} : vector<4x64xf32>, vector<64x64xf32>, vector<4x64xf32> -> vector<4x64xf32>
    %976 = arith.addf %974, %975 : vector<4x64xf32>
    %977 = arith.negf %976 : vector<4x64xf32>
    %978 = math.exp %977 : vector<4x64xf32>
    %cst_522 = arith.constant 1.000000e+00 : f32
    %979 = vector.broadcast %cst_522 : f32 to vector<4x64xf32>
    %980 = arith.addf %979, %978 : vector<4x64xf32>
    %981 = arith.divf %979, %980 : vector<4x64xf32>
    %cst_523 = arith.constant dense<0.000000e+00> : vector<4x64xf32>
    %982 = tpu.matmul %973, %1, %cst_523 {dimension_numbers = #tpu.dot_dimension_numbers<[1], [0], [0], [1], [0, 0, 1, 1], [], []>} : vector<4x64xf32>, vector<64x64xf32>, vector<4x64xf32> -> vector<4x64xf32>
    %cst_524 = arith.constant dense<0.000000e+00> : vector<4x64xf32>
    %983 = tpu.matmul %966, %3, %cst_524 {dimension_numbers = #tpu.dot_dimension_numbers<[1], [0], [0], [1], [0, 0, 1, 1], [], []>} : vector<4x64xf32>, vector<64x64xf32>, vector<4x64xf32> -> vector<4x64xf32>
    %984 = arith.addf %982, %983 : vector<4x64xf32>
    %985 = math.tanh %984 : vector<4x64xf32>
    %986 = arith.subf %985, %966 : vector<4x64xf32>
    %987 = arith.mulf %981, %986 : vector<4x64xf32>
    %988 = arith.addf %966, %987 : vector<4x64xf32>
    %c0_525 = arith.constant 0 : index
    %c0_526 = arith.constant 0 : index
    %c0_527 = arith.constant 0 : index
    %989 = vector.load %arg6[%c0_525, %c0_526, %c0_527] : memref<8x64x64xf32, #tpu.memory_space<vmem>>, vector<1x64x64xf32>
    %990 = vector.shape_cast %989 : vector<1x64x64xf32> to vector<64x64xf32>
    %cst_528 = arith.constant dense<0.000000e+00> : vector<4x64xf32>
    %991 = tpu.matmul %988, %990, %cst_528 {dimension_numbers = #tpu.dot_dimension_numbers<[1], [0], [0], [1], [0, 0, 1, 1], [], []>} : vector<4x64xf32>, vector<64x64xf32>, vector<4x64xf32> -> vector<4x64xf32>
    %992 = arith.negf %991 : vector<4x64xf32>
    %993 = math.exp %992 : vector<4x64xf32>
    %cst_529 = arith.constant 1.000000e+00 : f32
    %994 = vector.broadcast %cst_529 : f32 to vector<4x64xf32>
    %995 = arith.addf %994, %993 : vector<4x64xf32>
    %996 = arith.divf %994, %995 : vector<4x64xf32>
    %c0_530 = arith.constant 0 : index
    %c0_531 = arith.constant 0 : index
    %c0_532 = arith.constant 0 : index
    %997 = vector.load %arg7[%c0_530, %c0_531, %c0_532] : memref<8x64x64xf32, #tpu.memory_space<vmem>>, vector<1x64x64xf32>
    %998 = vector.shape_cast %997 : vector<1x64x64xf32> to vector<64x64xf32>
    %cst_533 = arith.constant dense<0.000000e+00> : vector<4x64xf32>
    %999 = tpu.matmul %988, %998, %cst_533 {dimension_numbers = #tpu.dot_dimension_numbers<[1], [0], [0], [1], [0, 0, 1, 1], [], []>} : vector<4x64xf32>, vector<64x64xf32>, vector<4x64xf32> -> vector<4x64xf32>
    %1000 = arith.negf %999 : vector<4x64xf32>
    %1001 = math.exp %1000 : vector<4x64xf32>
    %cst_534 = arith.constant 1.000000e+00 : f32
    %1002 = vector.broadcast %cst_534 : f32 to vector<4x64xf32>
    %1003 = arith.addf %1002, %1001 : vector<4x64xf32>
    %1004 = arith.divf %1002, %1003 : vector<4x64xf32>
    %1005 = arith.subf %1004, %988 : vector<4x64xf32>
    %1006 = arith.mulf %996, %1005 : vector<4x64xf32>
    %1007 = arith.addf %988, %1006 : vector<4x64xf32>
    %c1_535 = arith.constant 1 : index
    %c0_536 = arith.constant 0 : index
    %c0_537 = arith.constant 0 : index
    %1008 = vector.load %arg6[%c1_535, %c0_536, %c0_537] : memref<8x64x64xf32, #tpu.memory_space<vmem>>, vector<1x64x64xf32>
    %1009 = vector.shape_cast %1008 : vector<1x64x64xf32> to vector<64x64xf32>
    %cst_538 = arith.constant dense<0.000000e+00> : vector<4x64xf32>
    %1010 = tpu.matmul %1007, %1009, %cst_538 {dimension_numbers = #tpu.dot_dimension_numbers<[1], [0], [0], [1], [0, 0, 1, 1], [], []>} : vector<4x64xf32>, vector<64x64xf32>, vector<4x64xf32> -> vector<4x64xf32>
    %1011 = arith.negf %1010 : vector<4x64xf32>
    %1012 = math.exp %1011 : vector<4x64xf32>
    %cst_539 = arith.constant 1.000000e+00 : f32
    %1013 = vector.broadcast %cst_539 : f32 to vector<4x64xf32>
    %1014 = arith.addf %1013, %1012 : vector<4x64xf32>
    %1015 = arith.divf %1013, %1014 : vector<4x64xf32>
    %c1_540 = arith.constant 1 : index
    %c0_541 = arith.constant 0 : index
    %c0_542 = arith.constant 0 : index
    %1016 = vector.load %arg7[%c1_540, %c0_541, %c0_542] : memref<8x64x64xf32, #tpu.memory_space<vmem>>, vector<1x64x64xf32>
    %1017 = vector.shape_cast %1016 : vector<1x64x64xf32> to vector<64x64xf32>
    %cst_543 = arith.constant dense<0.000000e+00> : vector<4x64xf32>
    %1018 = tpu.matmul %1007, %1017, %cst_543 {dimension_numbers = #tpu.dot_dimension_numbers<[1], [0], [0], [1], [0, 0, 1, 1], [], []>} : vector<4x64xf32>, vector<64x64xf32>, vector<4x64xf32> -> vector<4x64xf32>
    %cst_544 = arith.constant 0.000000e+00 : f32
    %1019 = vector.broadcast %cst_544 : f32 to vector<4x64xf32>
    %1020 = arith.maximumf %1018, %1019 : vector<4x64xf32>
    %1021 = arith.subf %1020, %1007 : vector<4x64xf32>
    %1022 = arith.mulf %1015, %1021 : vector<4x64xf32>
    %1023 = arith.addf %1007, %1022 : vector<4x64xf32>
    %c2_545 = arith.constant 2 : index
    %c0_546 = arith.constant 0 : index
    %c0_547 = arith.constant 0 : index
    %1024 = vector.load %arg6[%c2_545, %c0_546, %c0_547] : memref<8x64x64xf32, #tpu.memory_space<vmem>>, vector<1x64x64xf32>
    %1025 = vector.shape_cast %1024 : vector<1x64x64xf32> to vector<64x64xf32>
    %cst_548 = arith.constant dense<0.000000e+00> : vector<4x64xf32>
    %1026 = tpu.matmul %1007, %1025, %cst_548 {dimension_numbers = #tpu.dot_dimension_numbers<[1], [0], [0], [1], [0, 0, 1, 1], [], []>} : vector<4x64xf32>, vector<64x64xf32>, vector<4x64xf32> -> vector<4x64xf32>
    %1027 = arith.negf %1026 : vector<4x64xf32>
    %1028 = math.exp %1027 : vector<4x64xf32>
    %cst_549 = arith.constant 1.000000e+00 : f32
    %1029 = vector.broadcast %cst_549 : f32 to vector<4x64xf32>
    %1030 = arith.addf %1029, %1028 : vector<4x64xf32>
    %1031 = arith.divf %1029, %1030 : vector<4x64xf32>
    %c2_550 = arith.constant 2 : index
    %c0_551 = arith.constant 0 : index
    %c0_552 = arith.constant 0 : index
    %1032 = vector.load %arg7[%c2_550, %c0_551, %c0_552] : memref<8x64x64xf32, #tpu.memory_space<vmem>>, vector<1x64x64xf32>
    %1033 = vector.shape_cast %1032 : vector<1x64x64xf32> to vector<64x64xf32>
    %cst_553 = arith.constant dense<0.000000e+00> : vector<4x64xf32>
    %1034 = tpu.matmul %1007, %1033, %cst_553 {dimension_numbers = #tpu.dot_dimension_numbers<[1], [0], [0], [1], [0, 0, 1, 1], [], []>} : vector<4x64xf32>, vector<64x64xf32>, vector<4x64xf32> -> vector<4x64xf32>
    %cst_554 = arith.constant 0.000000e+00 : f32
    %1035 = vector.broadcast %cst_554 : f32 to vector<4x64xf32>
    %1036 = arith.maximumf %1034, %1035 : vector<4x64xf32>
    %1037 = arith.subf %1036, %1007 : vector<4x64xf32>
    %1038 = arith.mulf %1031, %1037 : vector<4x64xf32>
    %1039 = arith.addf %1007, %1038 : vector<4x64xf32>
    %c3_555 = arith.constant 3 : index
    %c0_556 = arith.constant 0 : index
    %c0_557 = arith.constant 0 : index
    %1040 = vector.load %arg6[%c3_555, %c0_556, %c0_557] : memref<8x64x64xf32, #tpu.memory_space<vmem>>, vector<1x64x64xf32>
    %1041 = vector.shape_cast %1040 : vector<1x64x64xf32> to vector<64x64xf32>
    %cst_558 = arith.constant dense<0.000000e+00> : vector<4x64xf32>
    %1042 = tpu.matmul %1007, %1041, %cst_558 {dimension_numbers = #tpu.dot_dimension_numbers<[1], [0], [0], [1], [0, 0, 1, 1], [], []>} : vector<4x64xf32>, vector<64x64xf32>, vector<4x64xf32> -> vector<4x64xf32>
    %1043 = arith.negf %1042 : vector<4x64xf32>
    %1044 = math.exp %1043 : vector<4x64xf32>
    %cst_559 = arith.constant 1.000000e+00 : f32
    %1045 = vector.broadcast %cst_559 : f32 to vector<4x64xf32>
    %1046 = arith.addf %1045, %1044 : vector<4x64xf32>
    %1047 = arith.divf %1045, %1046 : vector<4x64xf32>
    %c3_560 = arith.constant 3 : index
    %c0_561 = arith.constant 0 : index
    %c0_562 = arith.constant 0 : index
    %1048 = vector.load %arg7[%c3_560, %c0_561, %c0_562] : memref<8x64x64xf32, #tpu.memory_space<vmem>>, vector<1x64x64xf32>
    %1049 = vector.shape_cast %1048 : vector<1x64x64xf32> to vector<64x64xf32>
    %cst_563 = arith.constant dense<0.000000e+00> : vector<4x64xf32>
    %1050 = tpu.matmul %1007, %1049, %cst_563 {dimension_numbers = #tpu.dot_dimension_numbers<[1], [0], [0], [1], [0, 0, 1, 1], [], []>} : vector<4x64xf32>, vector<64x64xf32>, vector<4x64xf32> -> vector<4x64xf32>
    %1051 = arith.subf %1050, %1007 : vector<4x64xf32>
    %1052 = arith.mulf %1047, %1051 : vector<4x64xf32>
    %1053 = arith.addf %1007, %1052 : vector<4x64xf32>
    %c4_564 = arith.constant 4 : index
    %c0_565 = arith.constant 0 : index
    %c0_566 = arith.constant 0 : index
    %1054 = vector.load %arg6[%c4_564, %c0_565, %c0_566] : memref<8x64x64xf32, #tpu.memory_space<vmem>>, vector<1x64x64xf32>
    %1055 = vector.shape_cast %1054 : vector<1x64x64xf32> to vector<64x64xf32>
    %cst_567 = arith.constant dense<0.000000e+00> : vector<4x64xf32>
    %1056 = tpu.matmul %1023, %1055, %cst_567 {dimension_numbers = #tpu.dot_dimension_numbers<[1], [0], [0], [1], [0, 0, 1, 1], [], []>} : vector<4x64xf32>, vector<64x64xf32>, vector<4x64xf32> -> vector<4x64xf32>
    %1057 = arith.negf %1056 : vector<4x64xf32>
    %1058 = math.exp %1057 : vector<4x64xf32>
    %cst_568 = arith.constant 1.000000e+00 : f32
    %1059 = vector.broadcast %cst_568 : f32 to vector<4x64xf32>
    %1060 = arith.addf %1059, %1058 : vector<4x64xf32>
    %1061 = arith.divf %1059, %1060 : vector<4x64xf32>
    %c4_569 = arith.constant 4 : index
    %c0_570 = arith.constant 0 : index
    %c0_571 = arith.constant 0 : index
    %1062 = vector.load %arg7[%c4_569, %c0_570, %c0_571] : memref<8x64x64xf32, #tpu.memory_space<vmem>>, vector<1x64x64xf32>
    %1063 = vector.shape_cast %1062 : vector<1x64x64xf32> to vector<64x64xf32>
    %cst_572 = arith.constant dense<0.000000e+00> : vector<4x64xf32>
    %1064 = tpu.matmul %1023, %1063, %cst_572 {dimension_numbers = #tpu.dot_dimension_numbers<[1], [0], [0], [1], [0, 0, 1, 1], [], []>} : vector<4x64xf32>, vector<64x64xf32>, vector<4x64xf32> -> vector<4x64xf32>
    %1065 = math.tanh %1064 : vector<4x64xf32>
    %1066 = arith.subf %1065, %1023 : vector<4x64xf32>
    %1067 = arith.mulf %1061, %1066 : vector<4x64xf32>
    %1068 = arith.addf %1023, %1067 : vector<4x64xf32>
    %c5_573 = arith.constant 5 : index
    %c0_574 = arith.constant 0 : index
    %c0_575 = arith.constant 0 : index
    %1069 = vector.load %arg6[%c5_573, %c0_574, %c0_575] : memref<8x64x64xf32, #tpu.memory_space<vmem>>, vector<1x64x64xf32>
    %1070 = vector.shape_cast %1069 : vector<1x64x64xf32> to vector<64x64xf32>
    %cst_576 = arith.constant dense<0.000000e+00> : vector<4x64xf32>
    %1071 = tpu.matmul %1068, %1070, %cst_576 {dimension_numbers = #tpu.dot_dimension_numbers<[1], [0], [0], [1], [0, 0, 1, 1], [], []>} : vector<4x64xf32>, vector<64x64xf32>, vector<4x64xf32> -> vector<4x64xf32>
    %1072 = arith.negf %1071 : vector<4x64xf32>
    %1073 = math.exp %1072 : vector<4x64xf32>
    %cst_577 = arith.constant 1.000000e+00 : f32
    %1074 = vector.broadcast %cst_577 : f32 to vector<4x64xf32>
    %1075 = arith.addf %1074, %1073 : vector<4x64xf32>
    %1076 = arith.divf %1074, %1075 : vector<4x64xf32>
    %c5_578 = arith.constant 5 : index
    %c0_579 = arith.constant 0 : index
    %c0_580 = arith.constant 0 : index
    %1077 = vector.load %arg7[%c5_578, %c0_579, %c0_580] : memref<8x64x64xf32, #tpu.memory_space<vmem>>, vector<1x64x64xf32>
    %1078 = vector.shape_cast %1077 : vector<1x64x64xf32> to vector<64x64xf32>
    %cst_581 = arith.constant dense<0.000000e+00> : vector<4x64xf32>
    %1079 = tpu.matmul %1068, %1078, %cst_581 {dimension_numbers = #tpu.dot_dimension_numbers<[1], [0], [0], [1], [0, 0, 1, 1], [], []>} : vector<4x64xf32>, vector<64x64xf32>, vector<4x64xf32> -> vector<4x64xf32>
    %1080 = arith.negf %1079 : vector<4x64xf32>
    %1081 = math.exp %1080 : vector<4x64xf32>
    %cst_582 = arith.constant 1.000000e+00 : f32
    %1082 = vector.broadcast %cst_582 : f32 to vector<4x64xf32>
    %1083 = arith.addf %1082, %1081 : vector<4x64xf32>
    %1084 = arith.divf %1082, %1083 : vector<4x64xf32>
    %1085 = arith.subf %1084, %1068 : vector<4x64xf32>
    %1086 = arith.mulf %1076, %1085 : vector<4x64xf32>
    %1087 = arith.addf %1068, %1086 : vector<4x64xf32>
    %c6_583 = arith.constant 6 : index
    %c0_584 = arith.constant 0 : index
    %c0_585 = arith.constant 0 : index
    %1088 = vector.load %arg6[%c6_583, %c0_584, %c0_585] : memref<8x64x64xf32, #tpu.memory_space<vmem>>, vector<1x64x64xf32>
    %1089 = vector.shape_cast %1088 : vector<1x64x64xf32> to vector<64x64xf32>
    %cst_586 = arith.constant dense<0.000000e+00> : vector<4x64xf32>
    %1090 = tpu.matmul %1039, %1089, %cst_586 {dimension_numbers = #tpu.dot_dimension_numbers<[1], [0], [0], [1], [0, 0, 1, 1], [], []>} : vector<4x64xf32>, vector<64x64xf32>, vector<4x64xf32> -> vector<4x64xf32>
    %1091 = arith.negf %1090 : vector<4x64xf32>
    %1092 = math.exp %1091 : vector<4x64xf32>
    %cst_587 = arith.constant 1.000000e+00 : f32
    %1093 = vector.broadcast %cst_587 : f32 to vector<4x64xf32>
    %1094 = arith.addf %1093, %1092 : vector<4x64xf32>
    %1095 = arith.divf %1093, %1094 : vector<4x64xf32>
    %c6_588 = arith.constant 6 : index
    %c0_589 = arith.constant 0 : index
    %c0_590 = arith.constant 0 : index
    %1096 = vector.load %arg7[%c6_588, %c0_589, %c0_590] : memref<8x64x64xf32, #tpu.memory_space<vmem>>, vector<1x64x64xf32>
    %1097 = vector.shape_cast %1096 : vector<1x64x64xf32> to vector<64x64xf32>
    %cst_591 = arith.constant dense<0.000000e+00> : vector<4x64xf32>
    %1098 = tpu.matmul %1039, %1097, %cst_591 {dimension_numbers = #tpu.dot_dimension_numbers<[1], [0], [0], [1], [0, 0, 1, 1], [], []>} : vector<4x64xf32>, vector<64x64xf32>, vector<4x64xf32> -> vector<4x64xf32>
    %1099 = math.tanh %1098 : vector<4x64xf32>
    %1100 = arith.subf %1099, %1039 : vector<4x64xf32>
    %1101 = arith.mulf %1095, %1100 : vector<4x64xf32>
    %1102 = arith.addf %1039, %1101 : vector<4x64xf32>
    %c7_592 = arith.constant 7 : index
    %c0_593 = arith.constant 0 : index
    %c0_594 = arith.constant 0 : index
    %1103 = vector.load %arg6[%c7_592, %c0_593, %c0_594] : memref<8x64x64xf32, #tpu.memory_space<vmem>>, vector<1x64x64xf32>
    %1104 = vector.shape_cast %1103 : vector<1x64x64xf32> to vector<64x64xf32>
    %cst_595 = arith.constant dense<0.000000e+00> : vector<4x64xf32>
    %1105 = tpu.matmul %1068, %1104, %cst_595 {dimension_numbers = #tpu.dot_dimension_numbers<[1], [0], [0], [1], [0, 0, 1, 1], [], []>} : vector<4x64xf32>, vector<64x64xf32>, vector<4x64xf32> -> vector<4x64xf32>
    %1106 = arith.negf %1105 : vector<4x64xf32>
    %1107 = math.exp %1106 : vector<4x64xf32>
    %cst_596 = arith.constant 1.000000e+00 : f32
    %1108 = vector.broadcast %cst_596 : f32 to vector<4x64xf32>
    %1109 = arith.addf %1108, %1107 : vector<4x64xf32>
    %1110 = arith.divf %1108, %1109 : vector<4x64xf32>
    %c7_597 = arith.constant 7 : index
    %c0_598 = arith.constant 0 : index
    %c0_599 = arith.constant 0 : index
    %1111 = vector.load %arg7[%c7_597, %c0_598, %c0_599] : memref<8x64x64xf32, #tpu.memory_space<vmem>>, vector<1x64x64xf32>
    %1112 = vector.shape_cast %1111 : vector<1x64x64xf32> to vector<64x64xf32>
    %cst_600 = arith.constant dense<0.000000e+00> : vector<4x64xf32>
    %1113 = tpu.matmul %1068, %1112, %cst_600 {dimension_numbers = #tpu.dot_dimension_numbers<[1], [0], [0], [1], [0, 0, 1, 1], [], []>} : vector<4x64xf32>, vector<64x64xf32>, vector<4x64xf32> -> vector<4x64xf32>
    %cst_601 = arith.constant 0.000000e+00 : f32
    %1114 = vector.broadcast %cst_601 : f32 to vector<4x64xf32>
    %1115 = arith.maximumf %1113, %1114 : vector<4x64xf32>
    %1116 = arith.subf %1115, %1068 : vector<4x64xf32>
    %1117 = arith.mulf %1110, %1116 : vector<4x64xf32>
    %1118 = arith.addf %1068, %1117 : vector<4x64xf32>
    %1119 = arith.addf %1007, %1023 : vector<4x64xf32>
    %1120 = arith.addf %1119, %1039 : vector<4x64xf32>
    %1121 = arith.addf %1120, %1053 : vector<4x64xf32>
    %1122 = arith.addf %1121, %1068 : vector<4x64xf32>
    %1123 = arith.addf %1122, %1087 : vector<4x64xf32>
    %1124 = arith.addf %1123, %1102 : vector<4x64xf32>
    %1125 = arith.addf %1124, %1118 : vector<4x64xf32>
    %1126 = vector.broadcast %cst : f32 to vector<4x64xf32>
    %1127 = arith.mulf %1125, %1126 : vector<4x64xf32>
    %1128 = arith.index_cast %c6_i32 : i32 to index
    %c0_602 = arith.constant 0 : index
    %c0_603 = arith.constant 0 : index
    %1129 = vector.load %arg8[%1128, %c0_602, %c0_603] : memref<8x4x64xf32, #tpu.memory_space<vmem>>, vector<1x4x64xf32>
    %1130 = vector.shape_cast %1129 : vector<1x4x64xf32> to vector<4x64xf32>
    %1131 = vector.shape_cast %1127 : vector<4x64xf32> to vector<1x4x64xf32>
    tpu.vector_store %arg8[%1128, %c0_602, %c0_603], %1131 {strides = array<i32>} : memref<8x4x64xf32, #tpu.memory_space<vmem>>, vector<1x4x64xf32>,
    %c7_i32 = arith.constant 7 : i32
    %1132 = arith.index_cast %c7_i32 : i32 to index
    %c0_604 = arith.constant 0 : index
    %c0_605 = arith.constant 0 : index
    %1133 = vector.load %arg0[%1132, %c0_604, %c0_605] : memref<8x4x64xf32, #tpu.memory_space<vmem>>, vector<1x4x64xf32>
    %1134 = vector.shape_cast %1133 : vector<1x4x64xf32> to vector<4x64xf32>
    %cst_606 = arith.constant dense<0.000000e+00> : vector<4x64xf32>
    %1135 = tpu.matmul %1134, %0, %cst_606 {dimension_numbers = #tpu.dot_dimension_numbers<[1], [0], [0], [1], [0, 0, 1, 1], [], []>} : vector<4x64xf32>, vector<64x64xf32>, vector<4x64xf32> -> vector<4x64xf32>
    %cst_607 = arith.constant dense<0.000000e+00> : vector<4x64xf32>
    %1136 = tpu.matmul %1127, %2, %cst_607 {dimension_numbers = #tpu.dot_dimension_numbers<[1], [0], [0], [1], [0, 0, 1, 1], [], []>} : vector<4x64xf32>, vector<64x64xf32>, vector<4x64xf32> -> vector<4x64xf32>
    %1137 = arith.addf %1135, %1136 : vector<4x64xf32>
    %1138 = arith.negf %1137 : vector<4x64xf32>
    %1139 = math.exp %1138 : vector<4x64xf32>
    %cst_608 = arith.constant 1.000000e+00 : f32
    %1140 = vector.broadcast %cst_608 : f32 to vector<4x64xf32>
    %1141 = arith.addf %1140, %1139 : vector<4x64xf32>
    %1142 = arith.divf %1140, %1141 : vector<4x64xf32>
    %cst_609 = arith.constant dense<0.000000e+00> : vector<4x64xf32>
    %1143 = tpu.matmul %1134, %1, %cst_609 {dimension_numbers = #tpu.dot_dimension_numbers<[1], [0], [0], [1], [0, 0, 1, 1], [], []>} : vector<4x64xf32>, vector<64x64xf32>, vector<4x64xf32> -> vector<4x64xf32>
    %cst_610 = arith.constant dense<0.000000e+00> : vector<4x64xf32>
    %1144 = tpu.matmul %1127, %3, %cst_610 {dimension_numbers = #tpu.dot_dimension_numbers<[1], [0], [0], [1], [0, 0, 1, 1], [], []>} : vector<4x64xf32>, vector<64x64xf32>, vector<4x64xf32> -> vector<4x64xf32>
    %1145 = arith.addf %1143, %1144 : vector<4x64xf32>
    %1146 = math.tanh %1145 : vector<4x64xf32>
    %1147 = arith.subf %1146, %1127 : vector<4x64xf32>
    %1148 = arith.mulf %1142, %1147 : vector<4x64xf32>
    %1149 = arith.addf %1127, %1148 : vector<4x64xf32>
    %c0_611 = arith.constant 0 : index
    %c0_612 = arith.constant 0 : index
    %c0_613 = arith.constant 0 : index
    %1150 = vector.load %arg6[%c0_611, %c0_612, %c0_613] : memref<8x64x64xf32, #tpu.memory_space<vmem>>, vector<1x64x64xf32>
    %1151 = vector.shape_cast %1150 : vector<1x64x64xf32> to vector<64x64xf32>
    %cst_614 = arith.constant dense<0.000000e+00> : vector<4x64xf32>
    %1152 = tpu.matmul %1149, %1151, %cst_614 {dimension_numbers = #tpu.dot_dimension_numbers<[1], [0], [0], [1], [0, 0, 1, 1], [], []>} : vector<4x64xf32>, vector<64x64xf32>, vector<4x64xf32> -> vector<4x64xf32>
    %1153 = arith.negf %1152 : vector<4x64xf32>
    %1154 = math.exp %1153 : vector<4x64xf32>
    %cst_615 = arith.constant 1.000000e+00 : f32
    %1155 = vector.broadcast %cst_615 : f32 to vector<4x64xf32>
    %1156 = arith.addf %1155, %1154 : vector<4x64xf32>
    %1157 = arith.divf %1155, %1156 : vector<4x64xf32>
    %c0_616 = arith.constant 0 : index
    %c0_617 = arith.constant 0 : index
    %c0_618 = arith.constant 0 : index
    %1158 = vector.load %arg7[%c0_616, %c0_617, %c0_618] : memref<8x64x64xf32, #tpu.memory_space<vmem>>, vector<1x64x64xf32>
    %1159 = vector.shape_cast %1158 : vector<1x64x64xf32> to vector<64x64xf32>
    %cst_619 = arith.constant dense<0.000000e+00> : vector<4x64xf32>
    %1160 = tpu.matmul %1149, %1159, %cst_619 {dimension_numbers = #tpu.dot_dimension_numbers<[1], [0], [0], [1], [0, 0, 1, 1], [], []>} : vector<4x64xf32>, vector<64x64xf32>, vector<4x64xf32> -> vector<4x64xf32>
    %1161 = arith.negf %1160 : vector<4x64xf32>
    %1162 = math.exp %1161 : vector<4x64xf32>
    %cst_620 = arith.constant 1.000000e+00 : f32
    %1163 = vector.broadcast %cst_620 : f32 to vector<4x64xf32>
    %1164 = arith.addf %1163, %1162 : vector<4x64xf32>
    %1165 = arith.divf %1163, %1164 : vector<4x64xf32>
    %1166 = arith.subf %1165, %1149 : vector<4x64xf32>
    %1167 = arith.mulf %1157, %1166 : vector<4x64xf32>
    %1168 = arith.addf %1149, %1167 : vector<4x64xf32>
    %c1_621 = arith.constant 1 : index
    %c0_622 = arith.constant 0 : index
    %c0_623 = arith.constant 0 : index
    %1169 = vector.load %arg6[%c1_621, %c0_622, %c0_623] : memref<8x64x64xf32, #tpu.memory_space<vmem>>, vector<1x64x64xf32>
    %1170 = vector.shape_cast %1169 : vector<1x64x64xf32> to vector<64x64xf32>
    %cst_624 = arith.constant dense<0.000000e+00> : vector<4x64xf32>
    %1171 = tpu.matmul %1168, %1170, %cst_624 {dimension_numbers = #tpu.dot_dimension_numbers<[1], [0], [0], [1], [0, 0, 1, 1], [], []>} : vector<4x64xf32>, vector<64x64xf32>, vector<4x64xf32> -> vector<4x64xf32>
    %1172 = arith.negf %1171 : vector<4x64xf32>
    %1173 = math.exp %1172 : vector<4x64xf32>
    %cst_625 = arith.constant 1.000000e+00 : f32
    %1174 = vector.broadcast %cst_625 : f32 to vector<4x64xf32>
    %1175 = arith.addf %1174, %1173 : vector<4x64xf32>
    %1176 = arith.divf %1174, %1175 : vector<4x64xf32>
    %c1_626 = arith.constant 1 : index
    %c0_627 = arith.constant 0 : index
    %c0_628 = arith.constant 0 : index
    %1177 = vector.load %arg7[%c1_626, %c0_627, %c0_628] : memref<8x64x64xf32, #tpu.memory_space<vmem>>, vector<1x64x64xf32>
    %1178 = vector.shape_cast %1177 : vector<1x64x64xf32> to vector<64x64xf32>
    %cst_629 = arith.constant dense<0.000000e+00> : vector<4x64xf32>
    %1179 = tpu.matmul %1168, %1178, %cst_629 {dimension_numbers = #tpu.dot_dimension_numbers<[1], [0], [0], [1], [0, 0, 1, 1], [], []>} : vector<4x64xf32>, vector<64x64xf32>, vector<4x64xf32> -> vector<4x64xf32>
    %cst_630 = arith.constant 0.000000e+00 : f32
    %1180 = vector.broadcast %cst_630 : f32 to vector<4x64xf32>
    %1181 = arith.maximumf %1179, %1180 : vector<4x64xf32>
    %1182 = arith.subf %1181, %1168 : vector<4x64xf32>
    %1183 = arith.mulf %1176, %1182 : vector<4x64xf32>
    %1184 = arith.addf %1168, %1183 : vector<4x64xf32>
    %c2_631 = arith.constant 2 : index
    %c0_632 = arith.constant 0 : index
    %c0_633 = arith.constant 0 : index
    %1185 = vector.load %arg6[%c2_631, %c0_632, %c0_633] : memref<8x64x64xf32, #tpu.memory_space<vmem>>, vector<1x64x64xf32>
    %1186 = vector.shape_cast %1185 : vector<1x64x64xf32> to vector<64x64xf32>
    %cst_634 = arith.constant dense<0.000000e+00> : vector<4x64xf32>
    %1187 = tpu.matmul %1168, %1186, %cst_634 {dimension_numbers = #tpu.dot_dimension_numbers<[1], [0], [0], [1], [0, 0, 1, 1], [], []>} : vector<4x64xf32>, vector<64x64xf32>, vector<4x64xf32> -> vector<4x64xf32>
    %1188 = arith.negf %1187 : vector<4x64xf32>
    %1189 = math.exp %1188 : vector<4x64xf32>
    %cst_635 = arith.constant 1.000000e+00 : f32
    %1190 = vector.broadcast %cst_635 : f32 to vector<4x64xf32>
    %1191 = arith.addf %1190, %1189 : vector<4x64xf32>
    %1192 = arith.divf %1190, %1191 : vector<4x64xf32>
    %c2_636 = arith.constant 2 : index
    %c0_637 = arith.constant 0 : index
    %c0_638 = arith.constant 0 : index
    %1193 = vector.load %arg7[%c2_636, %c0_637, %c0_638] : memref<8x64x64xf32, #tpu.memory_space<vmem>>, vector<1x64x64xf32>
    %1194 = vector.shape_cast %1193 : vector<1x64x64xf32> to vector<64x64xf32>
    %cst_639 = arith.constant dense<0.000000e+00> : vector<4x64xf32>
    %1195 = tpu.matmul %1168, %1194, %cst_639 {dimension_numbers = #tpu.dot_dimension_numbers<[1], [0], [0], [1], [0, 0, 1, 1], [], []>} : vector<4x64xf32>, vector<64x64xf32>, vector<4x64xf32> -> vector<4x64xf32>
    %cst_640 = arith.constant 0.000000e+00 : f32
    %1196 = vector.broadcast %cst_640 : f32 to vector<4x64xf32>
    %1197 = arith.maximumf %1195, %1196 : vector<4x64xf32>
    %1198 = arith.subf %1197, %1168 : vector<4x64xf32>
    %1199 = arith.mulf %1192, %1198 : vector<4x64xf32>
    %1200 = arith.addf %1168, %1199 : vector<4x64xf32>
    %c3_641 = arith.constant 3 : index
    %c0_642 = arith.constant 0 : index
    %c0_643 = arith.constant 0 : index
    %1201 = vector.load %arg6[%c3_641, %c0_642, %c0_643] : memref<8x64x64xf32, #tpu.memory_space<vmem>>, vector<1x64x64xf32>
    %1202 = vector.shape_cast %1201 : vector<1x64x64xf32> to vector<64x64xf32>
    %cst_644 = arith.constant dense<0.000000e+00> : vector<4x64xf32>
    %1203 = tpu.matmul %1168, %1202, %cst_644 {dimension_numbers = #tpu.dot_dimension_numbers<[1], [0], [0], [1], [0, 0, 1, 1], [], []>} : vector<4x64xf32>, vector<64x64xf32>, vector<4x64xf32> -> vector<4x64xf32>
    %1204 = arith.negf %1203 : vector<4x64xf32>
    %1205 = math.exp %1204 : vector<4x64xf32>
    %cst_645 = arith.constant 1.000000e+00 : f32
    %1206 = vector.broadcast %cst_645 : f32 to vector<4x64xf32>
    %1207 = arith.addf %1206, %1205 : vector<4x64xf32>
    %1208 = arith.divf %1206, %1207 : vector<4x64xf32>
    %c3_646 = arith.constant 3 : index
    %c0_647 = arith.constant 0 : index
    %c0_648 = arith.constant 0 : index
    %1209 = vector.load %arg7[%c3_646, %c0_647, %c0_648] : memref<8x64x64xf32, #tpu.memory_space<vmem>>, vector<1x64x64xf32>
    %1210 = vector.shape_cast %1209 : vector<1x64x64xf32> to vector<64x64xf32>
    %cst_649 = arith.constant dense<0.000000e+00> : vector<4x64xf32>
    %1211 = tpu.matmul %1168, %1210, %cst_649 {dimension_numbers = #tpu.dot_dimension_numbers<[1], [0], [0], [1], [0, 0, 1, 1], [], []>} : vector<4x64xf32>, vector<64x64xf32>, vector<4x64xf32> -> vector<4x64xf32>
    %1212 = arith.subf %1211, %1168 : vector<4x64xf32>
    %1213 = arith.mulf %1208, %1212 : vector<4x64xf32>
    %1214 = arith.addf %1168, %1213 : vector<4x64xf32>
    %c4_650 = arith.constant 4 : index
    %c0_651 = arith.constant 0 : index
    %c0_652 = arith.constant 0 : index
    %1215 = vector.load %arg6[%c4_650, %c0_651, %c0_652] : memref<8x64x64xf32, #tpu.memory_space<vmem>>, vector<1x64x64xf32>
    %1216 = vector.shape_cast %1215 : vector<1x64x64xf32> to vector<64x64xf32>
    %cst_653 = arith.constant dense<0.000000e+00> : vector<4x64xf32>
    %1217 = tpu.matmul %1184, %1216, %cst_653 {dimension_numbers = #tpu.dot_dimension_numbers<[1], [0], [0], [1], [0, 0, 1, 1], [], []>} : vector<4x64xf32>, vector<64x64xf32>, vector<4x64xf32> -> vector<4x64xf32>
    %1218 = arith.negf %1217 : vector<4x64xf32>
    %1219 = math.exp %1218 : vector<4x64xf32>
    %cst_654 = arith.constant 1.000000e+00 : f32
    %1220 = vector.broadcast %cst_654 : f32 to vector<4x64xf32>
    %1221 = arith.addf %1220, %1219 : vector<4x64xf32>
    %1222 = arith.divf %1220, %1221 : vector<4x64xf32>
    %c4_655 = arith.constant 4 : index
    %c0_656 = arith.constant 0 : index
    %c0_657 = arith.constant 0 : index
    %1223 = vector.load %arg7[%c4_655, %c0_656, %c0_657] : memref<8x64x64xf32, #tpu.memory_space<vmem>>, vector<1x64x64xf32>
    %1224 = vector.shape_cast %1223 : vector<1x64x64xf32> to vector<64x64xf32>
    %cst_658 = arith.constant dense<0.000000e+00> : vector<4x64xf32>
    %1225 = tpu.matmul %1184, %1224, %cst_658 {dimension_numbers = #tpu.dot_dimension_numbers<[1], [0], [0], [1], [0, 0, 1, 1], [], []>} : vector<4x64xf32>, vector<64x64xf32>, vector<4x64xf32> -> vector<4x64xf32>
    %1226 = math.tanh %1225 : vector<4x64xf32>
    %1227 = arith.subf %1226, %1184 : vector<4x64xf32>
    %1228 = arith.mulf %1222, %1227 : vector<4x64xf32>
    %1229 = arith.addf %1184, %1228 : vector<4x64xf32>
    %c5_659 = arith.constant 5 : index
    %c0_660 = arith.constant 0 : index
    %c0_661 = arith.constant 0 : index
    %1230 = vector.load %arg6[%c5_659, %c0_660, %c0_661] : memref<8x64x64xf32, #tpu.memory_space<vmem>>, vector<1x64x64xf32>
    %1231 = vector.shape_cast %1230 : vector<1x64x64xf32> to vector<64x64xf32>
    %cst_662 = arith.constant dense<0.000000e+00> : vector<4x64xf32>
    %1232 = tpu.matmul %1229, %1231, %cst_662 {dimension_numbers = #tpu.dot_dimension_numbers<[1], [0], [0], [1], [0, 0, 1, 1], [], []>} : vector<4x64xf32>, vector<64x64xf32>, vector<4x64xf32> -> vector<4x64xf32>
    %1233 = arith.negf %1232 : vector<4x64xf32>
    %1234 = math.exp %1233 : vector<4x64xf32>
    %cst_663 = arith.constant 1.000000e+00 : f32
    %1235 = vector.broadcast %cst_663 : f32 to vector<4x64xf32>
    %1236 = arith.addf %1235, %1234 : vector<4x64xf32>
    %1237 = arith.divf %1235, %1236 : vector<4x64xf32>
    %c5_664 = arith.constant 5 : index
    %c0_665 = arith.constant 0 : index
    %c0_666 = arith.constant 0 : index
    %1238 = vector.load %arg7[%c5_664, %c0_665, %c0_666] : memref<8x64x64xf32, #tpu.memory_space<vmem>>, vector<1x64x64xf32>
    %1239 = vector.shape_cast %1238 : vector<1x64x64xf32> to vector<64x64xf32>
    %cst_667 = arith.constant dense<0.000000e+00> : vector<4x64xf32>
    %1240 = tpu.matmul %1229, %1239, %cst_667 {dimension_numbers = #tpu.dot_dimension_numbers<[1], [0], [0], [1], [0, 0, 1, 1], [], []>} : vector<4x64xf32>, vector<64x64xf32>, vector<4x64xf32> -> vector<4x64xf32>
    %1241 = arith.negf %1240 : vector<4x64xf32>
    %1242 = math.exp %1241 : vector<4x64xf32>
    %cst_668 = arith.constant 1.000000e+00 : f32
    %1243 = vector.broadcast %cst_668 : f32 to vector<4x64xf32>
    %1244 = arith.addf %1243, %1242 : vector<4x64xf32>
    %1245 = arith.divf %1243, %1244 : vector<4x64xf32>
    %1246 = arith.subf %1245, %1229 : vector<4x64xf32>
    %1247 = arith.mulf %1237, %1246 : vector<4x64xf32>
    %1248 = arith.addf %1229, %1247 : vector<4x64xf32>
    %c6_669 = arith.constant 6 : index
    %c0_670 = arith.constant 0 : index
    %c0_671 = arith.constant 0 : index
    %1249 = vector.load %arg6[%c6_669, %c0_670, %c0_671] : memref<8x64x64xf32, #tpu.memory_space<vmem>>, vector<1x64x64xf32>
    %1250 = vector.shape_cast %1249 : vector<1x64x64xf32> to vector<64x64xf32>
    %cst_672 = arith.constant dense<0.000000e+00> : vector<4x64xf32>
    %1251 = tpu.matmul %1200, %1250, %cst_672 {dimension_numbers = #tpu.dot_dimension_numbers<[1], [0], [0], [1], [0, 0, 1, 1], [], []>} : vector<4x64xf32>, vector<64x64xf32>, vector<4x64xf32> -> vector<4x64xf32>
    %1252 = arith.negf %1251 : vector<4x64xf32>
    %1253 = math.exp %1252 : vector<4x64xf32>
    %cst_673 = arith.constant 1.000000e+00 : f32
    %1254 = vector.broadcast %cst_673 : f32 to vector<4x64xf32>
    %1255 = arith.addf %1254, %1253 : vector<4x64xf32>
    %1256 = arith.divf %1254, %1255 : vector<4x64xf32>
    %c6_674 = arith.constant 6 : index
    %c0_675 = arith.constant 0 : index
    %c0_676 = arith.constant 0 : index
    %1257 = vector.load %arg7[%c6_674, %c0_675, %c0_676] : memref<8x64x64xf32, #tpu.memory_space<vmem>>, vector<1x64x64xf32>
    %1258 = vector.shape_cast %1257 : vector<1x64x64xf32> to vector<64x64xf32>
    %cst_677 = arith.constant dense<0.000000e+00> : vector<4x64xf32>
    %1259 = tpu.matmul %1200, %1258, %cst_677 {dimension_numbers = #tpu.dot_dimension_numbers<[1], [0], [0], [1], [0, 0, 1, 1], [], []>} : vector<4x64xf32>, vector<64x64xf32>, vector<4x64xf32> -> vector<4x64xf32>
    %1260 = math.tanh %1259 : vector<4x64xf32>
    %1261 = arith.subf %1260, %1200 : vector<4x64xf32>
    %1262 = arith.mulf %1256, %1261 : vector<4x64xf32>
    %1263 = arith.addf %1200, %1262 : vector<4x64xf32>
    %c7_678 = arith.constant 7 : index
    %c0_679 = arith.constant 0 : index
    %c0_680 = arith.constant 0 : index
    %1264 = vector.load %arg6[%c7_678, %c0_679, %c0_680] : memref<8x64x64xf32, #tpu.memory_space<vmem>>, vector<1x64x64xf32>
    %1265 = vector.shape_cast %1264 : vector<1x64x64xf32> to vector<64x64xf32>
    %cst_681 = arith.constant dense<0.000000e+00> : vector<4x64xf32>
    %1266 = tpu.matmul %1229, %1265, %cst_681 {dimension_numbers = #tpu.dot_dimension_numbers<[1], [0], [0], [1], [0, 0, 1, 1], [], []>} : vector<4x64xf32>, vector<64x64xf32>, vector<4x64xf32> -> vector<4x64xf32>
    %1267 = arith.negf %1266 : vector<4x64xf32>
    %1268 = math.exp %1267 : vector<4x64xf32>
    %cst_682 = arith.constant 1.000000e+00 : f32
    %1269 = vector.broadcast %cst_682 : f32 to vector<4x64xf32>
    %1270 = arith.addf %1269, %1268 : vector<4x64xf32>
    %1271 = arith.divf %1269, %1270 : vector<4x64xf32>
    %c7_683 = arith.constant 7 : index
    %c0_684 = arith.constant 0 : index
    %c0_685 = arith.constant 0 : index
    %1272 = vector.load %arg7[%c7_683, %c0_684, %c0_685] : memref<8x64x64xf32, #tpu.memory_space<vmem>>, vector<1x64x64xf32>
    %1273 = vector.shape_cast %1272 : vector<1x64x64xf32> to vector<64x64xf32>
    %cst_686 = arith.constant dense<0.000000e+00> : vector<4x64xf32>
    %1274 = tpu.matmul %1229, %1273, %cst_686 {dimension_numbers = #tpu.dot_dimension_numbers<[1], [0], [0], [1], [0, 0, 1, 1], [], []>} : vector<4x64xf32>, vector<64x64xf32>, vector<4x64xf32> -> vector<4x64xf32>
    %cst_687 = arith.constant 0.000000e+00 : f32
    %1275 = vector.broadcast %cst_687 : f32 to vector<4x64xf32>
    %1276 = arith.maximumf %1274, %1275 : vector<4x64xf32>
    %1277 = arith.subf %1276, %1229 : vector<4x64xf32>
    %1278 = arith.mulf %1271, %1277 : vector<4x64xf32>
    %1279 = arith.addf %1229, %1278 : vector<4x64xf32>
    %1280 = arith.addf %1168, %1184 : vector<4x64xf32>
    %1281 = arith.addf %1280, %1200 : vector<4x64xf32>
    %1282 = arith.addf %1281, %1214 : vector<4x64xf32>
    %1283 = arith.addf %1282, %1229 : vector<4x64xf32>
    %1284 = arith.addf %1283, %1248 : vector<4x64xf32>
    %1285 = arith.addf %1284, %1263 : vector<4x64xf32>
    %1286 = arith.addf %1285, %1279 : vector<4x64xf32>
    %1287 = vector.broadcast %cst : f32 to vector<4x64xf32>
    %1288 = arith.mulf %1286, %1287 : vector<4x64xf32>
    %1289 = arith.index_cast %c7_i32 : i32 to index
    %c0_688 = arith.constant 0 : index
    %c0_689 = arith.constant 0 : index
    %1290 = vector.load %arg8[%1289, %c0_688, %c0_689] : memref<8x4x64xf32, #tpu.memory_space<vmem>>, vector<1x4x64xf32>
    %1291 = vector.shape_cast %1290 : vector<1x4x64xf32> to vector<4x64xf32>
    %1292 = vector.shape_cast %1288 : vector<4x64xf32> to vector<1x4x64xf32>
    tpu.vector_store %arg8[%1289, %c0_688, %c0_689], %1292 {strides = array<i32>} : memref<8x4x64xf32, #tpu.memory_space<vmem>>, vector<1x4x64xf32>,
    %c8_i32 = arith.constant 8 : i32
    return
  }
}

</mosaic_0001>

<bundles_post_ra>
// kernel: tpu_custom_call.1
= control target key start
LH: loop header
LB: loop body
LE: loop exit
PB: predicated region body
PF: predicated region fallthrough
CT: control target
= control target key end

     0   :  { %13 = vsyncpa [#allocation3], 0  ;;  %s22757_s0 = inlined_call_operand.hbm [shape: f32[8,4,64], index: 0, kind: input, shape index: {}]   ;;  %s22758_s1 = inlined_call_operand.hbm [shape: f32[4,64], index: 1, kind: input, shape index: {}]   ;;  %s22759_s2 = inlined_call_operand.hbm [shape: f32[64,64], index: 2, kind: input, shape index: {}]   ;;  %s22760_s3 = inlined_call_operand.hbm [shape: f32[64,64], index: 3, kind: input, shape index: {}]   ;;  %s22761_s4 = inlined_call_operand.hbm [shape: f32[64,64], index: 4, kind: input, shape index: {}]   ;;  %s22762_s5 = inlined_call_operand.hbm [shape: f32[64,64], index: 5, kind: input, shape index: {}]   ;;  %s22763_s6 = inlined_call_operand.hbm [shape: f32[8,64,64], index: 6, kind: input, shape index: {}]   ;;  %s22764_s7 = inlined_call_operand.hbm [shape: f32[8,64,64], index: 7, kind: input, shape index: {}]   ;;  %s22765_s8 = inlined_call_operand.hbm [shape: f32[8,4,64], index: 8, kind: output, shape index: {}]  }
   0x1   :  { %14 = vsyncpa [#allocation6], 0 }
   0x2   :  { %15 = vsyncpa [#allocation9], 0 }
   0x3   :  { %16 = vsyncpa [#allocation12], 0 }
   0x4   :  { %17 = vsyncpa [#allocation15], 0 }
   0x5   :  { %18 = vsyncpa [#allocation4], 0  ;;  %s20791_s27 = smov [#allocation5]   ;;  %s20581_s9 = scalar_lea.hbm %s22758_s1, 64 }
   0x6   :  { %s37_s28 = sshll.u32 %s20791_s27, 4  ;;  %p20582_p0 = scmp.ne.s32.totalorder %s22758_s1, %s20581_s9  ;;  %s38_s28 = int_to_ptr.vmem [resolvable:$true] %s37_s28 }
   0x7   :  { %p20585_p1 = scmp.lt.u32.totalorder %s20581_s9, %s22758_s1 }
   0x9   :  { %p20587_p2 = pnand %p20585_p1, %p20582_p0 }
   0xb   :  { %20590 = shalt.err (!%p20587_p2)
}
   0xc   :  { %s20591_s14 = scalar_lea.vmem %s38_s28, 64  ;;  %p20596_p4 = scmp.lt.s32.totalorder %s38_s28, %s38_s28 }
   0xd   :  { %p20592_p3 = scmp.ne.s32.totalorder %s38_s28, %s20591_s14  ;;  %p20597_p5 = scmp.lt.s32.totalorder %s20591_s14, %s20591_s14 }
   0xf   :  { %p20598_p6 = por %p20597_p5, %p20596_p4 }
  0x11   :  { %p20599_p7 = pnand %p20598_p6, %p20592_p3 }
  0x13   :  { %20602 = shalt.err (!%p20599_p7)
}
  0x14   :  { %40 = dma.hbm_to_vmem [thread:$0]  %s22758_s1, 64, %s38_s28, [#allocation6]  }
  0x15   :  { %s20792_s17 = smov [#allocation8]   ;;  %s20793_s19 = smov [#allocation11]  }
  0x16   :  { %s58_s18 = sshll.u32 %s20792_s17, 4  ;;  %s82_s20 = sshll.u32 %s20793_s19, 4  ;;  %s59_s18 = int_to_ptr.vmem [resolvable:$true] %s58_s18  ;;  %s83_s20 = int_to_ptr.vmem [resolvable:$true] %s82_s20 }
  0x17   :  { %s20603_s23 = scalar_lea.hbm %s22760_s3, 1024 }
  0x18   :  { %p20604_p8 = scmp.ne.s32.totalorder %s22760_s3, %s20603_s23  ;;  %p20607_p9 = scmp.lt.u32.totalorder %s20603_s23, %s22760_s3 }
  0x1a   :  { %p20609_p10 = pnand %p20607_p9, %p20604_p8 }
  0x1c   :  { %20612 = shalt.err (!%p20609_p10)
}
  0x1d   :  { %s20613_s1 = scalar_lea.vmem %s59_s18, 1024  ;;  %p20618_p12 = scmp.lt.s32.totalorder %s59_s18, %s59_s18 }
  0x1e   :  { %p20614_p11 = scmp.ne.s32.totalorder %s59_s18, %s20613_s1  ;;  %p20619_p13 = scmp.lt.s32.totalorder %s20613_s1, %s20613_s1 }
  0x20   :  { %p20620_p0 = por %p20619_p13, %p20618_p12 }
  0x22   :  { %p20621_p1 = pnand %p20620_p0, %p20614_p11 }
  0x24   :  { %20624 = shalt.err (!%p20621_p1)
}
  0x25   :  { %s20794_s28 = smov 128   ;;  %s20795_s29 = smov 8  }
  0x26   :  { %64 = dma.hbm_to_vmem [thread:$0]  %s22760_s3, 1024, %s59_s18, [#allocation9], %s20794_s28, %s20794_s28, %s20795_s29  }
  0x27   :  { %s20625_s12 = scalar_lea.hbm %s22762_s5, 1024 }
  0x28   :  { %p20626_p2 = scmp.ne.s32.totalorder %s22762_s5, %s20625_s12  ;;  %p20629_p3 = scmp.lt.u32.totalorder %s20625_s12, %s22762_s5 }
  0x2a   :  { %p20631_p4 = pnand %p20629_p3, %p20626_p2 }
  0x2c   :  { %20634 = shalt.err (!%p20631_p4)
}
  0x2d   :  { %s20635_s17 = scalar_lea.vmem %s83_s20, 1024  ;;  %p20640_p6 = scmp.lt.s32.totalorder %s83_s20, %s83_s20 }
  0x2e   :  { %p20636_p5 = scmp.ne.s32.totalorder %s83_s20, %s20635_s17  ;;  %p20641_p7 = scmp.lt.s32.totalorder %s20635_s17, %s20635_s17 }
  0x30   :  { %p20642_p8 = por %p20641_p7, %p20640_p6 }
  0x32   :  { %p20643_p9 = pnand %p20642_p8, %p20636_p5 }
  0x34   :  { %20646 = shalt.err (!%p20643_p9)
}
  0x35   :  { %88 = dma.hbm_to_vmem [thread:$0]  %s22762_s5, 1024, %s83_s20, [#allocation12], %s20794_s28, %s20794_s28, %s20795_s29  }
  0x36   :  { %s20796_s19 = smov [#allocation2]   ;;  %s20647_s24 = scalar_lea.hbm %s22757_s0, 512 }
  0x37   :  { %s24_s21 = sshll.u32 %s20796_s19, 4  ;;  %p20648_p10 = scmp.ne.s32.totalorder %s22757_s0, %s20647_s24  ;;  %s25_s21 = int_to_ptr.vmem [resolvable:$true] %s24_s21 }
  0x38   :  { %p20651_p11 = scmp.lt.u32.totalorder %s20647_s24, %s22757_s0 }
  0x3a   :  { %p20653_p12 = pnand %p20651_p11, %p20648_p10 }
  0x3c   :  { %20656 = shalt.err (!%p20653_p12)
}
  0x3d   :  { %s20657_s30 = scalar_lea.vmem %s25_s21, 512  ;;  %p20662_p0 = scmp.lt.s32.totalorder %s25_s21, %s25_s21 }
  0x3e   :  { %p20658_p13 = scmp.ne.s32.totalorder %s25_s21, %s20657_s30  ;;  %p20663_p1 = scmp.lt.s32.totalorder %s20657_s30, %s20657_s30 }
  0x40   :  { %p20664_p2 = por %p20663_p1, %p20662_p0 }
  0x42   :  { %p20665_p3 = pnand %p20664_p2, %p20658_p13 }
  0x44   :  { %20668 = shalt.err (!%p20665_p3)
}
  0x45   :  { %s20797_s5 = smov 64   ;;  %s20798_s20 = smov 4  }
  0x46   :  { %30 = dma.hbm_to_vmem [thread:$0]  %s22757_s0, 512, %s25_s21, [#allocation3], %s20797_s5, %s20797_s5, %s20798_s20  }
  0x47   :  { %s20799_s11 = smov [#allocation7]   ;;  %s20800_s13 = smov [#allocation10]  }
  0x48   :  { %s46_s12 = sshll.u32 %s20799_s11, 4  ;;  %s70_s14 = sshll.u32 %s20800_s13, 4  ;;  %s47_s12 = int_to_ptr.vmem [resolvable:$true] %s46_s12  ;;  %s20909_s14 = int_to_ptr.vmem [resolvable:$true] %s70_s14 }
  0x49   :  { %s20669_s17 = scalar_lea.hbm %s22759_s2, 1024 }
  0x4a   :  { %p20670_p4 = scmp.ne.s32.totalorder %s22759_s2, %s20669_s17  ;;  %p20673_p5 = scmp.lt.u32.totalorder %s20669_s17, %s22759_s2 }
  0x4c   :  { %p20675_p6 = pnand %p20673_p5, %p20670_p4 }
  0x4e   :  { %20678 = shalt.err (!%p20675_p6)
}
  0x4f   :  { %s20679_s0 = scalar_lea.vmem %s47_s12, 1024  ;;  %p20684_p8 = scmp.lt.s32.totalorder %s47_s12, %s47_s12 }
  0x50   :  { %p20680_p7 = scmp.ne.s32.totalorder %s47_s12, %s20679_s0  ;;  %p20685_p9 = scmp.lt.s32.totalorder %s20679_s0, %s20679_s0 }
  0x52   :  { %p20686_p10 = por %p20685_p9, %p20684_p8 }
  0x54   :  { %p20687_p11 = pnand %p20686_p10, %p20680_p7 }
  0x56   :  { %20690 = shalt.err (!%p20687_p11)
}
  0x57   :  { %52 = dma.hbm_to_vmem [thread:$0]  %s22759_s2, 1024, %s47_s12, [#allocation6], %s20794_s28, %s20794_s28, %s20795_s29  }
  0x58   :  { %s20691_s26 = scalar_lea.hbm %s22761_s4, 1024 }
  0x59   :  { %p20692_p12 = scmp.ne.s32.totalorder %s22761_s4, %s20691_s26  ;;  %p20695_p13 = scmp.lt.u32.totalorder %s20691_s26, %s22761_s4 }
  0x5b   :  { %p20697_p0 = pnand %p20695_p13, %p20692_p12 }
  0x5d   :  { %20700 = shalt.err (!%p20697_p0)
}
  0x5e   :  { %s20701_s10 = scalar_lea.vmem %s20909_s14, 1024  ;;  %p20706_p2 = scmp.lt.s32.totalorder %s20909_s14, %s20909_s14 }
  0x5f   :  { %p20702_p1 = scmp.ne.s32.totalorder %s20909_s14, %s20701_s10  ;;  %p20707_p3 = scmp.lt.s32.totalorder %s20701_s10, %s20701_s10 }
  0x61   :  { %p20708_p4 = por %p20707_p3, %p20706_p2 }
  0x63   :  { %p20709_p5 = pnand %p20708_p4, %p20702_p1 }
  0x65   :  { %20712 = shalt.err (!%p20709_p5)
}
  0x66   :  { %76 = dma.hbm_to_vmem [thread:$0]  %s22761_s4, 1024, %s20909_s14, [#allocation9], %s20794_s28, %s20794_s28, %s20795_s29  }
  0x67   :  { %s20801_s12 = smov [#allocation13]   ;;  %s20802_s15 = smov [#allocation14]  }
  0x68   :  { %s94_s13 = sshll.u32 %s20801_s12, 4  ;;  %s106_s16 = sshll.u32 %s20802_s15, 4  ;;  %s95_s13 = int_to_ptr.vmem [resolvable:$true] %s94_s13  ;;  %s20946_s16 = int_to_ptr.vmem [resolvable:$true] %s106_s16 }
  0x69   :  { %s20713_s18 = scalar_lea.hbm %s22763_s6, 8192 }
  0x6a   :  { %p20714_p6 = scmp.ne.s32.totalorder %s22763_s6, %s20713_s18  ;;  %p20717_p7 = scmp.lt.u32.totalorder %s20713_s18, %s22763_s6 }
  0x6c   :  { %p20719_p8 = pnand %p20717_p7, %p20714_p6 }
  0x6e   :  { %20722 = shalt.err (!%p20719_p8)
}
  0x6f   :  { %s20723_s4 = scalar_lea.vmem %s95_s13, 8192  ;;  %p20728_p10 = scmp.lt.s32.totalorder %s95_s13, %s95_s13 }
  0x70   :  { %p20724_p9 = scmp.ne.s32.totalorder %s95_s13, %s20723_s4  ;;  %p20729_p11 = scmp.lt.s32.totalorder %s20723_s4, %s20723_s4 }
  0x72   :  { %p20730_p12 = por %p20729_p11, %p20728_p10 }
  0x74   :  { %p20731_p13 = pnand %p20730_p12, %p20724_p9 }
  0x76   :  { %20734 = shalt.err (!%p20731_p13)
}
  0x77   :  { %100 = dma.hbm_to_vmem [thread:$0]  %s22763_s6, 8192, %s95_s13, [#allocation12], %s20794_s28, %s20794_s28, %s20795_s29  }
  0x78   :  { %s20735_s26 = scalar_lea.hbm %s22764_s7, 8192 }
  0x79   :  { %p20736_p0 = scmp.ne.s32.totalorder %s22764_s7, %s20735_s26  ;;  %p20739_p1 = scmp.lt.u32.totalorder %s20735_s26, %s22764_s7 }
  0x7b   :  { %p20741_p2 = pnand %p20739_p1, %p20736_p0 }
  0x7d   :  { %20744 = shalt.err (!%p20741_p2)
}
  0x7e   :  { %s20745_s10 = scalar_lea.vmem %s20946_s16, 8192  ;;  %p20750_p4 = scmp.lt.s32.totalorder %s20946_s16, %s20946_s16 }
  0x7f   :  { %p20746_p3 = scmp.ne.s32.totalorder %s20946_s16, %s20745_s10  ;;  %p20751_p5 = scmp.lt.s32.totalorder %s20745_s10, %s20745_s10 }
  0x81   :  { %p20752_p6 = por %p20751_p5, %p20750_p4 }
  0x83   :  { %p20753_p7 = pnand %p20752_p6, %p20746_p3 }
  0x85   :  { %20756 = shalt.err (!%p20753_p7)
}
  0x86   :  { %112 = dma.hbm_to_vmem [thread:$0]  %s22764_s7, 8192, %s20946_s16, [#allocation15], %s20794_s28, %s20794_s28, %s20795_s29  }
  0x87   :  { %20779 = dma.done.wait [#allocation3], 512  }
  0x88   :  { %20780 = vsyncadd [#allocation3], 4294966784 }
  0x89   :  { %20781 = dma.done.wait [#allocation6], 1088  }
  0x8a   :  { %20782 = vsyncadd [#allocation6], 4294966208 }
  0x8b   :  { %20783 = dma.done.wait [#allocation9], 2048  }
  0x8c   :  { %20784 = vsyncadd [#allocation9], 4294965248 }
  0x8d   :  { %20785 = dma.done.wait [#allocation12], 9216  }
  0x8e   :  { %20786 = vsyncadd [#allocation12], 4294958080 }
  0x8f   :  { %20787 = dma.done.wait [#allocation15], 8192  }
  0x90   :  { %20788 = vsyncadd [#allocation15], 4294959104  ;;  %v20803_v0 = vmov 0.0|0.0   ;;  %vm20804_vm0 = vmmov 0   ;;  %v20805_v1 = vmov 0.0   ;;  %v153_v2 = vld [vmem:[#allocation10] sm:$0xff] }
  0x91   :  { %18213 = vmatprep.subr.bf16.mxu0 %v20803_v0  ;;  %18237 = vmatprep.subr.bf16.mxu1 %v20803_v0  ;;  %v154_v3 = vld [vmem:[#allocation10 + $0x8] sm:$0xff]  ;;  %v161_v4 = vld [vmem:[#allocation11] sm:$0xff]  ;;  %v155_v7 = vld [vmem:[#allocation10 + $0x10] sm:$0xff]  ;;  %vm171_vm1 = vcmask 523264   ;;  %vm1842_vm2 = vcmask 519168   ;;  %s20806_s7 = smov [#allocation16]  }
  0x92   :  { %15189 = vmatprep.mubr.msk.f32.mxu0 %vm20804_vm0, %v20805_v1  ;;  %15227 = vmatprep.mubr.msk.f32.mxu1 %vm20804_vm0, %v20805_v1  ;;  %v20989_v5 = vpack.c.bf16 %v154_v3, %v153_v2  ;;  %v162_v6 = vld [vmem:[#allocation11 + $0x8] sm:$0xff]  ;;  %v156_v8 = vld [vmem:[#allocation10 + $0x18] sm:$0xff]  ;;  %v163_v10 = vld [vmem:[#allocation11 + $0x10] sm:$0xff]  ;;  %s13469_s28 = sshll.u32 %s20806_s7, 4  ;;  %s13470_s28 = int_to_ptr.vmem [resolvable:$true] %s13469_s28 }
  0x93   :  { %v20991_v9 = vpack.c.bf16 %v162_v6, %v161_v4  ;;  %v164_v11 = vld [vmem:[#allocation11 + $0x18] sm:$0xff]  ;;  %v20994_v12 = vpack.c.bf16 %v156_v8, %v155_v7  ;;  %v157_v14 = vld [vmem:[#allocation10 + $0x20] sm:$0xff]  ;;  %v158_v15 = vld [vmem:[#allocation10 + $0x28] sm:$0xff]  ;;  %s20757_s29 = scalar_lea.vmem %s13470_s28, 512  ;;  %p20762_p9 = scmp.lt.s32.totalorder %s13470_s28, %s13470_s28 }
  0x94   :  { %18215 = vmatpush3.bf16.msra.mxu0 %v20989_v5  ;;  %v20998_v13 = vpack.c.bf16 %v164_v11, %v163_v10  ;;  %v165_v16 = vld [vmem:[#allocation11 + $0x20] sm:$0xff]  ;;  %v166_v17 = vld [vmem:[#allocation11 + $0x28] sm:$0xff]  ;;  %v21002_v18 = vpack.c.bf16 %v158_v15, %v157_v14  ;;  %v159_v20 = vld [vmem:[#allocation10 + $0x30] sm:$0xff]  ;;  %p20758_p8 = scmp.ne.s32.totalorder %s13470_s28, %s20757_s29  ;;  %p20763_p10 = scmp.lt.s32.totalorder %s20757_s29, %s20757_s29 }
  0x95   :  { %18239 = vmatpush3.bf16.msra.mxu1 %v20991_v9  ;;  %18216 = vmatprep.subr.bf16.mxu0 %v20803_v0  ;;  %v21006_v19 = vpack.c.bf16 %v166_v17, %v165_v16  ;;  %v160_v21 = vld [vmem:[#allocation10 + $0x38] sm:$0xff]  ;;  %v167_v22 = vld [vmem:[#allocation11 + $0x30] sm:$0xff]  ;;  %v137_v26 = vld [vmem:[#allocation7] sm:$0xff] }
  0x96   :  { %18240 = vmatprep.subr.bf16.mxu1 %v20803_v0  ;;  %v168_v23 = vld [vmem:[#allocation11 + $0x38] sm:$0xff]  ;;  %v21010_v24 = vpack.c.bf16 %v160_v21, %v159_v20  ;;  %v138_v27 = vld [vmem:[#allocation7 + $0x8] sm:$0xff]  ;;  %v145_v28 = vld [vmem:[#allocation8] sm:$0xff]  ;;  %p20764_p11 = por %p20763_p10, %p20762_p9 }
  0x97   :  { %v21014_v25 = vpack.c.bf16 %v168_v23, %v167_v22  ;;  %v146_v29 = vld [vmem:[#allocation8 + $0x8] sm:$0xff]  ;;  %v21018_v30 = vld [vmem:[#allocation5] sm:$0xf]  ;;  %v21020_v31 = vpack.c.bf16 %v138_v27, %v137_v26  ;;  %v139_v33 = vld [vmem:[#allocation7 + $0x10] sm:$0xff] }
  0x98   :  { %18218 = vmatpush3.bf16.msra.mxu0 %v20994_v12  ;;  %v21024_v32 = vpack.c.bf16 %v146_v29, %v145_v28  ;;  %v140_v34 = vld [vmem:[#allocation7 + $0x18] sm:$0xff]  ;;  %v147_v35 = vld [vmem:[#allocation8 + $0x10] sm:$0xff]  ;;  %v141_v39 = vld [vmem:[#allocation7 + $0x20] sm:$0xff]  ;;  %p20765_p12 = pnand %p20764_p11, %p20758_p8 }
  0x99   :  { %18242 = vmatpush3.bf16.msra.mxu1 %v20998_v13  ;;  %18219 = vmatprep.subr.bf16.mxu0 %v20803_v0  ;;  %v148_v36 = vld [vmem:[#allocation8 + $0x18] sm:$0xff]  ;;  %v21032_v37 = vpack.c.bf16 %v140_v34, %v139_v33  ;;  %v142_v40 = vld [vmem:[#allocation7 + $0x28] sm:$0xff]  ;;  %v149_v41 = vld [vmem:[#allocation8 + $0x20] sm:$0xff] }
  0x9a   :  { %18243 = vmatprep.subr.bf16.mxu1 %v20803_v0  ;;  %v21036_v38 = vpack.c.bf16 %v148_v36, %v147_v35  ;;  %v150_v42 = vld [vmem:[#allocation8 + $0x28] sm:$0xff]  ;;  %v21044_v43 = vpack.c.bf16 %v142_v40, %v141_v39  ;;  %v143_v45 = vld [vmem:[#allocation7 + $0x30] sm:$0xff]  ;;  %v144_v46 = vld [vmem:[#allocation7 + $0x38] sm:$0xff] }
  0x9b   :  { %v21048_v44 = vpack.c.bf16 %v150_v42, %v149_v41  ;;  %v151_v47 = vld [vmem:[#allocation8 + $0x30] sm:$0xff]  ;;  %v152_v48 = vld [vmem:[#allocation8 + $0x38] sm:$0xff]  ;;  %v21052_v49 = vpack.c.bf16 %v144_v46, %v143_v45  ;;  %v468_v52 = vld [vmem:[#allocation13] sm:$0xff] }
  0x9c   :  { %18221 = vmatpush3.bf16.msra.mxu0 %v21002_v18  ;;  %v21056_v50 = vpack.c.bf16 %v152_v48, %v151_v47  ;;  %v170_v51 = vld [vmem:[#allocation2] sm:$0xf]  ;;  %v469_v53 = vld [vmem:[#allocation13 + $0x8] sm:$0xff]  ;;  %v555_v54 = vld [vmem:[#allocation14] sm:$0xff] }
  0x9d   :  { %18245 = vmatpush3.bf16.msra.mxu1 %v21006_v19  ;;  %18222 = vmatprep.subr.bf16.mxu0 %v20803_v0  ;;  %v18262_v55 = vpack.c.bf16 %v469_v53, %v468_v52  ;;  %v556_v56 = vld [vmem:[#allocation14 + $0x8] sm:$0xff]  ;;  %v470_v58 = vld [vmem:[#allocation13 + $0x10] sm:$0xff]  ;;  %v471_v59 = vld [vmem:[#allocation13 + $0x18] sm:$0xff] }
  0x9e   :  { %18246 = vmatprep.subr.bf16.mxu1 %v20803_v0  ;;  %v18274_v57 = vpack.c.bf16 %v556_v56, %v555_v54  ;;  %v557_v60 = vld [vmem:[#allocation14 + $0x10] sm:$0xff]  ;;  %v18265_v61 = vpack.c.bf16 %v471_v59, %v470_v58  ;;  %v558_v62 = vld [vmem:[#allocation14 + $0x18] sm:$0xff]  ;;  %v472_v2 = vld [vmem:[#allocation13 + $0x20] sm:$0xff] }
  0x9f   :  { %v18277_v63 = vpack.c.bf16 %v558_v62, %v557_v60  ;;  %v473_v3 = vld [vmem:[#allocation13 + $0x28] sm:$0xff]  ;;  %v559_v4 = vld [vmem:[#allocation14 + $0x20] sm:$0xff]  ;;  %v474_v10 = vld [vmem:[#allocation13 + $0x30] sm:$0xff] }
  0xa0   :  { %18224 = vmatpush3.bf16.msra.mxu0 %v21010_v24  ;;  %v18268_v6 = vpack.c.bf16 %v473_v3, %v472_v2  ;;  %v560_v7 = vld [vmem:[#allocation14 + $0x28] sm:$0xff]  ;;  %v475_v11 = vld [vmem:[#allocation13 + $0x38] sm:$0xff]  ;;  %v561_v14 = vld [vmem:[#allocation14 + $0x30] sm:$0xff] }
  0xa1   :  { %18248 = vmatpush3.bf16.msra.mxu1 %v21014_v25  ;;  %18225 = vmatprep.subr.bf16.mxu0 %v20803_v0  ;;  %v18280_v8 = vpack.c.bf16 %v560_v7, %v559_v4  ;;  %v18271_v15 = vpack.c.bf16 %v475_v11, %v474_v10  ;;  %v562_v16 = vld [vmem:[#allocation14 + $0x38] sm:$0xff]  ;;  %v643_v39 = vld [vmem:[#allocation13 + $0x40] sm:$0xff]  ;;  %v644_v40 = vld [vmem:[#allocation13 + $0x48] sm:$0xff] }
  0xa2   :  { %18249 = vmatprep.subr.bf16.mxu1 %v20803_v0  ;;  %v18283_v17 = vpack.c.bf16 %v562_v16, %v561_v14  ;;  %v731_v41 = vld [vmem:[#allocation14 + $0x40] sm:$0xff]  ;;  %v18286_v42 = vpack.c.bf16 %v644_v40, %v643_v39  ;;  %v732_v45 = vld [vmem:[#allocation14 + $0x48] sm:$0xff]  ;;  %v646_v47 = vld [vmem:[#allocation13 + $0x58] sm:$0xff] }
  0xa3   :  { %15190 = vmatmul.mubr.msk.f32.vlgmr.msra.gmra.mrb[0].mxu0 %vm171_vm1, %v21018_v30  ;;  %v18298_v46 = vpack.c.bf16 %v732_v45, %v731_v41  ;;  %v733_v48 = vld [vmem:[#allocation14 + $0x50] sm:$0xff]  ;;  %v734_v52 = vld [vmem:[#allocation14 + $0x58] sm:$0xff]  ;;  %v647_v54 = vld [vmem:[#allocation13 + $0x60] sm:$0xff] }
  0xa4   :  { %18227 = vmatpush3.bf16.msra.mxu0 %v21020_v31  ;;  %15228 = vmatmul.mubr.msk.f32.vlgmr.msra.gmra.mrb[0].mxu1 %vm171_vm1, %v21018_v30  ;;  %v18301_v53 = vpack.c.bf16 %v734_v52, %v733_v48  ;;  %v735_v56 = vld [vmem:[#allocation14 + $0x60] sm:$0xff]  ;;  %v736_v58 = vld [vmem:[#allocation14 + $0x68] sm:$0xff]  ;;  %v649_v60 = vld [vmem:[#allocation13 + $0x70] sm:$0xff] }
  0xa5   :  { %18251 = vmatpush3.bf16.msra.mxu1 %v21024_v32  ;;  %18228 = vmatprep.subr.bf16.mxu0 %v20803_v0  ;;  %v18304_v59 = vpack.c.bf16 %v736_v58, %v735_v56  ;;  %v737_v62 = vld [vmem:[#allocation14 + $0x70] sm:$0xff]  ;;  %v738_v2 = vld [vmem:[#allocation14 + $0x78] sm:$0xff]  ;;  %v904_v48 = vld [vmem:[#allocation14 + $0xa8] sm:$0xff] }
  0xa6   :  { %18252 = vmatprep.subr.bf16.mxu1 %v20803_v0  ;;  %15208 = vmatprep.mubr.msk.f32.mxu0 %vm20804_vm0, %v20805_v1  ;;  %v18307_v3 = vpack.c.bf16 %v738_v2, %v737_v62  ;;  %v817_v40 = vld [vmem:[#allocation13 + $0x98] sm:$0xff]  ;;  %v901_v41 = vld [vmem:[#allocation14 + $0x90] sm:$0xff]  ;;  %v1068_v62 = vld [vmem:[#allocation14 + $0xc8] sm:$0xff] }
  0xa7   :  { %15246 = vmatprep.mubr.msk.f32.mxu1 %vm20804_vm0, %v20805_v1  ;;  %v906_v56 = vld [vmem:[#allocation14 + $0xb8] sm:$0xff] }
  0xa8   :  { %18230 = vmatpush3.bf16.msra.mxu0 %v21032_v37 }
  0xa9   :  { %18254 = vmatpush3.bf16.msra.mxu1 %v21036_v38  ;;  %18231 = vmatprep.subr.bf16.mxu0 %v20803_v0 }
  0xaa   :  { %18255 = vmatprep.subr.bf16.mxu1 %v20803_v0 }
  0xac   :  { %18233 = vmatpush3.bf16.msra.mxu0 %v21044_v43 }
  0xad   :  { %18257 = vmatpush3.bf16.msra.mxu1 %v21048_v44  ;;  %18234 = vmatprep.subr.bf16.mxu0 %v20803_v0 }
  0xae   :  { %18258 = vmatprep.subr.bf16.mxu1 %v20803_v0 }
  0xb0   :  { %18236 = vmatpush3.bf16.msra.mxu0 %v21052_v49 }
  0xb1   :  { %18260 = vmatpush3.bf16.msra.mxu1 %v21056_v50  ;;  %18261 = vmatprep.subr.bf16.mxu0 %v20803_v0 }
  0xb2   :  { %18273 = vmatprep.subr.bf16.mxu1 %v20803_v0 }
  0xb3   :  { %15209 = vmatmul.mubr.msk.f32.vlgmr.msra.gmra.mrb[0].mxu0 %vm171_vm1, %v170_v51 }
  0xb4   :  { %15247 = vmatmul.mubr.msk.f32.vlgmr.msra.gmra.mrb[0].mxu1 %vm171_vm1, %v170_v51  ;;  %15265 = vmatprep.mubr.msk.f32.mxu0 %vm20804_vm0, %v20805_v1 }
  0xb5   :  { %15284 = vmatprep.mubr.msk.f32.mxu1 %vm20804_vm0, %v20805_v1  ;;  %18263 = vmatpush3.bf16.msra.mxu0 %v18262_v55  ;;  %v648_v55 = vld [vmem:[#allocation13 + $0x68] sm:$0xff] }
  0xb6   :  { %18275 = vmatpush3.bf16.msra.mxu1 %v18274_v57  ;;  %18264 = vmatprep.subr.bf16.mxu0 %v20803_v0  ;;  %v18292_v57 = vpack.c.bf16 %v648_v55, %v647_v54  ;;  %v821_v54 = vld [vmem:[#allocation13 + $0xb8] sm:$0xff]  ;;  %v905_v55 = vld [vmem:[#allocation14 + $0xb0] sm:$0xff] }
  0xb7   :  { %18276 = vmatprep.subr.bf16.mxu1 %v20803_v0  ;;  %v18331_v58 = vpack.c.bf16 %v906_v56, %v905_v55  ;;  %v1155_v56 = vld [vmem:[#allocation13 + $0x130] sm:$0xff] }
  0xb9   :  { %18266 = vmatpush3.bf16.msra.mxu0 %v18265_v61  ;;  %v650_v61 = vld [vmem:[#allocation13 + $0x78] sm:$0xff] }
  0xba   :  { %18278 = vmatpush3.bf16.msra.mxu1 %v18277_v63  ;;  %18267 = vmatprep.subr.bf16.mxu0 %v20803_v0  ;;  %v18295_v63 = vpack.c.bf16 %v650_v61, %v649_v60  ;;  %v983_v60 = vld [vmem:[#allocation13 + $0xc8] sm:$0xff]  ;;  %v1067_v61 = vld [vmem:[#allocation14 + $0xc0] sm:$0xff] }
  0xbb   :  { %18279 = vmatprep.subr.bf16.mxu1 %v20803_v0  ;;  %v18346_v2 = vpack.c.bf16 %v1068_v62, %v1067_v61 }
  0xbd   :  { %18269 = vmatpush3.bf16.msra.mxu0 %v18268_v6 }
  0xbe   :  { %18281 = vmatpush3.bf16.msra.mxu1 %v18280_v8  ;;  %18270 = vmatprep.subr.bf16.mxu0 %v20803_v0 }
  0xbf   :  { %18282 = vmatprep.subr.bf16.mxu1 %v20803_v0 }
  0xc1   :  { %18272 = vmatpush3.bf16.msra.mxu0 %v18271_v15 }
  0xc2   :  { %18284 = vmatpush3.bf16.msra.mxu1 %v18283_v17  ;;  %18285 = vmatprep.subr.bf16.mxu0 %v20803_v0 }
  0xc3   :  { %18297 = vmatprep.subr.bf16.mxu1 %v20803_v0 }
 0x186   :  { %v314_v20 = vpop.f32.mrb[0].mxu0 }
 0x187   :  { %v13487_v21 = vmul.f32 -1.442695, %v314_v20  ;;  %v460_v22 = vpop.f32.mrb[0].mxu1  ;;  %v15210_v23 = vpop.f32.mrb[1].mxu0 }
 0x188   :  { %v15248_v26 = vpop.f32.mrb[1].mxu1  ;;  %v815_v23 = vld [vmem:[#allocation13 + $0x88] sm:$0xff] }
 0x189   :  { %20181 = vpow2.f32 %v13487_v21  ;;  %v814_v21 = vld [vmem:[#allocation13 + $0x80] sm:$0xff] }
 0x18a   :  { %20183 = vtanh.f32 %v460_v22  ;;  %v899_v26 = vld [vmem:[#allocation14 + $0x80] sm:$0xff] }
 0x193   :  { %v20182_v27 = vpop.eup %20181 }
 0x194   :  { %v321_v28 = vadd.f32 1.0, %v20182_v27  ;;  %v20184_v29 = vpop.eup %20183  ;;  %v900_v27 = vld [vmem:[#allocation14 + $0x88] sm:$0xff] }
 0x195   :  { %v465_v33 = vsub.f32 %v20184_v29, %v21018_v30 }
 0x196   :  { %20185 = vrcp.f32 %v321_v28 }
 0x1a0   :  { %v20186_v34 = vpop.eup %20185 }
 0x1a1   :  { %v466_v35 = vmul.f32 %v20186_v34, %v465_v33  ;;  %v18310_v33 = vpack.c.bf16 %v815_v23, %v814_v21  ;;  %v18322_v34 = vpack.c.bf16 %v900_v27, %v899_v26  ;;  %v988_v21 = vld [vmem:[#allocation13 + $0xf0] sm:$0xff]  ;;  %v1074_v26 = vld [vmem:[#allocation14 + $0xf8] sm:$0xff] }
 0x1a2   :  { %v1073_v23 = vld [vmem:[#allocation14 + $0xf0] sm:$0xff] }
 0x1a3   :  { %v21079_v36 = vadd.f32 %v466_v35, %v21018_v30  ;;  %v645_v30 = vld [vmem:[#allocation13 + $0x50] sm:$0xff] }
 0x1a4   :  { %v18289_v51 = vpack.c.bf16 %v646_v47, %v645_v30  ;;  %v816_v35 = vld [vmem:[#allocation13 + $0x90] sm:$0xff]  ;;  %v818_v30 = vld [vmem:[#allocation13 + $0xa0] sm:$0xff] }
 0x1a5   :  { %15266 = vmatmul.mubr.msk.f32.vlgmr.msra.gmra.mrb[2].mxu0 %vm171_vm1, %v21079_v36  ;;  %15285 = vmatmul.mubr.msk.f32.vlgmr.msra.gmra.mrb[2].mxu1 %vm171_vm1, %v21079_v36  ;;  %v18313_v45 = vpack.c.bf16 %v817_v40, %v816_v35  ;;  %v903_v47 = vld [vmem:[#allocation14 + $0xa0] sm:$0xff]  ;;  %v1238_v40 = vld [vmem:[#allocation14 + $0x108] sm:$0xff] }
 0x1a6   :  { %15303 = vmatprep.mubr.msk.f32.mxu0 %vm20804_vm0, %v20805_v1  ;;  %15322 = vmatprep.mubr.msk.f32.mxu1 %vm20804_vm0, %v20805_v1  ;;  %v18328_v52 = vpack.c.bf16 %v904_v48, %v903_v47  ;;  %v1153_v48 = vld [vmem:[#allocation13 + $0x120] sm:$0xff] }
 0x1a7   :  { %18287 = vmatpush3.bf16.msra.mxu0 %v18286_v42  ;;  %18299 = vmatpush3.bf16.msra.mxu1 %v18298_v46  ;;  %v902_v42 = vld [vmem:[#allocation14 + $0x98] sm:$0xff] }
 0x1a8   :  { %18288 = vmatprep.subr.bf16.mxu0 %v20803_v0  ;;  %18300 = vmatprep.subr.bf16.mxu1 %v20803_v0  ;;  %v18325_v46 = vpack.c.bf16 %v902_v42, %v901_v41  ;;  %v1151_v42 = vld [vmem:[#allocation13 + $0x110] sm:$0xff] }
 0x1ab   :  { %18290 = vmatpush3.bf16.msra.mxu0 %v18289_v51  ;;  %18302 = vmatpush3.bf16.msra.mxu1 %v18301_v53  ;;  %v820_v53 = vld [vmem:[#allocation13 + $0xb0] sm:$0xff] }
 0x1ac   :  { %18291 = vmatprep.subr.bf16.mxu0 %v20803_v0  ;;  %18303 = vmatprep.subr.bf16.mxu1 %v20803_v0 }
 0x1af   :  { %18293 = vmatpush3.bf16.msra.mxu0 %v18292_v57  ;;  %18305 = vmatpush3.bf16.msra.mxu1 %v18304_v59  ;;  %v18319_v57 = vpack.c.bf16 %v821_v54, %v820_v53  ;;  %v982_v59 = vld [vmem:[#allocation13 + $0xc0] sm:$0xff]  ;;  %v1242_v54 = vld [vmem:[#allocation14 + $0x128] sm:$0xff] }
 0x1b0   :  { %18294 = vmatprep.subr.bf16.mxu0 %v20803_v0  ;;  %18306 = vmatprep.subr.bf16.mxu1 %v20803_v0 }
 0x1b3   :  { %18296 = vmatpush3.bf16.msra.mxu0 %v18295_v63  ;;  %18308 = vmatpush3.bf16.msra.mxu1 %v18307_v3  ;;  %v18334_v63 = vpack.c.bf16 %v983_v60, %v982_v59  ;;  %v984_v3 = vld [vmem:[#allocation13 + $0xd0] sm:$0xff]  ;;  %v1244_v60 = vld [vmem:[#allocation14 + $0x138] sm:$0xff] }
 0x1b4   :  { %18309 = vmatprep.subr.bf16.mxu0 %v20803_v0  ;;  %18321 = vmatprep.subr.bf16.mxu1 %v20803_v0 }
 0x278   :  { %v545_v4 = vpop.f32.mrb[2].mxu0  ;;  %v629_v6 = vpop.f32.mrb[2].mxu1 }
 0x279   :  { %v13491_v7 = vmul.f32 -1.442695, %v545_v4  ;;  %v13493_v8 = vmul.f32 -1.442695, %v629_v6  ;;  %v15267_v10 = vpop.f32.mrb[3].mxu0  ;;  %v15286_v11 = vpop.f32.mrb[3].mxu1 }
 0x27a   :  { %v985_v4 = vld [vmem:[#allocation13 + $0xd8] sm:$0xff]  ;;  %v1069_v6 = vld [vmem:[#allocation14 + $0xd0] sm:$0xff]  ;;  %v986_v11 = vld [vmem:[#allocation13 + $0xe0] sm:$0xff] }
 0x27b   :  { %20187 = vpow2.f32 %v13491_v7  ;;  %v1070_v7 = vld [vmem:[#allocation14 + $0xd8] sm:$0xff] }
 0x27c   :  { %20189 = vpow2.f32 %v13493_v8  ;;  %v18337_v8 = vpack.c.bf16 %v985_v4, %v984_v3  ;;  %v18349_v10 = vpack.c.bf16 %v1070_v7, %v1069_v6 }
 0x285   :  { %v20188_v14 = vpop.eup %20187 }
 0x286   :  { %v20190_v15 = vpop.eup %20189  ;;  %v552_v16 = vadd.f32 1.0, %v20188_v14  ;;  %v987_v14 = vld [vmem:[#allocation13 + $0xe8] sm:$0xff] }
 0x287   :  { %v636_v17 = vadd.f32 1.0, %v20190_v15  ;;  %v1071_v15 = vld [vmem:[#allocation14 + $0xe0] sm:$0xff] }
 0x289   :  { %20191 = vrcp.f32 %v636_v17  ;;  %v18340_v17 = vpack.c.bf16 %v987_v14, %v986_v11 }
 0x28a   :  { %20193 = vrcp.f32 %v552_v16  ;;  %v1072_v16 = vld [vmem:[#allocation14 + $0xe8] sm:$0xff] }
 0x293   :  { %v20192_v20 = vpop.eup %20191 }
 0x294   :  { %v639_v22 = vsub.f32 %v20192_v20, %v21079_v36  ;;  %v20194_v28 = vpop.eup %20193  ;;  %v18352_v20 = vpack.c.bf16 %v1072_v16, %v1071_v15 }
 0x296   :  { %v640_v29 = vmul.f32 %v20194_v28, %v639_v22  ;;  %v989_v22 = vld [vmem:[#allocation13 + $0xf8] sm:$0xff]  ;;  %v18355_v28 = vpack.c.bf16 %v1074_v26, %v1073_v23 }
 0x297   :  { %v18343_v27 = vpack.c.bf16 %v989_v22, %v988_v21 }
 0x298   :  { %v21099_v39 = vadd.f32 %v640_v29, %v21079_v36  ;;  %v819_v36 = vld [vmem:[#allocation13 + $0xa8] sm:$0xff]  ;;  %v1149_v29 = vld [vmem:[#allocation13 + $0x100] sm:$0xff] }
 0x299   :  { %v18316_v51 = vpack.c.bf16 %v819_v36, %v818_v30  ;;  %v1240_v36 = vld [vmem:[#allocation14 + $0x118] sm:$0xff] }
 0x29a   :  { %15304 = vmatmul.mubr.msk.f32.vlgmr.msra.gmra.mrb[4].mxu0 %vm171_vm1, %v21099_v39  ;;  %15323 = vmatmul.mubr.msk.f32.vlgmr.msra.gmra.mrb[4].mxu1 %vm171_vm1, %v21099_v39 }
 0x29b   :  { %18311 = vmatpush3.bf16.msra.mxu0 %v18310_v33  ;;  %18323 = vmatpush3.bf16.msra.mxu1 %v18322_v34  ;;  %v1150_v33 = vld [vmem:[#allocation13 + $0x108] sm:$0xff]  ;;  %v1237_v34 = vld [vmem:[#allocation14 + $0x100] sm:$0xff] }
 0x29c   :  { %18312 = vmatprep.subr.bf16.mxu0 %v20803_v0  ;;  %18324 = vmatprep.subr.bf16.mxu1 %v20803_v0  ;;  %v18358_v35 = vpack.c.bf16 %v1150_v33, %v1149_v29  ;;  %v18370_v41 = vpack.c.bf16 %v1238_v40, %v1237_v34 }
 0x29d   :  { %15341 = vmatprep.mubr.msk.f32.mxu0 %vm20804_vm0, %v20805_v1  ;;  %15360 = vmatprep.mubr.msk.f32.mxu1 %vm20804_vm0, %v20805_v1 }
 0x29f   :  { %18314 = vmatpush3.bf16.msra.mxu0 %v18313_v45  ;;  %18326 = vmatpush3.bf16.msra.mxu1 %v18325_v46  ;;  %v1152_v45 = vld [vmem:[#allocation13 + $0x118] sm:$0xff]  ;;  %v1239_v46 = vld [vmem:[#allocation14 + $0x110] sm:$0xff] }
 0x2a0   :  { %18315 = vmatprep.subr.bf16.mxu0 %v20803_v0  ;;  %18327 = vmatprep.subr.bf16.mxu1 %v20803_v0  ;;  %v18361_v30 = vpack.c.bf16 %v1152_v45, %v1151_v42  ;;  %v18373_v47 = vpack.c.bf16 %v1240_v36, %v1239_v46 }
 0x2a3   :  { %18317 = vmatpush3.bf16.msra.mxu0 %v18316_v51  ;;  %18329 = vmatpush3.bf16.msra.mxu1 %v18328_v52  ;;  %v1154_v51 = vld [vmem:[#allocation13 + $0x128] sm:$0xff]  ;;  %v1241_v52 = vld [vmem:[#allocation14 + $0x120] sm:$0xff] }
 0x2a4   :  { %18318 = vmatprep.subr.bf16.mxu0 %v20803_v0  ;;  %18330 = vmatprep.subr.bf16.mxu1 %v20803_v0  ;;  %v18364_v53 = vpack.c.bf16 %v1154_v51, %v1153_v48  ;;  %v18376_v55 = vpack.c.bf16 %v1242_v54, %v1241_v52  ;;  %v1320_v48 = vld [vmem:[#allocation13 + $0x140] sm:$0xff]  ;;  %v1321_v51 = vld [vmem:[#allocation13 + $0x148] sm:$0xff] }
 0x2a5   :  { %v1408_v52 = vld [vmem:[#allocation14 + $0x140] sm:$0xff]  ;;  %v1409_v54 = vld [vmem:[#allocation14 + $0x148] sm:$0xff] }
 0x2a7   :  { %18320 = vmatpush3.bf16.msra.mxu0 %v18319_v57  ;;  %18332 = vmatpush3.bf16.msra.mxu1 %v18331_v58  ;;  %v1156_v57 = vld [vmem:[#allocation13 + $0x138] sm:$0xff]  ;;  %v1243_v58 = vld [vmem:[#allocation14 + $0x130] sm:$0xff] }
 0x2a8   :  { %18333 = vmatprep.subr.bf16.mxu0 %v20803_v0  ;;  %18345 = vmatprep.subr.bf16.mxu1 %v20803_v0  ;;  %v18367_v59 = vpack.c.bf16 %v1156_v57, %v1155_v56  ;;  %v18379_v61 = vpack.c.bf16 %v1244_v60, %v1243_v58  ;;  %v1322_v56 = vld [vmem:[#allocation13 + $0x150] sm:$0xff]  ;;  %v1323_v57 = vld [vmem:[#allocation13 + $0x158] sm:$0xff] }
 0x2a9   :  { %v1410_v58 = vld [vmem:[#allocation14 + $0x150] sm:$0xff]  ;;  %v1411_v60 = vld [vmem:[#allocation14 + $0x158] sm:$0xff] }
 0x2aa   :  { %15342 = vmatmul.mubr.msk.f32.vlgmr.msra.gmra.mrb[6].mxu0 %vm171_vm1, %v21099_v39  ;;  %15361 = vmatmul.mubr.msk.f32.vlgmr.msra.gmra.mrb[6].mxu1 %vm171_vm1, %v21099_v39 }
 0x2ab   :  { %18335 = vmatpush3.bf16.msra.mxu0 %v18334_v63  ;;  %18347 = vmatpush3.bf16.msra.mxu1 %v18346_v2 }
 0x2ac   :  { %18336 = vmatprep.subr.bf16.mxu0 %v20803_v0  ;;  %18348 = vmatprep.subr.bf16.mxu1 %v20803_v0 }
 0x2ad   :  { %15379 = vmatprep.mubr.msk.f32.mxu0 %vm20804_vm0, %v20805_v1  ;;  %15398 = vmatprep.mubr.msk.f32.mxu1 %vm20804_vm0, %v20805_v1 }
 0x2af   :  { %18338 = vmatpush3.bf16.msra.mxu0 %v18337_v8  ;;  %18350 = vmatpush3.bf16.msra.mxu1 %v18349_v10 }
 0x2b0   :  { %18339 = vmatprep.subr.bf16.mxu0 %v20803_v0  ;;  %18351 = vmatprep.subr.bf16.mxu1 %v20803_v0 }
 0x2b3   :  { %18341 = vmatpush3.bf16.msra.mxu0 %v18340_v17  ;;  %18353 = vmatpush3.bf16.msra.mxu1 %v18352_v20 }
 0x2b4   :  { %18342 = vmatprep.subr.bf16.mxu0 %v20803_v0  ;;  %18354 = vmatprep.subr.bf16.mxu1 %v20803_v0 }
 0x2b7   :  { %18344 = vmatpush3.bf16.msra.mxu0 %v18343_v27  ;;  %18356 = vmatpush3.bf16.msra.mxu1 %v18355_v28 }
 0x2b8   :  { %18357 = vmatprep.subr.bf16.mxu0 %v20803_v0  ;;  %18369 = vmatprep.subr.bf16.mxu1 %v20803_v0 }
 0x2ba   :  { %15380 = vmatmul.mubr.msk.f32.vlgmr.msra.gmra.mrb[8].mxu0 %vm171_vm1, %v21099_v39  ;;  %15399 = vmatmul.mubr.msk.f32.vlgmr.msra.gmra.mrb[8].mxu1 %vm171_vm1, %v21099_v39 }
 0x2bb   :  { %15417 = vmatprep.mubr.msk.f32.mxu0 %vm20804_vm0, %v20805_v1  ;;  %15436 = vmatprep.mubr.msk.f32.mxu1 %vm20804_vm0, %v20805_v1 }
 0x2bc   :  { %18359 = vmatpush3.bf16.msra.mxu0 %v18358_v35  ;;  %18371 = vmatpush3.bf16.msra.mxu1 %v18370_v41 }
 0x2bd   :  { %18360 = vmatprep.subr.bf16.mxu0 %v20803_v0  ;;  %18372 = vmatprep.subr.bf16.mxu1 %v20803_v0 }
 0x2c0   :  { %18362 = vmatpush3.bf16.msra.mxu0 %v18361_v30  ;;  %18374 = vmatpush3.bf16.msra.mxu1 %v18373_v47 }
 0x2c1   :  { %18363 = vmatprep.subr.bf16.mxu0 %v20803_v0  ;;  %18375 = vmatprep.subr.bf16.mxu1 %v20803_v0 }
 0x2c4   :  { %18365 = vmatpush3.bf16.msra.mxu0 %v18364_v53  ;;  %18377 = vmatpush3.bf16.msra.mxu1 %v18376_v55  ;;  %v18382_v53 = vpack.c.bf16 %v1321_v51, %v1320_v48  ;;  %v18394_v55 = vpack.c.bf16 %v1409_v54, %v1408_v52  ;;  %v1499_v51 = vld [vmem:[#allocation13 + $0x198] sm:$0xff]  ;;  %v1586_v52 = vld [vmem:[#allocation14 + $0x190] sm:$0xff] }
 0x2c5   :  { %18366 = vmatprep.subr.bf16.mxu0 %v20803_v0  ;;  %18378 = vmatprep.subr.bf16.mxu1 %v20803_v0 }
 0x2c8   :  { %18368 = vmatpush3.bf16.msra.mxu0 %v18367_v59  ;;  %18380 = vmatpush3.bf16.msra.mxu1 %v18379_v61  ;;  %v18385_v59 = vpack.c.bf16 %v1323_v57, %v1322_v56  ;;  %v18397_v61 = vpack.c.bf16 %v1411_v60, %v1410_v58  ;;  %v1500_v56 = vld [vmem:[#allocation13 + $0x1a0] sm:$0xff]  ;;  %v1501_v57 = vld [vmem:[#allocation13 + $0x1a8] sm:$0xff] }
 0x2c9   :  { %18381 = vmatprep.subr.bf16.mxu0 %v20803_v0  ;;  %18393 = vmatprep.subr.bf16.mxu1 %v20803_v0  ;;  %v1588_v58 = vld [vmem:[#allocation14 + $0x1a0] sm:$0xff]  ;;  %v18412_v60 = vpack.c.bf16 %v1501_v57, %v1500_v56 }
 0x36d   :  { %v720_v62 = vpop.f32.mrb[4].mxu0  ;;  %v805_v63 = vpop.f32.mrb[4].mxu1 }
 0x36e   :  { %v13495_v2 = vmul.f32 -1.442695, %v720_v62  ;;  %v15305_v3 = vpop.f32.mrb[5].mxu0  ;;  %v15324_v4 = vpop.f32.mrb[5].mxu1  ;;  %v809_v16 = vmax.f32 %v805_v63, 0.0  ;;  %v1324_v62 = vld [vmem:[#allocation13 + $0x160] sm:$0xff] }
 0x36f   :  { %v1325_v63 = vld [vmem:[#allocation13 + $0x168] sm:$0xff] }
 0x370   :  { %20195 = vpow2.f32 %v13495_v2  ;;  %v810_v17 = vsub.f32 %v809_v16, %v21099_v39  ;;  %v1412_v2 = vld [vmem:[#allocation14 + $0x160] sm:$0xff]  ;;  %v18388_v3 = vpack.c.bf16 %v1325_v63, %v1324_v62  ;;  %v1413_v4 = vld [vmem:[#allocation14 + $0x168] sm:$0xff]  ;;  %v1502_v62 = vld [vmem:[#allocation13 + $0x1b0] sm:$0xff] }
 0x371   :  { %v1503_v63 = vld [vmem:[#allocation13 + $0x1b8] sm:$0xff] }
 0x37a   :  { %v20196_v6 = vpop.eup %20195 }
 0x37b   :  { %v727_v7 = vadd.f32 1.0, %v20196_v6  ;;  %v18400_v6 = vpack.c.bf16 %v1413_v4, %v1412_v2  ;;  %v1590_v2 = vld [vmem:[#allocation14 + $0x1b0] sm:$0xff]  ;;  %v18415_v4 = vpack.c.bf16 %v1503_v63, %v1502_v62 }
 0x37d   :  { %20197 = vrcp.f32 %v727_v7  ;;  %v888_v8 = vpop.f32.mrb[6].mxu0  ;;  %v973_v10 = vpop.f32.mrb[6].mxu1  ;;  %v1326_v7 = vld [vmem:[#allocation13 + $0x170] sm:$0xff] }
 0x37e   :  { %v13498_v11 = vmul.f32 -1.442695, %v888_v8  ;;  %v15343_v14 = vpop.f32.mrb[7].mxu0  ;;  %v15362_v15 = vpop.f32.mrb[7].mxu1  ;;  %v977_v35 = vmax.f32 %v973_v10, 0.0  ;;  %v1327_v8 = vld [vmem:[#allocation13 + $0x178] sm:$0xff] }
 0x37f   :  { %v1414_v10 = vld [vmem:[#allocation14 + $0x170] sm:$0xff]  ;;  %v1415_v14 = vld [vmem:[#allocation14 + $0x178] sm:$0xff] }
 0x380   :  { %20199 = vpow2.f32 %v13498_v11  ;;  %v978_v40 = vsub.f32 %v977_v35, %v21099_v39  ;;  %v18391_v11 = vpack.c.bf16 %v1327_v8, %v1326_v7  ;;  %v18403_v15 = vpack.c.bf16 %v1415_v14, %v1414_v10  ;;  %v1584_v35 = vld [vmem:[#allocation14 + $0x180] sm:$0xff]  ;;  %v1668_v8 = vld [vmem:[#allocation13 + $0x1c8] sm:$0xff] }
 0x381   :  { %v1667_v7 = vld [vmem:[#allocation13 + $0x1c0] sm:$0xff] }
 0x382   :  { %v1752_v10 = vld [vmem:[#allocation14 + $0x1c0] sm:$0xff]  ;;  %v18430_v14 = vpack.c.bf16 %v1668_v8, %v1667_v7 }
 0x387   :  { %v20198_v20 = vpop.eup %20197 }
 0x388   :  { %v811_v21 = vmul.f32 %v20198_v20, %v810_v17 }
 0x38a   :  { %v20200_v22 = vpop.eup %20199  ;;  %v21151_v23 = vadd.f32 %v811_v21, %v21099_v39 }
 0x38b   :  { %v895_v26 = vadd.f32 1.0, %v20200_v22 }
 0x38c   :  { %15418 = vmatmul.mubr.msk.f32.vlgmr.msra.gmra.mrb[10].mxu0 %vm171_vm1, %v21151_v23  ;;  %15437 = vmatmul.mubr.msk.f32.vlgmr.msra.gmra.mrb[10].mxu1 %vm171_vm1, %v21151_v23 }
 0x38d   :  { %20201 = vrcp.f32 %v895_v26  ;;  %v1056_v27 = vpop.f32.mrb[8].mxu0  ;;  %v1141_v28 = vpop.f32.mrb[8].mxu1  ;;  %15455 = vmatprep.mubr.msk.f32.mxu0 %vm20804_vm0, %v20805_v1  ;;  %15474 = vmatprep.mubr.msk.f32.mxu1 %vm20804_vm0, %v20805_v1 }
 0x38e   :  { %v13501_v29 = vmul.f32 -1.442695, %v1056_v27  ;;  %v15381_v33 = vpop.f32.mrb[9].mxu0  ;;  %v15400_v34 = vpop.f32.mrb[9].mxu1  ;;  %v1145_v30 = vsub.f32 %v1141_v28, %v21099_v39  ;;  %18383 = vmatpush3.bf16.msra.mxu0 %v18382_v53  ;;  %18395 = vmatpush3.bf16.msra.mxu1 %v18394_v55  ;;  %v1587_v53 = vld [vmem:[#allocation14 + $0x198] sm:$0xff] }
 0x38f   :  { %18384 = vmatprep.subr.bf16.mxu0 %v20803_v0  ;;  %18396 = vmatprep.subr.bf16.mxu1 %v20803_v0  ;;  %v1497_v34 = vld [vmem:[#allocation13 + $0x188] sm:$0xff]  ;;  %v18421_v55 = vpack.c.bf16 %v1587_v53, %v1586_v52 }
 0x390   :  { %20203 = vpow2.f32 %v13501_v29  ;;  %v1496_v29 = vld [vmem:[#allocation13 + $0x180] sm:$0xff] }
 0x392   :  { %18386 = vmatpush3.bf16.msra.mxu0 %v18385_v59  ;;  %18398 = vmatpush3.bf16.msra.mxu1 %v18397_v61  ;;  %v1589_v59 = vld [vmem:[#allocation14 + $0x1a8] sm:$0xff] }
 0x393   :  { %18387 = vmatprep.subr.bf16.mxu0 %v20803_v0  ;;  %18399 = vmatprep.subr.bf16.mxu1 %v20803_v0  ;;  %v18424_v61 = vpack.c.bf16 %v1589_v59, %v1588_v58 }
 0x396   :  { %18389 = vmatpush3.bf16.msra.mxu0 %v18388_v3  ;;  %18401 = vmatpush3.bf16.msra.mxu1 %v18400_v6  ;;  %v1591_v3 = vld [vmem:[#allocation14 + $0x1b8] sm:$0xff] }
 0x397   :  { %v20202_v41 = vpop.eup %20201  ;;  %18390 = vmatprep.subr.bf16.mxu0 %v20803_v0  ;;  %18402 = vmatprep.subr.bf16.mxu1 %v20803_v0  ;;  %v18427_v6 = vpack.c.bf16 %v1591_v3, %v1590_v2 }
 0x398   :  { %v21162_v42 = vmul.f32 %v20202_v41, %v978_v40  ;;  %v1585_v40 = vld [vmem:[#allocation14 + $0x188] sm:$0xff] }
 0x39a   :  { %v20204_v45 = vpop.eup %20203  ;;  %18392 = vmatpush3.bf16.msra.mxu0 %v18391_v11  ;;  %18404 = vmatpush3.bf16.msra.mxu1 %v18403_v15  ;;  %v1753_v11 = vld [vmem:[#allocation14 + $0x1c8] sm:$0xff] }
 0x39b   :  { %v1063_v46 = vadd.f32 1.0, %v20204_v45  ;;  %18405 = vmatprep.subr.bf16.mxu0 %v20803_v0  ;;  %18417 = vmatprep.subr.bf16.mxu1 %v20803_v0  ;;  %v18442_v15 = vpack.c.bf16 %v1753_v11, %v1752_v10 }
 0x39d   :  { %20205 = vrcp.f32 %v1063_v46  ;;  %v18406_v46 = vpack.c.bf16 %v1497_v34, %v1496_v29  ;;  %v1756_v29 = vld [vmem:[#allocation14 + $0x1e0] sm:$0xff] }
 0x3a7   :  { %v20206_v36 = vpop.eup %20205 }
 0x3a8   :  { %v21165_v47 = vmul.f32 %v20206_v36, %v1145_v30  ;;  %v18418_v30 = vpack.c.bf16 %v1585_v40, %v1584_v35  ;;  %v1498_v36 = vld [vmem:[#allocation13 + $0x190] sm:$0xff] }
 0x3a9   :  { %v18409_v54 = vpack.c.bf16 %v1499_v51, %v1498_v36  ;;  %v1673_v40 = vld [vmem:[#allocation13 + $0x1f0] sm:$0xff] }
 0x45f   :  { %v1226_v16 = vpop.f32.mrb[10].mxu0  ;;  %v1311_v17 = vpop.f32.mrb[10].mxu1 }
 0x460   :  { %v13504_v20 = vmul.f32 -1.442695, %v1226_v16  ;;  %v15419_v21 = vpop.f32.mrb[11].mxu0  ;;  %v15438_v22 = vpop.f32.mrb[11].mxu1  ;;  %v1669_v16 = vld [vmem:[#allocation13 + $0x1d0] sm:$0xff] }
 0x461   :  { %v1754_v21 = vld [vmem:[#allocation14 + $0x1d0] sm:$0xff]  ;;  %v1755_v22 = vld [vmem:[#allocation14 + $0x1d8] sm:$0xff] }
 0x462   :  { %20207 = vpow2.f32 %v13504_v20  ;;  %v1670_v20 = vld [vmem:[#allocation13 + $0x1d8] sm:$0xff] }
 0x463   :  { %20209 = vtanh.f32 %v1311_v17  ;;  %v21195_v17 = vadd.f32 %v21162_v42, %v21099_v39  ;;  %v1672_v42 = vld [vmem:[#allocation13 + $0x1e8] sm:$0xff] }
 0x46c   :  { %v20208_v26 = vpop.eup %20207 }
 0x46d   :  { %v1233_v27 = vadd.f32 1.0, %v20208_v26  ;;  %v20210_v28 = vpop.eup %20209  ;;  %v18433_v26 = vpack.c.bf16 %v1670_v20, %v1669_v16 }
 0x46e   :  { %v1316_v33 = vsub.f32 %v20210_v28, %v21151_v23  ;;  %v1671_v28 = vld [vmem:[#allocation13 + $0x1e0] sm:$0xff] }
 0x46f   :  { %20211 = vrcp.f32 %v1233_v27  ;;  %v18445_v27 = vpack.c.bf16 %v1755_v22, %v1754_v21  ;;  %v18436_v34 = vpack.c.bf16 %v1672_v42, %v1671_v28 }
 0x479   :  { %v20212_v41 = vpop.eup %20211 }
 0x47a   :  { %v1317_v45 = vmul.f32 %v20212_v41, %v1316_v33  ;;  %v1757_v33 = vld [vmem:[#allocation14 + $0x1e8] sm:$0xff]  ;;  %v1674_v41 = vld [vmem:[#allocation13 + $0x1f8] sm:$0xff] }
 0x47b   :  { %v18448_v35 = vpack.c.bf16 %v1757_v33, %v1756_v29 }
 0x47c   :  { %v21177_v48 = vadd.f32 %v1317_v45, %v21151_v23  ;;  %v1758_v45 = vld [vmem:[#allocation14 + $0x1f0] sm:$0xff] }
 0x47e   :  { %15456 = vmatmul.mubr.msk.f32.vlgmr.msra.gmra.mrb[12].mxu0 %vm171_vm1, %v21177_v48  ;;  %15475 = vmatmul.mubr.msk.f32.vlgmr.msra.gmra.mrb[12].mxu1 %vm171_vm1, %v21177_v48 }
 0x47f   :  { %18407 = vmatpush3.bf16.msra.mxu0 %v18406_v46  ;;  %18419 = vmatpush3.bf16.msra.mxu1 %v18418_v30  ;;  %v1759_v46 = vld [vmem:[#allocation14 + $0x1f8] sm:$0xff]  ;;  %v18439_v30 = vpack.c.bf16 %v1674_v41, %v1673_v40 }
 0x480   :  { %18408 = vmatprep.subr.bf16.mxu0 %v20803_v0  ;;  %18420 = vmatprep.subr.bf16.mxu1 %v20803_v0  ;;  %v18451_v36 = vpack.c.bf16 %v1759_v46, %v1758_v45 }
 0x481   :  { %15493 = vmatprep.mubr.msk.f32.mxu0 %vm20804_vm0, %v20805_v1  ;;  %15512 = vmatprep.mubr.msk.f32.mxu1 %vm20804_vm0, %v20805_v1 }
 0x483   :  { %18410 = vmatpush3.bf16.msra.mxu0 %v18409_v54  ;;  %18422 = vmatpush3.bf16.msra.mxu1 %v18421_v55 }
 0x484   :  { %18411 = vmatprep.subr.bf16.mxu0 %v20803_v0  ;;  %18423 = vmatprep.subr.bf16.mxu1 %v20803_v0 }
 0x487   :  { %18413 = vmatpush3.bf16.msra.mxu0 %v18412_v60  ;;  %18425 = vmatpush3.bf16.msra.mxu1 %v18424_v61 }
 0x488   :  { %18414 = vmatprep.subr.bf16.mxu0 %v20803_v0  ;;  %18426 = vmatprep.subr.bf16.mxu1 %v20803_v0 }
 0x48b   :  { %18416 = vmatpush3.bf16.msra.mxu0 %v18415_v4  ;;  %18428 = vmatpush3.bf16.msra.mxu1 %v18427_v6  ;;  %v1147_v4 = vadd.f32 %v21165_v47, %v21099_v39  ;;  %v1834_v6 = vadd.f32 %v21151_v23, %v21099_v39 }
 0x48c   :  { %18429 = vmatprep.subr.bf16.mxu0 %v20803_v0  ;;  %18441 = vmatprep.subr.bf16.mxu1 %v20803_v0 }
 0x48d   :  { %v1835_v10 = vadd.f32 %v1834_v6, %v21195_v17  ;;  %v2147_v6 = vld [vmem:[#allocation13 + $0x28] sm:$0xff] }
 0x48e   :  { %15494 = vmatmul.mubr.msk.f32.vlgmr.msra.gmra.mrb[14].mxu0 %vm171_vm1, %v21195_v17  ;;  %15513 = vmatmul.mubr.msk.f32.vlgmr.msra.gmra.mrb[14].mxu1 %vm171_vm1, %v21195_v17 }
 0x48f   :  { %18431 = vmatpush3.bf16.msra.mxu0 %v18430_v14  ;;  %18443 = vmatpush3.bf16.msra.mxu1 %v18442_v15  ;;  %v1836_v15 = vadd.f32 %v1835_v10, %v1147_v4  ;;  %v2146_v4 = vld [vmem:[#allocation13 + $0x20] sm:$0xff]  ;;  %v2234_v10 = vld [vmem:[#allocation14 + $0x28] sm:$0xff] }
 0x490   :  { %18432 = vmatprep.subr.bf16.mxu0 %v20803_v0  ;;  %18444 = vmatprep.subr.bf16.mxu1 %v20803_v0 }
 0x491   :  { %15531 = vmatprep.mubr.msk.f32.mxu0 %vm20804_vm0, %v20805_v1  ;;  %15550 = vmatprep.mubr.msk.f32.mxu1 %vm20804_vm0, %v20805_v1  ;;  %v1837_v47 = vadd.f32 %v1836_v15, %v21177_v48  ;;  %v2149_v15 = vld [vmem:[#allocation13 + $0x38] sm:$0xff] }
 0x493   :  { %18434 = vmatpush3.bf16.msra.mxu0 %v18433_v26  ;;  %18446 = vmatpush3.bf16.msra.mxu1 %v18445_v27 }
 0x494   :  { %18435 = vmatprep.subr.bf16.mxu0 %v20803_v0  ;;  %18447 = vmatprep.subr.bf16.mxu1 %v20803_v0 }
 0x497   :  { %18437 = vmatpush3.bf16.msra.mxu0 %v18436_v34  ;;  %18449 = vmatpush3.bf16.msra.mxu1 %v18448_v35 }
 0x498   :  { %18438 = vmatprep.subr.bf16.mxu0 %v20803_v0  ;;  %18450 = vmatprep.subr.bf16.mxu1 %v20803_v0 }
 0x49b   :  { %18440 = vmatpush3.bf16.msra.mxu0 %v18439_v30  ;;  %18452 = vmatpush3.bf16.msra.mxu1 %v18451_v36 }
 0x49c   :  { %18453 = vmatprep.subr.bf16.mxu0 %v20803_v0  ;;  %18477 = vmatprep.subr.bf16.mxu1 %v20803_v0 }
 0x49e   :  { %15532 = vmatmul.mubr.msk.f32.vlgmr.msra.gmra.mrb[16].mxu0 %vm171_vm1, %v21177_v48  ;;  %15551 = vmatmul.mubr.msk.f32.vlgmr.msra.gmra.mrb[16].mxu1 %vm171_vm1, %v21177_v48 }
 0x49f   :  { %18455 = vmatpush3.bf16.msra.mxu0 %v20989_v5  ;;  %18479 = vmatpush3.bf16.msra.mxu1 %v20991_v9 }
 0x4a0   :  { %18456 = vmatprep.subr.bf16.mxu0 %v20803_v0  ;;  %18480 = vmatprep.subr.bf16.mxu1 %v20803_v0 }
 0x4a1   :  { %15569 = vmatprep.mubr.msk.f32.mxu0 %vm20804_vm0, %v20805_v1  ;;  %15607 = vmatprep.mubr.msk.f32.mxu1 %vm20804_vm0, %v20805_v1 }
 0x4a3   :  { %18458 = vmatpush3.bf16.msra.mxu0 %v20994_v12  ;;  %18482 = vmatpush3.bf16.msra.mxu1 %v20998_v13 }
 0x4a4   :  { %18459 = vmatprep.subr.bf16.mxu0 %v20803_v0  ;;  %18483 = vmatprep.subr.bf16.mxu1 %v20803_v0 }
 0x4a7   :  { %18461 = vmatpush3.bf16.msra.mxu0 %v21002_v18  ;;  %18485 = vmatpush3.bf16.msra.mxu1 %v21006_v19 }
 0x4a8   :  { %18462 = vmatprep.subr.bf16.mxu0 %v20803_v0  ;;  %18486 = vmatprep.subr.bf16.mxu1 %v20803_v0 }
 0x4ab   :  { %18464 = vmatpush3.bf16.msra.mxu0 %v21010_v24  ;;  %18488 = vmatpush3.bf16.msra.mxu1 %v21014_v25 }
 0x4ac   :  { %18465 = vmatprep.subr.bf16.mxu0 %v20803_v0  ;;  %18489 = vmatprep.subr.bf16.mxu1 %v20803_v0 }
 0x551   :  { %v1397_v51 = vpop.f32.mrb[12].mxu0  ;;  %v1482_v52 = vpop.f32.mrb[12].mxu1 }
 0x552   :  { %v13507_v53 = vmul.f32 -1.442695, %v1397_v51  ;;  %v13509_v54 = vmul.f32 -1.442695, %v1482_v52  ;;  %v15457_v55 = vpop.f32.mrb[13].mxu0  ;;  %v15476_v56 = vpop.f32.mrb[13].mxu1 }
 0x553   :  { %v2143_v55 = vld [vmem:[#allocation13 + $0x8] sm:$0xff]  ;;  %v2229_v56 = vld [vmem:[#allocation14] sm:$0xff] }
 0x554   :  { %20213 = vpow2.f32 %v13507_v53 }
 0x555   :  { %20215 = vpow2.f32 %v13509_v54 }
 0x55e   :  { %v20214_v57 = vpop.eup %20213 }
 0x55f   :  { %v20216_v58 = vpop.eup %20215  ;;  %v1404_v59 = vadd.f32 1.0, %v20214_v57 }
 0x560   :  { %v1489_v60 = vadd.f32 1.0, %v20216_v58  ;;  %v2230_v58 = vld [vmem:[#allocation14 + $0x8] sm:$0xff] }
 0x561   :  { %v1573_v61 = vpop.f32.mrb[14].mxu0  ;;  %v1658_v62 = vpop.f32.mrb[14].mxu1 }
 0x562   :  { %20217 = vrcp.f32 %v1489_v60  ;;  %v13511_v63 = vmul.f32 -1.442695, %v1573_v61  ;;  %v15495_v2 = vpop.f32.mrb[15].mxu0  ;;  %v15514_v3 = vpop.f32.mrb[15].mxu1  ;;  %v2144_v60 = vld [vmem:[#allocation13 + $0x10] sm:$0xff]  ;;  %v2145_v61 = vld [vmem:[#allocation13 + $0x18] sm:$0xff] }
 0x563   :  { %20219 = vrcp.f32 %v1404_v59  ;;  %v18514_v59 = vpack.c.bf16 %v2230_v58, %v2229_v56  ;;  %v2232_v2 = vld [vmem:[#allocation14 + $0x18] sm:$0xff]  ;;  %v2320_v56 = vld [vmem:[#allocation13 + $0x60] sm:$0xff] }
 0x564   :  { %20221 = vpow2.f32 %v13511_v63  ;;  %v18505_v63 = vpack.c.bf16 %v2145_v61, %v2144_v60  ;;  %v2407_v58 = vld [vmem:[#allocation14 + $0x60] sm:$0xff]  ;;  %v2408_v60 = vld [vmem:[#allocation14 + $0x68] sm:$0xff] }
 0x565   :  { %20223 = vtanh.f32 %v1658_v62  ;;  %v2231_v62 = vld [vmem:[#allocation14 + $0x10] sm:$0xff]  ;;  %v18544_v61 = vpack.c.bf16 %v2408_v60, %v2407_v58  ;;  %v2576_v58 = vld [vmem:[#allocation14 + $0xb8] sm:$0xff] }
 0x566   :  { %v18517_v3 = vpack.c.bf16 %v2232_v2, %v2231_v62  ;;  %v2322_v62 = vld [vmem:[#allocation13 + $0x70] sm:$0xff] }
 0x567   :  { %v2409_v2 = vld [vmem:[#allocation14 + $0x70] sm:$0xff] }
 0x56c   :  { %v20218_v7 = vpop.eup %20217 }
 0x56d   :  { %v20220_v8 = vpop.eup %20219  ;;  %v1492_v11 = vsub.f32 %v20218_v7, %v21177_v48  ;;  %v2233_v7 = vld [vmem:[#allocation14 + $0x20] sm:$0xff] }
 0x56e   :  { %v20222_v14 = vpop.eup %20221 }
 0x56f   :  { %v1580_v16 = vadd.f32 1.0, %v20222_v14  ;;  %v1493_v20 = vmul.f32 %v20220_v8, %v1492_v11  ;;  %v20224_v42 = vpop.eup %20223  ;;  %v18508_v8 = vpack.c.bf16 %v2147_v6, %v2146_v4  ;;  %v18520_v11 = vpack.c.bf16 %v2234_v10, %v2233_v7  ;;  %v2148_v14 = vld [vmem:[#allocation13 + $0x30] sm:$0xff]  ;;  %v2410_v4 = vld [vmem:[#allocation14 + $0x78] sm:$0xff] }
 0x570   :  { %v1663_v29 = vsub.f32 %v20224_v42, %v21195_v17  ;;  %v18547_v6 = vpack.c.bf16 %v2410_v4, %v2409_v2  ;;  %v2736_v2 = vld [vmem:[#allocation14 + $0xc8] sm:$0xff] }
 0x571   :  { %20225 = vrcp.f32 %v1580_v16  ;;  %v1741_v21 = vpop.f32.mrb[16].mxu0  ;;  %v1494_v22 = vadd.f32 %v1493_v20, %v21177_v48  ;;  %v1826_v26 = vpop.f32.mrb[16].mxu1  ;;  %v2235_v16 = vld [vmem:[#allocation14 + $0x30] sm:$0xff]  ;;  %v18511_v20 = vpack.c.bf16 %v2149_v15, %v2148_v14 }
 0x572   :  { %v13514_v27 = vmul.f32 -1.442695, %v1741_v21  ;;  %v15533_v39 = vpop.f32.mrb[17].mxu0  ;;  %v15552_v23 = vpop.f32.mrb[17].mxu1  ;;  %v1830_v46 = vmax.f32 %v1826_v26, 0.0  ;;  %v2236_v21 = vld [vmem:[#allocation14 + $0x38] sm:$0xff] }
 0x573   :  { %v1838_v28 = vadd.f32 %v1837_v47, %v1494_v22  ;;  %v18523_v22 = vpack.c.bf16 %v2236_v21, %v2235_v16 }
 0x574   :  { %20227 = vpow2.f32 %v13514_v27  ;;  %v1831_v30 = vsub.f32 %v1830_v46, %v21177_v48  ;;  %v2403_v46 = vld [vmem:[#allocation14 + $0x40] sm:$0xff] }
 0x57b   :  { %v20226_v33 = vpop.eup %20225 }
 0x57c   :  { %v1664_v34 = vmul.f32 %v20226_v33, %v1663_v29 }
 0x57e   :  { %v20228_v35 = vpop.eup %20227  ;;  %v1665_v40 = vadd.f32 %v1664_v34, %v21195_v17  ;;  %v2142_v17 = vld [vmem:[#allocation13] sm:$0xff] }
 0x57f   :  { %v1748_v41 = vadd.f32 1.0, %v20228_v35  ;;  %v18502_v57 = vpack.c.bf16 %v2143_v55, %v2142_v17  ;;  %v2406_v17 = vld [vmem:[#allocation14 + $0x58] sm:$0xff] }
 0x580   :  { %v1839_v45 = vadd.f32 %v1838_v28, %v1665_v40 }
 0x581   :  { %20229 = vrcp.f32 %v1748_v41  ;;  %v2316_v41 = vld [vmem:[#allocation13 + $0x40] sm:$0xff] }
 0x58b   :  { %v20230_v36 = vpop.eup %20229 }
 0x58c   :  { %v1832_v51 = vmul.f32 %v20230_v36, %v1831_v30  ;;  %v2404_v36 = vld [vmem:[#allocation14 + $0x48] sm:$0xff] }
 0x58e   :  { %v1833_v52 = vadd.f32 %v1832_v51, %v21177_v48  ;;  %v1845_v48 = vld [vmem:[#allocation2 + $0x4] sm:$0xf]  ;;  %v18538_v51 = vpack.c.bf16 %v2404_v36, %v2403_v46  ;;  %v2571_v46 = vld [vmem:[#allocation14 + $0x90] sm:$0xff] }
 0x590   :  { %v1840_v53 = vadd.f32 %v1839_v45, %v1833_v52  ;;  %v2317_v45 = vld [vmem:[#allocation13 + $0x48] sm:$0xff]  ;;  %v2318_v52 = vld [vmem:[#allocation13 + $0x50] sm:$0xff] }
 0x591   :  { %v18526_v30 = vpack.c.bf16 %v2317_v45, %v2316_v41  ;;  %v2488_v45 = vld [vmem:[#allocation13 + $0x98] sm:$0xff] }
 0x592   :  { %v21251_v54 = vmul.f32 0.125, %v1840_v53  ;;  %v2319_v53 = vld [vmem:[#allocation13 + $0x58] sm:$0xff] }
 0x594   :  { %1843 = vst.msk [vmem:[#allocation16] sm:$0xf] %vm1842_vm2, %v21251_v54  ;;  %15570 = vmatmul.mubr.msk.f32.vlgmr.msra.gmra.mrb[18].mxu0 %vm171_vm1, %v21251_v54  ;;  %15608 = vmatmul.mubr.msk.f32.vlgmr.msra.gmra.mrb[18].mxu1 %vm171_vm1, %v21251_v54 }
 0x595   :  { %18467 = vmatpush3.bf16.msra.mxu0 %v21020_v31  ;;  %18491 = vmatpush3.bf16.msra.mxu1 %v21024_v32 }
 0x596   :  { %18468 = vmatprep.subr.bf16.mxu0 %v20803_v0  ;;  %18492 = vmatprep.subr.bf16.mxu1 %v20803_v0 }
 0x597   :  { %15588 = vmatprep.mubr.msk.f32.mxu0 %vm20804_vm0, %v20805_v1  ;;  %15626 = vmatprep.mubr.msk.f32.mxu1 %vm20804_vm0, %v20805_v1 }
 0x599   :  { %18470 = vmatpush3.bf16.msra.mxu0 %v21032_v37  ;;  %18494 = vmatpush3.bf16.msra.mxu1 %v21036_v38 }
 0x59a   :  { %18471 = vmatprep.subr.bf16.mxu0 %v20803_v0  ;;  %18495 = vmatprep.subr.bf16.mxu1 %v20803_v0 }
 0x59d   :  { %18473 = vmatpush3.bf16.msra.mxu0 %v21044_v43  ;;  %18497 = vmatpush3.bf16.msra.mxu1 %v21048_v44 }
 0x59e   :  { %18474 = vmatprep.subr.bf16.mxu0 %v20803_v0  ;;  %18498 = vmatprep.subr.bf16.mxu1 %v20803_v0 }
 0x5a1   :  { %18476 = vmatpush3.bf16.msra.mxu0 %v21052_v49  ;;  %18500 = vmatpush3.bf16.msra.mxu1 %v21056_v50 }
 0x5a2   :  { %18501 = vmatprep.subr.bf16.mxu0 %v20803_v0  ;;  %18513 = vmatprep.subr.bf16.mxu1 %v20803_v0 }
 0x5a4   :  { %15589 = vmatmul.mubr.msk.f32.vlgmr.msra.gmra.mrb[18].mxu0 %vm171_vm1, %v1845_v48  ;;  %15627 = vmatmul.mubr.msk.f32.vlgmr.msra.gmra.mrb[18].mxu1 %vm171_vm1, %v1845_v48  ;;  %v18529_v48 = vpack.c.bf16 %v2319_v53, %v2318_v52  ;;  %v2489_v52 = vld [vmem:[#allocation13 + $0xa0] sm:$0xff] }
 0x5a5   :  { %15645 = vmatprep.mubr.msk.f32.mxu0 %vm20804_vm0, %v20805_v1  ;;  %15664 = vmatprep.mubr.msk.f32.mxu1 %vm20804_vm0, %v20805_v1  ;;  %v2573_v53 = vld [vmem:[#allocation14 + $0xa0] sm:$0xff] }
 0x5a6   :  { %18503 = vmatpush3.bf16.msra.mxu0 %v18502_v57  ;;  %18515 = vmatpush3.bf16.msra.mxu1 %v18514_v59  ;;  %v2321_v57 = vld [vmem:[#allocation13 + $0x68] sm:$0xff] }
 0x5a7   :  { %18504 = vmatprep.subr.bf16.mxu0 %v20803_v0  ;;  %18516 = vmatprep.subr.bf16.mxu1 %v20803_v0  ;;  %v18532_v59 = vpack.c.bf16 %v2321_v57, %v2320_v56  ;;  %v2492_v56 = vld [vmem:[#allocation13 + $0xb8] sm:$0xff]  ;;  %v2575_v57 = vld [vmem:[#allocation14 + $0xb0] sm:$0xff] }
 0x5a8   :  { %v18571_v60 = vpack.c.bf16 %v2576_v58, %v2575_v57  ;;  %v2822_v58 = vld [vmem:[#allocation13 + $0x130] sm:$0xff] }
 0x5aa   :  { %18506 = vmatpush3.bf16.msra.mxu0 %v18505_v63  ;;  %18518 = vmatpush3.bf16.msra.mxu1 %v18517_v3  ;;  %v2323_v63 = vld [vmem:[#allocation13 + $0x78] sm:$0xff] }
 0x5ab   :  { %18507 = vmatprep.subr.bf16.mxu0 %v20803_v0  ;;  %18519 = vmatprep.subr.bf16.mxu1 %v20803_v0  ;;  %v18535_v3 = vpack.c.bf16 %v2323_v63, %v2322_v62  ;;  %v2652_v62 = vld [vmem:[#allocation13 + $0xc8] sm:$0xff]  ;;  %v2735_v63 = vld [vmem:[#allocation14 + $0xc0] sm:$0xff] }
 0x5ac   :  { %v18586_v4 = vpack.c.bf16 %v2736_v2, %v2735_v63 }
 0x5ae   :  { %18509 = vmatpush3.bf16.msra.mxu0 %v18508_v8  ;;  %18521 = vmatpush3.bf16.msra.mxu1 %v18520_v11 }
 0x5af   :  { %18510 = vmatprep.subr.bf16.mxu0 %v20803_v0  ;;  %18522 = vmatprep.subr.bf16.mxu1 %v20803_v0 }
 0x5b2   :  { %18512 = vmatpush3.bf16.msra.mxu0 %v18511_v20  ;;  %18524 = vmatpush3.bf16.msra.mxu1 %v18523_v22 }
 0x5b3   :  { %18525 = vmatprep.subr.bf16.mxu0 %v20803_v0  ;;  %18537 = vmatprep.subr.bf16.mxu1 %v20803_v0 }
 0x677   :  { %v1988_v26 = vpop.f32.mrb[18].mxu0  ;;  %v2134_v47 = vpop.f32.mrb[18].mxu1 }
 0x678   :  { %v13518_v27 = vmul.f32 -1.442695, %v1988_v26  ;;  %v15590_v39 = vpop.f32.mrb[19].mxu0  ;;  %v15628_v23 = vpop.f32.mrb[19].mxu1 }
 0x679   :  { %v2486_v39 = vld [vmem:[#allocation13 + $0x88] sm:$0xff]  ;;  %v2569_v23 = vld [vmem:[#allocation14 + $0x80] sm:$0xff] }
 0x67a   :  { %20231 = vpow2.f32 %v13518_v27 }
 0x67b   :  { %20233 = vtanh.f32 %v2134_v47  ;;  %v2485_v47 = vld [vmem:[#allocation13 + $0x80] sm:$0xff] }
 0x684   :  { %v20232_v28 = vpop.eup %20231 }
 0x685   :  { %v1995_v42 = vadd.f32 1.0, %v20232_v28  ;;  %v20234_v29 = vpop.eup %20233  ;;  %v2570_v28 = vld [vmem:[#allocation14 + $0x88] sm:$0xff] }
 0x686   :  { %v2139_v33 = vsub.f32 %v20234_v29, %v21251_v54 }
 0x687   :  { %20235 = vrcp.f32 %v1995_v42 }
 0x691   :  { %v20236_v34 = vpop.eup %20235 }
 0x692   :  { %v2140_v35 = vmul.f32 %v20236_v34, %v2139_v33  ;;  %v18550_v33 = vpack.c.bf16 %v2486_v39, %v2485_v47  ;;  %v18562_v34 = vpack.c.bf16 %v2570_v28, %v2569_v23  ;;  %v2657_v47 = vld [vmem:[#allocation13 + $0xf0] sm:$0xff]  ;;  %v2742_v23 = vld [vmem:[#allocation14 + $0xf8] sm:$0xff] }
 0x693   :  { %v2741_v39 = vld [vmem:[#allocation14 + $0xf0] sm:$0xff] }
 0x694   :  { %v21295_v40 = vadd.f32 %v2140_v35, %v21251_v54  ;;  %v2405_v54 = vld [vmem:[#allocation14 + $0x50] sm:$0xff] }
 0x695   :  { %v18541_v55 = vpack.c.bf16 %v2406_v17, %v2405_v54  ;;  %v2487_v35 = vld [vmem:[#allocation13 + $0x90] sm:$0xff]  ;;  %v2574_v54 = vld [vmem:[#allocation14 + $0xa8] sm:$0xff] }
 0x696   :  { %15646 = vmatmul.mubr.msk.f32.vlgmr.msra.gmra.mrb[20].mxu0 %vm171_vm1, %v21295_v40  ;;  %15665 = vmatmul.mubr.msk.f32.vlgmr.msra.gmra.mrb[20].mxu1 %vm171_vm1, %v21295_v40  ;;  %v18553_v36 = vpack.c.bf16 %v2488_v45, %v2487_v35  ;;  %v18568_v17 = vpack.c.bf16 %v2574_v54, %v2573_v53  ;;  %v2904_v45 = vld [vmem:[#allocation14 + $0x108] sm:$0xff]  ;;  %v2820_v54 = vld [vmem:[#allocation13 + $0x120] sm:$0xff] }
 0x697   :  { %15683 = vmatprep.mubr.msk.f32.mxu0 %vm20804_vm0, %v20805_v1  ;;  %15702 = vmatprep.mubr.msk.f32.mxu1 %vm20804_vm0, %v20805_v1 }
 0x698   :  { %18527 = vmatpush3.bf16.msra.mxu0 %v18526_v30  ;;  %18539 = vmatpush3.bf16.msra.mxu1 %v18538_v51  ;;  %v2572_v30 = vld [vmem:[#allocation14 + $0x98] sm:$0xff] }
 0x699   :  { %18528 = vmatprep.subr.bf16.mxu0 %v20803_v0  ;;  %18540 = vmatprep.subr.bf16.mxu1 %v20803_v0  ;;  %v18565_v51 = vpack.c.bf16 %v2572_v30, %v2571_v46  ;;  %v2818_v30 = vld [vmem:[#allocation13 + $0x110] sm:$0xff] }
 0x69c   :  { %18530 = vmatpush3.bf16.msra.mxu0 %v18529_v48  ;;  %18542 = vmatpush3.bf16.msra.mxu1 %v18541_v55  ;;  %v2491_v55 = vld [vmem:[#allocation13 + $0xb0] sm:$0xff] }
 0x69d   :  { %18531 = vmatprep.subr.bf16.mxu0 %v20803_v0  ;;  %18543 = vmatprep.subr.bf16.mxu1 %v20803_v0 }
 0x6a0   :  { %18533 = vmatpush3.bf16.msra.mxu0 %v18532_v59  ;;  %18545 = vmatpush3.bf16.msra.mxu1 %v18544_v61  ;;  %v18559_v59 = vpack.c.bf16 %v2492_v56, %v2491_v55  ;;  %v2651_v61 = vld [vmem:[#allocation13 + $0xc0] sm:$0xff]  ;;  %v2908_v56 = vld [vmem:[#allocation14 + $0x128] sm:$0xff] }
 0x6a1   :  { %18534 = vmatprep.subr.bf16.mxu0 %v20803_v0  ;;  %18546 = vmatprep.subr.bf16.mxu1 %v20803_v0 }
 0x6a4   :  { %18536 = vmatpush3.bf16.msra.mxu0 %v18535_v3  ;;  %18548 = vmatpush3.bf16.msra.mxu1 %v18547_v6  ;;  %v18574_v3 = vpack.c.bf16 %v2652_v62, %v2651_v61  ;;  %v2653_v6 = vld [vmem:[#allocation13 + $0xd0] sm:$0xff]  ;;  %v2910_v62 = vld [vmem:[#allocation14 + $0x138] sm:$0xff] }
 0x6a5   :  { %18549 = vmatprep.subr.bf16.mxu0 %v20803_v0  ;;  %18561 = vmatprep.subr.bf16.mxu1 %v20803_v0 }
 0x769   :  { %v2219_v7 = vpop.f32.mrb[20].mxu0  ;;  %v2303_v8 = vpop.f32.mrb[20].mxu1 }
 0x76a   :  { %v13522_v10 = vmul.f32 -1.442695, %v2219_v7  ;;  %v13524_v11 = vmul.f32 -1.442695, %v2303_v8  ;;  %v15647_v14 = vpop.f32.mrb[21].mxu0  ;;  %v15666_v15 = vpop.f32.mrb[21].mxu1 }
 0x76b   :  { %v2654_v7 = vld [vmem:[#allocation13 + $0xd8] sm:$0xff]  ;;  %v2737_v8 = vld [vmem:[#allocation14 + $0xd0] sm:$0xff]  ;;  %v2655_v15 = vld [vmem:[#allocation13 + $0xe0] sm:$0xff] }
 0x76c   :  { %20237 = vpow2.f32 %v13522_v10  ;;  %v2738_v10 = vld [vmem:[#allocation14 + $0xd8] sm:$0xff] }
 0x76d   :  { %20239 = vpow2.f32 %v13524_v11  ;;  %v18577_v11 = vpack.c.bf16 %v2654_v7, %v2653_v6  ;;  %v18589_v14 = vpack.c.bf16 %v2738_v10, %v2737_v8 }
 0x776   :  { %v20238_v16 = vpop.eup %20237 }
 0x777   :  { %v20240_v20 = vpop.eup %20239  ;;  %v2226_v21 = vadd.f32 1.0, %v20238_v16  ;;  %v2656_v16 = vld [vmem:[#allocation13 + $0xe8] sm:$0xff] }
 0x778   :  { %v2310_v22 = vadd.f32 1.0, %v20240_v20  ;;  %v2739_v20 = vld [vmem:[#allocation14 + $0xe0] sm:$0xff] }
 0x77a   :  { %20241 = vrcp.f32 %v2310_v22  ;;  %v18580_v22 = vpack.c.bf16 %v2656_v16, %v2655_v15 }
 0x77b   :  { %20243 = vrcp.f32 %v2226_v21  ;;  %v2740_v21 = vld [vmem:[#allocation14 + $0xe8] sm:$0xff] }
 0x784   :  { %v20242_v26 = vpop.eup %20241 }
 0x785   :  { %v2313_v27 = vsub.f32 %v20242_v26, %v21295_v40  ;;  %v20244_v42 = vpop.eup %20243  ;;  %v18592_v26 = vpack.c.bf16 %v2740_v21, %v2739_v20 }
 0x787   :  { %v2314_v29 = vmul.f32 %v20244_v42, %v2313_v27  ;;  %v2658_v27 = vld [vmem:[#allocation13 + $0xf8] sm:$0xff]  ;;  %v18595_v42 = vpack.c.bf16 %v2742_v23, %v2741_v39 }
 0x788   :  { %v18583_v28 = vpack.c.bf16 %v2658_v27, %v2657_v47 }
 0x789   :  { %v21315_v41 = vadd.f32 %v2314_v29, %v21295_v40  ;;  %v2490_v40 = vld [vmem:[#allocation13 + $0xa8] sm:$0xff]  ;;  %v2816_v29 = vld [vmem:[#allocation13 + $0x100] sm:$0xff] }
 0x78a   :  { %v18556_v48 = vpack.c.bf16 %v2490_v40, %v2489_v52  ;;  %v2906_v40 = vld [vmem:[#allocation14 + $0x118] sm:$0xff] }
 0x78b   :  { %15684 = vmatmul.mubr.msk.f32.vlgmr.msra.gmra.mrb[22].mxu0 %vm171_vm1, %v21315_v41  ;;  %15703 = vmatmul.mubr.msk.f32.vlgmr.msra.gmra.mrb[22].mxu1 %vm171_vm1, %v21315_v41 }
 0x78c   :  { %18551 = vmatpush3.bf16.msra.mxu0 %v18550_v33  ;;  %18563 = vmatpush3.bf16.msra.mxu1 %v18562_v34  ;;  %v2817_v33 = vld [vmem:[#allocation13 + $0x108] sm:$0xff]  ;;  %v2903_v34 = vld [vmem:[#allocation14 + $0x100] sm:$0xff] }
 0x78d   :  { %18552 = vmatprep.subr.bf16.mxu0 %v20803_v0  ;;  %18564 = vmatprep.subr.bf16.mxu1 %v20803_v0  ;;  %v18598_v35 = vpack.c.bf16 %v2817_v33, %v2816_v29  ;;  %v18610_v46 = vpack.c.bf16 %v2904_v45, %v2903_v34 }
 0x78e   :  { %15721 = vmatprep.mubr.msk.f32.mxu0 %vm20804_vm0, %v20805_v1  ;;  %15740 = vmatprep.mubr.msk.f32.mxu1 %vm20804_vm0, %v20805_v1 }
 0x790   :  { %18554 = vmatpush3.bf16.msra.mxu0 %v18553_v36  ;;  %18566 = vmatpush3.bf16.msra.mxu1 %v18565_v51  ;;  %v2819_v36 = vld [vmem:[#allocation13 + $0x118] sm:$0xff]  ;;  %v2905_v51 = vld [vmem:[#allocation14 + $0x110] sm:$0xff] }
 0x791   :  { %18555 = vmatprep.subr.bf16.mxu0 %v20803_v0  ;;  %18567 = vmatprep.subr.bf16.mxu1 %v20803_v0  ;;  %v18601_v52 = vpack.c.bf16 %v2819_v36, %v2818_v30  ;;  %v18613_v53 = vpack.c.bf16 %v2906_v40, %v2905_v51 }
 0x794   :  { %18557 = vmatpush3.bf16.msra.mxu0 %v18556_v48  ;;  %18569 = vmatpush3.bf16.msra.mxu1 %v18568_v17  ;;  %v2821_v48 = vld [vmem:[#allocation13 + $0x128] sm:$0xff]  ;;  %v2907_v17 = vld [vmem:[#allocation14 + $0x120] sm:$0xff] }
 0x795   :  { %18558 = vmatprep.subr.bf16.mxu0 %v20803_v0  ;;  %18570 = vmatprep.subr.bf16.mxu1 %v20803_v0  ;;  %v18604_v55 = vpack.c.bf16 %v2821_v48, %v2820_v54  ;;  %v18616_v57 = vpack.c.bf16 %v2908_v56, %v2907_v17  ;;  %v2985_v54 = vld [vmem:[#allocation13 + $0x140] sm:$0xff]  ;;  %v2986_v48 = vld [vmem:[#allocation13 + $0x148] sm:$0xff] }
 0x796   :  { %v3072_v17 = vld [vmem:[#allocation14 + $0x140] sm:$0xff]  ;;  %v3073_v56 = vld [vmem:[#allocation14 + $0x148] sm:$0xff] }
 0x798   :  { %18560 = vmatpush3.bf16.msra.mxu0 %v18559_v59  ;;  %18572 = vmatpush3.bf16.msra.mxu1 %v18571_v60  ;;  %v2823_v59 = vld [vmem:[#allocation13 + $0x138] sm:$0xff]  ;;  %v2909_v60 = vld [vmem:[#allocation14 + $0x130] sm:$0xff] }
 0x799   :  { %18573 = vmatprep.subr.bf16.mxu0 %v20803_v0  ;;  %18585 = vmatprep.subr.bf16.mxu1 %v20803_v0  ;;  %v18607_v61 = vpack.c.bf16 %v2823_v59, %v2822_v58  ;;  %v18619_v63 = vpack.c.bf16 %v2910_v62, %v2909_v60  ;;  %v2987_v58 = vld [vmem:[#allocation13 + $0x150] sm:$0xff]  ;;  %v2988_v59 = vld [vmem:[#allocation13 + $0x158] sm:$0xff] }
 0x79a   :  { %v3074_v60 = vld [vmem:[#allocation14 + $0x150] sm:$0xff]  ;;  %v3075_v62 = vld [vmem:[#allocation14 + $0x158] sm:$0xff] }
 0x79b   :  { %15722 = vmatmul.mubr.msk.f32.vlgmr.msra.gmra.mrb[24].mxu0 %vm171_vm1, %v21315_v41  ;;  %15741 = vmatmul.mubr.msk.f32.vlgmr.msra.gmra.mrb[24].mxu1 %vm171_vm1, %v21315_v41 }
 0x79c   :  { %18575 = vmatpush3.bf16.msra.mxu0 %v18574_v3  ;;  %18587 = vmatpush3.bf16.msra.mxu1 %v18586_v4 }
 0x79d   :  { %18576 = vmatprep.subr.bf16.mxu0 %v20803_v0  ;;  %18588 = vmatprep.subr.bf16.mxu1 %v20803_v0 }
 0x79e   :  { %15759 = vmatprep.mubr.msk.f32.mxu0 %vm20804_vm0, %v20805_v1  ;;  %15778 = vmatprep.mubr.msk.f32.mxu1 %vm20804_vm0, %v20805_v1 }
 0x7a0   :  { %18578 = vmatpush3.bf16.msra.mxu0 %v18577_v11  ;;  %18590 = vmatpush3.bf16.msra.mxu1 %v18589_v14 }
 0x7a1   :  { %18579 = vmatprep.subr.bf16.mxu0 %v20803_v0  ;;  %18591 = vmatprep.subr.bf16.mxu1 %v20803_v0 }
 0x7a4   :  { %18581 = vmatpush3.bf16.msra.mxu0 %v18580_v22  ;;  %18593 = vmatpush3.bf16.msra.mxu1 %v18592_v26 }
 0x7a5   :  { %18582 = vmatprep.subr.bf16.mxu0 %v20803_v0  ;;  %18594 = vmatprep.subr.bf16.mxu1 %v20803_v0 }
 0x7a8   :  { %18584 = vmatpush3.bf16.msra.mxu0 %v18583_v28  ;;  %18596 = vmatpush3.bf16.msra.mxu1 %v18595_v42 }
 0x7a9   :  { %18597 = vmatprep.subr.bf16.mxu0 %v20803_v0  ;;  %18609 = vmatprep.subr.bf16.mxu1 %v20803_v0 }
 0x7ab   :  { %15760 = vmatmul.mubr.msk.f32.vlgmr.msra.gmra.mrb[26].mxu0 %vm171_vm1, %v21315_v41  ;;  %15779 = vmatmul.mubr.msk.f32.vlgmr.msra.gmra.mrb[26].mxu1 %vm171_vm1, %v21315_v41 }
 0x7ac   :  { %15797 = vmatprep.mubr.msk.f32.mxu0 %vm20804_vm0, %v20805_v1  ;;  %15816 = vmatprep.mubr.msk.f32.mxu1 %vm20804_vm0, %v20805_v1 }
 0x7ad   :  { %18599 = vmatpush3.bf16.msra.mxu0 %v18598_v35  ;;  %18611 = vmatpush3.bf16.msra.mxu1 %v18610_v46 }
 0x7ae   :  { %18600 = vmatprep.subr.bf16.mxu0 %v20803_v0  ;;  %18612 = vmatprep.subr.bf16.mxu1 %v20803_v0 }
 0x7b1   :  { %18602 = vmatpush3.bf16.msra.mxu0 %v18601_v52  ;;  %18614 = vmatpush3.bf16.msra.mxu1 %v18613_v53 }
 0x7b2   :  { %18603 = vmatprep.subr.bf16.mxu0 %v20803_v0  ;;  %18615 = vmatprep.subr.bf16.mxu1 %v20803_v0 }
 0x7b5   :  { %18605 = vmatpush3.bf16.msra.mxu0 %v18604_v55  ;;  %18617 = vmatpush3.bf16.msra.mxu1 %v18616_v57  ;;  %v18622_v55 = vpack.c.bf16 %v2986_v48, %v2985_v54  ;;  %v18634_v57 = vpack.c.bf16 %v3073_v56, %v3072_v17  ;;  %v3162_v48 = vld [vmem:[#allocation13 + $0x198] sm:$0xff]  ;;  %v3248_v17 = vld [vmem:[#allocation14 + $0x190] sm:$0xff] }
 0x7b6   :  { %18606 = vmatprep.subr.bf16.mxu0 %v20803_v0  ;;  %18618 = vmatprep.subr.bf16.mxu1 %v20803_v0 }
 0x7b9   :  { %18608 = vmatpush3.bf16.msra.mxu0 %v18607_v61  ;;  %18620 = vmatpush3.bf16.msra.mxu1 %v18619_v63  ;;  %v18625_v61 = vpack.c.bf16 %v2988_v59, %v2987_v58  ;;  %v18637_v63 = vpack.c.bf16 %v3075_v62, %v3074_v60  ;;  %v3163_v58 = vld [vmem:[#allocation13 + $0x1a0] sm:$0xff]  ;;  %v3164_v59 = vld [vmem:[#allocation13 + $0x1a8] sm:$0xff] }
 0x7ba   :  { %18621 = vmatprep.subr.bf16.mxu0 %v20803_v0  ;;  %18633 = vmatprep.subr.bf16.mxu1 %v20803_v0  ;;  %v3250_v60 = vld [vmem:[#allocation14 + $0x1a0] sm:$0xff]  ;;  %v18652_v62 = vpack.c.bf16 %v3164_v59, %v3163_v58 }
 0x85e   :  { %v2393_v2 = vpop.f32.mrb[22].mxu0  ;;  %v2477_v3 = vpop.f32.mrb[22].mxu1 }
 0x85f   :  { %v13526_v4 = vmul.f32 -1.442695, %v2393_v2  ;;  %v15685_v6 = vpop.f32.mrb[23].mxu0  ;;  %v15704_v7 = vpop.f32.mrb[23].mxu1  ;;  %v2481_v21 = vmax.f32 %v2477_v3, 0.0  ;;  %v2989_v2 = vld [vmem:[#allocation13 + $0x160] sm:$0xff] }
 0x860   :  { %v2990_v3 = vld [vmem:[#allocation13 + $0x168] sm:$0xff] }
 0x861   :  { %20245 = vpow2.f32 %v13526_v4  ;;  %v2482_v22 = vsub.f32 %v2481_v21, %v21315_v41  ;;  %v3076_v4 = vld [vmem:[#allocation14 + $0x160] sm:$0xff]  ;;  %v18628_v6 = vpack.c.bf16 %v2990_v3, %v2989_v2  ;;  %v3077_v7 = vld [vmem:[#allocation14 + $0x168] sm:$0xff]  ;;  %v3165_v2 = vld [vmem:[#allocation13 + $0x1b0] sm:$0xff] }
 0x862   :  { %v3166_v3 = vld [vmem:[#allocation13 + $0x1b8] sm:$0xff] }
 0x86b   :  { %v20246_v8 = vpop.eup %20245 }
 0x86c   :  { %v2400_v10 = vadd.f32 1.0, %v20246_v8  ;;  %v18640_v8 = vpack.c.bf16 %v3077_v7, %v3076_v4  ;;  %v3252_v4 = vld [vmem:[#allocation14 + $0x1b0] sm:$0xff]  ;;  %v18655_v7 = vpack.c.bf16 %v3166_v3, %v3165_v2 }
 0x86e   :  { %20247 = vrcp.f32 %v2400_v10  ;;  %v2559_v11 = vpop.f32.mrb[24].mxu0  ;;  %v2643_v14 = vpop.f32.mrb[24].mxu1  ;;  %v2991_v10 = vld [vmem:[#allocation13 + $0x170] sm:$0xff] }
 0x86f   :  { %v13529_v15 = vmul.f32 -1.442695, %v2559_v11  ;;  %v15723_v16 = vpop.f32.mrb[25].mxu0  ;;  %v15742_v20 = vpop.f32.mrb[25].mxu1  ;;  %v2647_v35 = vmax.f32 %v2643_v14, 0.0  ;;  %v2992_v11 = vld [vmem:[#allocation13 + $0x178] sm:$0xff] }
 0x870   :  { %v3078_v14 = vld [vmem:[#allocation14 + $0x170] sm:$0xff]  ;;  %v3079_v16 = vld [vmem:[#allocation14 + $0x178] sm:$0xff] }
 0x871   :  { %20249 = vpow2.f32 %v13529_v15  ;;  %v2648_v45 = vsub.f32 %v2647_v35, %v21315_v41  ;;  %v18631_v15 = vpack.c.bf16 %v2992_v11, %v2991_v10  ;;  %v18643_v20 = vpack.c.bf16 %v3079_v16, %v3078_v14  ;;  %v3246_v35 = vld [vmem:[#allocation14 + $0x180] sm:$0xff]  ;;  %v3329_v11 = vld [vmem:[#allocation13 + $0x1c8] sm:$0xff] }
 0x872   :  { %v3328_v10 = vld [vmem:[#allocation13 + $0x1c0] sm:$0xff] }
 0x873   :  { %v3412_v14 = vld [vmem:[#allocation14 + $0x1c0] sm:$0xff]  ;;  %v18670_v16 = vpack.c.bf16 %v3329_v11, %v3328_v10 }
 0x878   :  { %v20248_v26 = vpop.eup %20247 }
 0x879   :  { %v2483_v47 = vmul.f32 %v20248_v26, %v2482_v22 }
 0x87b   :  { %v20250_v27 = vpop.eup %20249  ;;  %v21367_v39 = vadd.f32 %v2483_v47, %v21315_v41 }
 0x87c   :  { %v2566_v23 = vadd.f32 1.0, %v20250_v27 }
 0x87d   :  { %15798 = vmatmul.mubr.msk.f32.vlgmr.msra.gmra.mrb[28].mxu0 %vm171_vm1, %v21367_v39  ;;  %15817 = vmatmul.mubr.msk.f32.vlgmr.msra.gmra.mrb[28].mxu1 %vm171_vm1, %v21367_v39 }
 0x87e   :  { %20251 = vrcp.f32 %v2566_v23  ;;  %v2725_v28 = vpop.f32.mrb[26].mxu0  ;;  %v2809_v42 = vpop.f32.mrb[26].mxu1  ;;  %15835 = vmatprep.mubr.msk.f32.mxu0 %vm20804_vm0, %v20805_v1  ;;  %15854 = vmatprep.mubr.msk.f32.mxu1 %vm20804_vm0, %v20805_v1 }
 0x87f   :  { %v13532_v29 = vmul.f32 -1.442695, %v2725_v28  ;;  %v15761_v33 = vpop.f32.mrb[27].mxu0  ;;  %v15780_v34 = vpop.f32.mrb[27].mxu1  ;;  %v2813_v52 = vsub.f32 %v2809_v42, %v21315_v41  ;;  %18623 = vmatpush3.bf16.msra.mxu0 %v18622_v55  ;;  %18635 = vmatpush3.bf16.msra.mxu1 %v18634_v57  ;;  %v3249_v55 = vld [vmem:[#allocation14 + $0x198] sm:$0xff] }
 0x880   :  { %18624 = vmatprep.subr.bf16.mxu0 %v20803_v0  ;;  %18636 = vmatprep.subr.bf16.mxu1 %v20803_v0  ;;  %v3160_v34 = vld [vmem:[#allocation13 + $0x188] sm:$0xff]  ;;  %v18661_v57 = vpack.c.bf16 %v3249_v55, %v3248_v17 }
 0x881   :  { %20253 = vpow2.f32 %v13532_v29  ;;  %v3159_v29 = vld [vmem:[#allocation13 + $0x180] sm:$0xff] }
 0x883   :  { %18626 = vmatpush3.bf16.msra.mxu0 %v18625_v61  ;;  %18638 = vmatpush3.bf16.msra.mxu1 %v18637_v63  ;;  %v3251_v61 = vld [vmem:[#allocation14 + $0x1a8] sm:$0xff] }
 0x884   :  { %18627 = vmatprep.subr.bf16.mxu0 %v20803_v0  ;;  %18639 = vmatprep.subr.bf16.mxu1 %v20803_v0  ;;  %v18664_v63 = vpack.c.bf16 %v3251_v61, %v3250_v60 }
 0x887   :  { %18629 = vmatpush3.bf16.msra.mxu0 %v18628_v6  ;;  %18641 = vmatpush3.bf16.msra.mxu1 %v18640_v8  ;;  %v3253_v6 = vld [vmem:[#allocation14 + $0x1b8] sm:$0xff] }
 0x888   :  { %v20252_v46 = vpop.eup %20251  ;;  %18630 = vmatprep.subr.bf16.mxu0 %v20803_v0  ;;  %18642 = vmatprep.subr.bf16.mxu1 %v20803_v0  ;;  %v18667_v8 = vpack.c.bf16 %v3253_v6, %v3252_v4 }
 0x889   :  { %v21378_v30 = vmul.f32 %v20252_v46, %v2648_v45  ;;  %v3247_v45 = vld [vmem:[#allocation14 + $0x188] sm:$0xff] }
 0x88b   :  { %v20254_v36 = vpop.eup %20253  ;;  %18632 = vmatpush3.bf16.msra.mxu0 %v18631_v15  ;;  %18644 = vmatpush3.bf16.msra.mxu1 %v18643_v20  ;;  %v3413_v15 = vld [vmem:[#allocation14 + $0x1c8] sm:$0xff] }
 0x88c   :  { %v2732_v51 = vadd.f32 1.0, %v20254_v36  ;;  %18645 = vmatprep.subr.bf16.mxu0 %v20803_v0  ;;  %18657 = vmatprep.subr.bf16.mxu1 %v20803_v0  ;;  %v18682_v20 = vpack.c.bf16 %v3413_v15, %v3412_v14 }
 0x88e   :  { %20255 = vrcp.f32 %v2732_v51  ;;  %v18646_v51 = vpack.c.bf16 %v3160_v34, %v3159_v29  ;;  %v3416_v29 = vld [vmem:[#allocation14 + $0x1e0] sm:$0xff] }
 0x898   :  { %v20256_v40 = vpop.eup %20255 }
 0x899   :  { %v21381_v53 = vmul.f32 %v20256_v40, %v2813_v52  ;;  %v18658_v52 = vpack.c.bf16 %v3247_v45, %v3246_v35  ;;  %v3161_v40 = vld [vmem:[#allocation13 + $0x190] sm:$0xff] }
 0x89a   :  { %v18649_v56 = vpack.c.bf16 %v3162_v48, %v3161_v40  ;;  %v3334_v45 = vld [vmem:[#allocation13 + $0x1f0] sm:$0xff] }
 0x950   :  { %v2893_v21 = vpop.f32.mrb[28].mxu0  ;;  %v2977_v22 = vpop.f32.mrb[28].mxu1 }
 0x951   :  { %v13535_v26 = vmul.f32 -1.442695, %v2893_v21  ;;  %v15799_v47 = vpop.f32.mrb[29].mxu0  ;;  %v15818_v27 = vpop.f32.mrb[29].mxu1  ;;  %v3330_v21 = vld [vmem:[#allocation13 + $0x1d0] sm:$0xff] }
 0x952   :  { %v3414_v47 = vld [vmem:[#allocation14 + $0x1d0] sm:$0xff]  ;;  %v3415_v27 = vld [vmem:[#allocation14 + $0x1d8] sm:$0xff] }
 0x953   :  { %20257 = vpow2.f32 %v13535_v26  ;;  %v3331_v26 = vld [vmem:[#allocation13 + $0x1d8] sm:$0xff] }
 0x954   :  { %20259 = vtanh.f32 %v2977_v22  ;;  %v21411_v22 = vadd.f32 %v21378_v30, %v21315_v41  ;;  %v3333_v30 = vld [vmem:[#allocation13 + $0x1e8] sm:$0xff] }
 0x95d   :  { %v20258_v23 = vpop.eup %20257 }
 0x95e   :  { %v2900_v28 = vadd.f32 1.0, %v20258_v23  ;;  %v20260_v42 = vpop.eup %20259  ;;  %v18673_v23 = vpack.c.bf16 %v3331_v26, %v3330_v21 }
 0x95f   :  { %v2982_v33 = vsub.f32 %v20260_v42, %v21367_v39  ;;  %v3332_v42 = vld [vmem:[#allocation13 + $0x1e0] sm:$0xff] }
 0x960   :  { %20261 = vrcp.f32 %v2900_v28  ;;  %v18685_v28 = vpack.c.bf16 %v3415_v27, %v3414_v47  ;;  %v18676_v34 = vpack.c.bf16 %v3333_v30, %v3332_v42 }
 0x96a   :  { %v20262_v46 = vpop.eup %20261 }
 0x96b   :  { %v2983_v36 = vmul.f32 %v20262_v46, %v2982_v33  ;;  %v3417_v33 = vld [vmem:[#allocation14 + $0x1e8] sm:$0xff]  ;;  %v3335_v46 = vld [vmem:[#allocation13 + $0x1f8] sm:$0xff] }
 0x96c   :  { %v18688_v35 = vpack.c.bf16 %v3417_v33, %v3416_v29 }
 0x96d   :  { %v21393_v54 = vadd.f32 %v2983_v36, %v21367_v39  ;;  %v3418_v36 = vld [vmem:[#allocation14 + $0x1f0] sm:$0xff] }
 0x96f   :  { %15836 = vmatmul.mubr.msk.f32.vlgmr.msra.gmra.mrb[30].mxu0 %vm171_vm1, %v21393_v54  ;;  %15855 = vmatmul.mubr.msk.f32.vlgmr.msra.gmra.mrb[30].mxu1 %vm171_vm1, %v21393_v54 }
 0x970   :  { %18647 = vmatpush3.bf16.msra.mxu0 %v18646_v51  ;;  %18659 = vmatpush3.bf16.msra.mxu1 %v18658_v52  ;;  %v3419_v51 = vld [vmem:[#allocation14 + $0x1f8] sm:$0xff]  ;;  %v18679_v52 = vpack.c.bf16 %v3335_v46, %v3334_v45 }
 0x971   :  { %18648 = vmatprep.subr.bf16.mxu0 %v20803_v0  ;;  %18660 = vmatprep.subr.bf16.mxu1 %v20803_v0  ;;  %v18691_v40 = vpack.c.bf16 %v3419_v51, %v3418_v36 }
 0x972   :  { %15873 = vmatprep.mubr.msk.f32.mxu0 %vm20804_vm0, %v20805_v1  ;;  %15892 = vmatprep.mubr.msk.f32.mxu1 %vm20804_vm0, %v20805_v1 }
 0x974   :  { %18650 = vmatpush3.bf16.msra.mxu0 %v18649_v56  ;;  %18662 = vmatpush3.bf16.msra.mxu1 %v18661_v57 }
 0x975   :  { %18651 = vmatprep.subr.bf16.mxu0 %v20803_v0  ;;  %18663 = vmatprep.subr.bf16.mxu1 %v20803_v0 }
 0x978   :  { %18653 = vmatpush3.bf16.msra.mxu0 %v18652_v62  ;;  %18665 = vmatpush3.bf16.msra.mxu1 %v18664_v63 }
 0x979   :  { %18654 = vmatprep.subr.bf16.mxu0 %v20803_v0  ;;  %18666 = vmatprep.subr.bf16.mxu1 %v20803_v0 }
 0x97c   :  { %18656 = vmatpush3.bf16.msra.mxu0 %v18655_v7  ;;  %18668 = vmatpush3.bf16.msra.mxu1 %v18667_v8  ;;  %v2815_v7 = vadd.f32 %v21381_v53, %v21315_v41  ;;  %v3494_v8 = vadd.f32 %v21367_v39, %v21315_v41 }
 0x97d   :  { %18669 = vmatprep.subr.bf16.mxu0 %v20803_v0  ;;  %18681 = vmatprep.subr.bf16.mxu1 %v20803_v0 }
 0x97e   :  { %v3495_v14 = vadd.f32 %v3494_v8, %v21411_v22  ;;  %v3807_v8 = vld [vmem:[#allocation13 + $0x28] sm:$0xff] }
 0x97f   :  { %15874 = vmatmul.mubr.msk.f32.vlgmr.msra.gmra.mrb[32].mxu0 %vm171_vm1, %v21411_v22  ;;  %15893 = vmatmul.mubr.msk.f32.vlgmr.msra.gmra.mrb[32].mxu1 %vm171_vm1, %v21411_v22 }
 0x980   :  { %18671 = vmatpush3.bf16.msra.mxu0 %v18670_v16  ;;  %18683 = vmatpush3.bf16.msra.mxu1 %v18682_v20  ;;  %v3496_v20 = vadd.f32 %v3495_v14, %v2815_v7  ;;  %v3806_v7 = vld [vmem:[#allocation13 + $0x20] sm:$0xff]  ;;  %v3894_v14 = vld [vmem:[#allocation14 + $0x28] sm:$0xff] }
 0x981   :  { %18672 = vmatprep.subr.bf16.mxu0 %v20803_v0  ;;  %18684 = vmatprep.subr.bf16.mxu1 %v20803_v0 }
 0x982   :  { %15911 = vmatprep.mubr.msk.f32.mxu0 %vm20804_vm0, %v20805_v1  ;;  %15930 = vmatprep.mubr.msk.f32.mxu1 %vm20804_vm0, %v20805_v1  ;;  %v3497_v53 = vadd.f32 %v3496_v20, %v21393_v54  ;;  %v3809_v20 = vld [vmem:[#allocation13 + $0x38] sm:$0xff] }
 0x984   :  { %18674 = vmatpush3.bf16.msra.mxu0 %v18673_v23  ;;  %18686 = vmatpush3.bf16.msra.mxu1 %v18685_v28 }
 0x985   :  { %18675 = vmatprep.subr.bf16.mxu0 %v20803_v0  ;;  %18687 = vmatprep.subr.bf16.mxu1 %v20803_v0 }
 0x988   :  { %18677 = vmatpush3.bf16.msra.mxu0 %v18676_v34  ;;  %18689 = vmatpush3.bf16.msra.mxu1 %v18688_v35 }
 0x989   :  { %18678 = vmatprep.subr.bf16.mxu0 %v20803_v0  ;;  %18690 = vmatprep.subr.bf16.mxu1 %v20803_v0 }
 0x98c   :  { %18680 = vmatpush3.bf16.msra.mxu0 %v18679_v52  ;;  %18692 = vmatpush3.bf16.msra.mxu1 %v18691_v40 }
 0x98d   :  { %18693 = vmatprep.subr.bf16.mxu0 %v20803_v0  ;;  %18717 = vmatprep.subr.bf16.mxu1 %v20803_v0 }
 0x98f   :  { %15912 = vmatmul.mubr.msk.f32.vlgmr.msra.gmra.mrb[34].mxu0 %vm171_vm1, %v21393_v54  ;;  %15931 = vmatmul.mubr.msk.f32.vlgmr.msra.gmra.mrb[34].mxu1 %vm171_vm1, %v21393_v54 }
 0x990   :  { %18695 = vmatpush3.bf16.msra.mxu0 %v20989_v5  ;;  %18719 = vmatpush3.bf16.msra.mxu1 %v20991_v9 }
 0x991   :  { %18696 = vmatprep.subr.bf16.mxu0 %v20803_v0  ;;  %18720 = vmatprep.subr.bf16.mxu1 %v20803_v0 }
 0x992   :  { %15949 = vmatprep.mubr.msk.f32.mxu0 %vm20804_vm0, %v20805_v1  ;;  %15987 = vmatprep.mubr.msk.f32.mxu1 %vm20804_vm0, %v20805_v1 }
 0x994   :  { %18698 = vmatpush3.bf16.msra.mxu0 %v20994_v12  ;;  %18722 = vmatpush3.bf16.msra.mxu1 %v20998_v13 }
 0x995   :  { %18699 = vmatprep.subr.bf16.mxu0 %v20803_v0  ;;  %18723 = vmatprep.subr.bf16.mxu1 %v20803_v0 }
 0x998   :  { %18701 = vmatpush3.bf16.msra.mxu0 %v21002_v18  ;;  %18725 = vmatpush3.bf16.msra.mxu1 %v21006_v19 }
 0x999   :  { %18702 = vmatprep.subr.bf16.mxu0 %v20803_v0  ;;  %18726 = vmatprep.subr.bf16.mxu1 %v20803_v0 }
 0x99c   :  { %18704 = vmatpush3.bf16.msra.mxu0 %v21010_v24  ;;  %18728 = vmatpush3.bf16.msra.mxu1 %v21014_v25 }
 0x99d   :  { %18705 = vmatprep.subr.bf16.mxu0 %v20803_v0  ;;  %18729 = vmatprep.subr.bf16.mxu1 %v20803_v0 }
 0xa42   :  { %v3062_v48 = vpop.f32.mrb[30].mxu0  ;;  %v3146_v17 = vpop.f32.mrb[30].mxu1 }
 0xa43   :  { %v13538_v55 = vmul.f32 -1.442695, %v3062_v48  ;;  %v13540_v56 = vmul.f32 -1.442695, %v3146_v17  ;;  %v15837_v57 = vpop.f32.mrb[31].mxu0  ;;  %v15856_v58 = vpop.f32.mrb[31].mxu1 }
 0xa44   :  { %v3803_v57 = vld [vmem:[#allocation13 + $0x8] sm:$0xff]  ;;  %v3889_v58 = vld [vmem:[#allocation14] sm:$0xff] }
 0xa45   :  { %20263 = vpow2.f32 %v13538_v55 }
 0xa46   :  { %20265 = vpow2.f32 %v13540_v56 }
 0xa4f   :  { %v20264_v59 = vpop.eup %20263 }
 0xa50   :  { %v20266_v60 = vpop.eup %20265  ;;  %v3069_v61 = vadd.f32 1.0, %v20264_v59 }
 0xa51   :  { %v3153_v62 = vadd.f32 1.0, %v20266_v60  ;;  %v3890_v60 = vld [vmem:[#allocation14 + $0x8] sm:$0xff] }
 0xa52   :  { %v3236_v63 = vpop.f32.mrb[32].mxu0  ;;  %v3320_v2 = vpop.f32.mrb[32].mxu1 }
 0xa53   :  { %20267 = vrcp.f32 %v3153_v62  ;;  %v13542_v3 = vmul.f32 -1.442695, %v3236_v63  ;;  %v15875_v4 = vpop.f32.mrb[33].mxu0  ;;  %v15894_v6 = vpop.f32.mrb[33].mxu1  ;;  %v3804_v62 = vld [vmem:[#allocation13 + $0x10] sm:$0xff]  ;;  %v3805_v63 = vld [vmem:[#allocation13 + $0x18] sm:$0xff] }
 0xa54   :  { %20269 = vrcp.f32 %v3069_v61  ;;  %v18754_v61 = vpack.c.bf16 %v3890_v60, %v3889_v58  ;;  %v3892_v4 = vld [vmem:[#allocation14 + $0x18] sm:$0xff]  ;;  %v3980_v58 = vld [vmem:[#allocation13 + $0x60] sm:$0xff] }
 0xa55   :  { %20271 = vpow2.f32 %v13542_v3  ;;  %v18745_v3 = vpack.c.bf16 %v3805_v63, %v3804_v62  ;;  %v4067_v60 = vld [vmem:[#allocation14 + $0x60] sm:$0xff]  ;;  %v4068_v62 = vld [vmem:[#allocation14 + $0x68] sm:$0xff] }
 0xa56   :  { %20273 = vtanh.f32 %v3320_v2  ;;  %v3891_v2 = vld [vmem:[#allocation14 + $0x10] sm:$0xff]  ;;  %v18784_v63 = vpack.c.bf16 %v4068_v62, %v4067_v60  ;;  %v4236_v60 = vld [vmem:[#allocation14 + $0xb8] sm:$0xff] }
 0xa57   :  { %v18757_v6 = vpack.c.bf16 %v3892_v4, %v3891_v2  ;;  %v3982_v2 = vld [vmem:[#allocation13 + $0x70] sm:$0xff] }
 0xa58   :  { %v4069_v4 = vld [vmem:[#allocation14 + $0x70] sm:$0xff] }
 0xa5d   :  { %v20268_v10 = vpop.eup %20267 }
 0xa5e   :  { %v20270_v11 = vpop.eup %20269  ;;  %v3156_v15 = vsub.f32 %v20268_v10, %v21393_v54  ;;  %v3893_v10 = vld [vmem:[#allocation14 + $0x20] sm:$0xff] }
 0xa5f   :  { %v20272_v16 = vpop.eup %20271 }
 0xa60   :  { %v3243_v21 = vadd.f32 1.0, %v20272_v16  ;;  %v3157_v26 = vmul.f32 %v20270_v11, %v3156_v15  ;;  %v20274_v30 = vpop.eup %20273  ;;  %v18748_v11 = vpack.c.bf16 %v3807_v8, %v3806_v7  ;;  %v18760_v15 = vpack.c.bf16 %v3894_v14, %v3893_v10  ;;  %v3808_v16 = vld [vmem:[#allocation13 + $0x30] sm:$0xff]  ;;  %v4070_v7 = vld [vmem:[#allocation14 + $0x78] sm:$0xff] }
 0xa61   :  { %v3325_v29 = vsub.f32 %v20274_v30, %v21411_v22  ;;  %v18787_v8 = vpack.c.bf16 %v4070_v7, %v4069_v4  ;;  %v4396_v4 = vld [vmem:[#allocation14 + $0xc8] sm:$0xff] }
 0xa62   :  { %20275 = vrcp.f32 %v3243_v21  ;;  %v3402_v47 = vpop.f32.mrb[34].mxu0  ;;  %v3158_v27 = vadd.f32 %v3157_v26, %v21393_v54  ;;  %v3486_v23 = vpop.f32.mrb[34].mxu1  ;;  %v3895_v21 = vld [vmem:[#allocation14 + $0x30] sm:$0xff]  ;;  %v18751_v26 = vpack.c.bf16 %v3809_v20, %v3808_v16 }
 0xa63   :  { %v13545_v28 = vmul.f32 -1.442695, %v3402_v47  ;;  %v15913_v41 = vpop.f32.mrb[35].mxu0  ;;  %v15932_v39 = vpop.f32.mrb[35].mxu1  ;;  %v3490_v51 = vmax.f32 %v3486_v23, 0.0  ;;  %v3896_v47 = vld [vmem:[#allocation14 + $0x38] sm:$0xff] }
 0xa64   :  { %v3498_v42 = vadd.f32 %v3497_v53, %v3158_v27  ;;  %v18763_v27 = vpack.c.bf16 %v3896_v47, %v3895_v21 }
 0xa65   :  { %20277 = vpow2.f32 %v13545_v28  ;;  %v3491_v52 = vsub.f32 %v3490_v51, %v21393_v54  ;;  %v4063_v51 = vld [vmem:[#allocation14 + $0x40] sm:$0xff] }
 0xa6c   :  { %v20276_v33 = vpop.eup %20275 }
 0xa6d   :  { %v3326_v34 = vmul.f32 %v20276_v33, %v3325_v29 }
 0xa6f   :  { %v20278_v35 = vpop.eup %20277  ;;  %v3327_v45 = vadd.f32 %v3326_v34, %v21411_v22  ;;  %v3802_v22 = vld [vmem:[#allocation13] sm:$0xff] }
 0xa70   :  { %v3409_v46 = vadd.f32 1.0, %v20278_v35  ;;  %v18742_v59 = vpack.c.bf16 %v3803_v57, %v3802_v22  ;;  %v4066_v22 = vld [vmem:[#allocation14 + $0x58] sm:$0xff] }
 0xa71   :  { %v3499_v36 = vadd.f32 %v3498_v42, %v3327_v45 }
 0xa72   :  { %20279 = vrcp.f32 %v3409_v46  ;;  %v3976_v46 = vld [vmem:[#allocation13 + $0x40] sm:$0xff] }
 0xa7c   :  { %v20280_v40 = vpop.eup %20279 }
 0xa7d   :  { %v3492_v48 = vmul.f32 %v20280_v40, %v3491_v52  ;;  %v4064_v40 = vld [vmem:[#allocation14 + $0x48] sm:$0xff] }
 0xa7f   :  { %v3493_v17 = vadd.f32 %v3492_v48, %v21393_v54  ;;  %v3505_v54 = vld [vmem:[#allocation2 + $0x8] sm:$0xf]  ;;  %v18778_v48 = vpack.c.bf16 %v4064_v40, %v4063_v51  ;;  %v4231_v51 = vld [vmem:[#allocation14 + $0x90] sm:$0xff] }
 0xa81   :  { %v3500_v55 = vadd.f32 %v3499_v36, %v3493_v17  ;;  %v3977_v36 = vld [vmem:[#allocation13 + $0x48] sm:$0xff]  ;;  %v3978_v17 = vld [vmem:[#allocation13 + $0x50] sm:$0xff] }
 0xa82   :  { %v18766_v52 = vpack.c.bf16 %v3977_v36, %v3976_v46  ;;  %v4148_v36 = vld [vmem:[#allocation13 + $0x98] sm:$0xff] }
 0xa83   :  { %v21467_v56 = vmul.f32 0.125, %v3500_v55  ;;  %v3979_v55 = vld [vmem:[#allocation13 + $0x58] sm:$0xff] }
 0xa85   :  { %3503 = vst.msk [vmem:[#allocation16 + $0x4] sm:$0xf] %vm1842_vm2, %v21467_v56  ;;  %15950 = vmatmul.mubr.msk.f32.vlgmr.msra.gmra.mrb[36].mxu0 %vm171_vm1, %v21467_v56  ;;  %15988 = vmatmul.mubr.msk.f32.vlgmr.msra.gmra.mrb[36].mxu1 %vm171_vm1, %v21467_v56 }
 0xa86   :  { %18707 = vmatpush3.bf16.msra.mxu0 %v21020_v31  ;;  %18731 = vmatpush3.bf16.msra.mxu1 %v21024_v32 }
 0xa87   :  { %18708 = vmatprep.subr.bf16.mxu0 %v20803_v0  ;;  %18732 = vmatprep.subr.bf16.mxu1 %v20803_v0 }
 0xa88   :  { %15968 = vmatprep.mubr.msk.f32.mxu0 %vm20804_vm0, %v20805_v1  ;;  %16006 = vmatprep.mubr.msk.f32.mxu1 %vm20804_vm0, %v20805_v1 }
 0xa8a   :  { %18710 = vmatpush3.bf16.msra.mxu0 %v21032_v37  ;;  %18734 = vmatpush3.bf16.msra.mxu1 %v21036_v38 }
 0xa8b   :  { %18711 = vmatprep.subr.bf16.mxu0 %v20803_v0  ;;  %18735 = vmatprep.subr.bf16.mxu1 %v20803_v0 }
 0xa8e   :  { %18713 = vmatpush3.bf16.msra.mxu0 %v21044_v43  ;;  %18737 = vmatpush3.bf16.msra.mxu1 %v21048_v44 }
 0xa8f   :  { %18714 = vmatprep.subr.bf16.mxu0 %v20803_v0  ;;  %18738 = vmatprep.subr.bf16.mxu1 %v20803_v0 }
 0xa92   :  { %18716 = vmatpush3.bf16.msra.mxu0 %v21052_v49  ;;  %18740 = vmatpush3.bf16.msra.mxu1 %v21056_v50 }
 0xa93   :  { %18741 = vmatprep.subr.bf16.mxu0 %v20803_v0  ;;  %18753 = vmatprep.subr.bf16.mxu1 %v20803_v0 }
 0xa95   :  { %15969 = vmatmul.mubr.msk.f32.vlgmr.msra.gmra.mrb[36].mxu0 %vm171_vm1, %v3505_v54  ;;  %16007 = vmatmul.mubr.msk.f32.vlgmr.msra.gmra.mrb[36].mxu1 %vm171_vm1, %v3505_v54  ;;  %v18769_v54 = vpack.c.bf16 %v3979_v55, %v3978_v17  ;;  %v4149_v17 = vld [vmem:[#allocation13 + $0xa0] sm:$0xff] }
 0xa96   :  { %16025 = vmatprep.mubr.msk.f32.mxu0 %vm20804_vm0, %v20805_v1  ;;  %16044 = vmatprep.mubr.msk.f32.mxu1 %vm20804_vm0, %v20805_v1  ;;  %v4233_v55 = vld [vmem:[#allocation14 + $0xa0] sm:$0xff] }
 0xa97   :  { %18743 = vmatpush3.bf16.msra.mxu0 %v18742_v59  ;;  %18755 = vmatpush3.bf16.msra.mxu1 %v18754_v61  ;;  %v3981_v59 = vld [vmem:[#allocation13 + $0x68] sm:$0xff] }
 0xa98   :  { %18744 = vmatprep.subr.bf16.mxu0 %v20803_v0  ;;  %18756 = vmatprep.subr.bf16.mxu1 %v20803_v0  ;;  %v18772_v61 = vpack.c.bf16 %v3981_v59, %v3980_v58  ;;  %v4152_v58 = vld [vmem:[#allocation13 + $0xb8] sm:$0xff]  ;;  %v4235_v59 = vld [vmem:[#allocation14 + $0xb0] sm:$0xff] }
 0xa99   :  { %v18811_v62 = vpack.c.bf16 %v4236_v60, %v4235_v59  ;;  %v4482_v60 = vld [vmem:[#allocation13 + $0x130] sm:$0xff] }
 0xa9b   :  { %18746 = vmatpush3.bf16.msra.mxu0 %v18745_v3  ;;  %18758 = vmatpush3.bf16.msra.mxu1 %v18757_v6  ;;  %v3983_v3 = vld [vmem:[#allocation13 + $0x78] sm:$0xff] }
 0xa9c   :  { %18747 = vmatprep.subr.bf16.mxu0 %v20803_v0  ;;  %18759 = vmatprep.subr.bf16.mxu1 %v20803_v0  ;;  %v18775_v6 = vpack.c.bf16 %v3983_v3, %v3982_v2  ;;  %v4312_v2 = vld [vmem:[#allocation13 + $0xc8] sm:$0xff]  ;;  %v4395_v3 = vld [vmem:[#allocation14 + $0xc0] sm:$0xff] }
 0xa9d   :  { %v18826_v7 = vpack.c.bf16 %v4396_v4, %v4395_v3 }
 0xa9f   :  { %18749 = vmatpush3.bf16.msra.mxu0 %v18748_v11  ;;  %18761 = vmatpush3.bf16.msra.mxu1 %v18760_v15 }
 0xaa0   :  { %18750 = vmatprep.subr.bf16.mxu0 %v20803_v0  ;;  %18762 = vmatprep.subr.bf16.mxu1 %v20803_v0 }
 0xaa3   :  { %18752 = vmatpush3.bf16.msra.mxu0 %v18751_v26  ;;  %18764 = vmatpush3.bf16.msra.mxu1 %v18763_v27 }
 0xaa4   :  { %18765 = vmatprep.subr.bf16.mxu0 %v20803_v0  ;;  %18777 = vmatprep.subr.bf16.mxu1 %v20803_v0 }
 0xb68   :  { %v3648_v23 = vpop.f32.mrb[36].mxu0  ;;  %v3794_v53 = vpop.f32.mrb[36].mxu1 }
 0xb69   :  { %v13549_v28 = vmul.f32 -1.442695, %v3648_v23  ;;  %v15970_v41 = vpop.f32.mrb[37].mxu0  ;;  %v16008_v39 = vpop.f32.mrb[37].mxu1 }
 0xb6a   :  { %v4146_v41 = vld [vmem:[#allocation13 + $0x88] sm:$0xff]  ;;  %v4229_v39 = vld [vmem:[#allocation14 + $0x80] sm:$0xff] }
 0xb6b   :  { %20281 = vpow2.f32 %v13549_v28 }
 0xb6c   :  { %20283 = vtanh.f32 %v3794_v53  ;;  %v4145_v53 = vld [vmem:[#allocation13 + $0x80] sm:$0xff] }
 0xb75   :  { %v20282_v42 = vpop.eup %20281 }
 0xb76   :  { %v3655_v30 = vadd.f32 1.0, %v20282_v42  ;;  %v20284_v29 = vpop.eup %20283  ;;  %v4230_v42 = vld [vmem:[#allocation14 + $0x88] sm:$0xff] }
 0xb77   :  { %v3799_v33 = vsub.f32 %v20284_v29, %v21467_v56 }
 0xb78   :  { %20285 = vrcp.f32 %v3655_v30 }
 0xb82   :  { %v20286_v34 = vpop.eup %20285 }
 0xb83   :  { %v3800_v35 = vmul.f32 %v20286_v34, %v3799_v33  ;;  %v18790_v33 = vpack.c.bf16 %v4146_v41, %v4145_v53  ;;  %v18802_v34 = vpack.c.bf16 %v4230_v42, %v4229_v39  ;;  %v4317_v53 = vld [vmem:[#allocation13 + $0xf0] sm:$0xff]  ;;  %v4402_v39 = vld [vmem:[#allocation14 + $0xf8] sm:$0xff] }
 0xb84   :  { %v4401_v41 = vld [vmem:[#allocation14 + $0xf0] sm:$0xff] }
 0xb85   :  { %v21511_v45 = vadd.f32 %v3800_v35, %v21467_v56  ;;  %v4065_v56 = vld [vmem:[#allocation14 + $0x50] sm:$0xff] }
 0xb86   :  { %v18781_v57 = vpack.c.bf16 %v4066_v22, %v4065_v56  ;;  %v4147_v35 = vld [vmem:[#allocation13 + $0x90] sm:$0xff]  ;;  %v4234_v56 = vld [vmem:[#allocation14 + $0xa8] sm:$0xff] }
 0xb87   :  { %16026 = vmatmul.mubr.msk.f32.vlgmr.msra.gmra.mrb[38].mxu0 %vm171_vm1, %v21511_v45  ;;  %16045 = vmatmul.mubr.msk.f32.vlgmr.msra.gmra.mrb[38].mxu1 %vm171_vm1, %v21511_v45  ;;  %v18793_v40 = vpack.c.bf16 %v4148_v36, %v4147_v35  ;;  %v18808_v22 = vpack.c.bf16 %v4234_v56, %v4233_v55  ;;  %v4564_v36 = vld [vmem:[#allocation14 + $0x108] sm:$0xff]  ;;  %v4480_v56 = vld [vmem:[#allocation13 + $0x120] sm:$0xff] }
 0xb88   :  { %16063 = vmatprep.mubr.msk.f32.mxu0 %vm20804_vm0, %v20805_v1  ;;  %16082 = vmatprep.mubr.msk.f32.mxu1 %vm20804_vm0, %v20805_v1 }
 0xb89   :  { %18767 = vmatpush3.bf16.msra.mxu0 %v18766_v52  ;;  %18779 = vmatpush3.bf16.msra.mxu1 %v18778_v48  ;;  %v4232_v52 = vld [vmem:[#allocation14 + $0x98] sm:$0xff] }
 0xb8a   :  { %18768 = vmatprep.subr.bf16.mxu0 %v20803_v0  ;;  %18780 = vmatprep.subr.bf16.mxu1 %v20803_v0  ;;  %v18805_v48 = vpack.c.bf16 %v4232_v52, %v4231_v51  ;;  %v4478_v52 = vld [vmem:[#allocation13 + $0x110] sm:$0xff] }
 0xb8d   :  { %18770 = vmatpush3.bf16.msra.mxu0 %v18769_v54  ;;  %18782 = vmatpush3.bf16.msra.mxu1 %v18781_v57  ;;  %v4151_v57 = vld [vmem:[#allocation13 + $0xb0] sm:$0xff] }
 0xb8e   :  { %18771 = vmatprep.subr.bf16.mxu0 %v20803_v0  ;;  %18783 = vmatprep.subr.bf16.mxu1 %v20803_v0 }
 0xb91   :  { %18773 = vmatpush3.bf16.msra.mxu0 %v18772_v61  ;;  %18785 = vmatpush3.bf16.msra.mxu1 %v18784_v63  ;;  %v18799_v61 = vpack.c.bf16 %v4152_v58, %v4151_v57  ;;  %v4311_v63 = vld [vmem:[#allocation13 + $0xc0] sm:$0xff]  ;;  %v4568_v58 = vld [vmem:[#allocation14 + $0x128] sm:$0xff] }
 0xb92   :  { %18774 = vmatprep.subr.bf16.mxu0 %v20803_v0  ;;  %18786 = vmatprep.subr.bf16.mxu1 %v20803_v0 }
 0xb95   :  { %18776 = vmatpush3.bf16.msra.mxu0 %v18775_v6  ;;  %18788 = vmatpush3.bf16.msra.mxu1 %v18787_v8  ;;  %v18814_v6 = vpack.c.bf16 %v4312_v2, %v4311_v63  ;;  %v4313_v8 = vld [vmem:[#allocation13 + $0xd0] sm:$0xff]  ;;  %v4570_v2 = vld [vmem:[#allocation14 + $0x138] sm:$0xff] }
 0xb96   :  { %18789 = vmatprep.subr.bf16.mxu0 %v20803_v0  ;;  %18801 = vmatprep.subr.bf16.mxu1 %v20803_v0 }
 0xc5a   :  { %v3879_v10 = vpop.f32.mrb[38].mxu0  ;;  %v3963_v11 = vpop.f32.mrb[38].mxu1 }
 0xc5b   :  { %v13553_v14 = vmul.f32 -1.442695, %v3879_v10  ;;  %v13555_v15 = vmul.f32 -1.442695, %v3963_v11  ;;  %v16027_v16 = vpop.f32.mrb[39].mxu0  ;;  %v16046_v20 = vpop.f32.mrb[39].mxu1 }
 0xc5c   :  { %v4314_v10 = vld [vmem:[#allocation13 + $0xd8] sm:$0xff]  ;;  %v4397_v11 = vld [vmem:[#allocation14 + $0xd0] sm:$0xff]  ;;  %v4315_v20 = vld [vmem:[#allocation13 + $0xe0] sm:$0xff] }
 0xc5d   :  { %20287 = vpow2.f32 %v13553_v14  ;;  %v4398_v14 = vld [vmem:[#allocation14 + $0xd8] sm:$0xff] }
 0xc5e   :  { %20289 = vpow2.f32 %v13555_v15  ;;  %v18817_v15 = vpack.c.bf16 %v4314_v10, %v4313_v8  ;;  %v18829_v16 = vpack.c.bf16 %v4398_v14, %v4397_v11 }
 0xc67   :  { %v20288_v21 = vpop.eup %20287 }
 0xc68   :  { %v20290_v26 = vpop.eup %20289  ;;  %v3886_v47 = vadd.f32 1.0, %v20288_v21  ;;  %v4316_v21 = vld [vmem:[#allocation13 + $0xe8] sm:$0xff] }
 0xc69   :  { %v3970_v27 = vadd.f32 1.0, %v20290_v26  ;;  %v4399_v26 = vld [vmem:[#allocation14 + $0xe0] sm:$0xff] }
 0xc6b   :  { %20291 = vrcp.f32 %v3970_v27  ;;  %v18820_v27 = vpack.c.bf16 %v4316_v21, %v4315_v20 }
 0xc6c   :  { %20293 = vrcp.f32 %v3886_v47  ;;  %v4400_v47 = vld [vmem:[#allocation14 + $0xe8] sm:$0xff] }
 0xc75   :  { %v20292_v23 = vpop.eup %20291 }
 0xc76   :  { %v3973_v28 = vsub.f32 %v20292_v23, %v21511_v45  ;;  %v20294_v30 = vpop.eup %20293  ;;  %v18832_v23 = vpack.c.bf16 %v4400_v47, %v4399_v26 }
 0xc78   :  { %v3974_v29 = vmul.f32 %v20294_v30, %v3973_v28  ;;  %v4318_v28 = vld [vmem:[#allocation13 + $0xf8] sm:$0xff]  ;;  %v18835_v30 = vpack.c.bf16 %v4402_v39, %v4401_v41 }
 0xc79   :  { %v18823_v42 = vpack.c.bf16 %v4318_v28, %v4317_v53 }
 0xc7a   :  { %v21531_v46 = vadd.f32 %v3974_v29, %v21511_v45  ;;  %v4150_v45 = vld [vmem:[#allocation13 + $0xa8] sm:$0xff]  ;;  %v4476_v29 = vld [vmem:[#allocation13 + $0x100] sm:$0xff] }
 0xc7b   :  { %v18796_v54 = vpack.c.bf16 %v4150_v45, %v4149_v17  ;;  %v4566_v45 = vld [vmem:[#allocation14 + $0x118] sm:$0xff] }
 0xc7c   :  { %16064 = vmatmul.mubr.msk.f32.vlgmr.msra.gmra.mrb[40].mxu0 %vm171_vm1, %v21531_v46  ;;  %16083 = vmatmul.mubr.msk.f32.vlgmr.msra.gmra.mrb[40].mxu1 %vm171_vm1, %v21531_v46 }
 0xc7d   :  { %18791 = vmatpush3.bf16.msra.mxu0 %v18790_v33  ;;  %18803 = vmatpush3.bf16.msra.mxu1 %v18802_v34  ;;  %v4477_v33 = vld [vmem:[#allocation13 + $0x108] sm:$0xff]  ;;  %v4563_v34 = vld [vmem:[#allocation14 + $0x100] sm:$0xff] }
 0xc7e   :  { %18792 = vmatprep.subr.bf16.mxu0 %v20803_v0  ;;  %18804 = vmatprep.subr.bf16.mxu1 %v20803_v0  ;;  %v18838_v35 = vpack.c.bf16 %v4477_v33, %v4476_v29  ;;  %v18850_v51 = vpack.c.bf16 %v4564_v36, %v4563_v34 }
 0xc7f   :  { %16101 = vmatprep.mubr.msk.f32.mxu0 %vm20804_vm0, %v20805_v1  ;;  %16120 = vmatprep.mubr.msk.f32.mxu1 %vm20804_vm0, %v20805_v1 }
 0xc81   :  { %18794 = vmatpush3.bf16.msra.mxu0 %v18793_v40  ;;  %18806 = vmatpush3.bf16.msra.mxu1 %v18805_v48  ;;  %v4479_v40 = vld [vmem:[#allocation13 + $0x118] sm:$0xff]  ;;  %v4565_v48 = vld [vmem:[#allocation14 + $0x110] sm:$0xff] }
 0xc82   :  { %18795 = vmatprep.subr.bf16.mxu0 %v20803_v0  ;;  %18807 = vmatprep.subr.bf16.mxu1 %v20803_v0  ;;  %v18841_v17 = vpack.c.bf16 %v4479_v40, %v4478_v52  ;;  %v18853_v55 = vpack.c.bf16 %v4566_v45, %v4565_v48 }
 0xc85   :  { %18797 = vmatpush3.bf16.msra.mxu0 %v18796_v54  ;;  %18809 = vmatpush3.bf16.msra.mxu1 %v18808_v22  ;;  %v4481_v54 = vld [vmem:[#allocation13 + $0x128] sm:$0xff]  ;;  %v4567_v22 = vld [vmem:[#allocation14 + $0x120] sm:$0xff] }
 0xc86   :  { %18798 = vmatprep.subr.bf16.mxu0 %v20803_v0  ;;  %18810 = vmatprep.subr.bf16.mxu1 %v20803_v0  ;;  %v18844_v57 = vpack.c.bf16 %v4481_v54, %v4480_v56  ;;  %v18856_v59 = vpack.c.bf16 %v4568_v58, %v4567_v22  ;;  %v4645_v56 = vld [vmem:[#allocation13 + $0x140] sm:$0xff]  ;;  %v4646_v54 = vld [vmem:[#allocation13 + $0x148] sm:$0xff] }
 0xc87   :  { %v4732_v22 = vld [vmem:[#allocation14 + $0x140] sm:$0xff]  ;;  %v4733_v58 = vld [vmem:[#allocation14 + $0x148] sm:$0xff] }
 0xc89   :  { %18800 = vmatpush3.bf16.msra.mxu0 %v18799_v61  ;;  %18812 = vmatpush3.bf16.msra.mxu1 %v18811_v62  ;;  %v4483_v61 = vld [vmem:[#allocation13 + $0x138] sm:$0xff]  ;;  %v4569_v62 = vld [vmem:[#allocation14 + $0x130] sm:$0xff] }
 0xc8a   :  { %18813 = vmatprep.subr.bf16.mxu0 %v20803_v0  ;;  %18825 = vmatprep.subr.bf16.mxu1 %v20803_v0  ;;  %v18847_v63 = vpack.c.bf16 %v4483_v61, %v4482_v60  ;;  %v18859_v3 = vpack.c.bf16 %v4570_v2, %v4569_v62  ;;  %v4647_v60 = vld [vmem:[#allocation13 + $0x150] sm:$0xff]  ;;  %v4648_v61 = vld [vmem:[#allocation13 + $0x158] sm:$0xff] }
 0xc8b   :  { %v4734_v62 = vld [vmem:[#allocation14 + $0x150] sm:$0xff]  ;;  %v4735_v2 = vld [vmem:[#allocation14 + $0x158] sm:$0xff] }
 0xc8c   :  { %16102 = vmatmul.mubr.msk.f32.vlgmr.msra.gmra.mrb[42].mxu0 %vm171_vm1, %v21531_v46  ;;  %16121 = vmatmul.mubr.msk.f32.vlgmr.msra.gmra.mrb[42].mxu1 %vm171_vm1, %v21531_v46 }
 0xc8d   :  { %18815 = vmatpush3.bf16.msra.mxu0 %v18814_v6  ;;  %18827 = vmatpush3.bf16.msra.mxu1 %v18826_v7 }
 0xc8e   :  { %18816 = vmatprep.subr.bf16.mxu0 %v20803_v0  ;;  %18828 = vmatprep.subr.bf16.mxu1 %v20803_v0 }
 0xc8f   :  { %16139 = vmatprep.mubr.msk.f32.mxu0 %vm20804_vm0, %v20805_v1  ;;  %16158 = vmatprep.mubr.msk.f32.mxu1 %vm20804_vm0, %v20805_v1 }
 0xc91   :  { %18818 = vmatpush3.bf16.msra.mxu0 %v18817_v15  ;;  %18830 = vmatpush3.bf16.msra.mxu1 %v18829_v16 }
 0xc92   :  { %18819 = vmatprep.subr.bf16.mxu0 %v20803_v0  ;;  %18831 = vmatprep.subr.bf16.mxu1 %v20803_v0 }
 0xc95   :  { %18821 = vmatpush3.bf16.msra.mxu0 %v18820_v27  ;;  %18833 = vmatpush3.bf16.msra.mxu1 %v18832_v23 }
 0xc96   :  { %18822 = vmatprep.subr.bf16.mxu0 %v20803_v0  ;;  %18834 = vmatprep.subr.bf16.mxu1 %v20803_v0 }
 0xc99   :  { %18824 = vmatpush3.bf16.msra.mxu0 %v18823_v42  ;;  %18836 = vmatpush3.bf16.msra.mxu1 %v18835_v30 }
 0xc9a   :  { %18837 = vmatprep.subr.bf16.mxu0 %v20803_v0  ;;  %18849 = vmatprep.subr.bf16.mxu1 %v20803_v0 }
 0xc9c   :  { %16140 = vmatmul.mubr.msk.f32.vlgmr.msra.gmra.mrb[44].mxu0 %vm171_vm1, %v21531_v46  ;;  %16159 = vmatmul.mubr.msk.f32.vlgmr.msra.gmra.mrb[44].mxu1 %vm171_vm1, %v21531_v46 }
 0xc9d   :  { %16177 = vmatprep.mubr.msk.f32.mxu0 %vm20804_vm0, %v20805_v1  ;;  %16196 = vmatprep.mubr.msk.f32.mxu1 %vm20804_vm0, %v20805_v1 }
 0xc9e   :  { %18839 = vmatpush3.bf16.msra.mxu0 %v18838_v35  ;;  %18851 = vmatpush3.bf16.msra.mxu1 %v18850_v51 }
 0xc9f   :  { %18840 = vmatprep.subr.bf16.mxu0 %v20803_v0  ;;  %18852 = vmatprep.subr.bf16.mxu1 %v20803_v0 }
 0xca2   :  { %18842 = vmatpush3.bf16.msra.mxu0 %v18841_v17  ;;  %18854 = vmatpush3.bf16.msra.mxu1 %v18853_v55 }
 0xca3   :  { %18843 = vmatprep.subr.bf16.mxu0 %v20803_v0  ;;  %18855 = vmatprep.subr.bf16.mxu1 %v20803_v0 }
 0xca6   :  { %18845 = vmatpush3.bf16.msra.mxu0 %v18844_v57  ;;  %18857 = vmatpush3.bf16.msra.mxu1 %v18856_v59  ;;  %v18862_v57 = vpack.c.bf16 %v4646_v54, %v4645_v56  ;;  %v18874_v59 = vpack.c.bf16 %v4733_v58, %v4732_v22  ;;  %v4822_v54 = vld [vmem:[#allocation13 + $0x198] sm:$0xff]  ;;  %v4908_v22 = vld [vmem:[#allocation14 + $0x190] sm:$0xff] }
 0xca7   :  { %18846 = vmatprep.subr.bf16.mxu0 %v20803_v0  ;;  %18858 = vmatprep.subr.bf16.mxu1 %v20803_v0 }
 0xcaa   :  { %18848 = vmatpush3.bf16.msra.mxu0 %v18847_v63  ;;  %18860 = vmatpush3.bf16.msra.mxu1 %v18859_v3  ;;  %v18865_v63 = vpack.c.bf16 %v4648_v61, %v4647_v60  ;;  %v18877_v3 = vpack.c.bf16 %v4735_v2, %v4734_v62  ;;  %v4823_v60 = vld [vmem:[#allocation13 + $0x1a0] sm:$0xff]  ;;  %v4824_v61 = vld [vmem:[#allocation13 + $0x1a8] sm:$0xff] }
 0xcab   :  { %18861 = vmatprep.subr.bf16.mxu0 %v20803_v0  ;;  %18873 = vmatprep.subr.bf16.mxu1 %v20803_v0  ;;  %v4910_v62 = vld [vmem:[#allocation14 + $0x1a0] sm:$0xff]  ;;  %v18892_v2 = vpack.c.bf16 %v4824_v61, %v4823_v60 }
 0xd4f   :  { %v4053_v4 = vpop.f32.mrb[40].mxu0  ;;  %v4137_v6 = vpop.f32.mrb[40].mxu1 }
 0xd50   :  { %v13557_v7 = vmul.f32 -1.442695, %v4053_v4  ;;  %v16065_v8 = vpop.f32.mrb[41].mxu0  ;;  %v16084_v10 = vpop.f32.mrb[41].mxu1  ;;  %v4141_v47 = vmax.f32 %v4137_v6, 0.0  ;;  %v4649_v4 = vld [vmem:[#allocation13 + $0x160] sm:$0xff] }
 0xd51   :  { %v4650_v6 = vld [vmem:[#allocation13 + $0x168] sm:$0xff] }
 0xd52   :  { %20295 = vpow2.f32 %v13557_v7  ;;  %v4142_v27 = vsub.f32 %v4141_v47, %v21531_v46  ;;  %v4736_v7 = vld [vmem:[#allocation14 + $0x160] sm:$0xff]  ;;  %v18868_v8 = vpack.c.bf16 %v4650_v6, %v4649_v4  ;;  %v4737_v10 = vld [vmem:[#allocation14 + $0x168] sm:$0xff]  ;;  %v4825_v4 = vld [vmem:[#allocation13 + $0x1b0] sm:$0xff] }
 0xd53   :  { %v4826_v6 = vld [vmem:[#allocation13 + $0x1b8] sm:$0xff] }
 0xd5c   :  { %v20296_v11 = vpop.eup %20295 }
 0xd5d   :  { %v4060_v14 = vadd.f32 1.0, %v20296_v11  ;;  %v18880_v11 = vpack.c.bf16 %v4737_v10, %v4736_v7  ;;  %v4912_v7 = vld [vmem:[#allocation14 + $0x1b0] sm:$0xff]  ;;  %v18895_v10 = vpack.c.bf16 %v4826_v6, %v4825_v4 }
 0xd5f   :  { %20297 = vrcp.f32 %v4060_v14  ;;  %v4219_v15 = vpop.f32.mrb[42].mxu0  ;;  %v4303_v16 = vpop.f32.mrb[42].mxu1  ;;  %v4651_v14 = vld [vmem:[#allocation13 + $0x170] sm:$0xff] }
 0xd60   :  { %v13560_v20 = vmul.f32 -1.442695, %v4219_v15  ;;  %v16103_v21 = vpop.f32.mrb[43].mxu0  ;;  %v16122_v26 = vpop.f32.mrb[43].mxu1  ;;  %v4307_v35 = vmax.f32 %v4303_v16, 0.0  ;;  %v4652_v15 = vld [vmem:[#allocation13 + $0x178] sm:$0xff] }
 0xd61   :  { %v4738_v16 = vld [vmem:[#allocation14 + $0x170] sm:$0xff]  ;;  %v4739_v21 = vld [vmem:[#allocation14 + $0x178] sm:$0xff] }
 0xd62   :  { %20299 = vpow2.f32 %v13560_v20  ;;  %v4308_v36 = vsub.f32 %v4307_v35, %v21531_v46  ;;  %v18871_v20 = vpack.c.bf16 %v4652_v15, %v4651_v14  ;;  %v18883_v26 = vpack.c.bf16 %v4739_v21, %v4738_v16  ;;  %v4906_v35 = vld [vmem:[#allocation14 + $0x180] sm:$0xff]  ;;  %v4989_v15 = vld [vmem:[#allocation13 + $0x1c8] sm:$0xff] }
 0xd63   :  { %v4988_v14 = vld [vmem:[#allocation13 + $0x1c0] sm:$0xff] }
 0xd64   :  { %v5072_v16 = vld [vmem:[#allocation14 + $0x1c0] sm:$0xff]  ;;  %v18910_v21 = vpack.c.bf16 %v4989_v15, %v4988_v14 }
 0xd69   :  { %v20298_v23 = vpop.eup %20297 }
 0xd6a   :  { %v4143_v53 = vmul.f32 %v20298_v23, %v4142_v27 }
 0xd6c   :  { %v20300_v28 = vpop.eup %20299  ;;  %v21583_v41 = vadd.f32 %v4143_v53, %v21531_v46 }
 0xd6d   :  { %v4226_v39 = vadd.f32 1.0, %v20300_v28 }
 0xd6e   :  { %16178 = vmatmul.mubr.msk.f32.vlgmr.msra.gmra.mrb[46].mxu0 %vm171_vm1, %v21583_v41  ;;  %16197 = vmatmul.mubr.msk.f32.vlgmr.msra.gmra.mrb[46].mxu1 %vm171_vm1, %v21583_v41 }
 0xd6f   :  { %20301 = vrcp.f32 %v4226_v39  ;;  %v4385_v42 = vpop.f32.mrb[44].mxu0  ;;  %v4469_v30 = vpop.f32.mrb[44].mxu1  ;;  %16215 = vmatprep.mubr.msk.f32.mxu0 %vm20804_vm0, %v20805_v1  ;;  %16234 = vmatprep.mubr.msk.f32.mxu1 %vm20804_vm0, %v20805_v1 }
 0xd70   :  { %v13563_v29 = vmul.f32 -1.442695, %v4385_v42  ;;  %v16141_v33 = vpop.f32.mrb[45].mxu0  ;;  %v16160_v34 = vpop.f32.mrb[45].mxu1  ;;  %v4473_v17 = vsub.f32 %v4469_v30, %v21531_v46  ;;  %18863 = vmatpush3.bf16.msra.mxu0 %v18862_v57  ;;  %18875 = vmatpush3.bf16.msra.mxu1 %v18874_v59  ;;  %v4909_v57 = vld [vmem:[#allocation14 + $0x198] sm:$0xff] }
 0xd71   :  { %18864 = vmatprep.subr.bf16.mxu0 %v20803_v0  ;;  %18876 = vmatprep.subr.bf16.mxu1 %v20803_v0  ;;  %v4820_v34 = vld [vmem:[#allocation13 + $0x188] sm:$0xff]  ;;  %v18901_v59 = vpack.c.bf16 %v4909_v57, %v4908_v22 }
 0xd72   :  { %20303 = vpow2.f32 %v13563_v29  ;;  %v4819_v29 = vld [vmem:[#allocation13 + $0x180] sm:$0xff] }
 0xd74   :  { %18866 = vmatpush3.bf16.msra.mxu0 %v18865_v63  ;;  %18878 = vmatpush3.bf16.msra.mxu1 %v18877_v3  ;;  %v4911_v63 = vld [vmem:[#allocation14 + $0x1a8] sm:$0xff] }
 0xd75   :  { %18867 = vmatprep.subr.bf16.mxu0 %v20803_v0  ;;  %18879 = vmatprep.subr.bf16.mxu1 %v20803_v0  ;;  %v18904_v3 = vpack.c.bf16 %v4911_v63, %v4910_v62 }
 0xd78   :  { %18869 = vmatpush3.bf16.msra.mxu0 %v18868_v8  ;;  %18881 = vmatpush3.bf16.msra.mxu1 %v18880_v11  ;;  %v4913_v8 = vld [vmem:[#allocation14 + $0x1b8] sm:$0xff] }
 0xd79   :  { %v20302_v51 = vpop.eup %20301  ;;  %18870 = vmatprep.subr.bf16.mxu0 %v20803_v0  ;;  %18882 = vmatprep.subr.bf16.mxu1 %v20803_v0  ;;  %v18907_v11 = vpack.c.bf16 %v4913_v8, %v4912_v7 }
 0xd7a   :  { %v21594_v52 = vmul.f32 %v20302_v51, %v4308_v36  ;;  %v4907_v36 = vld [vmem:[#allocation14 + $0x188] sm:$0xff] }
 0xd7c   :  { %v20304_v40 = vpop.eup %20303  ;;  %18872 = vmatpush3.bf16.msra.mxu0 %v18871_v20  ;;  %18884 = vmatpush3.bf16.msra.mxu1 %v18883_v26  ;;  %v5073_v20 = vld [vmem:[#allocation14 + $0x1c8] sm:$0xff] }
 0xd7d   :  { %v4392_v48 = vadd.f32 1.0, %v20304_v40  ;;  %18885 = vmatprep.subr.bf16.mxu0 %v20803_v0  ;;  %18897 = vmatprep.subr.bf16.mxu1 %v20803_v0  ;;  %v18922_v26 = vpack.c.bf16 %v5073_v20, %v5072_v16 }
 0xd7f   :  { %20305 = vrcp.f32 %v4392_v48  ;;  %v18886_v48 = vpack.c.bf16 %v4820_v34, %v4819_v29  ;;  %v5076_v29 = vld [vmem:[#allocation14 + $0x1e0] sm:$0xff] }
 0xd89   :  { %v20306_v45 = vpop.eup %20305 }
 0xd8a   :  { %v21597_v55 = vmul.f32 %v20306_v45, %v4473_v17  ;;  %v18898_v17 = vpack.c.bf16 %v4907_v36, %v4906_v35  ;;  %v4821_v45 = vld [vmem:[#allocation13 + $0x190] sm:$0xff] }
 0xd8b   :  { %v18889_v58 = vpack.c.bf16 %v4822_v54, %v4821_v45  ;;  %v4994_v36 = vld [vmem:[#allocation13 + $0x1f0] sm:$0xff] }
 0xe41   :  { %v4553_v47 = vpop.f32.mrb[46].mxu0  ;;  %v4637_v27 = vpop.f32.mrb[46].mxu1 }
 0xe42   :  { %v13566_v23 = vmul.f32 -1.442695, %v4553_v47  ;;  %v16179_v53 = vpop.f32.mrb[47].mxu0  ;;  %v16198_v28 = vpop.f32.mrb[47].mxu1  ;;  %v4990_v47 = vld [vmem:[#allocation13 + $0x1d0] sm:$0xff] }
 0xe43   :  { %v5074_v53 = vld [vmem:[#allocation14 + $0x1d0] sm:$0xff]  ;;  %v5075_v28 = vld [vmem:[#allocation14 + $0x1d8] sm:$0xff] }
 0xe44   :  { %20307 = vpow2.f32 %v13566_v23  ;;  %v4991_v23 = vld [vmem:[#allocation13 + $0x1d8] sm:$0xff] }
 0xe45   :  { %20309 = vtanh.f32 %v4637_v27  ;;  %v21627_v27 = vadd.f32 %v21594_v52, %v21531_v46  ;;  %v4993_v52 = vld [vmem:[#allocation13 + $0x1e8] sm:$0xff] }
 0xe4e   :  { %v20308_v39 = vpop.eup %20307 }
 0xe4f   :  { %v4560_v42 = vadd.f32 1.0, %v20308_v39  ;;  %v20310_v30 = vpop.eup %20309  ;;  %v18913_v39 = vpack.c.bf16 %v4991_v23, %v4990_v47 }
 0xe50   :  { %v4642_v33 = vsub.f32 %v20310_v30, %v21583_v41  ;;  %v4992_v30 = vld [vmem:[#allocation13 + $0x1e0] sm:$0xff] }
 0xe51   :  { %20311 = vrcp.f32 %v4560_v42  ;;  %v18925_v42 = vpack.c.bf16 %v5075_v28, %v5074_v53  ;;  %v18916_v34 = vpack.c.bf16 %v4993_v52, %v4992_v30 }
 0xe5b   :  { %v20312_v51 = vpop.eup %20311 }
 0xe5c   :  { %v4643_v40 = vmul.f32 %v20312_v51, %v4642_v33  ;;  %v5077_v33 = vld [vmem:[#allocation14 + $0x1e8] sm:$0xff]  ;;  %v4995_v51 = vld [vmem:[#allocation13 + $0x1f8] sm:$0xff] }
 0xe5d   :  { %v18928_v35 = vpack.c.bf16 %v5077_v33, %v5076_v29 }
 0xe5e   :  { %v21609_v56 = vadd.f32 %v4643_v40, %v21583_v41  ;;  %v5078_v40 = vld [vmem:[#allocation14 + $0x1f0] sm:$0xff] }
 0xe60   :  { %16216 = vmatmul.mubr.msk.f32.vlgmr.msra.gmra.mrb[48].mxu0 %vm171_vm1, %v21609_v56  ;;  %16235 = vmatmul.mubr.msk.f32.vlgmr.msra.gmra.mrb[48].mxu1 %vm171_vm1, %v21609_v56 }
 0xe61   :  { %18887 = vmatpush3.bf16.msra.mxu0 %v18886_v48  ;;  %18899 = vmatpush3.bf16.msra.mxu1 %v18898_v17  ;;  %v5079_v48 = vld [vmem:[#allocation14 + $0x1f8] sm:$0xff]  ;;  %v18919_v17 = vpack.c.bf16 %v4995_v51, %v4994_v36 }
 0xe62   :  { %18888 = vmatprep.subr.bf16.mxu0 %v20803_v0  ;;  %18900 = vmatprep.subr.bf16.mxu1 %v20803_v0  ;;  %v18931_v45 = vpack.c.bf16 %v5079_v48, %v5078_v40 }
 0xe63   :  { %16253 = vmatprep.mubr.msk.f32.mxu0 %vm20804_vm0, %v20805_v1  ;;  %16272 = vmatprep.mubr.msk.f32.mxu1 %vm20804_vm0, %v20805_v1 }
 0xe65   :  { %18890 = vmatpush3.bf16.msra.mxu0 %v18889_v58  ;;  %18902 = vmatpush3.bf16.msra.mxu1 %v18901_v59 }
 0xe66   :  { %18891 = vmatprep.subr.bf16.mxu0 %v20803_v0  ;;  %18903 = vmatprep.subr.bf16.mxu1 %v20803_v0 }
 0xe69   :  { %18893 = vmatpush3.bf16.msra.mxu0 %v18892_v2  ;;  %18905 = vmatpush3.bf16.msra.mxu1 %v18904_v3 }
 0xe6a   :  { %18894 = vmatprep.subr.bf16.mxu0 %v20803_v0  ;;  %18906 = vmatprep.subr.bf16.mxu1 %v20803_v0 }
 0xe6d   :  { %18896 = vmatpush3.bf16.msra.mxu0 %v18895_v10  ;;  %18908 = vmatpush3.bf16.msra.mxu1 %v18907_v11  ;;  %v4475_v10 = vadd.f32 %v21597_v55, %v21531_v46  ;;  %v5154_v11 = vadd.f32 %v21583_v41, %v21531_v46 }
 0xe6e   :  { %18909 = vmatprep.subr.bf16.mxu0 %v20803_v0  ;;  %18921 = vmatprep.subr.bf16.mxu1 %v20803_v0 }
 0xe6f   :  { %v5155_v16 = vadd.f32 %v5154_v11, %v21627_v27  ;;  %v5467_v11 = vld [vmem:[#allocation13 + $0x28] sm:$0xff] }
 0xe70   :  { %16254 = vmatmul.mubr.msk.f32.vlgmr.msra.gmra.mrb[50].mxu0 %vm171_vm1, %v21627_v27  ;;  %16273 = vmatmul.mubr.msk.f32.vlgmr.msra.gmra.mrb[50].mxu1 %vm171_vm1, %v21627_v27 }
 0xe71   :  { %18911 = vmatpush3.bf16.msra.mxu0 %v18910_v21  ;;  %18923 = vmatpush3.bf16.msra.mxu1 %v18922_v26  ;;  %v5156_v26 = vadd.f32 %v5155_v16, %v4475_v10  ;;  %v5466_v10 = vld [vmem:[#allocation13 + $0x20] sm:$0xff]  ;;  %v5554_v16 = vld [vmem:[#allocation14 + $0x28] sm:$0xff] }
 0xe72   :  { %18912 = vmatprep.subr.bf16.mxu0 %v20803_v0  ;;  %18924 = vmatprep.subr.bf16.mxu1 %v20803_v0 }
 0xe73   :  { %16291 = vmatprep.mubr.msk.f32.mxu0 %vm20804_vm0, %v20805_v1  ;;  %16310 = vmatprep.mubr.msk.f32.mxu1 %vm20804_vm0, %v20805_v1  ;;  %v5157_v55 = vadd.f32 %v5156_v26, %v21609_v56  ;;  %v5469_v26 = vld [vmem:[#allocation13 + $0x38] sm:$0xff] }
 0xe75   :  { %18914 = vmatpush3.bf16.msra.mxu0 %v18913_v39  ;;  %18926 = vmatpush3.bf16.msra.mxu1 %v18925_v42 }
 0xe76   :  { %18915 = vmatprep.subr.bf16.mxu0 %v20803_v0  ;;  %18927 = vmatprep.subr.bf16.mxu1 %v20803_v0 }
 0xe79   :  { %18917 = vmatpush3.bf16.msra.mxu0 %v18916_v34  ;;  %18929 = vmatpush3.bf16.msra.mxu1 %v18928_v35 }
 0xe7a   :  { %18918 = vmatprep.subr.bf16.mxu0 %v20803_v0  ;;  %18930 = vmatprep.subr.bf16.mxu1 %v20803_v0 }
 0xe7d   :  { %18920 = vmatpush3.bf16.msra.mxu0 %v18919_v17  ;;  %18932 = vmatpush3.bf16.msra.mxu1 %v18931_v45 }
 0xe7e   :  { %18933 = vmatprep.subr.bf16.mxu0 %v20803_v0  ;;  %18957 = vmatprep.subr.bf16.mxu1 %v20803_v0 }
 0xe80   :  { %16292 = vmatmul.mubr.msk.f32.vlgmr.msra.gmra.mrb[52].mxu0 %vm171_vm1, %v21609_v56  ;;  %16311 = vmatmul.mubr.msk.f32.vlgmr.msra.gmra.mrb[52].mxu1 %vm171_vm1, %v21609_v56 }
 0xe81   :  { %18935 = vmatpush3.bf16.msra.mxu0 %v20989_v5  ;;  %18959 = vmatpush3.bf16.msra.mxu1 %v20991_v9 }
 0xe82   :  { %18936 = vmatprep.subr.bf16.mxu0 %v20803_v0  ;;  %18960 = vmatprep.subr.bf16.mxu1 %v20803_v0 }
 0xe83   :  { %16329 = vmatprep.mubr.msk.f32.mxu0 %vm20804_vm0, %v20805_v1  ;;  %16367 = vmatprep.mubr.msk.f32.mxu1 %vm20804_vm0, %v20805_v1 }
 0xe85   :  { %18938 = vmatpush3.bf16.msra.mxu0 %v20994_v12  ;;  %18962 = vmatpush3.bf16.msra.mxu1 %v20998_v13 }
 0xe86   :  { %18939 = vmatprep.subr.bf16.mxu0 %v20803_v0  ;;  %18963 = vmatprep.subr.bf16.mxu1 %v20803_v0 }
 0xe89   :  { %18941 = vmatpush3.bf16.msra.mxu0 %v21002_v18  ;;  %18965 = vmatpush3.bf16.msra.mxu1 %v21006_v19 }
 0xe8a   :  { %18942 = vmatprep.subr.bf16.mxu0 %v20803_v0  ;;  %18966 = vmatprep.subr.bf16.mxu1 %v20803_v0 }
 0xe8d   :  { %18944 = vmatpush3.bf16.msra.mxu0 %v21010_v24  ;;  %18968 = vmatpush3.bf16.msra.mxu1 %v21014_v25 }
 0xe8e   :  { %18945 = vmatprep.subr.bf16.mxu0 %v20803_v0  ;;  %18969 = vmatprep.subr.bf16.mxu1 %v20803_v0 }
 0xf33   :  { %v4722_v54 = vpop.f32.mrb[48].mxu0  ;;  %v4806_v22 = vpop.f32.mrb[48].mxu1 }
 0xf34   :  { %v13569_v57 = vmul.f32 -1.442695, %v4722_v54  ;;  %v13571_v58 = vmul.f32 -1.442695, %v4806_v22  ;;  %v16217_v59 = vpop.f32.mrb[49].mxu0  ;;  %v16236_v60 = vpop.f32.mrb[49].mxu1 }
 0xf35   :  { %v5463_v59 = vld [vmem:[#allocation13 + $0x8] sm:$0xff]  ;;  %v5549_v60 = vld [vmem:[#allocation14] sm:$0xff] }
 0xf36   :  { %20313 = vpow2.f32 %v13569_v57 }
 0xf37   :  { %20315 = vpow2.f32 %v13571_v58 }
 0xf40   :  { %v20314_v61 = vpop.eup %20313 }
 0xf41   :  { %v20316_v62 = vpop.eup %20315  ;;  %v4729_v63 = vadd.f32 1.0, %v20314_v61 }
 0xf42   :  { %v4813_v2 = vadd.f32 1.0, %v20316_v62  ;;  %v5550_v62 = vld [vmem:[#allocation14 + $0x8] sm:$0xff] }
 0xf43   :  { %v4896_v3 = vpop.f32.mrb[50].mxu0  ;;  %v4980_v4 = vpop.f32.mrb[50].mxu1 }
 0xf44   :  { %20317 = vrcp.f32 %v4813_v2  ;;  %v13573_v6 = vmul.f32 -1.442695, %v4896_v3  ;;  %v16255_v7 = vpop.f32.mrb[51].mxu0  ;;  %v16274_v8 = vpop.f32.mrb[51].mxu1  ;;  %v5464_v2 = vld [vmem:[#allocation13 + $0x10] sm:$0xff]  ;;  %v5465_v3 = vld [vmem:[#allocation13 + $0x18] sm:$0xff] }
 0xf45   :  { %20319 = vrcp.f32 %v4729_v63  ;;  %v18994_v63 = vpack.c.bf16 %v5550_v62, %v5549_v60  ;;  %v5552_v7 = vld [vmem:[#allocation14 + $0x18] sm:$0xff]  ;;  %v5640_v60 = vld [vmem:[#allocation13 + $0x60] sm:$0xff] }
 0xf46   :  { %20321 = vpow2.f32 %v13573_v6  ;;  %v18985_v6 = vpack.c.bf16 %v5465_v3, %v5464_v2  ;;  %v5727_v62 = vld [vmem:[#allocation14 + $0x60] sm:$0xff]  ;;  %v5728_v2 = vld [vmem:[#allocation14 + $0x68] sm:$0xff] }
 0xf47   :  { %20323 = vtanh.f32 %v4980_v4  ;;  %v5551_v4 = vld [vmem:[#allocation14 + $0x10] sm:$0xff]  ;;  %v19024_v3 = vpack.c.bf16 %v5728_v2, %v5727_v62  ;;  %v5896_v62 = vld [vmem:[#allocation14 + $0xb8] sm:$0xff] }
 0xf48   :  { %v18997_v8 = vpack.c.bf16 %v5552_v7, %v5551_v4  ;;  %v5642_v4 = vld [vmem:[#allocation13 + $0x70] sm:$0xff] }
 0xf49   :  { %v5729_v7 = vld [vmem:[#allocation14 + $0x70] sm:$0xff] }
 0xf4e   :  { %v20318_v14 = vpop.eup %20317 }
 0xf4f   :  { %v20320_v15 = vpop.eup %20319  ;;  %v4816_v20 = vsub.f32 %v20318_v14, %v21609_v56  ;;  %v5553_v14 = vld [vmem:[#allocation14 + $0x20] sm:$0xff] }
 0xf50   :  { %v20322_v21 = vpop.eup %20321 }
 0xf51   :  { %v4903_v47 = vadd.f32 1.0, %v20322_v21  ;;  %v4817_v23 = vmul.f32 %v20320_v15, %v4816_v20  ;;  %v20324_v52 = vpop.eup %20323  ;;  %v18988_v15 = vpack.c.bf16 %v5467_v11, %v5466_v10  ;;  %v19000_v20 = vpack.c.bf16 %v5554_v16, %v5553_v14  ;;  %v5468_v21 = vld [vmem:[#allocation13 + $0x30] sm:$0xff]  ;;  %v5730_v10 = vld [vmem:[#allocation14 + $0x78] sm:$0xff] }
 0xf52   :  { %v4985_v29 = vsub.f32 %v20324_v52, %v21627_v27  ;;  %v19027_v11 = vpack.c.bf16 %v5730_v10, %v5729_v7  ;;  %v6056_v7 = vld [vmem:[#allocation14 + $0xc8] sm:$0xff] }
 0xf53   :  { %20325 = vrcp.f32 %v4903_v47  ;;  %v5062_v53 = vpop.f32.mrb[52].mxu0  ;;  %v4818_v28 = vadd.f32 %v4817_v23, %v21609_v56  ;;  %v5146_v39 = vpop.f32.mrb[52].mxu1  ;;  %v5555_v47 = vld [vmem:[#allocation14 + $0x30] sm:$0xff]  ;;  %v18991_v23 = vpack.c.bf16 %v5469_v26, %v5468_v21 }
 0xf54   :  { %v13576_v42 = vmul.f32 -1.442695, %v5062_v53  ;;  %v16293_v46 = vpop.f32.mrb[53].mxu0  ;;  %v16312_v41 = vpop.f32.mrb[53].mxu1  ;;  %v5150_v48 = vmax.f32 %v5146_v39, 0.0  ;;  %v5556_v53 = vld [vmem:[#allocation14 + $0x38] sm:$0xff] }
 0xf55   :  { %v5158_v30 = vadd.f32 %v5157_v55, %v4818_v28  ;;  %v19003_v28 = vpack.c.bf16 %v5556_v53, %v5555_v47 }
 0xf56   :  { %20327 = vpow2.f32 %v13576_v42  ;;  %v5151_v17 = vsub.f32 %v5150_v48, %v21609_v56  ;;  %v5723_v48 = vld [vmem:[#allocation14 + $0x40] sm:$0xff] }
 0xf5d   :  { %v20326_v33 = vpop.eup %20325 }
 0xf5e   :  { %v4986_v34 = vmul.f32 %v20326_v33, %v4985_v29 }
 0xf60   :  { %v20328_v35 = vpop.eup %20327  ;;  %v4987_v36 = vadd.f32 %v4986_v34, %v21627_v27  ;;  %v5462_v27 = vld [vmem:[#allocation13] sm:$0xff] }
 0xf61   :  { %v5069_v51 = vadd.f32 1.0, %v20328_v35  ;;  %v18982_v61 = vpack.c.bf16 %v5463_v59, %v5462_v27  ;;  %v5726_v27 = vld [vmem:[#allocation14 + $0x58] sm:$0xff] }
 0xf62   :  { %v5159_v40 = vadd.f32 %v5158_v30, %v4987_v36 }
 0xf63   :  { %20329 = vrcp.f32 %v5069_v51  ;;  %v5636_v51 = vld [vmem:[#allocation13 + $0x40] sm:$0xff] }
 0xf6d   :  { %v20330_v45 = vpop.eup %20329 }
 0xf6e   :  { %v5152_v54 = vmul.f32 %v20330_v45, %v5151_v17  ;;  %v5724_v45 = vld [vmem:[#allocation14 + $0x48] sm:$0xff] }
 0xf70   :  { %v5153_v22 = vadd.f32 %v5152_v54, %v21609_v56  ;;  %v5165_v56 = vld [vmem:[#allocation2 + $0xc] sm:$0xf]  ;;  %v19018_v54 = vpack.c.bf16 %v5724_v45, %v5723_v48  ;;  %v5891_v48 = vld [vmem:[#allocation14 + $0x90] sm:$0xff] }
 0xf72   :  { %v5160_v57 = vadd.f32 %v5159_v40, %v5153_v22  ;;  %v5637_v40 = vld [vmem:[#allocation13 + $0x48] sm:$0xff]  ;;  %v5638_v22 = vld [vmem:[#allocation13 + $0x50] sm:$0xff] }
 0xf73   :  { %v19006_v17 = vpack.c.bf16 %v5637_v40, %v5636_v51  ;;  %v5808_v40 = vld [vmem:[#allocation13 + $0x98] sm:$0xff] }
 0xf74   :  { %v21683_v58 = vmul.f32 0.125, %v5160_v57  ;;  %v5639_v57 = vld [vmem:[#allocation13 + $0x58] sm:$0xff] }
 0xf76   :  { %5163 = vst.msk [vmem:[#allocation16 + $0x8] sm:$0xf] %vm1842_vm2, %v21683_v58  ;;  %16330 = vmatmul.mubr.msk.f32.vlgmr.msra.gmra.mrb[54].mxu0 %vm171_vm1, %v21683_v58  ;;  %16368 = vmatmul.mubr.msk.f32.vlgmr.msra.gmra.mrb[54].mxu1 %vm171_vm1, %v21683_v58 }
 0xf77   :  { %18947 = vmatpush3.bf16.msra.mxu0 %v21020_v31  ;;  %18971 = vmatpush3.bf16.msra.mxu1 %v21024_v32 }
 0xf78   :  { %18948 = vmatprep.subr.bf16.mxu0 %v20803_v0  ;;  %18972 = vmatprep.subr.bf16.mxu1 %v20803_v0 }
 0xf79   :  { %16348 = vmatprep.mubr.msk.f32.mxu0 %vm20804_vm0, %v20805_v1  ;;  %16386 = vmatprep.mubr.msk.f32.mxu1 %vm20804_vm0, %v20805_v1 }
 0xf7b   :  { %18950 = vmatpush3.bf16.msra.mxu0 %v21032_v37  ;;  %18974 = vmatpush3.bf16.msra.mxu1 %v21036_v38 }
 0xf7c   :  { %18951 = vmatprep.subr.bf16.mxu0 %v20803_v0  ;;  %18975 = vmatprep.subr.bf16.mxu1 %v20803_v0 }
 0xf7f   :  { %18953 = vmatpush3.bf16.msra.mxu0 %v21044_v43  ;;  %18977 = vmatpush3.bf16.msra.mxu1 %v21048_v44 }
 0xf80   :  { %18954 = vmatprep.subr.bf16.mxu0 %v20803_v0  ;;  %18978 = vmatprep.subr.bf16.mxu1 %v20803_v0 }
 0xf83   :  { %18956 = vmatpush3.bf16.msra.mxu0 %v21052_v49  ;;  %18980 = vmatpush3.bf16.msra.mxu1 %v21056_v50 }
 0xf84   :  { %18981 = vmatprep.subr.bf16.mxu0 %v20803_v0  ;;  %18993 = vmatprep.subr.bf16.mxu1 %v20803_v0 }
 0xf86   :  { %16349 = vmatmul.mubr.msk.f32.vlgmr.msra.gmra.mrb[54].mxu0 %vm171_vm1, %v5165_v56  ;;  %16387 = vmatmul.mubr.msk.f32.vlgmr.msra.gmra.mrb[54].mxu1 %vm171_vm1, %v5165_v56  ;;  %v19009_v56 = vpack.c.bf16 %v5639_v57, %v5638_v22  ;;  %v5809_v22 = vld [vmem:[#allocation13 + $0xa0] sm:$0xff] }
 0xf87   :  { %16405 = vmatprep.mubr.msk.f32.mxu0 %vm20804_vm0, %v20805_v1  ;;  %16424 = vmatprep.mubr.msk.f32.mxu1 %vm20804_vm0, %v20805_v1  ;;  %v5893_v57 = vld [vmem:[#allocation14 + $0xa0] sm:$0xff] }
 0xf88   :  { %18983 = vmatpush3.bf16.msra.mxu0 %v18982_v61  ;;  %18995 = vmatpush3.bf16.msra.mxu1 %v18994_v63  ;;  %v5641_v61 = vld [vmem:[#allocation13 + $0x68] sm:$0xff] }
 0xf89   :  { %18984 = vmatprep.subr.bf16.mxu0 %v20803_v0  ;;  %18996 = vmatprep.subr.bf16.mxu1 %v20803_v0  ;;  %v19012_v63 = vpack.c.bf16 %v5641_v61, %v5640_v60  ;;  %v5812_v60 = vld [vmem:[#allocation13 + $0xb8] sm:$0xff]  ;;  %v5895_v61 = vld [vmem:[#allocation14 + $0xb0] sm:$0xff] }
 0xf8a   :  { %v19051_v2 = vpack.c.bf16 %v5896_v62, %v5895_v61  ;;  %v6142_v62 = vld [vmem:[#allocation13 + $0x130] sm:$0xff] }
 0xf8c   :  { %18986 = vmatpush3.bf16.msra.mxu0 %v18985_v6  ;;  %18998 = vmatpush3.bf16.msra.mxu1 %v18997_v8  ;;  %v5643_v6 = vld [vmem:[#allocation13 + $0x78] sm:$0xff] }
 0xf8d   :  { %18987 = vmatprep.subr.bf16.mxu0 %v20803_v0  ;;  %18999 = vmatprep.subr.bf16.mxu1 %v20803_v0  ;;  %v19015_v8 = vpack.c.bf16 %v5643_v6, %v5642_v4  ;;  %v5972_v4 = vld [vmem:[#allocation13 + $0xc8] sm:$0xff]  ;;  %v6055_v6 = vld [vmem:[#allocation14 + $0xc0] sm:$0xff] }
 0xf8e   :  { %v19066_v10 = vpack.c.bf16 %v6056_v7, %v6055_v6 }
 0xf90   :  { %18989 = vmatpush3.bf16.msra.mxu0 %v18988_v15  ;;  %19001 = vmatpush3.bf16.msra.mxu1 %v19000_v20 }
 0xf91   :  { %18990 = vmatprep.subr.bf16.mxu0 %v20803_v0  ;;  %19002 = vmatprep.subr.bf16.mxu1 %v20803_v0 }
 0xf94   :  { %18992 = vmatpush3.bf16.msra.mxu0 %v18991_v23  ;;  %19004 = vmatpush3.bf16.msra.mxu1 %v19003_v28 }
 0xf95   :  { %19005 = vmatprep.subr.bf16.mxu0 %v20803_v0  ;;  %19017 = vmatprep.subr.bf16.mxu1 %v20803_v0 }
0x1059   :  { %v5308_v39 = vpop.f32.mrb[54].mxu0  ;;  %v5454_v55 = vpop.f32.mrb[54].mxu1 }
0x105a   :  { %v13580_v42 = vmul.f32 -1.442695, %v5308_v39  ;;  %v16350_v46 = vpop.f32.mrb[55].mxu0  ;;  %v16388_v41 = vpop.f32.mrb[55].mxu1 }
0x105b   :  { %v5806_v46 = vld [vmem:[#allocation13 + $0x88] sm:$0xff]  ;;  %v5889_v41 = vld [vmem:[#allocation14 + $0x80] sm:$0xff] }
0x105c   :  { %20331 = vpow2.f32 %v13580_v42 }
0x105d   :  { %20333 = vtanh.f32 %v5454_v55  ;;  %v5805_v55 = vld [vmem:[#allocation13 + $0x80] sm:$0xff] }
0x1066   :  { %v20332_v30 = vpop.eup %20331 }
0x1067   :  { %v5315_v52 = vadd.f32 1.0, %v20332_v30  ;;  %v20334_v29 = vpop.eup %20333  ;;  %v5890_v30 = vld [vmem:[#allocation14 + $0x88] sm:$0xff] }
0x1068   :  { %v5459_v33 = vsub.f32 %v20334_v29, %v21683_v58 }
0x1069   :  { %20335 = vrcp.f32 %v5315_v52 }
0x1073   :  { %v20336_v34 = vpop.eup %20335 }
0x1074   :  { %v5460_v35 = vmul.f32 %v20336_v34, %v5459_v33  ;;  %v19030_v33 = vpack.c.bf16 %v5806_v46, %v5805_v55  ;;  %v19042_v34 = vpack.c.bf16 %v5890_v30, %v5889_v41  ;;  %v5977_v55 = vld [vmem:[#allocation13 + $0xf0] sm:$0xff]  ;;  %v6062_v41 = vld [vmem:[#allocation14 + $0xf8] sm:$0xff] }
0x1075   :  { %v6061_v46 = vld [vmem:[#allocation14 + $0xf0] sm:$0xff] }
0x1076   :  { %v21727_v36 = vadd.f32 %v5460_v35, %v21683_v58  ;;  %v5725_v58 = vld [vmem:[#allocation14 + $0x50] sm:$0xff] }
0x1077   :  { %v19021_v59 = vpack.c.bf16 %v5726_v27, %v5725_v58  ;;  %v5807_v35 = vld [vmem:[#allocation13 + $0x90] sm:$0xff]  ;;  %v5894_v58 = vld [vmem:[#allocation14 + $0xa8] sm:$0xff] }
0x1078   :  { %16406 = vmatmul.mubr.msk.f32.vlgmr.msra.gmra.mrb[56].mxu0 %vm171_vm1, %v21727_v36  ;;  %16425 = vmatmul.mubr.msk.f32.vlgmr.msra.gmra.mrb[56].mxu1 %vm171_vm1, %v21727_v36  ;;  %v19033_v45 = vpack.c.bf16 %v5808_v40, %v5807_v35  ;;  %v19048_v27 = vpack.c.bf16 %v5894_v58, %v5893_v57  ;;  %v6224_v40 = vld [vmem:[#allocation14 + $0x108] sm:$0xff]  ;;  %v6140_v58 = vld [vmem:[#allocation13 + $0x120] sm:$0xff] }
0x1079   :  { %16443 = vmatprep.mubr.msk.f32.mxu0 %vm20804_vm0, %v20805_v1  ;;  %16462 = vmatprep.mubr.msk.f32.mxu1 %vm20804_vm0, %v20805_v1 }
0x107a   :  { %19007 = vmatpush3.bf16.msra.mxu0 %v19006_v17  ;;  %19019 = vmatpush3.bf16.msra.mxu1 %v19018_v54  ;;  %v5892_v17 = vld [vmem:[#allocation14 + $0x98] sm:$0xff] }
0x107b   :  { %19008 = vmatprep.subr.bf16.mxu0 %v20803_v0  ;;  %19020 = vmatprep.subr.bf16.mxu1 %v20803_v0  ;;  %v19045_v54 = vpack.c.bf16 %v5892_v17, %v5891_v48  ;;  %v6138_v17 = vld [vmem:[#allocation13 + $0x110] sm:$0xff] }
0x107e   :  { %19010 = vmatpush3.bf16.msra.mxu0 %v19009_v56  ;;  %19022 = vmatpush3.bf16.msra.mxu1 %v19021_v59  ;;  %v5811_v59 = vld [vmem:[#allocation13 + $0xb0] sm:$0xff] }
0x107f   :  { %19011 = vmatprep.subr.bf16.mxu0 %v20803_v0  ;;  %19023 = vmatprep.subr.bf16.mxu1 %v20803_v0 }
0x1082   :  { %19013 = vmatpush3.bf16.msra.mxu0 %v19012_v63  ;;  %19025 = vmatpush3.bf16.msra.mxu1 %v19024_v3  ;;  %v19039_v63 = vpack.c.bf16 %v5812_v60, %v5811_v59  ;;  %v5971_v3 = vld [vmem:[#allocation13 + $0xc0] sm:$0xff]  ;;  %v6228_v60 = vld [vmem:[#allocation14 + $0x128] sm:$0xff] }
0x1083   :  { %19014 = vmatprep.subr.bf16.mxu0 %v20803_v0  ;;  %19026 = vmatprep.subr.bf16.mxu1 %v20803_v0 }
0x1086   :  { %19016 = vmatpush3.bf16.msra.mxu0 %v19015_v8  ;;  %19028 = vmatpush3.bf16.msra.mxu1 %v19027_v11  ;;  %v19054_v8 = vpack.c.bf16 %v5972_v4, %v5971_v3  ;;  %v5973_v11 = vld [vmem:[#allocation13 + $0xd0] sm:$0xff]  ;;  %v6230_v4 = vld [vmem:[#allocation14 + $0x138] sm:$0xff] }
0x1087   :  { %19029 = vmatprep.subr.bf16.mxu0 %v20803_v0  ;;  %19041 = vmatprep.subr.bf16.mxu1 %v20803_v0 }
0x114b   :  { %v5539_v14 = vpop.f32.mrb[56].mxu0  ;;  %v5623_v15 = vpop.f32.mrb[56].mxu1 }
0x114c   :  { %v13584_v16 = vmul.f32 -1.442695, %v5539_v14  ;;  %v13586_v20 = vmul.f32 -1.442695, %v5623_v15  ;;  %v16407_v21 = vpop.f32.mrb[57].mxu0  ;;  %v16426_v26 = vpop.f32.mrb[57].mxu1 }
0x114d   :  { %v5974_v14 = vld [vmem:[#allocation13 + $0xd8] sm:$0xff]  ;;  %v6057_v15 = vld [vmem:[#allocation14 + $0xd0] sm:$0xff]  ;;  %v5975_v26 = vld [vmem:[#allocation13 + $0xe0] sm:$0xff] }
0x114e   :  { %20337 = vpow2.f32 %v13584_v16  ;;  %v6058_v16 = vld [vmem:[#allocation14 + $0xd8] sm:$0xff] }
0x114f   :  { %20339 = vpow2.f32 %v13586_v20  ;;  %v19057_v20 = vpack.c.bf16 %v5974_v14, %v5973_v11  ;;  %v19069_v21 = vpack.c.bf16 %v6058_v16, %v6057_v15 }
0x1158   :  { %v20338_v47 = vpop.eup %20337 }
0x1159   :  { %v20340_v23 = vpop.eup %20339  ;;  %v5546_v53 = vadd.f32 1.0, %v20338_v47  ;;  %v5976_v47 = vld [vmem:[#allocation13 + $0xe8] sm:$0xff] }
0x115a   :  { %v5630_v28 = vadd.f32 1.0, %v20340_v23  ;;  %v6059_v23 = vld [vmem:[#allocation14 + $0xe0] sm:$0xff] }
0x115c   :  { %20341 = vrcp.f32 %v5630_v28  ;;  %v19060_v28 = vpack.c.bf16 %v5976_v47, %v5975_v26 }
0x115d   :  { %20343 = vrcp.f32 %v5546_v53  ;;  %v6060_v53 = vld [vmem:[#allocation14 + $0xe8] sm:$0xff] }
0x1166   :  { %v20342_v39 = vpop.eup %20341 }
0x1167   :  { %v5633_v42 = vsub.f32 %v20342_v39, %v21727_v36  ;;  %v20344_v52 = vpop.eup %20343  ;;  %v19072_v39 = vpack.c.bf16 %v6060_v53, %v6059_v23 }
0x1169   :  { %v5634_v29 = vmul.f32 %v20344_v52, %v5633_v42  ;;  %v5978_v42 = vld [vmem:[#allocation13 + $0xf8] sm:$0xff]  ;;  %v19075_v52 = vpack.c.bf16 %v6062_v41, %v6061_v46 }
0x116a   :  { %v19063_v30 = vpack.c.bf16 %v5978_v42, %v5977_v55 }
0x116b   :  { %v21747_v51 = vadd.f32 %v5634_v29, %v21727_v36  ;;  %v5810_v36 = vld [vmem:[#allocation13 + $0xa8] sm:$0xff]  ;;  %v6136_v29 = vld [vmem:[#allocation13 + $0x100] sm:$0xff] }
0x116c   :  { %v19036_v56 = vpack.c.bf16 %v5810_v36, %v5809_v22  ;;  %v6226_v36 = vld [vmem:[#allocation14 + $0x118] sm:$0xff] }
0x116d   :  { %16444 = vmatmul.mubr.msk.f32.vlgmr.msra.gmra.mrb[58].mxu0 %vm171_vm1, %v21747_v51  ;;  %16463 = vmatmul.mubr.msk.f32.vlgmr.msra.gmra.mrb[58].mxu1 %vm171_vm1, %v21747_v51 }
0x116e   :  { %19031 = vmatpush3.bf16.msra.mxu0 %v19030_v33  ;;  %19043 = vmatpush3.bf16.msra.mxu1 %v19042_v34  ;;  %v6137_v33 = vld [vmem:[#allocation13 + $0x108] sm:$0xff]  ;;  %v6223_v34 = vld [vmem:[#allocation14 + $0x100] sm:$0xff] }
0x116f   :  { %19032 = vmatprep.subr.bf16.mxu0 %v20803_v0  ;;  %19044 = vmatprep.subr.bf16.mxu1 %v20803_v0  ;;  %v19078_v35 = vpack.c.bf16 %v6137_v33, %v6136_v29  ;;  %v19090_v48 = vpack.c.bf16 %v6224_v40, %v6223_v34 }
0x1170   :  { %16481 = vmatprep.mubr.msk.f32.mxu0 %vm20804_vm0, %v20805_v1  ;;  %16500 = vmatprep.mubr.msk.f32.mxu1 %vm20804_vm0, %v20805_v1 }
0x1172   :  { %19034 = vmatpush3.bf16.msra.mxu0 %v19033_v45  ;;  %19046 = vmatpush3.bf16.msra.mxu1 %v19045_v54  ;;  %v6139_v45 = vld [vmem:[#allocation13 + $0x118] sm:$0xff]  ;;  %v6225_v54 = vld [vmem:[#allocation14 + $0x110] sm:$0xff] }
0x1173   :  { %19035 = vmatprep.subr.bf16.mxu0 %v20803_v0  ;;  %19047 = vmatprep.subr.bf16.mxu1 %v20803_v0  ;;  %v19081_v22 = vpack.c.bf16 %v6139_v45, %v6138_v17  ;;  %v19093_v57 = vpack.c.bf16 %v6226_v36, %v6225_v54 }
0x1176   :  { %19037 = vmatpush3.bf16.msra.mxu0 %v19036_v56  ;;  %19049 = vmatpush3.bf16.msra.mxu1 %v19048_v27  ;;  %v6141_v56 = vld [vmem:[#allocation13 + $0x128] sm:$0xff]  ;;  %v6227_v27 = vld [vmem:[#allocation14 + $0x120] sm:$0xff] }
0x1177   :  { %19038 = vmatprep.subr.bf16.mxu0 %v20803_v0  ;;  %19050 = vmatprep.subr.bf16.mxu1 %v20803_v0  ;;  %v19084_v59 = vpack.c.bf16 %v6141_v56, %v6140_v58  ;;  %v19096_v61 = vpack.c.bf16 %v6228_v60, %v6227_v27  ;;  %v6305_v58 = vld [vmem:[#allocation13 + $0x140] sm:$0xff]  ;;  %v6306_v56 = vld [vmem:[#allocation13 + $0x148] sm:$0xff] }
0x1178   :  { %v6392_v27 = vld [vmem:[#allocation14 + $0x140] sm:$0xff]  ;;  %v6393_v60 = vld [vmem:[#allocation14 + $0x148] sm:$0xff] }
0x117a   :  { %19040 = vmatpush3.bf16.msra.mxu0 %v19039_v63  ;;  %19052 = vmatpush3.bf16.msra.mxu1 %v19051_v2  ;;  %v6143_v63 = vld [vmem:[#allocation13 + $0x138] sm:$0xff]  ;;  %v6229_v2 = vld [vmem:[#allocation14 + $0x130] sm:$0xff] }
0x117b   :  { %19053 = vmatprep.subr.bf16.mxu0 %v20803_v0  ;;  %19065 = vmatprep.subr.bf16.mxu1 %v20803_v0  ;;  %v19087_v3 = vpack.c.bf16 %v6143_v63, %v6142_v62  ;;  %v19099_v6 = vpack.c.bf16 %v6230_v4, %v6229_v2  ;;  %v6307_v62 = vld [vmem:[#allocation13 + $0x150] sm:$0xff]  ;;  %v6308_v63 = vld [vmem:[#allocation13 + $0x158] sm:$0xff] }
0x117c   :  { %v6394_v2 = vld [vmem:[#allocation14 + $0x150] sm:$0xff]  ;;  %v6395_v4 = vld [vmem:[#allocation14 + $0x158] sm:$0xff] }
0x117d   :  { %16482 = vmatmul.mubr.msk.f32.vlgmr.msra.gmra.mrb[60].mxu0 %vm171_vm1, %v21747_v51  ;;  %16501 = vmatmul.mubr.msk.f32.vlgmr.msra.gmra.mrb[60].mxu1 %vm171_vm1, %v21747_v51 }
0x117e   :  { %19055 = vmatpush3.bf16.msra.mxu0 %v19054_v8  ;;  %19067 = vmatpush3.bf16.msra.mxu1 %v19066_v10 }
0x117f   :  { %19056 = vmatprep.subr.bf16.mxu0 %v20803_v0  ;;  %19068 = vmatprep.subr.bf16.mxu1 %v20803_v0 }
0x1180   :  { %16519 = vmatprep.mubr.msk.f32.mxu0 %vm20804_vm0, %v20805_v1  ;;  %16538 = vmatprep.mubr.msk.f32.mxu1 %vm20804_vm0, %v20805_v1 }
0x1182   :  { %19058 = vmatpush3.bf16.msra.mxu0 %v19057_v20  ;;  %19070 = vmatpush3.bf16.msra.mxu1 %v19069_v21 }
0x1183   :  { %19059 = vmatprep.subr.bf16.mxu0 %v20803_v0  ;;  %19071 = vmatprep.subr.bf16.mxu1 %v20803_v0 }
0x1186   :  { %19061 = vmatpush3.bf16.msra.mxu0 %v19060_v28  ;;  %19073 = vmatpush3.bf16.msra.mxu1 %v19072_v39 }
0x1187   :  { %19062 = vmatprep.subr.bf16.mxu0 %v20803_v0  ;;  %19074 = vmatprep.subr.bf16.mxu1 %v20803_v0 }
0x118a   :  { %19064 = vmatpush3.bf16.msra.mxu0 %v19063_v30  ;;  %19076 = vmatpush3.bf16.msra.mxu1 %v19075_v52 }
0x118b   :  { %19077 = vmatprep.subr.bf16.mxu0 %v20803_v0  ;;  %19089 = vmatprep.subr.bf16.mxu1 %v20803_v0 }
0x118d   :  { %16520 = vmatmul.mubr.msk.f32.vlgmr.msra.gmra.mrb[62].mxu0 %vm171_vm1, %v21747_v51  ;;  %16539 = vmatmul.mubr.msk.f32.vlgmr.msra.gmra.mrb[62].mxu1 %vm171_vm1, %v21747_v51 }
0x118e   :  { %16557 = vmatprep.mubr.msk.f32.mxu0 %vm20804_vm0, %v20805_v1  ;;  %16576 = vmatprep.mubr.msk.f32.mxu1 %vm20804_vm0, %v20805_v1 }
0x118f   :  { %19079 = vmatpush3.bf16.msra.mxu0 %v19078_v35  ;;  %19091 = vmatpush3.bf16.msra.mxu1 %v19090_v48 }
0x1190   :  { %19080 = vmatprep.subr.bf16.mxu0 %v20803_v0  ;;  %19092 = vmatprep.subr.bf16.mxu1 %v20803_v0 }
0x1193   :  { %19082 = vmatpush3.bf16.msra.mxu0 %v19081_v22  ;;  %19094 = vmatpush3.bf16.msra.mxu1 %v19093_v57 }
0x1194   :  { %19083 = vmatprep.subr.bf16.mxu0 %v20803_v0  ;;  %19095 = vmatprep.subr.bf16.mxu1 %v20803_v0 }
0x1197   :  { %19085 = vmatpush3.bf16.msra.mxu0 %v19084_v59  ;;  %19097 = vmatpush3.bf16.msra.mxu1 %v19096_v61  ;;  %v19102_v59 = vpack.c.bf16 %v6306_v56, %v6305_v58  ;;  %v19114_v61 = vpack.c.bf16 %v6393_v60, %v6392_v27  ;;  %v6482_v56 = vld [vmem:[#allocation13 + $0x198] sm:$0xff]  ;;  %v6568_v27 = vld [vmem:[#allocation14 + $0x190] sm:$0xff] }
0x1198   :  { %19086 = vmatprep.subr.bf16.mxu0 %v20803_v0  ;;  %19098 = vmatprep.subr.bf16.mxu1 %v20803_v0 }
0x119b   :  { %19088 = vmatpush3.bf16.msra.mxu0 %v19087_v3  ;;  %19100 = vmatpush3.bf16.msra.mxu1 %v19099_v6  ;;  %v19105_v3 = vpack.c.bf16 %v6308_v63, %v6307_v62  ;;  %v19117_v6 = vpack.c.bf16 %v6395_v4, %v6394_v2  ;;  %v6483_v62 = vld [vmem:[#allocation13 + $0x1a0] sm:$0xff]  ;;  %v6484_v63 = vld [vmem:[#allocation13 + $0x1a8] sm:$0xff] }
0x119c   :  { %19101 = vmatprep.subr.bf16.mxu0 %v20803_v0  ;;  %19113 = vmatprep.subr.bf16.mxu1 %v20803_v0  ;;  %v6570_v2 = vld [vmem:[#allocation14 + $0x1a0] sm:$0xff]  ;;  %v19132_v4 = vpack.c.bf16 %v6484_v63, %v6483_v62 }
0x1240   :  { %v5713_v7 = vpop.f32.mrb[58].mxu0  ;;  %v5797_v8 = vpop.f32.mrb[58].mxu1 }
0x1241   :  { %v13588_v10 = vmul.f32 -1.442695, %v5713_v7  ;;  %v16445_v11 = vpop.f32.mrb[59].mxu0  ;;  %v16464_v14 = vpop.f32.mrb[59].mxu1  ;;  %v5801_v53 = vmax.f32 %v5797_v8, 0.0  ;;  %v6309_v7 = vld [vmem:[#allocation13 + $0x160] sm:$0xff] }
0x1242   :  { %v6310_v8 = vld [vmem:[#allocation13 + $0x168] sm:$0xff] }
0x1243   :  { %20345 = vpow2.f32 %v13588_v10  ;;  %v5802_v28 = vsub.f32 %v5801_v53, %v21747_v51  ;;  %v6396_v10 = vld [vmem:[#allocation14 + $0x160] sm:$0xff]  ;;  %v19108_v11 = vpack.c.bf16 %v6310_v8, %v6309_v7  ;;  %v6397_v14 = vld [vmem:[#allocation14 + $0x168] sm:$0xff]  ;;  %v6485_v7 = vld [vmem:[#allocation13 + $0x1b0] sm:$0xff] }
0x1244   :  { %v6486_v8 = vld [vmem:[#allocation13 + $0x1b8] sm:$0xff] }
0x124d   :  { %v20346_v15 = vpop.eup %20345 }
0x124e   :  { %v5720_v16 = vadd.f32 1.0, %v20346_v15  ;;  %v19120_v15 = vpack.c.bf16 %v6397_v14, %v6396_v10  ;;  %v6572_v10 = vld [vmem:[#allocation14 + $0x1b0] sm:$0xff]  ;;  %v19135_v14 = vpack.c.bf16 %v6486_v8, %v6485_v7 }
0x1250   :  { %20347 = vrcp.f32 %v5720_v16  ;;  %v5879_v20 = vpop.f32.mrb[60].mxu0  ;;  %v5963_v21 = vpop.f32.mrb[60].mxu1  ;;  %v6311_v16 = vld [vmem:[#allocation13 + $0x170] sm:$0xff] }
0x1251   :  { %v13591_v26 = vmul.f32 -1.442695, %v5879_v20  ;;  %v16483_v47 = vpop.f32.mrb[61].mxu0  ;;  %v16502_v23 = vpop.f32.mrb[61].mxu1  ;;  %v5967_v35 = vmax.f32 %v5963_v21, 0.0  ;;  %v6312_v20 = vld [vmem:[#allocation13 + $0x178] sm:$0xff] }
0x1252   :  { %v6398_v21 = vld [vmem:[#allocation14 + $0x170] sm:$0xff]  ;;  %v6399_v47 = vld [vmem:[#allocation14 + $0x178] sm:$0xff] }
0x1253   :  { %20349 = vpow2.f32 %v13591_v26  ;;  %v5968_v40 = vsub.f32 %v5967_v35, %v21747_v51  ;;  %v19111_v26 = vpack.c.bf16 %v6312_v20, %v6311_v16  ;;  %v19123_v23 = vpack.c.bf16 %v6399_v47, %v6398_v21  ;;  %v6566_v35 = vld [vmem:[#allocation14 + $0x180] sm:$0xff]  ;;  %v6649_v20 = vld [vmem:[#allocation13 + $0x1c8] sm:$0xff] }
0x1254   :  { %v6648_v16 = vld [vmem:[#allocation13 + $0x1c0] sm:$0xff] }
0x1255   :  { %v6732_v21 = vld [vmem:[#allocation14 + $0x1c0] sm:$0xff]  ;;  %v19150_v47 = vpack.c.bf16 %v6649_v20, %v6648_v16 }
0x125a   :  { %v20348_v39 = vpop.eup %20347 }
0x125b   :  { %v5803_v55 = vmul.f32 %v20348_v39, %v5802_v28 }
0x125d   :  { %v20350_v42 = vpop.eup %20349  ;;  %v21799_v46 = vadd.f32 %v5803_v55, %v21747_v51 }
0x125e   :  { %v5886_v41 = vadd.f32 1.0, %v20350_v42 }
0x125f   :  { %16558 = vmatmul.mubr.msk.f32.vlgmr.msra.gmra.mrb[64].mxu0 %vm171_vm1, %v21799_v46  ;;  %16577 = vmatmul.mubr.msk.f32.vlgmr.msra.gmra.mrb[64].mxu1 %vm171_vm1, %v21799_v46 }
0x1260   :  { %20351 = vrcp.f32 %v5886_v41  ;;  %v6045_v30 = vpop.f32.mrb[62].mxu0  ;;  %v6129_v52 = vpop.f32.mrb[62].mxu1  ;;  %16595 = vmatprep.mubr.msk.f32.mxu0 %vm20804_vm0, %v20805_v1  ;;  %16614 = vmatprep.mubr.msk.f32.mxu1 %vm20804_vm0, %v20805_v1 }
0x1261   :  { %v13594_v29 = vmul.f32 -1.442695, %v6045_v30  ;;  %v16521_v33 = vpop.f32.mrb[63].mxu0  ;;  %v16540_v34 = vpop.f32.mrb[63].mxu1  ;;  %v6133_v22 = vsub.f32 %v6129_v52, %v21747_v51  ;;  %19103 = vmatpush3.bf16.msra.mxu0 %v19102_v59  ;;  %19115 = vmatpush3.bf16.msra.mxu1 %v19114_v61  ;;  %v6569_v59 = vld [vmem:[#allocation14 + $0x198] sm:$0xff] }
0x1262   :  { %19104 = vmatprep.subr.bf16.mxu0 %v20803_v0  ;;  %19116 = vmatprep.subr.bf16.mxu1 %v20803_v0  ;;  %v6480_v34 = vld [vmem:[#allocation13 + $0x188] sm:$0xff]  ;;  %v19141_v61 = vpack.c.bf16 %v6569_v59, %v6568_v27 }
0x1263   :  { %20353 = vpow2.f32 %v13594_v29  ;;  %v6479_v29 = vld [vmem:[#allocation13 + $0x180] sm:$0xff] }
0x1265   :  { %19106 = vmatpush3.bf16.msra.mxu0 %v19105_v3  ;;  %19118 = vmatpush3.bf16.msra.mxu1 %v19117_v6  ;;  %v6571_v3 = vld [vmem:[#allocation14 + $0x1a8] sm:$0xff] }
0x1266   :  { %19107 = vmatprep.subr.bf16.mxu0 %v20803_v0  ;;  %19119 = vmatprep.subr.bf16.mxu1 %v20803_v0  ;;  %v19144_v6 = vpack.c.bf16 %v6571_v3, %v6570_v2 }
0x1269   :  { %19109 = vmatpush3.bf16.msra.mxu0 %v19108_v11  ;;  %19121 = vmatpush3.bf16.msra.mxu1 %v19120_v15  ;;  %v6573_v11 = vld [vmem:[#allocation14 + $0x1b8] sm:$0xff] }
0x126a   :  { %v20352_v48 = vpop.eup %20351  ;;  %19110 = vmatprep.subr.bf16.mxu0 %v20803_v0  ;;  %19122 = vmatprep.subr.bf16.mxu1 %v20803_v0  ;;  %v19147_v15 = vpack.c.bf16 %v6573_v11, %v6572_v10 }
0x126b   :  { %v21810_v17 = vmul.f32 %v20352_v48, %v5968_v40  ;;  %v6567_v40 = vld [vmem:[#allocation14 + $0x188] sm:$0xff] }
0x126d   :  { %v20354_v45 = vpop.eup %20353  ;;  %19112 = vmatpush3.bf16.msra.mxu0 %v19111_v26  ;;  %19124 = vmatpush3.bf16.msra.mxu1 %v19123_v23  ;;  %v6733_v26 = vld [vmem:[#allocation14 + $0x1c8] sm:$0xff] }
0x126e   :  { %v6052_v54 = vadd.f32 1.0, %v20354_v45  ;;  %19125 = vmatprep.subr.bf16.mxu0 %v20803_v0  ;;  %19137 = vmatprep.subr.bf16.mxu1 %v20803_v0  ;;  %v19162_v23 = vpack.c.bf16 %v6733_v26, %v6732_v21 }
0x1270   :  { %20355 = vrcp.f32 %v6052_v54  ;;  %v19126_v54 = vpack.c.bf16 %v6480_v34, %v6479_v29  ;;  %v6736_v29 = vld [vmem:[#allocation14 + $0x1e0] sm:$0xff] }
0x127a   :  { %v20356_v36 = vpop.eup %20355 }
0x127b   :  { %v21813_v57 = vmul.f32 %v20356_v36, %v6133_v22  ;;  %v19138_v22 = vpack.c.bf16 %v6567_v40, %v6566_v35  ;;  %v6481_v36 = vld [vmem:[#allocation13 + $0x190] sm:$0xff] }
0x127c   :  { %v19129_v60 = vpack.c.bf16 %v6482_v56, %v6481_v36  ;;  %v6654_v40 = vld [vmem:[#allocation13 + $0x1f0] sm:$0xff] }
0x1332   :  { %v6213_v53 = vpop.f32.mrb[64].mxu0  ;;  %v6297_v28 = vpop.f32.mrb[64].mxu1 }
0x1333   :  { %v13597_v39 = vmul.f32 -1.442695, %v6213_v53  ;;  %v16559_v55 = vpop.f32.mrb[65].mxu0  ;;  %v16578_v42 = vpop.f32.mrb[65].mxu1  ;;  %v6650_v53 = vld [vmem:[#allocation13 + $0x1d0] sm:$0xff] }
0x1334   :  { %v6734_v55 = vld [vmem:[#allocation14 + $0x1d0] sm:$0xff]  ;;  %v6735_v42 = vld [vmem:[#allocation14 + $0x1d8] sm:$0xff] }
0x1335   :  { %20357 = vpow2.f32 %v13597_v39  ;;  %v6651_v39 = vld [vmem:[#allocation13 + $0x1d8] sm:$0xff] }
0x1336   :  { %20359 = vtanh.f32 %v6297_v28  ;;  %v21843_v28 = vadd.f32 %v21810_v17, %v21747_v51  ;;  %v6653_v17 = vld [vmem:[#allocation13 + $0x1e8] sm:$0xff] }
0x133f   :  { %v20358_v41 = vpop.eup %20357 }
0x1340   :  { %v6220_v30 = vadd.f32 1.0, %v20358_v41  ;;  %v20360_v52 = vpop.eup %20359  ;;  %v19153_v41 = vpack.c.bf16 %v6651_v39, %v6650_v53 }
0x1341   :  { %v6302_v33 = vsub.f32 %v20360_v52, %v21799_v46  ;;  %v6652_v52 = vld [vmem:[#allocation13 + $0x1e0] sm:$0xff] }
0x1342   :  { %20361 = vrcp.f32 %v6220_v30  ;;  %v19165_v30 = vpack.c.bf16 %v6735_v42, %v6734_v55  ;;  %v19156_v34 = vpack.c.bf16 %v6653_v17, %v6652_v52 }
0x134c   :  { %v20362_v48 = vpop.eup %20361 }
0x134d   :  { %v6303_v45 = vmul.f32 %v20362_v48, %v6302_v33  ;;  %v6737_v33 = vld [vmem:[#allocation14 + $0x1e8] sm:$0xff]  ;;  %v6655_v48 = vld [vmem:[#allocation13 + $0x1f8] sm:$0xff] }
0x134e   :  { %v19168_v35 = vpack.c.bf16 %v6737_v33, %v6736_v29 }
0x134f   :  { %v21825_v58 = vadd.f32 %v6303_v45, %v21799_v46  ;;  %v6738_v45 = vld [vmem:[#allocation14 + $0x1f0] sm:$0xff] }
0x1351   :  { %16596 = vmatmul.mubr.msk.f32.vlgmr.msra.gmra.mrb[66].mxu0 %vm171_vm1, %v21825_v58  ;;  %16615 = vmatmul.mubr.msk.f32.vlgmr.msra.gmra.mrb[66].mxu1 %vm171_vm1, %v21825_v58 }
0x1352   :  { %19127 = vmatpush3.bf16.msra.mxu0 %v19126_v54  ;;  %19139 = vmatpush3.bf16.msra.mxu1 %v19138_v22  ;;  %v6739_v54 = vld [vmem:[#allocation14 + $0x1f8] sm:$0xff]  ;;  %v19159_v22 = vpack.c.bf16 %v6655_v48, %v6654_v40 }
0x1353   :  { %19128 = vmatprep.subr.bf16.mxu0 %v20803_v0  ;;  %19140 = vmatprep.subr.bf16.mxu1 %v20803_v0  ;;  %v19171_v36 = vpack.c.bf16 %v6739_v54, %v6738_v45 }
0x1354   :  { %16633 = vmatprep.mubr.msk.f32.mxu0 %vm20804_vm0, %v20805_v1  ;;  %16652 = vmatprep.mubr.msk.f32.mxu1 %vm20804_vm0, %v20805_v1 }
0x1356   :  { %19130 = vmatpush3.bf16.msra.mxu0 %v19129_v60  ;;  %19142 = vmatpush3.bf16.msra.mxu1 %v19141_v61 }
0x1357   :  { %19131 = vmatprep.subr.bf16.mxu0 %v20803_v0  ;;  %19143 = vmatprep.subr.bf16.mxu1 %v20803_v0 }
0x135a   :  { %19133 = vmatpush3.bf16.msra.mxu0 %v19132_v4  ;;  %19145 = vmatpush3.bf16.msra.mxu1 %v19144_v6 }
0x135b   :  { %19134 = vmatprep.subr.bf16.mxu0 %v20803_v0  ;;  %19146 = vmatprep.subr.bf16.mxu1 %v20803_v0 }
0x135e   :  { %19136 = vmatpush3.bf16.msra.mxu0 %v19135_v14  ;;  %19148 = vmatpush3.bf16.msra.mxu1 %v19147_v15  ;;  %v6135_v14 = vadd.f32 %v21813_v57, %v21747_v51  ;;  %v6814_v15 = vadd.f32 %v21799_v46, %v21747_v51 }
0x135f   :  { %19149 = vmatprep.subr.bf16.mxu0 %v20803_v0  ;;  %19161 = vmatprep.subr.bf16.mxu1 %v20803_v0 }
0x1360   :  { %v6815_v21 = vadd.f32 %v6814_v15, %v21843_v28  ;;  %v7127_v15 = vld [vmem:[#allocation13 + $0x28] sm:$0xff] }
0x1361   :  { %16634 = vmatmul.mubr.msk.f32.vlgmr.msra.gmra.mrb[68].mxu0 %vm171_vm1, %v21843_v28  ;;  %16653 = vmatmul.mubr.msk.f32.vlgmr.msra.gmra.mrb[68].mxu1 %vm171_vm1, %v21843_v28 }
0x1362   :  { %19151 = vmatpush3.bf16.msra.mxu0 %v19150_v47  ;;  %19163 = vmatpush3.bf16.msra.mxu1 %v19162_v23  ;;  %v6816_v23 = vadd.f32 %v6815_v21, %v6135_v14  ;;  %v7126_v14 = vld [vmem:[#allocation13 + $0x20] sm:$0xff]  ;;  %v7214_v21 = vld [vmem:[#allocation14 + $0x28] sm:$0xff] }
0x1363   :  { %19152 = vmatprep.subr.bf16.mxu0 %v20803_v0  ;;  %19164 = vmatprep.subr.bf16.mxu1 %v20803_v0 }
0x1364   :  { %16671 = vmatprep.mubr.msk.f32.mxu0 %vm20804_vm0, %v20805_v1  ;;  %16690 = vmatprep.mubr.msk.f32.mxu1 %vm20804_vm0, %v20805_v1  ;;  %v6817_v57 = vadd.f32 %v6816_v23, %v21825_v58  ;;  %v7129_v23 = vld [vmem:[#allocation13 + $0x38] sm:$0xff] }
0x1366   :  { %19154 = vmatpush3.bf16.msra.mxu0 %v19153_v41  ;;  %19166 = vmatpush3.bf16.msra.mxu1 %v19165_v30 }
0x1367   :  { %19155 = vmatprep.subr.bf16.mxu0 %v20803_v0  ;;  %19167 = vmatprep.subr.bf16.mxu1 %v20803_v0 }
0x136a   :  { %19157 = vmatpush3.bf16.msra.mxu0 %v19156_v34  ;;  %19169 = vmatpush3.bf16.msra.mxu1 %v19168_v35 }
0x136b   :  { %19158 = vmatprep.subr.bf16.mxu0 %v20803_v0  ;;  %19170 = vmatprep.subr.bf16.mxu1 %v20803_v0 }
0x136e   :  { %19160 = vmatpush3.bf16.msra.mxu0 %v19159_v22  ;;  %19172 = vmatpush3.bf16.msra.mxu1 %v19171_v36 }
0x136f   :  { %19173 = vmatprep.subr.bf16.mxu0 %v20803_v0  ;;  %19197 = vmatprep.subr.bf16.mxu1 %v20803_v0 }
0x1371   :  { %16672 = vmatmul.mubr.msk.f32.vlgmr.msra.gmra.mrb[70].mxu0 %vm171_vm1, %v21825_v58  ;;  %16691 = vmatmul.mubr.msk.f32.vlgmr.msra.gmra.mrb[70].mxu1 %vm171_vm1, %v21825_v58 }
0x1372   :  { %19175 = vmatpush3.bf16.msra.mxu0 %v20989_v5  ;;  %19199 = vmatpush3.bf16.msra.mxu1 %v20991_v9 }
0x1373   :  { %19176 = vmatprep.subr.bf16.mxu0 %v20803_v0  ;;  %19200 = vmatprep.subr.bf16.mxu1 %v20803_v0 }
0x1374   :  { %16709 = vmatprep.mubr.msk.f32.mxu0 %vm20804_vm0, %v20805_v1  ;;  %16747 = vmatprep.mubr.msk.f32.mxu1 %vm20804_vm0, %v20805_v1 }
0x1376   :  { %19178 = vmatpush3.bf16.msra.mxu0 %v20994_v12  ;;  %19202 = vmatpush3.bf16.msra.mxu1 %v20998_v13 }
0x1377   :  { %19179 = vmatprep.subr.bf16.mxu0 %v20803_v0  ;;  %19203 = vmatprep.subr.bf16.mxu1 %v20803_v0 }
0x137a   :  { %19181 = vmatpush3.bf16.msra.mxu0 %v21002_v18  ;;  %19205 = vmatpush3.bf16.msra.mxu1 %v21006_v19 }
0x137b   :  { %19182 = vmatprep.subr.bf16.mxu0 %v20803_v0  ;;  %19206 = vmatprep.subr.bf16.mxu1 %v20803_v0 }
0x137e   :  { %19184 = vmatpush3.bf16.msra.mxu0 %v21010_v24  ;;  %19208 = vmatpush3.bf16.msra.mxu1 %v21014_v25 }
0x137f   :  { %19185 = vmatprep.subr.bf16.mxu0 %v20803_v0  ;;  %19209 = vmatprep.subr.bf16.mxu1 %v20803_v0 }
0x1424   :  { %v6382_v56 = vpop.f32.mrb[66].mxu0  ;;  %v6466_v27 = vpop.f32.mrb[66].mxu1 }
0x1425   :  { %v13600_v59 = vmul.f32 -1.442695, %v6382_v56  ;;  %v13602_v60 = vmul.f32 -1.442695, %v6466_v27  ;;  %v16597_v61 = vpop.f32.mrb[67].mxu0  ;;  %v16616_v62 = vpop.f32.mrb[67].mxu1 }
0x1426   :  { %v7123_v61 = vld [vmem:[#allocation13 + $0x8] sm:$0xff]  ;;  %v7209_v62 = vld [vmem:[#allocation14] sm:$0xff] }
0x1427   :  { %20363 = vpow2.f32 %v13600_v59 }
0x1428   :  { %20365 = vpow2.f32 %v13602_v60 }
0x1431   :  { %v20364_v63 = vpop.eup %20363 }
0x1432   :  { %v20366_v2 = vpop.eup %20365  ;;  %v6389_v3 = vadd.f32 1.0, %v20364_v63 }
0x1433   :  { %v6473_v4 = vadd.f32 1.0, %v20366_v2  ;;  %v7210_v2 = vld [vmem:[#allocation14 + $0x8] sm:$0xff] }
0x1434   :  { %v6556_v6 = vpop.f32.mrb[68].mxu0  ;;  %v6640_v7 = vpop.f32.mrb[68].mxu1 }
0x1435   :  { %20367 = vrcp.f32 %v6473_v4  ;;  %v13604_v8 = vmul.f32 -1.442695, %v6556_v6  ;;  %v16635_v10 = vpop.f32.mrb[69].mxu0  ;;  %v16654_v11 = vpop.f32.mrb[69].mxu1  ;;  %v7124_v4 = vld [vmem:[#allocation13 + $0x10] sm:$0xff]  ;;  %v7125_v6 = vld [vmem:[#allocation13 + $0x18] sm:$0xff] }
0x1436   :  { %20369 = vrcp.f32 %v6389_v3  ;;  %v19234_v3 = vpack.c.bf16 %v7210_v2, %v7209_v62  ;;  %v7212_v10 = vld [vmem:[#allocation14 + $0x18] sm:$0xff]  ;;  %v7300_v62 = vld [vmem:[#allocation13 + $0x60] sm:$0xff] }
0x1437   :  { %20371 = vpow2.f32 %v13604_v8  ;;  %v19225_v8 = vpack.c.bf16 %v7125_v6, %v7124_v4  ;;  %v7387_v2 = vld [vmem:[#allocation14 + $0x60] sm:$0xff]  ;;  %v7388_v4 = vld [vmem:[#allocation14 + $0x68] sm:$0xff] }
0x1438   :  { %20373 = vtanh.f32 %v6640_v7  ;;  %v7211_v7 = vld [vmem:[#allocation14 + $0x10] sm:$0xff]  ;;  %v19264_v6 = vpack.c.bf16 %v7388_v4, %v7387_v2  ;;  %v7556_v2 = vld [vmem:[#allocation14 + $0xb8] sm:$0xff] }
0x1439   :  { %v19237_v11 = vpack.c.bf16 %v7212_v10, %v7211_v7  ;;  %v7302_v7 = vld [vmem:[#allocation13 + $0x70] sm:$0xff] }
0x143a   :  { %v7389_v10 = vld [vmem:[#allocation14 + $0x70] sm:$0xff] }
0x143f   :  { %v20368_v16 = vpop.eup %20367 }
0x1440   :  { %v20370_v20 = vpop.eup %20369  ;;  %v6476_v26 = vsub.f32 %v20368_v16, %v21825_v58  ;;  %v7213_v16 = vld [vmem:[#allocation14 + $0x20] sm:$0xff] }
0x1441   :  { %v20372_v47 = vpop.eup %20371 }
0x1442   :  { %v6563_v53 = vadd.f32 1.0, %v20372_v47  ;;  %v6477_v39 = vmul.f32 %v20370_v20, %v6476_v26  ;;  %v20374_v17 = vpop.eup %20373  ;;  %v19228_v20 = vpack.c.bf16 %v7127_v15, %v7126_v14  ;;  %v19240_v26 = vpack.c.bf16 %v7214_v21, %v7213_v16  ;;  %v7128_v47 = vld [vmem:[#allocation13 + $0x30] sm:$0xff]  ;;  %v7390_v14 = vld [vmem:[#allocation14 + $0x78] sm:$0xff] }
0x1443   :  { %v6645_v29 = vsub.f32 %v20374_v17, %v21843_v28  ;;  %v19267_v15 = vpack.c.bf16 %v7390_v14, %v7389_v10  ;;  %v7716_v10 = vld [vmem:[#allocation14 + $0xc8] sm:$0xff] }
0x1444   :  { %20375 = vrcp.f32 %v6563_v53  ;;  %v6722_v55 = vpop.f32.mrb[70].mxu0  ;;  %v6478_v42 = vadd.f32 %v6477_v39, %v21825_v58  ;;  %v6806_v41 = vpop.f32.mrb[70].mxu1  ;;  %v7215_v53 = vld [vmem:[#allocation14 + $0x30] sm:$0xff]  ;;  %v19231_v39 = vpack.c.bf16 %v7129_v23, %v7128_v47 }
0x1445   :  { %v13607_v30 = vmul.f32 -1.442695, %v6722_v55  ;;  %v16673_v51 = vpop.f32.mrb[71].mxu0  ;;  %v16692_v46 = vpop.f32.mrb[71].mxu1  ;;  %v6810_v54 = vmax.f32 %v6806_v41, 0.0  ;;  %v7216_v55 = vld [vmem:[#allocation14 + $0x38] sm:$0xff] }
0x1446   :  { %v6818_v52 = vadd.f32 %v6817_v57, %v6478_v42  ;;  %v19243_v42 = vpack.c.bf16 %v7216_v55, %v7215_v53 }
0x1447   :  { %20377 = vpow2.f32 %v13607_v30  ;;  %v6811_v22 = vsub.f32 %v6810_v54, %v21825_v58  ;;  %v7383_v54 = vld [vmem:[#allocation14 + $0x40] sm:$0xff] }
0x144e   :  { %v20376_v33 = vpop.eup %20375 }
0x144f   :  { %v6646_v34 = vmul.f32 %v20376_v33, %v6645_v29 }
0x1451   :  { %v20378_v35 = vpop.eup %20377  ;;  %v6647_v40 = vadd.f32 %v6646_v34, %v21843_v28  ;;  %v7122_v28 = vld [vmem:[#allocation13] sm:$0xff] }
0x1452   :  { %v6729_v48 = vadd.f32 1.0, %v20378_v35  ;;  %v19222_v63 = vpack.c.bf16 %v7123_v61, %v7122_v28  ;;  %v7386_v28 = vld [vmem:[#allocation14 + $0x58] sm:$0xff] }
0x1453   :  { %v6819_v45 = vadd.f32 %v6818_v52, %v6647_v40 }
0x1454   :  { %20379 = vrcp.f32 %v6729_v48  ;;  %v7296_v48 = vld [vmem:[#allocation13 + $0x40] sm:$0xff] }
0x145e   :  { %v20380_v36 = vpop.eup %20379 }
0x145f   :  { %v6812_v56 = vmul.f32 %v20380_v36, %v6811_v22  ;;  %v7384_v36 = vld [vmem:[#allocation14 + $0x48] sm:$0xff] }
0x1461   :  { %v6813_v27 = vadd.f32 %v6812_v56, %v21825_v58  ;;  %v6825_v58 = vld [vmem:[#allocation2 + $0x10] sm:$0xf]  ;;  %v19258_v56 = vpack.c.bf16 %v7384_v36, %v7383_v54  ;;  %v7551_v54 = vld [vmem:[#allocation14 + $0x90] sm:$0xff] }
0x1463   :  { %v6820_v59 = vadd.f32 %v6819_v45, %v6813_v27  ;;  %v7297_v45 = vld [vmem:[#allocation13 + $0x48] sm:$0xff]  ;;  %v7298_v27 = vld [vmem:[#allocation13 + $0x50] sm:$0xff] }
0x1464   :  { %v19246_v22 = vpack.c.bf16 %v7297_v45, %v7296_v48  ;;  %v7468_v45 = vld [vmem:[#allocation13 + $0x98] sm:$0xff] }
0x1465   :  { %v21899_v60 = vmul.f32 0.125, %v6820_v59  ;;  %v7299_v59 = vld [vmem:[#allocation13 + $0x58] sm:$0xff] }
0x1467   :  { %6823 = vst.msk [vmem:[#allocation16 + $0xc] sm:$0xf] %vm1842_vm2, %v21899_v60  ;;  %16710 = vmatmul.mubr.msk.f32.vlgmr.msra.gmra.mrb[72].mxu0 %vm171_vm1, %v21899_v60  ;;  %16748 = vmatmul.mubr.msk.f32.vlgmr.msra.gmra.mrb[72].mxu1 %vm171_vm1, %v21899_v60 }
0x1468   :  { %19187 = vmatpush3.bf16.msra.mxu0 %v21020_v31  ;;  %19211 = vmatpush3.bf16.msra.mxu1 %v21024_v32 }
0x1469   :  { %19188 = vmatprep.subr.bf16.mxu0 %v20803_v0  ;;  %19212 = vmatprep.subr.bf16.mxu1 %v20803_v0 }
0x146a   :  { %16728 = vmatprep.mubr.msk.f32.mxu0 %vm20804_vm0, %v20805_v1  ;;  %16766 = vmatprep.mubr.msk.f32.mxu1 %vm20804_vm0, %v20805_v1 }
0x146c   :  { %19190 = vmatpush3.bf16.msra.mxu0 %v21032_v37  ;;  %19214 = vmatpush3.bf16.msra.mxu1 %v21036_v38 }
0x146d   :  { %19191 = vmatprep.subr.bf16.mxu0 %v20803_v0  ;;  %19215 = vmatprep.subr.bf16.mxu1 %v20803_v0 }
0x1470   :  { %19193 = vmatpush3.bf16.msra.mxu0 %v21044_v43  ;;  %19217 = vmatpush3.bf16.msra.mxu1 %v21048_v44 }
0x1471   :  { %19194 = vmatprep.subr.bf16.mxu0 %v20803_v0  ;;  %19218 = vmatprep.subr.bf16.mxu1 %v20803_v0 }
0x1474   :  { %19196 = vmatpush3.bf16.msra.mxu0 %v21052_v49  ;;  %19220 = vmatpush3.bf16.msra.mxu1 %v21056_v50 }
0x1475   :  { %19221 = vmatprep.subr.bf16.mxu0 %v20803_v0  ;;  %19233 = vmatprep.subr.bf16.mxu1 %v20803_v0 }
0x1477   :  { %16729 = vmatmul.mubr.msk.f32.vlgmr.msra.gmra.mrb[72].mxu0 %vm171_vm1, %v6825_v58  ;;  %16767 = vmatmul.mubr.msk.f32.vlgmr.msra.gmra.mrb[72].mxu1 %vm171_vm1, %v6825_v58  ;;  %v19249_v58 = vpack.c.bf16 %v7299_v59, %v7298_v27  ;;  %v7469_v27 = vld [vmem:[#allocation13 + $0xa0] sm:$0xff] }
0x1478   :  { %16785 = vmatprep.mubr.msk.f32.mxu0 %vm20804_vm0, %v20805_v1  ;;  %16804 = vmatprep.mubr.msk.f32.mxu1 %vm20804_vm0, %v20805_v1  ;;  %v7553_v59 = vld [vmem:[#allocation14 + $0xa0] sm:$0xff] }
0x1479   :  { %19223 = vmatpush3.bf16.msra.mxu0 %v19222_v63  ;;  %19235 = vmatpush3.bf16.msra.mxu1 %v19234_v3  ;;  %v7301_v63 = vld [vmem:[#allocation13 + $0x68] sm:$0xff] }
0x147a   :  { %19224 = vmatprep.subr.bf16.mxu0 %v20803_v0  ;;  %19236 = vmatprep.subr.bf16.mxu1 %v20803_v0  ;;  %v19252_v3 = vpack.c.bf16 %v7301_v63, %v7300_v62  ;;  %v7472_v62 = vld [vmem:[#allocation13 + $0xb8] sm:$0xff]  ;;  %v7555_v63 = vld [vmem:[#allocation14 + $0xb0] sm:$0xff] }
0x147b   :  { %v19291_v4 = vpack.c.bf16 %v7556_v2, %v7555_v63  ;;  %v7802_v2 = vld [vmem:[#allocation13 + $0x130] sm:$0xff] }
0x147d   :  { %19226 = vmatpush3.bf16.msra.mxu0 %v19225_v8  ;;  %19238 = vmatpush3.bf16.msra.mxu1 %v19237_v11  ;;  %v7303_v8 = vld [vmem:[#allocation13 + $0x78] sm:$0xff] }
0x147e   :  { %19227 = vmatprep.subr.bf16.mxu0 %v20803_v0  ;;  %19239 = vmatprep.subr.bf16.mxu1 %v20803_v0  ;;  %v19255_v11 = vpack.c.bf16 %v7303_v8, %v7302_v7  ;;  %v7632_v7 = vld [vmem:[#allocation13 + $0xc8] sm:$0xff]  ;;  %v7715_v8 = vld [vmem:[#allocation14 + $0xc0] sm:$0xff] }
0x147f   :  { %v19306_v14 = vpack.c.bf16 %v7716_v10, %v7715_v8 }
0x1481   :  { %19229 = vmatpush3.bf16.msra.mxu0 %v19228_v20  ;;  %19241 = vmatpush3.bf16.msra.mxu1 %v19240_v26 }
0x1482   :  { %19230 = vmatprep.subr.bf16.mxu0 %v20803_v0  ;;  %19242 = vmatprep.subr.bf16.mxu1 %v20803_v0 }
0x1485   :  { %19232 = vmatpush3.bf16.msra.mxu0 %v19231_v39  ;;  %19244 = vmatpush3.bf16.msra.mxu1 %v19243_v42 }
0x1486   :  { %19245 = vmatprep.subr.bf16.mxu0 %v20803_v0  ;;  %19257 = vmatprep.subr.bf16.mxu1 %v20803_v0 }
0x154a   :  { %v6968_v41 = vpop.f32.mrb[72].mxu0  ;;  %v7114_v57 = vpop.f32.mrb[72].mxu1 }
0x154b   :  { %v13611_v30 = vmul.f32 -1.442695, %v6968_v41  ;;  %v16730_v51 = vpop.f32.mrb[73].mxu0  ;;  %v16768_v46 = vpop.f32.mrb[73].mxu1 }
0x154c   :  { %v7466_v51 = vld [vmem:[#allocation13 + $0x88] sm:$0xff]  ;;  %v7549_v46 = vld [vmem:[#allocation14 + $0x80] sm:$0xff] }
0x154d   :  { %20381 = vpow2.f32 %v13611_v30 }
0x154e   :  { %20383 = vtanh.f32 %v7114_v57  ;;  %v7465_v57 = vld [vmem:[#allocation13 + $0x80] sm:$0xff] }
0x1557   :  { %v20382_v52 = vpop.eup %20381 }
0x1558   :  { %v6975_v17 = vadd.f32 1.0, %v20382_v52  ;;  %v20384_v29 = vpop.eup %20383  ;;  %v7550_v52 = vld [vmem:[#allocation14 + $0x88] sm:$0xff] }
0x1559   :  { %v7119_v33 = vsub.f32 %v20384_v29, %v21899_v60 }
0x155a   :  { %20385 = vrcp.f32 %v6975_v17 }
0x1564   :  { %v20386_v34 = vpop.eup %20385 }
0x1565   :  { %v7120_v35 = vmul.f32 %v20386_v34, %v7119_v33  ;;  %v19270_v33 = vpack.c.bf16 %v7466_v51, %v7465_v57  ;;  %v19282_v34 = vpack.c.bf16 %v7550_v52, %v7549_v46  ;;  %v7637_v57 = vld [vmem:[#allocation13 + $0xf0] sm:$0xff]  ;;  %v7722_v46 = vld [vmem:[#allocation14 + $0xf8] sm:$0xff] }
0x1566   :  { %v7721_v51 = vld [vmem:[#allocation14 + $0xf0] sm:$0xff] }
0x1567   :  { %v21943_v40 = vadd.f32 %v7120_v35, %v21899_v60  ;;  %v7385_v60 = vld [vmem:[#allocation14 + $0x50] sm:$0xff] }
0x1568   :  { %v19261_v61 = vpack.c.bf16 %v7386_v28, %v7385_v60  ;;  %v7467_v35 = vld [vmem:[#allocation13 + $0x90] sm:$0xff]  ;;  %v7554_v60 = vld [vmem:[#allocation14 + $0xa8] sm:$0xff] }
0x1569   :  { %16786 = vmatmul.mubr.msk.f32.vlgmr.msra.gmra.mrb[74].mxu0 %vm171_vm1, %v21943_v40  ;;  %16805 = vmatmul.mubr.msk.f32.vlgmr.msra.gmra.mrb[74].mxu1 %vm171_vm1, %v21943_v40  ;;  %v19273_v36 = vpack.c.bf16 %v7468_v45, %v7467_v35  ;;  %v19288_v28 = vpack.c.bf16 %v7554_v60, %v7553_v59  ;;  %v7884_v45 = vld [vmem:[#allocation14 + $0x108] sm:$0xff]  ;;  %v7800_v60 = vld [vmem:[#allocation13 + $0x120] sm:$0xff] }
0x156a   :  { %16823 = vmatprep.mubr.msk.f32.mxu0 %vm20804_vm0, %v20805_v1  ;;  %16842 = vmatprep.mubr.msk.f32.mxu1 %vm20804_vm0, %v20805_v1 }
0x156b   :  { %19247 = vmatpush3.bf16.msra.mxu0 %v19246_v22  ;;  %19259 = vmatpush3.bf16.msra.mxu1 %v19258_v56  ;;  %v7552_v22 = vld [vmem:[#allocation14 + $0x98] sm:$0xff] }
0x156c   :  { %19248 = vmatprep.subr.bf16.mxu0 %v20803_v0  ;;  %19260 = vmatprep.subr.bf16.mxu1 %v20803_v0  ;;  %v19285_v56 = vpack.c.bf16 %v7552_v22, %v7551_v54  ;;  %v7798_v22 = vld [vmem:[#allocation13 + $0x110] sm:$0xff] }
0x156f   :  { %19250 = vmatpush3.bf16.msra.mxu0 %v19249_v58  ;;  %19262 = vmatpush3.bf16.msra.mxu1 %v19261_v61  ;;  %v7471_v61 = vld [vmem:[#allocation13 + $0xb0] sm:$0xff] }
0x1570   :  { %19251 = vmatprep.subr.bf16.mxu0 %v20803_v0  ;;  %19263 = vmatprep.subr.bf16.mxu1 %v20803_v0 }
0x1573   :  { %19253 = vmatpush3.bf16.msra.mxu0 %v19252_v3  ;;  %19265 = vmatpush3.bf16.msra.mxu1 %v19264_v6  ;;  %v19279_v3 = vpack.c.bf16 %v7472_v62, %v7471_v61  ;;  %v7631_v6 = vld [vmem:[#allocation13 + $0xc0] sm:$0xff]  ;;  %v7888_v62 = vld [vmem:[#allocation14 + $0x128] sm:$0xff] }
0x1574   :  { %19254 = vmatprep.subr.bf16.mxu0 %v20803_v0  ;;  %19266 = vmatprep.subr.bf16.mxu1 %v20803_v0 }
0x1577   :  { %19256 = vmatpush3.bf16.msra.mxu0 %v19255_v11  ;;  %19268 = vmatpush3.bf16.msra.mxu1 %v19267_v15  ;;  %v19294_v11 = vpack.c.bf16 %v7632_v7, %v7631_v6  ;;  %v7633_v15 = vld [vmem:[#allocation13 + $0xd0] sm:$0xff]  ;;  %v7890_v7 = vld [vmem:[#allocation14 + $0x138] sm:$0xff] }
0x1578   :  { %19269 = vmatprep.subr.bf16.mxu0 %v20803_v0  ;;  %19281 = vmatprep.subr.bf16.mxu1 %v20803_v0 }
0x163c   :  { %v7199_v16 = vpop.f32.mrb[74].mxu0  ;;  %v7283_v20 = vpop.f32.mrb[74].mxu1 }
0x163d   :  { %v13615_v21 = vmul.f32 -1.442695, %v7199_v16  ;;  %v13617_v26 = vmul.f32 -1.442695, %v7283_v20  ;;  %v16787_v47 = vpop.f32.mrb[75].mxu0  ;;  %v16806_v23 = vpop.f32.mrb[75].mxu1 }
0x163e   :  { %v7634_v16 = vld [vmem:[#allocation13 + $0xd8] sm:$0xff]  ;;  %v7717_v20 = vld [vmem:[#allocation14 + $0xd0] sm:$0xff]  ;;  %v7635_v23 = vld [vmem:[#allocation13 + $0xe0] sm:$0xff] }
0x163f   :  { %20387 = vpow2.f32 %v13615_v21  ;;  %v7718_v21 = vld [vmem:[#allocation14 + $0xd8] sm:$0xff] }
0x1640   :  { %20389 = vpow2.f32 %v13617_v26  ;;  %v19297_v26 = vpack.c.bf16 %v7634_v16, %v7633_v15  ;;  %v19309_v47 = vpack.c.bf16 %v7718_v21, %v7717_v20 }
0x1649   :  { %v20388_v53 = vpop.eup %20387 }
0x164a   :  { %v20390_v39 = vpop.eup %20389  ;;  %v7206_v55 = vadd.f32 1.0, %v20388_v53  ;;  %v7636_v53 = vld [vmem:[#allocation13 + $0xe8] sm:$0xff] }
0x164b   :  { %v7290_v42 = vadd.f32 1.0, %v20390_v39  ;;  %v7719_v39 = vld [vmem:[#allocation14 + $0xe0] sm:$0xff] }
0x164d   :  { %20391 = vrcp.f32 %v7290_v42  ;;  %v19300_v42 = vpack.c.bf16 %v7636_v53, %v7635_v23 }
0x164e   :  { %20393 = vrcp.f32 %v7206_v55  ;;  %v7720_v55 = vld [vmem:[#allocation14 + $0xe8] sm:$0xff] }
0x1657   :  { %v20392_v41 = vpop.eup %20391 }
0x1658   :  { %v7293_v30 = vsub.f32 %v20392_v41, %v21943_v40  ;;  %v20394_v17 = vpop.eup %20393  ;;  %v19312_v41 = vpack.c.bf16 %v7720_v55, %v7719_v39 }
0x165a   :  { %v7294_v29 = vmul.f32 %v20394_v17, %v7293_v30  ;;  %v7638_v30 = vld [vmem:[#allocation13 + $0xf8] sm:$0xff]  ;;  %v19315_v17 = vpack.c.bf16 %v7722_v46, %v7721_v51 }
0x165b   :  { %v19303_v52 = vpack.c.bf16 %v7638_v30, %v7637_v57 }
0x165c   :  { %v21963_v48 = vadd.f32 %v7294_v29, %v21943_v40  ;;  %v7470_v40 = vld [vmem:[#allocation13 + $0xa8] sm:$0xff]  ;;  %v7796_v29 = vld [vmem:[#allocation13 + $0x100] sm:$0xff] }
0x165d   :  { %v19276_v58 = vpack.c.bf16 %v7470_v40, %v7469_v27  ;;  %v7886_v40 = vld [vmem:[#allocation14 + $0x118] sm:$0xff] }
0x165e   :  { %16824 = vmatmul.mubr.msk.f32.vlgmr.msra.gmra.mrb[76].mxu0 %vm171_vm1, %v21963_v48  ;;  %16843 = vmatmul.mubr.msk.f32.vlgmr.msra.gmra.mrb[76].mxu1 %vm171_vm1, %v21963_v48 }
0x165f   :  { %19271 = vmatpush3.bf16.msra.mxu0 %v19270_v33  ;;  %19283 = vmatpush3.bf16.msra.mxu1 %v19282_v34  ;;  %v7797_v33 = vld [vmem:[#allocation13 + $0x108] sm:$0xff]  ;;  %v7883_v34 = vld [vmem:[#allocation14 + $0x100] sm:$0xff] }
0x1660   :  { %19272 = vmatprep.subr.bf16.mxu0 %v20803_v0  ;;  %19284 = vmatprep.subr.bf16.mxu1 %v20803_v0  ;;  %v19318_v35 = vpack.c.bf16 %v7797_v33, %v7796_v29  ;;  %v19330_v54 = vpack.c.bf16 %v7884_v45, %v7883_v34 }
0x1661   :  { %16861 = vmatprep.mubr.msk.f32.mxu0 %vm20804_vm0, %v20805_v1  ;;  %16880 = vmatprep.mubr.msk.f32.mxu1 %vm20804_vm0, %v20805_v1 }
0x1663   :  { %19274 = vmatpush3.bf16.msra.mxu0 %v19273_v36  ;;  %19286 = vmatpush3.bf16.msra.mxu1 %v19285_v56  ;;  %v7799_v36 = vld [vmem:[#allocation13 + $0x118] sm:$0xff]  ;;  %v7885_v56 = vld [vmem:[#allocation14 + $0x110] sm:$0xff] }
0x1664   :  { %19275 = vmatprep.subr.bf16.mxu0 %v20803_v0  ;;  %19287 = vmatprep.subr.bf16.mxu1 %v20803_v0  ;;  %v19321_v27 = vpack.c.bf16 %v7799_v36, %v7798_v22  ;;  %v19333_v59 = vpack.c.bf16 %v7886_v40, %v7885_v56 }
0x1667   :  { %19277 = vmatpush3.bf16.msra.mxu0 %v19276_v58  ;;  %19289 = vmatpush3.bf16.msra.mxu1 %v19288_v28  ;;  %v7801_v58 = vld [vmem:[#allocation13 + $0x128] sm:$0xff]  ;;  %v7887_v28 = vld [vmem:[#allocation14 + $0x120] sm:$0xff] }
0x1668   :  { %19278 = vmatprep.subr.bf16.mxu0 %v20803_v0  ;;  %19290 = vmatprep.subr.bf16.mxu1 %v20803_v0  ;;  %v19324_v61 = vpack.c.bf16 %v7801_v58, %v7800_v60  ;;  %v19336_v63 = vpack.c.bf16 %v7888_v62, %v7887_v28  ;;  %v7965_v60 = vld [vmem:[#allocation13 + $0x140] sm:$0xff]  ;;  %v7966_v58 = vld [vmem:[#allocation13 + $0x148] sm:$0xff] }
0x1669   :  { %v8052_v28 = vld [vmem:[#allocation14 + $0x140] sm:$0xff]  ;;  %v8053_v62 = vld [vmem:[#allocation14 + $0x148] sm:$0xff] }
0x166b   :  { %19280 = vmatpush3.bf16.msra.mxu0 %v19279_v3  ;;  %19292 = vmatpush3.bf16.msra.mxu1 %v19291_v4  ;;  %v7803_v3 = vld [vmem:[#allocation13 + $0x138] sm:$0xff]  ;;  %v7889_v4 = vld [vmem:[#allocation14 + $0x130] sm:$0xff] }
0x166c   :  { %19293 = vmatprep.subr.bf16.mxu0 %v20803_v0  ;;  %19305 = vmatprep.subr.bf16.mxu1 %v20803_v0  ;;  %v19327_v6 = vpack.c.bf16 %v7803_v3, %v7802_v2  ;;  %v19339_v8 = vpack.c.bf16 %v7890_v7, %v7889_v4  ;;  %v7967_v2 = vld [vmem:[#allocation13 + $0x150] sm:$0xff]  ;;  %v7968_v3 = vld [vmem:[#allocation13 + $0x158] sm:$0xff] }
0x166d   :  { %v8054_v4 = vld [vmem:[#allocation14 + $0x150] sm:$0xff]  ;;  %v8055_v7 = vld [vmem:[#allocation14 + $0x158] sm:$0xff] }
0x166e   :  { %16862 = vmatmul.mubr.msk.f32.vlgmr.msra.gmra.mrb[78].mxu0 %vm171_vm1, %v21963_v48  ;;  %16881 = vmatmul.mubr.msk.f32.vlgmr.msra.gmra.mrb[78].mxu1 %vm171_vm1, %v21963_v48 }
0x166f   :  { %19295 = vmatpush3.bf16.msra.mxu0 %v19294_v11  ;;  %19307 = vmatpush3.bf16.msra.mxu1 %v19306_v14 }
0x1670   :  { %19296 = vmatprep.subr.bf16.mxu0 %v20803_v0  ;;  %19308 = vmatprep.subr.bf16.mxu1 %v20803_v0 }
0x1671   :  { %16899 = vmatprep.mubr.msk.f32.mxu0 %vm20804_vm0, %v20805_v1  ;;  %16918 = vmatprep.mubr.msk.f32.mxu1 %vm20804_vm0, %v20805_v1 }
0x1673   :  { %19298 = vmatpush3.bf16.msra.mxu0 %v19297_v26  ;;  %19310 = vmatpush3.bf16.msra.mxu1 %v19309_v47 }
0x1674   :  { %19299 = vmatprep.subr.bf16.mxu0 %v20803_v0  ;;  %19311 = vmatprep.subr.bf16.mxu1 %v20803_v0 }
0x1677   :  { %19301 = vmatpush3.bf16.msra.mxu0 %v19300_v42  ;;  %19313 = vmatpush3.bf16.msra.mxu1 %v19312_v41 }
0x1678   :  { %19302 = vmatprep.subr.bf16.mxu0 %v20803_v0  ;;  %19314 = vmatprep.subr.bf16.mxu1 %v20803_v0 }
0x167b   :  { %19304 = vmatpush3.bf16.msra.mxu0 %v19303_v52  ;;  %19316 = vmatpush3.bf16.msra.mxu1 %v19315_v17 }
0x167c   :  { %19317 = vmatprep.subr.bf16.mxu0 %v20803_v0  ;;  %19329 = vmatprep.subr.bf16.mxu1 %v20803_v0 }
0x167e   :  { %16900 = vmatmul.mubr.msk.f32.vlgmr.msra.gmra.mrb[80].mxu0 %vm171_vm1, %v21963_v48  ;;  %16919 = vmatmul.mubr.msk.f32.vlgmr.msra.gmra.mrb[80].mxu1 %vm171_vm1, %v21963_v48 }
0x167f   :  { %16937 = vmatprep.mubr.msk.f32.mxu0 %vm20804_vm0, %v20805_v1  ;;  %16956 = vmatprep.mubr.msk.f32.mxu1 %vm20804_vm0, %v20805_v1 }
0x1680   :  { %19319 = vmatpush3.bf16.msra.mxu0 %v19318_v35  ;;  %19331 = vmatpush3.bf16.msra.mxu1 %v19330_v54 }
0x1681   :  { %19320 = vmatprep.subr.bf16.mxu0 %v20803_v0  ;;  %19332 = vmatprep.subr.bf16.mxu1 %v20803_v0 }
0x1684   :  { %19322 = vmatpush3.bf16.msra.mxu0 %v19321_v27  ;;  %19334 = vmatpush3.bf16.msra.mxu1 %v19333_v59 }
0x1685   :  { %19323 = vmatprep.subr.bf16.mxu0 %v20803_v0  ;;  %19335 = vmatprep.subr.bf16.mxu1 %v20803_v0 }
0x1688   :  { %19325 = vmatpush3.bf16.msra.mxu0 %v19324_v61  ;;  %19337 = vmatpush3.bf16.msra.mxu1 %v19336_v63  ;;  %v19342_v61 = vpack.c.bf16 %v7966_v58, %v7965_v60  ;;  %v19354_v63 = vpack.c.bf16 %v8053_v62, %v8052_v28  ;;  %v8142_v58 = vld [vmem:[#allocation13 + $0x198] sm:$0xff]  ;;  %v8228_v28 = vld [vmem:[#allocation14 + $0x190] sm:$0xff] }
0x1689   :  { %19326 = vmatprep.subr.bf16.mxu0 %v20803_v0  ;;  %19338 = vmatprep.subr.bf16.mxu1 %v20803_v0 }
0x168c   :  { %19328 = vmatpush3.bf16.msra.mxu0 %v19327_v6  ;;  %19340 = vmatpush3.bf16.msra.mxu1 %v19339_v8  ;;  %v19345_v6 = vpack.c.bf16 %v7968_v3, %v7967_v2  ;;  %v19357_v8 = vpack.c.bf16 %v8055_v7, %v8054_v4  ;;  %v8143_v2 = vld [vmem:[#allocation13 + $0x1a0] sm:$0xff]  ;;  %v8144_v3 = vld [vmem:[#allocation13 + $0x1a8] sm:$0xff] }
0x168d   :  { %19341 = vmatprep.subr.bf16.mxu0 %v20803_v0  ;;  %19353 = vmatprep.subr.bf16.mxu1 %v20803_v0  ;;  %v8230_v4 = vld [vmem:[#allocation14 + $0x1a0] sm:$0xff]  ;;  %v19372_v7 = vpack.c.bf16 %v8144_v3, %v8143_v2 }
0x1731   :  { %v7373_v10 = vpop.f32.mrb[76].mxu0  ;;  %v7457_v11 = vpop.f32.mrb[76].mxu1 }
0x1732   :  { %v13619_v14 = vmul.f32 -1.442695, %v7373_v10  ;;  %v16825_v15 = vpop.f32.mrb[77].mxu0  ;;  %v16844_v16 = vpop.f32.mrb[77].mxu1  ;;  %v7461_v55 = vmax.f32 %v7457_v11, 0.0  ;;  %v7969_v10 = vld [vmem:[#allocation13 + $0x160] sm:$0xff] }
0x1733   :  { %v7970_v11 = vld [vmem:[#allocation13 + $0x168] sm:$0xff] }
0x1734   :  { %20395 = vpow2.f32 %v13619_v14  ;;  %v7462_v42 = vsub.f32 %v7461_v55, %v21963_v48  ;;  %v8056_v14 = vld [vmem:[#allocation14 + $0x160] sm:$0xff]  ;;  %v19348_v15 = vpack.c.bf16 %v7970_v11, %v7969_v10  ;;  %v8057_v16 = vld [vmem:[#allocation14 + $0x168] sm:$0xff]  ;;  %v8145_v10 = vld [vmem:[#allocation13 + $0x1b0] sm:$0xff] }
0x1735   :  { %v8146_v11 = vld [vmem:[#allocation13 + $0x1b8] sm:$0xff] }
0x173e   :  { %v20396_v20 = vpop.eup %20395 }
0x173f   :  { %v7380_v21 = vadd.f32 1.0, %v20396_v20  ;;  %v19360_v20 = vpack.c.bf16 %v8057_v16, %v8056_v14  ;;  %v8232_v14 = vld [vmem:[#allocation14 + $0x1b0] sm:$0xff]  ;;  %v19375_v16 = vpack.c.bf16 %v8146_v11, %v8145_v10 }
0x1741   :  { %20397 = vrcp.f32 %v7380_v21  ;;  %v7539_v26 = vpop.f32.mrb[78].mxu0  ;;  %v7623_v47 = vpop.f32.mrb[78].mxu1  ;;  %v7971_v21 = vld [vmem:[#allocation13 + $0x170] sm:$0xff] }
0x1742   :  { %v13622_v23 = vmul.f32 -1.442695, %v7539_v26  ;;  %v16863_v53 = vpop.f32.mrb[79].mxu0  ;;  %v16882_v39 = vpop.f32.mrb[79].mxu1  ;;  %v7627_v35 = vmax.f32 %v7623_v47, 0.0  ;;  %v7972_v26 = vld [vmem:[#allocation13 + $0x178] sm:$0xff] }
0x1743   :  { %v8058_v47 = vld [vmem:[#allocation14 + $0x170] sm:$0xff]  ;;  %v8059_v53 = vld [vmem:[#allocation14 + $0x178] sm:$0xff] }
0x1744   :  { %20399 = vpow2.f32 %v13622_v23  ;;  %v7628_v45 = vsub.f32 %v7627_v35, %v21963_v48  ;;  %v19351_v23 = vpack.c.bf16 %v7972_v26, %v7971_v21  ;;  %v19363_v39 = vpack.c.bf16 %v8059_v53, %v8058_v47  ;;  %v8226_v35 = vld [vmem:[#allocation14 + $0x180] sm:$0xff]  ;;  %v8309_v26 = vld [vmem:[#allocation13 + $0x1c8] sm:$0xff] }
0x1745   :  { %v8308_v21 = vld [vmem:[#allocation13 + $0x1c0] sm:$0xff] }
0x1746   :  { %v8392_v47 = vld [vmem:[#allocation14 + $0x1c0] sm:$0xff]  ;;  %v19390_v53 = vpack.c.bf16 %v8309_v26, %v8308_v21 }
0x174b   :  { %v20398_v41 = vpop.eup %20397 }
0x174c   :  { %v7463_v57 = vmul.f32 %v20398_v41, %v7462_v42 }
0x174e   :  { %v20400_v30 = vpop.eup %20399  ;;  %v22015_v51 = vadd.f32 %v7463_v57, %v21963_v48 }
0x174f   :  { %v7546_v46 = vadd.f32 1.0, %v20400_v30 }
0x1750   :  { %16938 = vmatmul.mubr.msk.f32.vlgmr.msra.gmra.mrb[82].mxu0 %vm171_vm1, %v22015_v51  ;;  %16957 = vmatmul.mubr.msk.f32.vlgmr.msra.gmra.mrb[82].mxu1 %vm171_vm1, %v22015_v51 }
0x1751   :  { %20401 = vrcp.f32 %v7546_v46  ;;  %v7705_v52 = vpop.f32.mrb[80].mxu0  ;;  %v7789_v17 = vpop.f32.mrb[80].mxu1  ;;  %16975 = vmatprep.mubr.msk.f32.mxu0 %vm20804_vm0, %v20805_v1  ;;  %16994 = vmatprep.mubr.msk.f32.mxu1 %vm20804_vm0, %v20805_v1 }
0x1752   :  { %v13625_v29 = vmul.f32 -1.442695, %v7705_v52  ;;  %v16901_v33 = vpop.f32.mrb[81].mxu0  ;;  %v16920_v34 = vpop.f32.mrb[81].mxu1  ;;  %v7793_v27 = vsub.f32 %v7789_v17, %v21963_v48  ;;  %19343 = vmatpush3.bf16.msra.mxu0 %v19342_v61  ;;  %19355 = vmatpush3.bf16.msra.mxu1 %v19354_v63  ;;  %v8229_v61 = vld [vmem:[#allocation14 + $0x198] sm:$0xff] }
0x1753   :  { %19344 = vmatprep.subr.bf16.mxu0 %v20803_v0  ;;  %19356 = vmatprep.subr.bf16.mxu1 %v20803_v0  ;;  %v8140_v34 = vld [vmem:[#allocation13 + $0x188] sm:$0xff]  ;;  %v19381_v63 = vpack.c.bf16 %v8229_v61, %v8228_v28 }
0x1754   :  { %20403 = vpow2.f32 %v13625_v29  ;;  %v8139_v29 = vld [vmem:[#allocation13 + $0x180] sm:$0xff] }
0x1756   :  { %19346 = vmatpush3.bf16.msra.mxu0 %v19345_v6  ;;  %19358 = vmatpush3.bf16.msra.mxu1 %v19357_v8  ;;  %v8231_v6 = vld [vmem:[#allocation14 + $0x1a8] sm:$0xff] }
0x1757   :  { %19347 = vmatprep.subr.bf16.mxu0 %v20803_v0  ;;  %19359 = vmatprep.subr.bf16.mxu1 %v20803_v0  ;;  %v19384_v8 = vpack.c.bf16 %v8231_v6, %v8230_v4 }
0x175a   :  { %19349 = vmatpush3.bf16.msra.mxu0 %v19348_v15  ;;  %19361 = vmatpush3.bf16.msra.mxu1 %v19360_v20  ;;  %v8233_v15 = vld [vmem:[#allocation14 + $0x1b8] sm:$0xff] }
0x175b   :  { %v20402_v54 = vpop.eup %20401  ;;  %19350 = vmatprep.subr.bf16.mxu0 %v20803_v0  ;;  %19362 = vmatprep.subr.bf16.mxu1 %v20803_v0  ;;  %v19387_v20 = vpack.c.bf16 %v8233_v15, %v8232_v14 }
0x175c   :  { %v22026_v22 = vmul.f32 %v20402_v54, %v7628_v45  ;;  %v8227_v45 = vld [vmem:[#allocation14 + $0x188] sm:$0xff] }
0x175e   :  { %v20404_v36 = vpop.eup %20403  ;;  %19352 = vmatpush3.bf16.msra.mxu0 %v19351_v23  ;;  %19364 = vmatpush3.bf16.msra.mxu1 %v19363_v39  ;;  %v8393_v23 = vld [vmem:[#allocation14 + $0x1c8] sm:$0xff] }
0x175f   :  { %v7712_v56 = vadd.f32 1.0, %v20404_v36  ;;  %19365 = vmatprep.subr.bf16.mxu0 %v20803_v0  ;;  %19377 = vmatprep.subr.bf16.mxu1 %v20803_v0  ;;  %v19402_v39 = vpack.c.bf16 %v8393_v23, %v8392_v47 }
0x1761   :  { %20405 = vrcp.f32 %v7712_v56  ;;  %v19366_v56 = vpack.c.bf16 %v8140_v34, %v8139_v29  ;;  %v8396_v29 = vld [vmem:[#allocation14 + $0x1e0] sm:$0xff] }
0x176b   :  { %v20406_v40 = vpop.eup %20405 }
0x176c   :  { %v22029_v59 = vmul.f32 %v20406_v40, %v7793_v27  ;;  %v19378_v27 = vpack.c.bf16 %v8227_v45, %v8226_v35  ;;  %v8141_v40 = vld [vmem:[#allocation13 + $0x190] sm:$0xff] }
0x176d   :  { %v19369_v62 = vpack.c.bf16 %v8142_v58, %v8141_v40  ;;  %v8314_v45 = vld [vmem:[#allocation13 + $0x1f0] sm:$0xff] }
0x1823   :  { %v7873_v55 = vpop.f32.mrb[82].mxu0  ;;  %v7957_v42 = vpop.f32.mrb[82].mxu1 }
0x1824   :  { %v13628_v41 = vmul.f32 -1.442695, %v7873_v55  ;;  %v16939_v57 = vpop.f32.mrb[83].mxu0  ;;  %v16958_v30 = vpop.f32.mrb[83].mxu1  ;;  %v8310_v55 = vld [vmem:[#allocation13 + $0x1d0] sm:$0xff] }
0x1825   :  { %v8394_v57 = vld [vmem:[#allocation14 + $0x1d0] sm:$0xff]  ;;  %v8395_v30 = vld [vmem:[#allocation14 + $0x1d8] sm:$0xff] }
0x1826   :  { %20407 = vpow2.f32 %v13628_v41  ;;  %v8311_v41 = vld [vmem:[#allocation13 + $0x1d8] sm:$0xff] }
0x1827   :  { %20409 = vtanh.f32 %v7957_v42  ;;  %v22059_v42 = vadd.f32 %v22026_v22, %v21963_v48  ;;  %v8313_v22 = vld [vmem:[#allocation13 + $0x1e8] sm:$0xff] }
0x1830   :  { %v20408_v46 = vpop.eup %20407 }
0x1831   :  { %v7880_v52 = vadd.f32 1.0, %v20408_v46  ;;  %v20410_v17 = vpop.eup %20409  ;;  %v19393_v46 = vpack.c.bf16 %v8311_v41, %v8310_v55 }
0x1832   :  { %v7962_v33 = vsub.f32 %v20410_v17, %v22015_v51  ;;  %v8312_v17 = vld [vmem:[#allocation13 + $0x1e0] sm:$0xff] }
0x1833   :  { %20411 = vrcp.f32 %v7880_v52  ;;  %v19405_v52 = vpack.c.bf16 %v8395_v30, %v8394_v57  ;;  %v19396_v34 = vpack.c.bf16 %v8313_v22, %v8312_v17 }
0x183d   :  { %v20412_v54 = vpop.eup %20411 }
0x183e   :  { %v7963_v36 = vmul.f32 %v20412_v54, %v7962_v33  ;;  %v8397_v33 = vld [vmem:[#allocation14 + $0x1e8] sm:$0xff]  ;;  %v8315_v54 = vld [vmem:[#allocation13 + $0x1f8] sm:$0xff] }
0x183f   :  { %v19408_v35 = vpack.c.bf16 %v8397_v33, %v8396_v29 }
0x1840   :  { %v22041_v60 = vadd.f32 %v7963_v36, %v22015_v51  ;;  %v8398_v36 = vld [vmem:[#allocation14 + $0x1f0] sm:$0xff] }
0x1842   :  { %16976 = vmatmul.mubr.msk.f32.vlgmr.msra.gmra.mrb[84].mxu0 %vm171_vm1, %v22041_v60  ;;  %16995 = vmatmul.mubr.msk.f32.vlgmr.msra.gmra.mrb[84].mxu1 %vm171_vm1, %v22041_v60 }
0x1843   :  { %19367 = vmatpush3.bf16.msra.mxu0 %v19366_v56  ;;  %19379 = vmatpush3.bf16.msra.mxu1 %v19378_v27  ;;  %v8399_v56 = vld [vmem:[#allocation14 + $0x1f8] sm:$0xff]  ;;  %v19399_v27 = vpack.c.bf16 %v8315_v54, %v8314_v45 }
0x1844   :  { %19368 = vmatprep.subr.bf16.mxu0 %v20803_v0  ;;  %19380 = vmatprep.subr.bf16.mxu1 %v20803_v0  ;;  %v19411_v40 = vpack.c.bf16 %v8399_v56, %v8398_v36 }
0x1845   :  { %17013 = vmatprep.mubr.msk.f32.mxu0 %vm20804_vm0, %v20805_v1  ;;  %17032 = vmatprep.mubr.msk.f32.mxu1 %vm20804_vm0, %v20805_v1 }
0x1847   :  { %19370 = vmatpush3.bf16.msra.mxu0 %v19369_v62  ;;  %19382 = vmatpush3.bf16.msra.mxu1 %v19381_v63 }
0x1848   :  { %19371 = vmatprep.subr.bf16.mxu0 %v20803_v0  ;;  %19383 = vmatprep.subr.bf16.mxu1 %v20803_v0 }
0x184b   :  { %19373 = vmatpush3.bf16.msra.mxu0 %v19372_v7  ;;  %19385 = vmatpush3.bf16.msra.mxu1 %v19384_v8 }
0x184c   :  { %19374 = vmatprep.subr.bf16.mxu0 %v20803_v0  ;;  %19386 = vmatprep.subr.bf16.mxu1 %v20803_v0 }
0x184f   :  { %19376 = vmatpush3.bf16.msra.mxu0 %v19375_v16  ;;  %19388 = vmatpush3.bf16.msra.mxu1 %v19387_v20  ;;  %v7795_v16 = vadd.f32 %v22029_v59, %v21963_v48  ;;  %v8474_v20 = vadd.f32 %v22015_v51, %v21963_v48 }
0x1850   :  { %19389 = vmatprep.subr.bf16.mxu0 %v20803_v0  ;;  %19401 = vmatprep.subr.bf16.mxu1 %v20803_v0 }
0x1851   :  { %v8475_v47 = vadd.f32 %v8474_v20, %v22059_v42  ;;  %v8787_v20 = vld [vmem:[#allocation13 + $0x28] sm:$0xff] }
0x1852   :  { %17014 = vmatmul.mubr.msk.f32.vlgmr.msra.gmra.mrb[86].mxu0 %vm171_vm1, %v22059_v42  ;;  %17033 = vmatmul.mubr.msk.f32.vlgmr.msra.gmra.mrb[86].mxu1 %vm171_vm1, %v22059_v42 }
0x1853   :  { %19391 = vmatpush3.bf16.msra.mxu0 %v19390_v53  ;;  %19403 = vmatpush3.bf16.msra.mxu1 %v19402_v39  ;;  %v8476_v39 = vadd.f32 %v8475_v47, %v7795_v16  ;;  %v8786_v16 = vld [vmem:[#allocation13 + $0x20] sm:$0xff]  ;;  %v8874_v47 = vld [vmem:[#allocation14 + $0x28] sm:$0xff] }
0x1854   :  { %19392 = vmatprep.subr.bf16.mxu0 %v20803_v0  ;;  %19404 = vmatprep.subr.bf16.mxu1 %v20803_v0 }
0x1855   :  { %17051 = vmatprep.mubr.msk.f32.mxu0 %vm20804_vm0, %v20805_v1  ;;  %17070 = vmatprep.mubr.msk.f32.mxu1 %vm20804_vm0, %v20805_v1  ;;  %v8477_v59 = vadd.f32 %v8476_v39, %v22041_v60  ;;  %v8789_v39 = vld [vmem:[#allocation13 + $0x38] sm:$0xff] }
0x1857   :  { %19394 = vmatpush3.bf16.msra.mxu0 %v19393_v46  ;;  %19406 = vmatpush3.bf16.msra.mxu1 %v19405_v52 }
0x1858   :  { %19395 = vmatprep.subr.bf16.mxu0 %v20803_v0  ;;  %19407 = vmatprep.subr.bf16.mxu1 %v20803_v0 }
0x185b   :  { %19397 = vmatpush3.bf16.msra.mxu0 %v19396_v34  ;;  %19409 = vmatpush3.bf16.msra.mxu1 %v19408_v35 }
0x185c   :  { %19398 = vmatprep.subr.bf16.mxu0 %v20803_v0  ;;  %19410 = vmatprep.subr.bf16.mxu1 %v20803_v0 }
0x185f   :  { %19400 = vmatpush3.bf16.msra.mxu0 %v19399_v27  ;;  %19412 = vmatpush3.bf16.msra.mxu1 %v19411_v40 }
0x1860   :  { %19413 = vmatprep.subr.bf16.mxu0 %v20803_v0  ;;  %19437 = vmatprep.subr.bf16.mxu1 %v20803_v0 }
0x1862   :  { %17052 = vmatmul.mubr.msk.f32.vlgmr.msra.gmra.mrb[88].mxu0 %vm171_vm1, %v22041_v60  ;;  %17071 = vmatmul.mubr.msk.f32.vlgmr.msra.gmra.mrb[88].mxu1 %vm171_vm1, %v22041_v60 }
0x1863   :  { %19415 = vmatpush3.bf16.msra.mxu0 %v20989_v5  ;;  %19439 = vmatpush3.bf16.msra.mxu1 %v20991_v9 }
0x1864   :  { %19416 = vmatprep.subr.bf16.mxu0 %v20803_v0  ;;  %19440 = vmatprep.subr.bf16.mxu1 %v20803_v0 }
0x1865   :  { %17089 = vmatprep.mubr.msk.f32.mxu0 %vm20804_vm0, %v20805_v1  ;;  %17127 = vmatprep.mubr.msk.f32.mxu1 %vm20804_vm0, %v20805_v1 }
0x1867   :  { %19418 = vmatpush3.bf16.msra.mxu0 %v20994_v12  ;;  %19442 = vmatpush3.bf16.msra.mxu1 %v20998_v13 }
0x1868   :  { %19419 = vmatprep.subr.bf16.mxu0 %v20803_v0  ;;  %19443 = vmatprep.subr.bf16.mxu1 %v20803_v0 }
0x186b   :  { %19421 = vmatpush3.bf16.msra.mxu0 %v21002_v18  ;;  %19445 = vmatpush3.bf16.msra.mxu1 %v21006_v19 }
0x186c   :  { %19422 = vmatprep.subr.bf16.mxu0 %v20803_v0  ;;  %19446 = vmatprep.subr.bf16.mxu1 %v20803_v0 }
0x186f   :  { %19424 = vmatpush3.bf16.msra.mxu0 %v21010_v24  ;;  %19448 = vmatpush3.bf16.msra.mxu1 %v21014_v25 }
0x1870   :  { %19425 = vmatprep.subr.bf16.mxu0 %v20803_v0  ;;  %19449 = vmatprep.subr.bf16.mxu1 %v20803_v0 }
0x1915   :  { %v8042_v58 = vpop.f32.mrb[84].mxu0  ;;  %v8126_v28 = vpop.f32.mrb[84].mxu1 }
0x1916   :  { %v13631_v61 = vmul.f32 -1.442695, %v8042_v58  ;;  %v13633_v62 = vmul.f32 -1.442695, %v8126_v28  ;;  %v16977_v63 = vpop.f32.mrb[85].mxu0  ;;  %v16996_v2 = vpop.f32.mrb[85].mxu1 }
0x1917   :  { %v8783_v63 = vld [vmem:[#allocation13 + $0x8] sm:$0xff]  ;;  %v8869_v2 = vld [vmem:[#allocation14] sm:$0xff] }
0x1918   :  { %20413 = vpow2.f32 %v13631_v61 }
0x1919   :  { %20415 = vpow2.f32 %v13633_v62 }
0x1922   :  { %v20414_v3 = vpop.eup %20413 }
0x1923   :  { %v20416_v4 = vpop.eup %20415  ;;  %v8049_v6 = vadd.f32 1.0, %v20414_v3 }
0x1924   :  { %v8133_v7 = vadd.f32 1.0, %v20416_v4  ;;  %v8870_v4 = vld [vmem:[#allocation14 + $0x8] sm:$0xff] }
0x1925   :  { %v8216_v8 = vpop.f32.mrb[86].mxu0  ;;  %v8300_v10 = vpop.f32.mrb[86].mxu1 }
0x1926   :  { %20417 = vrcp.f32 %v8133_v7  ;;  %v13635_v11 = vmul.f32 -1.442695, %v8216_v8  ;;  %v17015_v14 = vpop.f32.mrb[87].mxu0  ;;  %v17034_v15 = vpop.f32.mrb[87].mxu1  ;;  %v8784_v7 = vld [vmem:[#allocation13 + $0x10] sm:$0xff]  ;;  %v8785_v8 = vld [vmem:[#allocation13 + $0x18] sm:$0xff] }
0x1927   :  { %20419 = vrcp.f32 %v8049_v6  ;;  %v19474_v6 = vpack.c.bf16 %v8870_v4, %v8869_v2  ;;  %v8872_v14 = vld [vmem:[#allocation14 + $0x18] sm:$0xff]  ;;  %v8960_v2 = vld [vmem:[#allocation13 + $0x60] sm:$0xff] }
0x1928   :  { %20421 = vpow2.f32 %v13635_v11  ;;  %v19465_v11 = vpack.c.bf16 %v8785_v8, %v8784_v7  ;;  %v9047_v4 = vld [vmem:[#allocation14 + $0x60] sm:$0xff]  ;;  %v9048_v7 = vld [vmem:[#allocation14 + $0x68] sm:$0xff] }
0x1929   :  { %20423 = vtanh.f32 %v8300_v10  ;;  %v8871_v10 = vld [vmem:[#allocation14 + $0x10] sm:$0xff]  ;;  %v19504_v8 = vpack.c.bf16 %v9048_v7, %v9047_v4  ;;  %v9216_v4 = vld [vmem:[#allocation14 + $0xb8] sm:$0xff] }
0x192a   :  { %v19477_v15 = vpack.c.bf16 %v8872_v14, %v8871_v10  ;;  %v8962_v10 = vld [vmem:[#allocation13 + $0x70] sm:$0xff] }
0x192b   :  { %v9049_v14 = vld [vmem:[#allocation14 + $0x70] sm:$0xff] }
0x1930   :  { %v20418_v21 = vpop.eup %20417 }
0x1931   :  { %v20420_v26 = vpop.eup %20419  ;;  %v8136_v23 = vsub.f32 %v20418_v21, %v22041_v60  ;;  %v8873_v21 = vld [vmem:[#allocation14 + $0x20] sm:$0xff] }
0x1932   :  { %v20422_v53 = vpop.eup %20421 }
0x1933   :  { %v8223_v55 = vadd.f32 1.0, %v20422_v53  ;;  %v8137_v41 = vmul.f32 %v20420_v26, %v8136_v23  ;;  %v20424_v22 = vpop.eup %20423  ;;  %v19468_v26 = vpack.c.bf16 %v8787_v20, %v8786_v16  ;;  %v19480_v23 = vpack.c.bf16 %v8874_v47, %v8873_v21  ;;  %v8788_v53 = vld [vmem:[#allocation13 + $0x30] sm:$0xff]  ;;  %v9050_v16 = vld [vmem:[#allocation14 + $0x78] sm:$0xff] }
0x1934   :  { %v8305_v29 = vsub.f32 %v20424_v22, %v22059_v42  ;;  %v19507_v20 = vpack.c.bf16 %v9050_v16, %v9049_v14  ;;  %v9376_v14 = vld [vmem:[#allocation14 + $0xc8] sm:$0xff] }
0x1935   :  { %20425 = vrcp.f32 %v8223_v55  ;;  %v8382_v57 = vpop.f32.mrb[88].mxu0  ;;  %v8138_v30 = vadd.f32 %v8137_v41, %v22041_v60  ;;  %v8466_v46 = vpop.f32.mrb[88].mxu1  ;;  %v8875_v55 = vld [vmem:[#allocation14 + $0x30] sm:$0xff]  ;;  %v19471_v41 = vpack.c.bf16 %v8789_v39, %v8788_v53 }
0x1936   :  { %v13638_v52 = vmul.f32 -1.442695, %v8382_v57  ;;  %v17053_v48 = vpop.f32.mrb[89].mxu0  ;;  %v17072_v51 = vpop.f32.mrb[89].mxu1  ;;  %v8470_v56 = vmax.f32 %v8466_v46, 0.0  ;;  %v8876_v57 = vld [vmem:[#allocation14 + $0x38] sm:$0xff] }
0x1937   :  { %v8478_v17 = vadd.f32 %v8477_v59, %v8138_v30  ;;  %v19483_v30 = vpack.c.bf16 %v8876_v57, %v8875_v55 }
0x1938   :  { %20427 = vpow2.f32 %v13638_v52  ;;  %v8471_v27 = vsub.f32 %v8470_v56, %v22041_v60  ;;  %v9043_v56 = vld [vmem:[#allocation14 + $0x40] sm:$0xff] }
0x193f   :  { %v20426_v33 = vpop.eup %20425 }
0x1940   :  { %v8306_v34 = vmul.f32 %v20426_v33, %v8305_v29 }
0x1942   :  { %v20428_v35 = vpop.eup %20427  ;;  %v8307_v45 = vadd.f32 %v8306_v34, %v22059_v42  ;;  %v8782_v42 = vld [vmem:[#allocation13] sm:$0xff] }
0x1943   :  { %v8389_v54 = vadd.f32 1.0, %v20428_v35  ;;  %v19462_v3 = vpack.c.bf16 %v8783_v63, %v8782_v42  ;;  %v9046_v42 = vld [vmem:[#allocation14 + $0x58] sm:$0xff] }
0x1944   :  { %v8479_v36 = vadd.f32 %v8478_v17, %v8307_v45 }
0x1945   :  { %20429 = vrcp.f32 %v8389_v54  ;;  %v8956_v54 = vld [vmem:[#allocation13 + $0x40] sm:$0xff] }
0x194f   :  { %v20430_v40 = vpop.eup %20429 }
0x1950   :  { %v8472_v58 = vmul.f32 %v20430_v40, %v8471_v27  ;;  %v9044_v40 = vld [vmem:[#allocation14 + $0x48] sm:$0xff] }
0x1952   :  { %v8473_v28 = vadd.f32 %v8472_v58, %v22041_v60  ;;  %v8485_v60 = vld [vmem:[#allocation2 + $0x14] sm:$0xf]  ;;  %v19498_v58 = vpack.c.bf16 %v9044_v40, %v9043_v56 }
0x1953   :  { %v9211_v56 = vld [vmem:[#allocation14 + $0x90] sm:$0xff] }
0x1954   :  { %v8480_v61 = vadd.f32 %v8479_v36, %v8473_v28  ;;  %v8957_v36 = vld [vmem:[#allocation13 + $0x48] sm:$0xff]  ;;  %v8958_v28 = vld [vmem:[#allocation13 + $0x50] sm:$0xff] }
0x1955   :  { %v19486_v27 = vpack.c.bf16 %v8957_v36, %v8956_v54  ;;  %v9128_v36 = vld [vmem:[#allocation13 + $0x98] sm:$0xff] }
0x1956   :  { %v22115_v62 = vmul.f32 0.125, %v8480_v61  ;;  %v8959_v61 = vld [vmem:[#allocation13 + $0x58] sm:$0xff] }
0x1958   :  { %8483 = vst.msk [vmem:[#allocation16 + $0x10] sm:$0xf] %vm1842_vm2, %v22115_v62  ;;  %17090 = vmatmul.mubr.msk.f32.vlgmr.msra.gmra.mrb[90].mxu0 %vm171_vm1, %v22115_v62  ;;  %17128 = vmatmul.mubr.msk.f32.vlgmr.msra.gmra.mrb[90].mxu1 %vm171_vm1, %v22115_v62 }
0x1959   :  { %19427 = vmatpush3.bf16.msra.mxu0 %v21020_v31  ;;  %19451 = vmatpush3.bf16.msra.mxu1 %v21024_v32 }
0x195a   :  { %19428 = vmatprep.subr.bf16.mxu0 %v20803_v0  ;;  %19452 = vmatprep.subr.bf16.mxu1 %v20803_v0 }
0x195b   :  { %17108 = vmatprep.mubr.msk.f32.mxu0 %vm20804_vm0, %v20805_v1  ;;  %17146 = vmatprep.mubr.msk.f32.mxu1 %vm20804_vm0, %v20805_v1 }
0x195d   :  { %19430 = vmatpush3.bf16.msra.mxu0 %v21032_v37  ;;  %19454 = vmatpush3.bf16.msra.mxu1 %v21036_v38 }
0x195e   :  { %19431 = vmatprep.subr.bf16.mxu0 %v20803_v0  ;;  %19455 = vmatprep.subr.bf16.mxu1 %v20803_v0 }
0x1961   :  { %19433 = vmatpush3.bf16.msra.mxu0 %v21044_v43  ;;  %19457 = vmatpush3.bf16.msra.mxu1 %v21048_v44 }
0x1962   :  { %19434 = vmatprep.subr.bf16.mxu0 %v20803_v0  ;;  %19458 = vmatprep.subr.bf16.mxu1 %v20803_v0 }
0x1965   :  { %19436 = vmatpush3.bf16.msra.mxu0 %v21052_v49  ;;  %19460 = vmatpush3.bf16.msra.mxu1 %v21056_v50 }
0x1966   :  { %19461 = vmatprep.subr.bf16.mxu0 %v20803_v0  ;;  %19473 = vmatprep.subr.bf16.mxu1 %v20803_v0 }
0x1968   :  { %17109 = vmatmul.mubr.msk.f32.vlgmr.msra.gmra.mrb[90].mxu0 %vm171_vm1, %v8485_v60  ;;  %17147 = vmatmul.mubr.msk.f32.vlgmr.msra.gmra.mrb[90].mxu1 %vm171_vm1, %v8485_v60  ;;  %v19489_v60 = vpack.c.bf16 %v8959_v61, %v8958_v28  ;;  %v9129_v28 = vld [vmem:[#allocation13 + $0xa0] sm:$0xff] }
0x1969   :  { %17165 = vmatprep.mubr.msk.f32.mxu0 %vm20804_vm0, %v20805_v1  ;;  %17184 = vmatprep.mubr.msk.f32.mxu1 %vm20804_vm0, %v20805_v1  ;;  %v9213_v61 = vld [vmem:[#allocation14 + $0xa0] sm:$0xff] }
0x196a   :  { %19463 = vmatpush3.bf16.msra.mxu0 %v19462_v3  ;;  %19475 = vmatpush3.bf16.msra.mxu1 %v19474_v6  ;;  %v8961_v3 = vld [vmem:[#allocation13 + $0x68] sm:$0xff] }
0x196b   :  { %19464 = vmatprep.subr.bf16.mxu0 %v20803_v0  ;;  %19476 = vmatprep.subr.bf16.mxu1 %v20803_v0  ;;  %v19492_v6 = vpack.c.bf16 %v8961_v3, %v8960_v2  ;;  %v9132_v2 = vld [vmem:[#allocation13 + $0xb8] sm:$0xff]  ;;  %v9215_v3 = vld [vmem:[#allocation14 + $0xb0] sm:$0xff] }
0x196c   :  { %v19531_v7 = vpack.c.bf16 %v9216_v4, %v9215_v3  ;;  %v9462_v4 = vld [vmem:[#allocation13 + $0x130] sm:$0xff] }
0x196e   :  { %19466 = vmatpush3.bf16.msra.mxu0 %v19465_v11  ;;  %19478 = vmatpush3.bf16.msra.mxu1 %v19477_v15  ;;  %v8963_v11 = vld [vmem:[#allocation13 + $0x78] sm:$0xff] }
0x196f   :  { %19467 = vmatprep.subr.bf16.mxu0 %v20803_v0  ;;  %19479 = vmatprep.subr.bf16.mxu1 %v20803_v0  ;;  %v19495_v15 = vpack.c.bf16 %v8963_v11, %v8962_v10  ;;  %v9292_v10 = vld [vmem:[#allocation13 + $0xc8] sm:$0xff]  ;;  %v9375_v11 = vld [vmem:[#allocation14 + $0xc0] sm:$0xff] }
0x1970   :  { %v19546_v16 = vpack.c.bf16 %v9376_v14, %v9375_v11 }
0x1972   :  { %19469 = vmatpush3.bf16.msra.mxu0 %v19468_v26  ;;  %19481 = vmatpush3.bf16.msra.mxu1 %v19480_v23 }
0x1973   :  { %19470 = vmatprep.subr.bf16.mxu0 %v20803_v0  ;;  %19482 = vmatprep.subr.bf16.mxu1 %v20803_v0 }
0x1976   :  { %19472 = vmatpush3.bf16.msra.mxu0 %v19471_v41  ;;  %19484 = vmatpush3.bf16.msra.mxu1 %v19483_v30 }
0x1977   :  { %19485 = vmatprep.subr.bf16.mxu0 %v20803_v0  ;;  %19497 = vmatprep.subr.bf16.mxu1 %v20803_v0 }
0x1a3b   :  { %v8628_v46 = vpop.f32.mrb[90].mxu0  ;;  %v8774_v59 = vpop.f32.mrb[90].mxu1 }
0x1a3c   :  { %v13642_v52 = vmul.f32 -1.442695, %v8628_v46  ;;  %v17110_v48 = vpop.f32.mrb[91].mxu0  ;;  %v17148_v51 = vpop.f32.mrb[91].mxu1 }
0x1a3d   :  { %v9126_v48 = vld [vmem:[#allocation13 + $0x88] sm:$0xff]  ;;  %v9209_v51 = vld [vmem:[#allocation14 + $0x80] sm:$0xff] }
0x1a3e   :  { %20431 = vpow2.f32 %v13642_v52 }
0x1a3f   :  { %20433 = vtanh.f32 %v8774_v59  ;;  %v9125_v59 = vld [vmem:[#allocation13 + $0x80] sm:$0xff] }
0x1a48   :  { %v20432_v17 = vpop.eup %20431 }
0x1a49   :  { %v8635_v22 = vadd.f32 1.0, %v20432_v17  ;;  %v20434_v29 = vpop.eup %20433  ;;  %v9210_v17 = vld [vmem:[#allocation14 + $0x88] sm:$0xff] }
0x1a4a   :  { %v8779_v33 = vsub.f32 %v20434_v29, %v22115_v62 }
0x1a4b   :  { %20435 = vrcp.f32 %v8635_v22 }
0x1a55   :  { %v20436_v34 = vpop.eup %20435 }
0x1a56   :  { %v8780_v35 = vmul.f32 %v20436_v34, %v8779_v33  ;;  %v19510_v33 = vpack.c.bf16 %v9126_v48, %v9125_v59  ;;  %v19522_v34 = vpack.c.bf16 %v9210_v17, %v9209_v51  ;;  %v9297_v59 = vld [vmem:[#allocation13 + $0xf0] sm:$0xff]  ;;  %v9382_v51 = vld [vmem:[#allocation14 + $0xf8] sm:$0xff] }
0x1a57   :  { %v9381_v48 = vld [vmem:[#allocation14 + $0xf0] sm:$0xff] }
0x1a58   :  { %v22159_v45 = vadd.f32 %v8780_v35, %v22115_v62  ;;  %v9045_v62 = vld [vmem:[#allocation14 + $0x50] sm:$0xff] }
0x1a59   :  { %v19501_v63 = vpack.c.bf16 %v9046_v42, %v9045_v62  ;;  %v9127_v35 = vld [vmem:[#allocation13 + $0x90] sm:$0xff]  ;;  %v9214_v62 = vld [vmem:[#allocation14 + $0xa8] sm:$0xff] }
0x1a5a   :  { %17166 = vmatmul.mubr.msk.f32.vlgmr.msra.gmra.mrb[92].mxu0 %vm171_vm1, %v22159_v45  ;;  %17185 = vmatmul.mubr.msk.f32.vlgmr.msra.gmra.mrb[92].mxu1 %vm171_vm1, %v22159_v45  ;;  %v19513_v40 = vpack.c.bf16 %v9128_v36, %v9127_v35  ;;  %v19528_v42 = vpack.c.bf16 %v9214_v62, %v9213_v61  ;;  %v9544_v36 = vld [vmem:[#allocation14 + $0x108] sm:$0xff]  ;;  %v9460_v62 = vld [vmem:[#allocation13 + $0x120] sm:$0xff] }
0x1a5b   :  { %17203 = vmatprep.mubr.msk.f32.mxu0 %vm20804_vm0, %v20805_v1  ;;  %17222 = vmatprep.mubr.msk.f32.mxu1 %vm20804_vm0, %v20805_v1 }
0x1a5c   :  { %19487 = vmatpush3.bf16.msra.mxu0 %v19486_v27  ;;  %19499 = vmatpush3.bf16.msra.mxu1 %v19498_v58  ;;  %v9212_v27 = vld [vmem:[#allocation14 + $0x98] sm:$0xff] }
0x1a5d   :  { %19488 = vmatprep.subr.bf16.mxu0 %v20803_v0  ;;  %19500 = vmatprep.subr.bf16.mxu1 %v20803_v0  ;;  %v19525_v58 = vpack.c.bf16 %v9212_v27, %v9211_v56  ;;  %v9458_v27 = vld [vmem:[#allocation13 + $0x110] sm:$0xff] }
0x1a60   :  { %19490 = vmatpush3.bf16.msra.mxu0 %v19489_v60  ;;  %19502 = vmatpush3.bf16.msra.mxu1 %v19501_v63  ;;  %v9131_v63 = vld [vmem:[#allocation13 + $0xb0] sm:$0xff] }
0x1a61   :  { %19491 = vmatprep.subr.bf16.mxu0 %v20803_v0  ;;  %19503 = vmatprep.subr.bf16.mxu1 %v20803_v0 }
0x1a64   :  { %19493 = vmatpush3.bf16.msra.mxu0 %v19492_v6  ;;  %19505 = vmatpush3.bf16.msra.mxu1 %v19504_v8  ;;  %v19519_v6 = vpack.c.bf16 %v9132_v2, %v9131_v63  ;;  %v9291_v8 = vld [vmem:[#allocation13 + $0xc0] sm:$0xff]  ;;  %v9548_v2 = vld [vmem:[#allocation14 + $0x128] sm:$0xff] }
0x1a65   :  { %19494 = vmatprep.subr.bf16.mxu0 %v20803_v0  ;;  %19506 = vmatprep.subr.bf16.mxu1 %v20803_v0 }
0x1a68   :  { %19496 = vmatpush3.bf16.msra.mxu0 %v19495_v15  ;;  %19508 = vmatpush3.bf16.msra.mxu1 %v19507_v20  ;;  %v19534_v15 = vpack.c.bf16 %v9292_v10, %v9291_v8  ;;  %v9293_v20 = vld [vmem:[#allocation13 + $0xd0] sm:$0xff]  ;;  %v9550_v10 = vld [vmem:[#allocation14 + $0x138] sm:$0xff] }
0x1a69   :  { %19509 = vmatprep.subr.bf16.mxu0 %v20803_v0  ;;  %19521 = vmatprep.subr.bf16.mxu1 %v20803_v0 }
0x1b2d   :  { %v8859_v21 = vpop.f32.mrb[92].mxu0  ;;  %v8943_v26 = vpop.f32.mrb[92].mxu1 }
0x1b2e   :  { %v13646_v47 = vmul.f32 -1.442695, %v8859_v21  ;;  %v13648_v23 = vmul.f32 -1.442695, %v8943_v26  ;;  %v17167_v53 = vpop.f32.mrb[93].mxu0  ;;  %v17186_v39 = vpop.f32.mrb[93].mxu1 }
0x1b2f   :  { %v9294_v21 = vld [vmem:[#allocation13 + $0xd8] sm:$0xff]  ;;  %v9377_v26 = vld [vmem:[#allocation14 + $0xd0] sm:$0xff]  ;;  %v9295_v39 = vld [vmem:[#allocation13 + $0xe0] sm:$0xff] }
0x1b30   :  { %20437 = vpow2.f32 %v13646_v47  ;;  %v9378_v47 = vld [vmem:[#allocation14 + $0xd8] sm:$0xff] }
0x1b31   :  { %20439 = vpow2.f32 %v13648_v23  ;;  %v19537_v23 = vpack.c.bf16 %v9294_v21, %v9293_v20  ;;  %v19549_v53 = vpack.c.bf16 %v9378_v47, %v9377_v26 }
0x1b3a   :  { %v20438_v55 = vpop.eup %20437 }
0x1b3b   :  { %v20440_v41 = vpop.eup %20439  ;;  %v8866_v57 = vadd.f32 1.0, %v20438_v55  ;;  %v9296_v55 = vld [vmem:[#allocation13 + $0xe8] sm:$0xff] }
0x1b3c   :  { %v8950_v30 = vadd.f32 1.0, %v20440_v41  ;;  %v9379_v41 = vld [vmem:[#allocation14 + $0xe0] sm:$0xff] }
0x1b3e   :  { %20441 = vrcp.f32 %v8950_v30  ;;  %v19540_v30 = vpack.c.bf16 %v9296_v55, %v9295_v39 }
0x1b3f   :  { %20443 = vrcp.f32 %v8866_v57  ;;  %v9380_v57 = vld [vmem:[#allocation14 + $0xe8] sm:$0xff] }
0x1b48   :  { %v20442_v46 = vpop.eup %20441 }
0x1b49   :  { %v8953_v52 = vsub.f32 %v20442_v46, %v22159_v45  ;;  %v20444_v22 = vpop.eup %20443  ;;  %v19552_v46 = vpack.c.bf16 %v9380_v57, %v9379_v41 }
0x1b4b   :  { %v8954_v29 = vmul.f32 %v20444_v22, %v8953_v52  ;;  %v9298_v52 = vld [vmem:[#allocation13 + $0xf8] sm:$0xff]  ;;  %v19555_v22 = vpack.c.bf16 %v9382_v51, %v9381_v48 }
0x1b4c   :  { %v19543_v17 = vpack.c.bf16 %v9298_v52, %v9297_v59 }
0x1b4d   :  { %v22179_v54 = vadd.f32 %v8954_v29, %v22159_v45  ;;  %v9130_v45 = vld [vmem:[#allocation13 + $0xa8] sm:$0xff]  ;;  %v9456_v29 = vld [vmem:[#allocation13 + $0x100] sm:$0xff] }
0x1b4e   :  { %v19516_v60 = vpack.c.bf16 %v9130_v45, %v9129_v28  ;;  %v9546_v45 = vld [vmem:[#allocation14 + $0x118] sm:$0xff] }
0x1b4f   :  { %17204 = vmatmul.mubr.msk.f32.vlgmr.msra.gmra.mrb[94].mxu0 %vm171_vm1, %v22179_v54  ;;  %17223 = vmatmul.mubr.msk.f32.vlgmr.msra.gmra.mrb[94].mxu1 %vm171_vm1, %v22179_v54 }
0x1b50   :  { %19511 = vmatpush3.bf16.msra.mxu0 %v19510_v33  ;;  %19523 = vmatpush3.bf16.msra.mxu1 %v19522_v34  ;;  %v9457_v33 = vld [vmem:[#allocation13 + $0x108] sm:$0xff]  ;;  %v9543_v34 = vld [vmem:[#allocation14 + $0x100] sm:$0xff] }
0x1b51   :  { %19512 = vmatprep.subr.bf16.mxu0 %v20803_v0  ;;  %19524 = vmatprep.subr.bf16.mxu1 %v20803_v0  ;;  %v19558_v35 = vpack.c.bf16 %v9457_v33, %v9456_v29  ;;  %v19570_v56 = vpack.c.bf16 %v9544_v36, %v9543_v34 }
0x1b52   :  { %17241 = vmatprep.mubr.msk.f32.mxu0 %vm20804_vm0, %v20805_v1  ;;  %17260 = vmatprep.mubr.msk.f32.mxu1 %vm20804_vm0, %v20805_v1 }
0x1b54   :  { %19514 = vmatpush3.bf16.msra.mxu0 %v19513_v40  ;;  %19526 = vmatpush3.bf16.msra.mxu1 %v19525_v58  ;;  %v9459_v40 = vld [vmem:[#allocation13 + $0x118] sm:$0xff]  ;;  %v9545_v58 = vld [vmem:[#allocation14 + $0x110] sm:$0xff] }
0x1b55   :  { %19515 = vmatprep.subr.bf16.mxu0 %v20803_v0  ;;  %19527 = vmatprep.subr.bf16.mxu1 %v20803_v0  ;;  %v19561_v28 = vpack.c.bf16 %v9459_v40, %v9458_v27  ;;  %v19573_v61 = vpack.c.bf16 %v9546_v45, %v9545_v58 }
0x1b58   :  { %19517 = vmatpush3.bf16.msra.mxu0 %v19516_v60  ;;  %19529 = vmatpush3.bf16.msra.mxu1 %v19528_v42  ;;  %v9461_v60 = vld [vmem:[#allocation13 + $0x128] sm:$0xff]  ;;  %v9547_v42 = vld [vmem:[#allocation14 + $0x120] sm:$0xff] }
0x1b59   :  { %19518 = vmatprep.subr.bf16.mxu0 %v20803_v0  ;;  %19530 = vmatprep.subr.bf16.mxu1 %v20803_v0  ;;  %v19564_v63 = vpack.c.bf16 %v9461_v60, %v9460_v62  ;;  %v19576_v3 = vpack.c.bf16 %v9548_v2, %v9547_v42  ;;  %v9625_v62 = vld [vmem:[#allocation13 + $0x140] sm:$0xff]  ;;  %v9626_v60 = vld [vmem:[#allocation13 + $0x148] sm:$0xff] }
0x1b5a   :  { %v9712_v42 = vld [vmem:[#allocation14 + $0x140] sm:$0xff]  ;;  %v9713_v2 = vld [vmem:[#allocation14 + $0x148] sm:$0xff] }
0x1b5c   :  { %19520 = vmatpush3.bf16.msra.mxu0 %v19519_v6  ;;  %19532 = vmatpush3.bf16.msra.mxu1 %v19531_v7  ;;  %v9463_v6 = vld [vmem:[#allocation13 + $0x138] sm:$0xff]  ;;  %v9549_v7 = vld [vmem:[#allocation14 + $0x130] sm:$0xff] }
0x1b5d   :  { %19533 = vmatprep.subr.bf16.mxu0 %v20803_v0  ;;  %19545 = vmatprep.subr.bf16.mxu1 %v20803_v0  ;;  %v19567_v8 = vpack.c.bf16 %v9463_v6, %v9462_v4  ;;  %v19579_v11 = vpack.c.bf16 %v9550_v10, %v9549_v7  ;;  %v9627_v4 = vld [vmem:[#allocation13 + $0x150] sm:$0xff]  ;;  %v9628_v6 = vld [vmem:[#allocation13 + $0x158] sm:$0xff] }
0x1b5e   :  { %v9714_v7 = vld [vmem:[#allocation14 + $0x150] sm:$0xff]  ;;  %v9715_v10 = vld [vmem:[#allocation14 + $0x158] sm:$0xff] }
0x1b5f   :  { %17242 = vmatmul.mubr.msk.f32.vlgmr.msra.gmra.mrb[96].mxu0 %vm171_vm1, %v22179_v54  ;;  %17261 = vmatmul.mubr.msk.f32.vlgmr.msra.gmra.mrb[96].mxu1 %vm171_vm1, %v22179_v54 }
0x1b60   :  { %19535 = vmatpush3.bf16.msra.mxu0 %v19534_v15  ;;  %19547 = vmatpush3.bf16.msra.mxu1 %v19546_v16 }
0x1b61   :  { %19536 = vmatprep.subr.bf16.mxu0 %v20803_v0  ;;  %19548 = vmatprep.subr.bf16.mxu1 %v20803_v0 }
0x1b62   :  { %17279 = vmatprep.mubr.msk.f32.mxu0 %vm20804_vm0, %v20805_v1  ;;  %17298 = vmatprep.mubr.msk.f32.mxu1 %vm20804_vm0, %v20805_v1 }
0x1b64   :  { %19538 = vmatpush3.bf16.msra.mxu0 %v19537_v23  ;;  %19550 = vmatpush3.bf16.msra.mxu1 %v19549_v53 }
0x1b65   :  { %19539 = vmatprep.subr.bf16.mxu0 %v20803_v0  ;;  %19551 = vmatprep.subr.bf16.mxu1 %v20803_v0 }
0x1b68   :  { %19541 = vmatpush3.bf16.msra.mxu0 %v19540_v30  ;;  %19553 = vmatpush3.bf16.msra.mxu1 %v19552_v46 }
0x1b69   :  { %19542 = vmatprep.subr.bf16.mxu0 %v20803_v0  ;;  %19554 = vmatprep.subr.bf16.mxu1 %v20803_v0 }
0x1b6c   :  { %19544 = vmatpush3.bf16.msra.mxu0 %v19543_v17  ;;  %19556 = vmatpush3.bf16.msra.mxu1 %v19555_v22 }
0x1b6d   :  { %19557 = vmatprep.subr.bf16.mxu0 %v20803_v0  ;;  %19569 = vmatprep.subr.bf16.mxu1 %v20803_v0 }
0x1b6f   :  { %17280 = vmatmul.mubr.msk.f32.vlgmr.msra.gmra.mrb[98].mxu0 %vm171_vm1, %v22179_v54  ;;  %17299 = vmatmul.mubr.msk.f32.vlgmr.msra.gmra.mrb[98].mxu1 %vm171_vm1, %v22179_v54 }
0x1b70   :  { %17317 = vmatprep.mubr.msk.f32.mxu0 %vm20804_vm0, %v20805_v1  ;;  %17336 = vmatprep.mubr.msk.f32.mxu1 %vm20804_vm0, %v20805_v1 }
0x1b71   :  { %19559 = vmatpush3.bf16.msra.mxu0 %v19558_v35  ;;  %19571 = vmatpush3.bf16.msra.mxu1 %v19570_v56 }
0x1b72   :  { %19560 = vmatprep.subr.bf16.mxu0 %v20803_v0  ;;  %19572 = vmatprep.subr.bf16.mxu1 %v20803_v0 }
0x1b75   :  { %19562 = vmatpush3.bf16.msra.mxu0 %v19561_v28  ;;  %19574 = vmatpush3.bf16.msra.mxu1 %v19573_v61 }
0x1b76   :  { %19563 = vmatprep.subr.bf16.mxu0 %v20803_v0  ;;  %19575 = vmatprep.subr.bf16.mxu1 %v20803_v0 }
0x1b79   :  { %19565 = vmatpush3.bf16.msra.mxu0 %v19564_v63  ;;  %19577 = vmatpush3.bf16.msra.mxu1 %v19576_v3  ;;  %v19582_v63 = vpack.c.bf16 %v9626_v60, %v9625_v62  ;;  %v19594_v3 = vpack.c.bf16 %v9713_v2, %v9712_v42  ;;  %v9802_v60 = vld [vmem:[#allocation13 + $0x198] sm:$0xff]  ;;  %v9888_v42 = vld [vmem:[#allocation14 + $0x190] sm:$0xff] }
0x1b7a   :  { %19566 = vmatprep.subr.bf16.mxu0 %v20803_v0  ;;  %19578 = vmatprep.subr.bf16.mxu1 %v20803_v0 }
0x1b7d   :  { %19568 = vmatpush3.bf16.msra.mxu0 %v19567_v8  ;;  %19580 = vmatpush3.bf16.msra.mxu1 %v19579_v11  ;;  %v19585_v8 = vpack.c.bf16 %v9628_v6, %v9627_v4  ;;  %v19597_v11 = vpack.c.bf16 %v9715_v10, %v9714_v7  ;;  %v9803_v4 = vld [vmem:[#allocation13 + $0x1a0] sm:$0xff]  ;;  %v9804_v6 = vld [vmem:[#allocation13 + $0x1a8] sm:$0xff] }
0x1b7e   :  { %19581 = vmatprep.subr.bf16.mxu0 %v20803_v0  ;;  %19593 = vmatprep.subr.bf16.mxu1 %v20803_v0  ;;  %v9890_v7 = vld [vmem:[#allocation14 + $0x1a0] sm:$0xff]  ;;  %v19612_v10 = vpack.c.bf16 %v9804_v6, %v9803_v4 }
0x1c22   :  { %v9033_v14 = vpop.f32.mrb[94].mxu0  ;;  %v9117_v15 = vpop.f32.mrb[94].mxu1 }
0x1c23   :  { %v13650_v16 = vmul.f32 -1.442695, %v9033_v14  ;;  %v17205_v20 = vpop.f32.mrb[95].mxu0  ;;  %v17224_v21 = vpop.f32.mrb[95].mxu1  ;;  %v9121_v57 = vmax.f32 %v9117_v15, 0.0  ;;  %v9629_v14 = vld [vmem:[#allocation13 + $0x160] sm:$0xff] }
0x1c24   :  { %v9630_v15 = vld [vmem:[#allocation13 + $0x168] sm:$0xff] }
0x1c25   :  { %20445 = vpow2.f32 %v13650_v16  ;;  %v9122_v30 = vsub.f32 %v9121_v57, %v22179_v54  ;;  %v9716_v16 = vld [vmem:[#allocation14 + $0x160] sm:$0xff]  ;;  %v19588_v20 = vpack.c.bf16 %v9630_v15, %v9629_v14  ;;  %v9717_v21 = vld [vmem:[#allocation14 + $0x168] sm:$0xff]  ;;  %v9805_v14 = vld [vmem:[#allocation13 + $0x1b0] sm:$0xff] }
0x1c26   :  { %v9806_v15 = vld [vmem:[#allocation13 + $0x1b8] sm:$0xff] }
0x1c2f   :  { %v20446_v26 = vpop.eup %20445 }
0x1c30   :  { %v9040_v47 = vadd.f32 1.0, %v20446_v26  ;;  %v19600_v26 = vpack.c.bf16 %v9717_v21, %v9716_v16  ;;  %v9892_v16 = vld [vmem:[#allocation14 + $0x1b0] sm:$0xff]  ;;  %v19615_v21 = vpack.c.bf16 %v9806_v15, %v9805_v14 }
0x1c32   :  { %20447 = vrcp.f32 %v9040_v47  ;;  %v9199_v23 = vpop.f32.mrb[96].mxu0  ;;  %v9283_v53 = vpop.f32.mrb[96].mxu1  ;;  %v9631_v47 = vld [vmem:[#allocation13 + $0x170] sm:$0xff] }
0x1c33   :  { %v13653_v39 = vmul.f32 -1.442695, %v9199_v23  ;;  %v17243_v55 = vpop.f32.mrb[97].mxu0  ;;  %v17262_v41 = vpop.f32.mrb[97].mxu1  ;;  %v9287_v35 = vmax.f32 %v9283_v53, 0.0  ;;  %v9632_v23 = vld [vmem:[#allocation13 + $0x178] sm:$0xff] }
0x1c34   :  { %v9718_v53 = vld [vmem:[#allocation14 + $0x170] sm:$0xff]  ;;  %v9719_v55 = vld [vmem:[#allocation14 + $0x178] sm:$0xff] }
0x1c35   :  { %20449 = vpow2.f32 %v13653_v39  ;;  %v9288_v36 = vsub.f32 %v9287_v35, %v22179_v54  ;;  %v19591_v39 = vpack.c.bf16 %v9632_v23, %v9631_v47  ;;  %v19603_v41 = vpack.c.bf16 %v9719_v55, %v9718_v53  ;;  %v9886_v35 = vld [vmem:[#allocation14 + $0x180] sm:$0xff]  ;;  %v9969_v23 = vld [vmem:[#allocation13 + $0x1c8] sm:$0xff] }
0x1c36   :  { %v9968_v47 = vld [vmem:[#allocation13 + $0x1c0] sm:$0xff] }
0x1c37   :  { %v10052_v53 = vld [vmem:[#allocation14 + $0x1c0] sm:$0xff]  ;;  %v19630_v55 = vpack.c.bf16 %v9969_v23, %v9968_v47 }
0x1c3c   :  { %v20448_v46 = vpop.eup %20447 }
0x1c3d   :  { %v9123_v59 = vmul.f32 %v20448_v46, %v9122_v30 }
0x1c3f   :  { %v20450_v52 = vpop.eup %20449  ;;  %v22231_v48 = vadd.f32 %v9123_v59, %v22179_v54 }
0x1c40   :  { %v9206_v51 = vadd.f32 1.0, %v20450_v52 }
0x1c41   :  { %17318 = vmatmul.mubr.msk.f32.vlgmr.msra.gmra.mrb[100].mxu0 %vm171_vm1, %v22231_v48  ;;  %17337 = vmatmul.mubr.msk.f32.vlgmr.msra.gmra.mrb[100].mxu1 %vm171_vm1, %v22231_v48 }
0x1c42   :  { %20451 = vrcp.f32 %v9206_v51  ;;  %v9365_v17 = vpop.f32.mrb[98].mxu0  ;;  %v9449_v22 = vpop.f32.mrb[98].mxu1  ;;  %17355 = vmatprep.mubr.msk.f32.mxu0 %vm20804_vm0, %v20805_v1  ;;  %17374 = vmatprep.mubr.msk.f32.mxu1 %vm20804_vm0, %v20805_v1 }
0x1c43   :  { %v13656_v29 = vmul.f32 -1.442695, %v9365_v17  ;;  %v17281_v33 = vpop.f32.mrb[99].mxu0  ;;  %v17300_v34 = vpop.f32.mrb[99].mxu1  ;;  %v9453_v28 = vsub.f32 %v9449_v22, %v22179_v54  ;;  %19583 = vmatpush3.bf16.msra.mxu0 %v19582_v63  ;;  %19595 = vmatpush3.bf16.msra.mxu1 %v19594_v3  ;;  %v9889_v63 = vld [vmem:[#allocation14 + $0x198] sm:$0xff] }
0x1c44   :  { %19584 = vmatprep.subr.bf16.mxu0 %v20803_v0  ;;  %19596 = vmatprep.subr.bf16.mxu1 %v20803_v0  ;;  %v9800_v34 = vld [vmem:[#allocation13 + $0x188] sm:$0xff]  ;;  %v19621_v3 = vpack.c.bf16 %v9889_v63, %v9888_v42 }
0x1c45   :  { %20453 = vpow2.f32 %v13656_v29  ;;  %v9799_v29 = vld [vmem:[#allocation13 + $0x180] sm:$0xff] }
0x1c47   :  { %19586 = vmatpush3.bf16.msra.mxu0 %v19585_v8  ;;  %19598 = vmatpush3.bf16.msra.mxu1 %v19597_v11  ;;  %v9891_v8 = vld [vmem:[#allocation14 + $0x1a8] sm:$0xff] }
0x1c48   :  { %19587 = vmatprep.subr.bf16.mxu0 %v20803_v0  ;;  %19599 = vmatprep.subr.bf16.mxu1 %v20803_v0  ;;  %v19624_v11 = vpack.c.bf16 %v9891_v8, %v9890_v7 }
0x1c4b   :  { %19589 = vmatpush3.bf16.msra.mxu0 %v19588_v20  ;;  %19601 = vmatpush3.bf16.msra.mxu1 %v19600_v26  ;;  %v9893_v20 = vld [vmem:[#allocation14 + $0x1b8] sm:$0xff] }
0x1c4c   :  { %v20452_v56 = vpop.eup %20451  ;;  %19590 = vmatprep.subr.bf16.mxu0 %v20803_v0  ;;  %19602 = vmatprep.subr.bf16.mxu1 %v20803_v0  ;;  %v19627_v26 = vpack.c.bf16 %v9893_v20, %v9892_v16 }
0x1c4d   :  { %v22242_v27 = vmul.f32 %v20452_v56, %v9288_v36  ;;  %v9887_v36 = vld [vmem:[#allocation14 + $0x188] sm:$0xff] }
0x1c4f   :  { %v20454_v40 = vpop.eup %20453  ;;  %19592 = vmatpush3.bf16.msra.mxu0 %v19591_v39  ;;  %19604 = vmatpush3.bf16.msra.mxu1 %v19603_v41  ;;  %v10053_v39 = vld [vmem:[#allocation14 + $0x1c8] sm:$0xff] }
0x1c50   :  { %v9372_v58 = vadd.f32 1.0, %v20454_v40  ;;  %19605 = vmatprep.subr.bf16.mxu0 %v20803_v0  ;;  %19617 = vmatprep.subr.bf16.mxu1 %v20803_v0  ;;  %v19642_v41 = vpack.c.bf16 %v10053_v39, %v10052_v53 }
0x1c52   :  { %20455 = vrcp.f32 %v9372_v58  ;;  %v19606_v58 = vpack.c.bf16 %v9800_v34, %v9799_v29  ;;  %v10056_v29 = vld [vmem:[#allocation14 + $0x1e0] sm:$0xff] }
0x1c5c   :  { %v20456_v45 = vpop.eup %20455 }
0x1c5d   :  { %v22245_v61 = vmul.f32 %v20456_v45, %v9453_v28  ;;  %v19618_v28 = vpack.c.bf16 %v9887_v36, %v9886_v35  ;;  %v9801_v45 = vld [vmem:[#allocation13 + $0x190] sm:$0xff] }
0x1c5e   :  { %v19609_v2 = vpack.c.bf16 %v9802_v60, %v9801_v45  ;;  %v9974_v36 = vld [vmem:[#allocation13 + $0x1f0] sm:$0xff] }
0x1d14   :  { %v9533_v57 = vpop.f32.mrb[100].mxu0  ;;  %v9617_v30 = vpop.f32.mrb[100].mxu1 }
0x1d15   :  { %v13659_v46 = vmul.f32 -1.442695, %v9533_v57  ;;  %v17319_v59 = vpop.f32.mrb[101].mxu0  ;;  %v17338_v52 = vpop.f32.mrb[101].mxu1  ;;  %v9970_v57 = vld [vmem:[#allocation13 + $0x1d0] sm:$0xff] }
0x1d16   :  { %v10054_v59 = vld [vmem:[#allocation14 + $0x1d0] sm:$0xff]  ;;  %v10055_v52 = vld [vmem:[#allocation14 + $0x1d8] sm:$0xff] }
0x1d17   :  { %20457 = vpow2.f32 %v13659_v46  ;;  %v9971_v46 = vld [vmem:[#allocation13 + $0x1d8] sm:$0xff] }
0x1d18   :  { %20459 = vtanh.f32 %v9617_v30  ;;  %v22275_v30 = vadd.f32 %v22242_v27, %v22179_v54  ;;  %v9973_v27 = vld [vmem:[#allocation13 + $0x1e8] sm:$0xff] }
0x1d21   :  { %v20458_v51 = vpop.eup %20457 }
0x1d22   :  { %v9540_v17 = vadd.f32 1.0, %v20458_v51  ;;  %v20460_v22 = vpop.eup %20459  ;;  %v19633_v51 = vpack.c.bf16 %v9971_v46, %v9970_v57 }
0x1d23   :  { %v9622_v33 = vsub.f32 %v20460_v22, %v22231_v48  ;;  %v9972_v22 = vld [vmem:[#allocation13 + $0x1e0] sm:$0xff] }
0x1d24   :  { %20461 = vrcp.f32 %v9540_v17  ;;  %v19645_v17 = vpack.c.bf16 %v10055_v52, %v10054_v59  ;;  %v19636_v34 = vpack.c.bf16 %v9973_v27, %v9972_v22 }
0x1d2e   :  { %v20462_v56 = vpop.eup %20461 }
0x1d2f   :  { %v9623_v40 = vmul.f32 %v20462_v56, %v9622_v33  ;;  %v10057_v33 = vld [vmem:[#allocation14 + $0x1e8] sm:$0xff]  ;;  %v9975_v56 = vld [vmem:[#allocation13 + $0x1f8] sm:$0xff] }
0x1d30   :  { %v19648_v35 = vpack.c.bf16 %v10057_v33, %v10056_v29 }
0x1d31   :  { %v22257_v62 = vadd.f32 %v9623_v40, %v22231_v48  ;;  %v10058_v40 = vld [vmem:[#allocation14 + $0x1f0] sm:$0xff] }
0x1d33   :  { %17356 = vmatmul.mubr.msk.f32.vlgmr.msra.gmra.mrb[102].mxu0 %vm171_vm1, %v22257_v62  ;;  %17375 = vmatmul.mubr.msk.f32.vlgmr.msra.gmra.mrb[102].mxu1 %vm171_vm1, %v22257_v62 }
0x1d34   :  { %19607 = vmatpush3.bf16.msra.mxu0 %v19606_v58  ;;  %19619 = vmatpush3.bf16.msra.mxu1 %v19618_v28  ;;  %v10059_v58 = vld [vmem:[#allocation14 + $0x1f8] sm:$0xff]  ;;  %v19639_v28 = vpack.c.bf16 %v9975_v56, %v9974_v36 }
0x1d35   :  { %19608 = vmatprep.subr.bf16.mxu0 %v20803_v0  ;;  %19620 = vmatprep.subr.bf16.mxu1 %v20803_v0  ;;  %v19651_v45 = vpack.c.bf16 %v10059_v58, %v10058_v40 }
0x1d36   :  { %17393 = vmatprep.mubr.msk.f32.mxu0 %vm20804_vm0, %v20805_v1  ;;  %17412 = vmatprep.mubr.msk.f32.mxu1 %vm20804_vm0, %v20805_v1 }
0x1d38   :  { %19610 = vmatpush3.bf16.msra.mxu0 %v19609_v2  ;;  %19622 = vmatpush3.bf16.msra.mxu1 %v19621_v3 }
0x1d39   :  { %19611 = vmatprep.subr.bf16.mxu0 %v20803_v0  ;;  %19623 = vmatprep.subr.bf16.mxu1 %v20803_v0 }
0x1d3c   :  { %19613 = vmatpush3.bf16.msra.mxu0 %v19612_v10  ;;  %19625 = vmatpush3.bf16.msra.mxu1 %v19624_v11 }
0x1d3d   :  { %19614 = vmatprep.subr.bf16.mxu0 %v20803_v0  ;;  %19626 = vmatprep.subr.bf16.mxu1 %v20803_v0 }
0x1d40   :  { %19616 = vmatpush3.bf16.msra.mxu0 %v19615_v21  ;;  %19628 = vmatpush3.bf16.msra.mxu1 %v19627_v26  ;;  %v9455_v21 = vadd.f32 %v22245_v61, %v22179_v54  ;;  %v10134_v26 = vadd.f32 %v22231_v48, %v22179_v54 }
0x1d41   :  { %19629 = vmatprep.subr.bf16.mxu0 %v20803_v0  ;;  %19641 = vmatprep.subr.bf16.mxu1 %v20803_v0 }
0x1d42   :  { %v10135_v53 = vadd.f32 %v10134_v26, %v22275_v30  ;;  %v10447_v26 = vld [vmem:[#allocation13 + $0x28] sm:$0xff] }
0x1d43   :  { %17394 = vmatmul.mubr.msk.f32.vlgmr.msra.gmra.mrb[104].mxu0 %vm171_vm1, %v22275_v30  ;;  %17413 = vmatmul.mubr.msk.f32.vlgmr.msra.gmra.mrb[104].mxu1 %vm171_vm1, %v22275_v30 }
0x1d44   :  { %19631 = vmatpush3.bf16.msra.mxu0 %v19630_v55  ;;  %19643 = vmatpush3.bf16.msra.mxu1 %v19642_v41  ;;  %v10136_v41 = vadd.f32 %v10135_v53, %v9455_v21  ;;  %v10446_v21 = vld [vmem:[#allocation13 + $0x20] sm:$0xff]  ;;  %v10534_v53 = vld [vmem:[#allocation14 + $0x28] sm:$0xff] }
0x1d45   :  { %19632 = vmatprep.subr.bf16.mxu0 %v20803_v0  ;;  %19644 = vmatprep.subr.bf16.mxu1 %v20803_v0 }
0x1d46   :  { %17431 = vmatprep.mubr.msk.f32.mxu0 %vm20804_vm0, %v20805_v1  ;;  %17450 = vmatprep.mubr.msk.f32.mxu1 %vm20804_vm0, %v20805_v1  ;;  %v10137_v61 = vadd.f32 %v10136_v41, %v22257_v62  ;;  %v10449_v41 = vld [vmem:[#allocation13 + $0x38] sm:$0xff] }
0x1d48   :  { %19634 = vmatpush3.bf16.msra.mxu0 %v19633_v51  ;;  %19646 = vmatpush3.bf16.msra.mxu1 %v19645_v17 }
0x1d49   :  { %19635 = vmatprep.subr.bf16.mxu0 %v20803_v0  ;;  %19647 = vmatprep.subr.bf16.mxu1 %v20803_v0 }
0x1d4c   :  { %19637 = vmatpush3.bf16.msra.mxu0 %v19636_v34  ;;  %19649 = vmatpush3.bf16.msra.mxu1 %v19648_v35 }
0x1d4d   :  { %19638 = vmatprep.subr.bf16.mxu0 %v20803_v0  ;;  %19650 = vmatprep.subr.bf16.mxu1 %v20803_v0 }
0x1d50   :  { %19640 = vmatpush3.bf16.msra.mxu0 %v19639_v28  ;;  %19652 = vmatpush3.bf16.msra.mxu1 %v19651_v45 }
0x1d51   :  { %19653 = vmatprep.subr.bf16.mxu0 %v20803_v0  ;;  %19677 = vmatprep.subr.bf16.mxu1 %v20803_v0 }
0x1d53   :  { %17432 = vmatmul.mubr.msk.f32.vlgmr.msra.gmra.mrb[106].mxu0 %vm171_vm1, %v22257_v62  ;;  %17451 = vmatmul.mubr.msk.f32.vlgmr.msra.gmra.mrb[106].mxu1 %vm171_vm1, %v22257_v62 }
0x1d54   :  { %19655 = vmatpush3.bf16.msra.mxu0 %v20989_v5  ;;  %19679 = vmatpush3.bf16.msra.mxu1 %v20991_v9 }
0x1d55   :  { %19656 = vmatprep.subr.bf16.mxu0 %v20803_v0  ;;  %19680 = vmatprep.subr.bf16.mxu1 %v20803_v0 }
0x1d56   :  { %17469 = vmatprep.mubr.msk.f32.mxu0 %vm20804_vm0, %v20805_v1  ;;  %17507 = vmatprep.mubr.msk.f32.mxu1 %vm20804_vm0, %v20805_v1 }
0x1d58   :  { %19658 = vmatpush3.bf16.msra.mxu0 %v20994_v12  ;;  %19682 = vmatpush3.bf16.msra.mxu1 %v20998_v13 }
0x1d59   :  { %19659 = vmatprep.subr.bf16.mxu0 %v20803_v0  ;;  %19683 = vmatprep.subr.bf16.mxu1 %v20803_v0 }
0x1d5c   :  { %19661 = vmatpush3.bf16.msra.mxu0 %v21002_v18  ;;  %19685 = vmatpush3.bf16.msra.mxu1 %v21006_v19 }
0x1d5d   :  { %19662 = vmatprep.subr.bf16.mxu0 %v20803_v0  ;;  %19686 = vmatprep.subr.bf16.mxu1 %v20803_v0 }
0x1d60   :  { %19664 = vmatpush3.bf16.msra.mxu0 %v21010_v24  ;;  %19688 = vmatpush3.bf16.msra.mxu1 %v21014_v25 }
0x1d61   :  { %19665 = vmatprep.subr.bf16.mxu0 %v20803_v0  ;;  %19689 = vmatprep.subr.bf16.mxu1 %v20803_v0 }
0x1e06   :  { %v9702_v60 = vpop.f32.mrb[102].mxu0  ;;  %v9786_v42 = vpop.f32.mrb[102].mxu1 }
0x1e07   :  { %v13662_v63 = vmul.f32 -1.442695, %v9702_v60  ;;  %v13664_v2 = vmul.f32 -1.442695, %v9786_v42  ;;  %v17357_v3 = vpop.f32.mrb[103].mxu0  ;;  %v17376_v4 = vpop.f32.mrb[103].mxu1 }
0x1e08   :  { %v10443_v3 = vld [vmem:[#allocation13 + $0x8] sm:$0xff]  ;;  %v10529_v4 = vld [vmem:[#allocation14] sm:$0xff] }
0x1e09   :  { %20463 = vpow2.f32 %v13662_v63 }
0x1e0a   :  { %20465 = vpow2.f32 %v13664_v2 }
0x1e13   :  { %v20464_v6 = vpop.eup %20463 }
0x1e14   :  { %v20466_v7 = vpop.eup %20465  ;;  %v9709_v8 = vadd.f32 1.0, %v20464_v6 }
0x1e15   :  { %v9793_v10 = vadd.f32 1.0, %v20466_v7  ;;  %v10530_v7 = vld [vmem:[#allocation14 + $0x8] sm:$0xff] }
0x1e16   :  { %v9876_v11 = vpop.f32.mrb[104].mxu0  ;;  %v9960_v14 = vpop.f32.mrb[104].mxu1 }
0x1e17   :  { %20467 = vrcp.f32 %v9793_v10  ;;  %v13666_v15 = vmul.f32 -1.442695, %v9876_v11  ;;  %v17395_v16 = vpop.f32.mrb[105].mxu0  ;;  %v17414_v20 = vpop.f32.mrb[105].mxu1  ;;  %v10444_v10 = vld [vmem:[#allocation13 + $0x10] sm:$0xff]  ;;  %v10445_v11 = vld [vmem:[#allocation13 + $0x18] sm:$0xff] }
0x1e18   :  { %20469 = vrcp.f32 %v9709_v8  ;;  %v19714_v8 = vpack.c.bf16 %v10530_v7, %v10529_v4  ;;  %v10532_v16 = vld [vmem:[#allocation14 + $0x18] sm:$0xff]  ;;  %v10620_v4 = vld [vmem:[#allocation13 + $0x60] sm:$0xff] }
0x1e19   :  { %20471 = vpow2.f32 %v13666_v15  ;;  %v19705_v15 = vpack.c.bf16 %v10445_v11, %v10444_v10  ;;  %v10707_v7 = vld [vmem:[#allocation14 + $0x60] sm:$0xff]  ;;  %v10708_v10 = vld [vmem:[#allocation14 + $0x68] sm:$0xff] }
0x1e1a   :  { %20473 = vtanh.f32 %v9960_v14  ;;  %v10531_v14 = vld [vmem:[#allocation14 + $0x10] sm:$0xff]  ;;  %v19744_v11 = vpack.c.bf16 %v10708_v10, %v10707_v7  ;;  %v10876_v7 = vld [vmem:[#allocation14 + $0xb8] sm:$0xff] }
0x1e1b   :  { %v19717_v20 = vpack.c.bf16 %v10532_v16, %v10531_v14  ;;  %v10622_v14 = vld [vmem:[#allocation13 + $0x70] sm:$0xff] }
0x1e1c   :  { %v10709_v16 = vld [vmem:[#allocation14 + $0x70] sm:$0xff] }
0x1e21   :  { %v20468_v47 = vpop.eup %20467 }
0x1e22   :  { %v20470_v23 = vpop.eup %20469  ;;  %v9796_v39 = vsub.f32 %v20468_v47, %v22257_v62  ;;  %v10533_v47 = vld [vmem:[#allocation14 + $0x20] sm:$0xff] }
0x1e23   :  { %v20472_v55 = vpop.eup %20471 }
0x1e24   :  { %v9883_v57 = vadd.f32 1.0, %v20472_v55  ;;  %v9797_v46 = vmul.f32 %v20470_v23, %v9796_v39  ;;  %v20474_v27 = vpop.eup %20473  ;;  %v19708_v23 = vpack.c.bf16 %v10447_v26, %v10446_v21  ;;  %v19720_v39 = vpack.c.bf16 %v10534_v53, %v10533_v47  ;;  %v10448_v55 = vld [vmem:[#allocation13 + $0x30] sm:$0xff]  ;;  %v10710_v21 = vld [vmem:[#allocation14 + $0x78] sm:$0xff] }
0x1e25   :  { %v9965_v29 = vsub.f32 %v20474_v27, %v22275_v30  ;;  %v19747_v26 = vpack.c.bf16 %v10710_v21, %v10709_v16  ;;  %v11036_v16 = vld [vmem:[#allocation14 + $0xc8] sm:$0xff] }
0x1e26   :  { %20475 = vrcp.f32 %v9883_v57  ;;  %v10042_v59 = vpop.f32.mrb[106].mxu0  ;;  %v9798_v52 = vadd.f32 %v9797_v46, %v22257_v62  ;;  %v10126_v51 = vpop.f32.mrb[106].mxu1  ;;  %v10535_v57 = vld [vmem:[#allocation14 + $0x30] sm:$0xff]  ;;  %v19711_v46 = vpack.c.bf16 %v10449_v41, %v10448_v55 }
0x1e27   :  { %v13669_v17 = vmul.f32 -1.442695, %v10042_v59  ;;  %v17433_v54 = vpop.f32.mrb[107].mxu0  ;;  %v17452_v48 = vpop.f32.mrb[107].mxu1  ;;  %v10130_v58 = vmax.f32 %v10126_v51, 0.0  ;;  %v10536_v59 = vld [vmem:[#allocation14 + $0x38] sm:$0xff] }
0x1e28   :  { %v10138_v22 = vadd.f32 %v10137_v61, %v9798_v52  ;;  %v19723_v52 = vpack.c.bf16 %v10536_v59, %v10535_v57 }
0x1e29   :  { %20477 = vpow2.f32 %v13669_v17  ;;  %v10131_v28 = vsub.f32 %v10130_v58, %v22257_v62  ;;  %v10703_v58 = vld [vmem:[#allocation14 + $0x40] sm:$0xff] }
0x1e30   :  { %v20476_v33 = vpop.eup %20475 }
0x1e31   :  { %v9966_v34 = vmul.f32 %v20476_v33, %v9965_v29 }
0x1e33   :  { %v20478_v35 = vpop.eup %20477  ;;  %v9967_v36 = vadd.f32 %v9966_v34, %v22275_v30  ;;  %v10442_v30 = vld [vmem:[#allocation13] sm:$0xff] }
0x1e34   :  { %v10049_v56 = vadd.f32 1.0, %v20478_v35  ;;  %v19702_v6 = vpack.c.bf16 %v10443_v3, %v10442_v30  ;;  %v10706_v30 = vld [vmem:[#allocation14 + $0x58] sm:$0xff] }
0x1e35   :  { %v10139_v40 = vadd.f32 %v10138_v22, %v9967_v36 }
0x1e36   :  { %20479 = vrcp.f32 %v10049_v56  ;;  %v10616_v56 = vld [vmem:[#allocation13 + $0x40] sm:$0xff] }
0x1e40   :  { %v20480_v45 = vpop.eup %20479 }
0x1e41   :  { %v10132_v60 = vmul.f32 %v20480_v45, %v10131_v28  ;;  %v10704_v45 = vld [vmem:[#allocation14 + $0x48] sm:$0xff] }
0x1e43   :  { %v10133_v42 = vadd.f32 %v10132_v60, %v22257_v62  ;;  %v10145_v62 = vld [vmem:[#allocation2 + $0x18] sm:$0xf]  ;;  %v19738_v60 = vpack.c.bf16 %v10704_v45, %v10703_v58 }
0x1e44   :  { %v10871_v58 = vld [vmem:[#allocation14 + $0x90] sm:$0xff] }
0x1e45   :  { %v10140_v63 = vadd.f32 %v10139_v40, %v10133_v42  ;;  %v10617_v40 = vld [vmem:[#allocation13 + $0x48] sm:$0xff]  ;;  %v10618_v42 = vld [vmem:[#allocation13 + $0x50] sm:$0xff] }
0x1e46   :  { %v19726_v28 = vpack.c.bf16 %v10617_v40, %v10616_v56  ;;  %v10788_v40 = vld [vmem:[#allocation13 + $0x98] sm:$0xff] }
0x1e47   :  { %v22331_v2 = vmul.f32 0.125, %v10140_v63  ;;  %v10619_v63 = vld [vmem:[#allocation13 + $0x58] sm:$0xff] }
0x1e49   :  { %10143 = vst.msk [vmem:[#allocation16 + $0x14] sm:$0xf] %vm1842_vm2, %v22331_v2  ;;  %17470 = vmatmul.mubr.msk.f32.vlgmr.msra.gmra.mrb[108].mxu0 %vm171_vm1, %v22331_v2  ;;  %17508 = vmatmul.mubr.msk.f32.vlgmr.msra.gmra.mrb[108].mxu1 %vm171_vm1, %v22331_v2 }
0x1e4a   :  { %19667 = vmatpush3.bf16.msra.mxu0 %v21020_v31  ;;  %19691 = vmatpush3.bf16.msra.mxu1 %v21024_v32 }
0x1e4b   :  { %19668 = vmatprep.subr.bf16.mxu0 %v20803_v0  ;;  %19692 = vmatprep.subr.bf16.mxu1 %v20803_v0 }
0x1e4c   :  { %17488 = vmatprep.mubr.msk.f32.mxu0 %vm20804_vm0, %v20805_v1  ;;  %17526 = vmatprep.mubr.msk.f32.mxu1 %vm20804_vm0, %v20805_v1 }
0x1e4e   :  { %19670 = vmatpush3.bf16.msra.mxu0 %v21032_v37  ;;  %19694 = vmatpush3.bf16.msra.mxu1 %v21036_v38 }
0x1e4f   :  { %19671 = vmatprep.subr.bf16.mxu0 %v20803_v0  ;;  %19695 = vmatprep.subr.bf16.mxu1 %v20803_v0 }
0x1e52   :  { %19673 = vmatpush3.bf16.msra.mxu0 %v21044_v43  ;;  %19697 = vmatpush3.bf16.msra.mxu1 %v21048_v44 }
0x1e53   :  { %19674 = vmatprep.subr.bf16.mxu0 %v20803_v0  ;;  %19698 = vmatprep.subr.bf16.mxu1 %v20803_v0 }
0x1e56   :  { %19676 = vmatpush3.bf16.msra.mxu0 %v21052_v49  ;;  %19700 = vmatpush3.bf16.msra.mxu1 %v21056_v50 }
0x1e57   :  { %19701 = vmatprep.subr.bf16.mxu0 %v20803_v0  ;;  %19713 = vmatprep.subr.bf16.mxu1 %v20803_v0 }
0x1e59   :  { %17489 = vmatmul.mubr.msk.f32.vlgmr.msra.gmra.mrb[108].mxu0 %vm171_vm1, %v10145_v62  ;;  %17527 = vmatmul.mubr.msk.f32.vlgmr.msra.gmra.mrb[108].mxu1 %vm171_vm1, %v10145_v62  ;;  %v19729_v62 = vpack.c.bf16 %v10619_v63, %v10618_v42  ;;  %v10789_v42 = vld [vmem:[#allocation13 + $0xa0] sm:$0xff] }
0x1e5a   :  { %17545 = vmatprep.mubr.msk.f32.mxu0 %vm20804_vm0, %v20805_v1  ;;  %17564 = vmatprep.mubr.msk.f32.mxu1 %vm20804_vm0, %v20805_v1  ;;  %v10873_v63 = vld [vmem:[#allocation14 + $0xa0] sm:$0xff] }
0x1e5b   :  { %19703 = vmatpush3.bf16.msra.mxu0 %v19702_v6  ;;  %19715 = vmatpush3.bf16.msra.mxu1 %v19714_v8  ;;  %v10621_v6 = vld [vmem:[#allocation13 + $0x68] sm:$0xff] }
0x1e5c   :  { %19704 = vmatprep.subr.bf16.mxu0 %v20803_v0  ;;  %19716 = vmatprep.subr.bf16.mxu1 %v20803_v0  ;;  %v19732_v8 = vpack.c.bf16 %v10621_v6, %v10620_v4  ;;  %v10792_v4 = vld [vmem:[#allocation13 + $0xb8] sm:$0xff]  ;;  %v10875_v6 = vld [vmem:[#allocation14 + $0xb0] sm:$0xff] }
0x1e5d   :  { %v19771_v10 = vpack.c.bf16 %v10876_v7, %v10875_v6  ;;  %v11122_v7 = vld [vmem:[#allocation13 + $0x130] sm:$0xff] }
0x1e5f   :  { %19706 = vmatpush3.bf16.msra.mxu0 %v19705_v15  ;;  %19718 = vmatpush3.bf16.msra.mxu1 %v19717_v20  ;;  %v10623_v15 = vld [vmem:[#allocation13 + $0x78] sm:$0xff] }
0x1e60   :  { %19707 = vmatprep.subr.bf16.mxu0 %v20803_v0  ;;  %19719 = vmatprep.subr.bf16.mxu1 %v20803_v0  ;;  %v19735_v20 = vpack.c.bf16 %v10623_v15, %v10622_v14  ;;  %v10952_v14 = vld [vmem:[#allocation13 + $0xc8] sm:$0xff]  ;;  %v11035_v15 = vld [vmem:[#allocation14 + $0xc0] sm:$0xff] }
0x1e61   :  { %v19786_v21 = vpack.c.bf16 %v11036_v16, %v11035_v15 }
0x1e63   :  { %19709 = vmatpush3.bf16.msra.mxu0 %v19708_v23  ;;  %19721 = vmatpush3.bf16.msra.mxu1 %v19720_v39 }
0x1e64   :  { %19710 = vmatprep.subr.bf16.mxu0 %v20803_v0  ;;  %19722 = vmatprep.subr.bf16.mxu1 %v20803_v0 }
0x1e67   :  { %19712 = vmatpush3.bf16.msra.mxu0 %v19711_v46  ;;  %19724 = vmatpush3.bf16.msra.mxu1 %v19723_v52 }
0x1e68   :  { %19725 = vmatprep.subr.bf16.mxu0 %v20803_v0  ;;  %19737 = vmatprep.subr.bf16.mxu1 %v20803_v0 }
0x1f2c   :  { %v10288_v51 = vpop.f32.mrb[108].mxu0  ;;  %v10434_v61 = vpop.f32.mrb[108].mxu1 }
0x1f2d   :  { %v13673_v17 = vmul.f32 -1.442695, %v10288_v51  ;;  %v17490_v54 = vpop.f32.mrb[109].mxu0  ;;  %v17528_v48 = vpop.f32.mrb[109].mxu1 }
0x1f2e   :  { %v10786_v54 = vld [vmem:[#allocation13 + $0x88] sm:$0xff]  ;;  %v10869_v48 = vld [vmem:[#allocation14 + $0x80] sm:$0xff] }
0x1f2f   :  { %20481 = vpow2.f32 %v13673_v17 }
0x1f30   :  { %20483 = vtanh.f32 %v10434_v61  ;;  %v10785_v61 = vld [vmem:[#allocation13 + $0x80] sm:$0xff] }
0x1f39   :  { %v20482_v22 = vpop.eup %20481 }
0x1f3a   :  { %v10295_v27 = vadd.f32 1.0, %v20482_v22  ;;  %v20484_v29 = vpop.eup %20483  ;;  %v10870_v22 = vld [vmem:[#allocation14 + $0x88] sm:$0xff] }
0x1f3b   :  { %v10439_v33 = vsub.f32 %v20484_v29, %v22331_v2 }
0x1f3c   :  { %20485 = vrcp.f32 %v10295_v27 }
0x1f46   :  { %v20486_v34 = vpop.eup %20485 }
0x1f47   :  { %v10440_v35 = vmul.f32 %v20486_v34, %v10439_v33  ;;  %v19750_v33 = vpack.c.bf16 %v10786_v54, %v10785_v61  ;;  %v19762_v34 = vpack.c.bf16 %v10870_v22, %v10869_v48  ;;  %v10957_v61 = vld [vmem:[#allocation13 + $0xf0] sm:$0xff]  ;;  %v11042_v48 = vld [vmem:[#allocation14 + $0xf8] sm:$0xff] }
0x1f48   :  { %v11041_v54 = vld [vmem:[#allocation14 + $0xf0] sm:$0xff] }
0x1f49   :  { %v22375_v36 = vadd.f32 %v10440_v35, %v22331_v2  ;;  %v10705_v2 = vld [vmem:[#allocation14 + $0x50] sm:$0xff] }
0x1f4a   :  { %v19741_v3 = vpack.c.bf16 %v10706_v30, %v10705_v2  ;;  %v10787_v35 = vld [vmem:[#allocation13 + $0x90] sm:$0xff]  ;;  %v10874_v2 = vld [vmem:[#allocation14 + $0xa8] sm:$0xff] }
0x1f4b   :  { %17546 = vmatmul.mubr.msk.f32.vlgmr.msra.gmra.mrb[110].mxu0 %vm171_vm1, %v22375_v36  ;;  %17565 = vmatmul.mubr.msk.f32.vlgmr.msra.gmra.mrb[110].mxu1 %vm171_vm1, %v22375_v36  ;;  %v19753_v45 = vpack.c.bf16 %v10788_v40, %v10787_v35  ;;  %v19768_v30 = vpack.c.bf16 %v10874_v2, %v10873_v63  ;;  %v11204_v40 = vld [vmem:[#allocation14 + $0x108] sm:$0xff]  ;;  %v11120_v2 = vld [vmem:[#allocation13 + $0x120] sm:$0xff] }
0x1f4c   :  { %17583 = vmatprep.mubr.msk.f32.mxu0 %vm20804_vm0, %v20805_v1  ;;  %17602 = vmatprep.mubr.msk.f32.mxu1 %vm20804_vm0, %v20805_v1 }
0x1f4d   :  { %19727 = vmatpush3.bf16.msra.mxu0 %v19726_v28  ;;  %19739 = vmatpush3.bf16.msra.mxu1 %v19738_v60  ;;  %v10872_v28 = vld [vmem:[#allocation14 + $0x98] sm:$0xff] }
0x1f4e   :  { %19728 = vmatprep.subr.bf16.mxu0 %v20803_v0  ;;  %19740 = vmatprep.subr.bf16.mxu1 %v20803_v0  ;;  %v19765_v60 = vpack.c.bf16 %v10872_v28, %v10871_v58  ;;  %v11118_v28 = vld [vmem:[#allocation13 + $0x110] sm:$0xff] }
0x1f51   :  { %19730 = vmatpush3.bf16.msra.mxu0 %v19729_v62  ;;  %19742 = vmatpush3.bf16.msra.mxu1 %v19741_v3  ;;  %v10791_v3 = vld [vmem:[#allocation13 + $0xb0] sm:$0xff] }
0x1f52   :  { %19731 = vmatprep.subr.bf16.mxu0 %v20803_v0  ;;  %19743 = vmatprep.subr.bf16.mxu1 %v20803_v0 }
0x1f55   :  { %19733 = vmatpush3.bf16.msra.mxu0 %v19732_v8  ;;  %19745 = vmatpush3.bf16.msra.mxu1 %v19744_v11  ;;  %v19759_v8 = vpack.c.bf16 %v10792_v4, %v10791_v3  ;;  %v10951_v11 = vld [vmem:[#allocation13 + $0xc0] sm:$0xff]  ;;  %v11208_v4 = vld [vmem:[#allocation14 + $0x128] sm:$0xff] }
0x1f56   :  { %19734 = vmatprep.subr.bf16.mxu0 %v20803_v0  ;;  %19746 = vmatprep.subr.bf16.mxu1 %v20803_v0 }
0x1f59   :  { %19736 = vmatpush3.bf16.msra.mxu0 %v19735_v20  ;;  %19748 = vmatpush3.bf16.msra.mxu1 %v19747_v26  ;;  %v19774_v20 = vpack.c.bf16 %v10952_v14, %v10951_v11  ;;  %v10953_v26 = vld [vmem:[#allocation13 + $0xd0] sm:$0xff]  ;;  %v11210_v14 = vld [vmem:[#allocation14 + $0x138] sm:$0xff] }
0x1f5a   :  { %19749 = vmatprep.subr.bf16.mxu0 %v20803_v0  ;;  %19761 = vmatprep.subr.bf16.mxu1 %v20803_v0 }
0x201e   :  { %v10519_v47 = vpop.f32.mrb[110].mxu0  ;;  %v10603_v23 = vpop.f32.mrb[110].mxu1 }
0x201f   :  { %v13677_v53 = vmul.f32 -1.442695, %v10519_v47  ;;  %v13679_v39 = vmul.f32 -1.442695, %v10603_v23  ;;  %v17547_v55 = vpop.f32.mrb[111].mxu0  ;;  %v17566_v41 = vpop.f32.mrb[111].mxu1 }
0x2020   :  { %v10954_v47 = vld [vmem:[#allocation13 + $0xd8] sm:$0xff]  ;;  %v11037_v23 = vld [vmem:[#allocation14 + $0xd0] sm:$0xff]  ;;  %v10955_v41 = vld [vmem:[#allocation13 + $0xe0] sm:$0xff] }
0x2021   :  { %20487 = vpow2.f32 %v13677_v53  ;;  %v11038_v53 = vld [vmem:[#allocation14 + $0xd8] sm:$0xff] }
0x2022   :  { %20489 = vpow2.f32 %v13679_v39  ;;  %v19777_v39 = vpack.c.bf16 %v10954_v47, %v10953_v26  ;;  %v19789_v55 = vpack.c.bf16 %v11038_v53, %v11037_v23 }
0x202b   :  { %v20488_v57 = vpop.eup %20487 }
0x202c   :  { %v20490_v46 = vpop.eup %20489  ;;  %v10526_v59 = vadd.f32 1.0, %v20488_v57  ;;  %v10956_v57 = vld [vmem:[#allocation13 + $0xe8] sm:$0xff] }
0x202d   :  { %v10610_v52 = vadd.f32 1.0, %v20490_v46  ;;  %v11039_v46 = vld [vmem:[#allocation14 + $0xe0] sm:$0xff] }
0x202f   :  { %20491 = vrcp.f32 %v10610_v52  ;;  %v19780_v52 = vpack.c.bf16 %v10956_v57, %v10955_v41 }
0x2030   :  { %20493 = vrcp.f32 %v10526_v59  ;;  %v11040_v59 = vld [vmem:[#allocation14 + $0xe8] sm:$0xff] }
0x2039   :  { %v20492_v51 = vpop.eup %20491 }
0x203a   :  { %v10613_v17 = vsub.f32 %v20492_v51, %v22375_v36  ;;  %v20494_v27 = vpop.eup %20493  ;;  %v19792_v51 = vpack.c.bf16 %v11040_v59, %v11039_v46 }
0x203c   :  { %v10614_v29 = vmul.f32 %v20494_v27, %v10613_v17  ;;  %v10958_v17 = vld [vmem:[#allocation13 + $0xf8] sm:$0xff]  ;;  %v19795_v27 = vpack.c.bf16 %v11042_v48, %v11041_v54 }
0x203d   :  { %v19783_v22 = vpack.c.bf16 %v10958_v17, %v10957_v61 }
0x203e   :  { %v22395_v56 = vadd.f32 %v10614_v29, %v22375_v36  ;;  %v10790_v36 = vld [vmem:[#allocation13 + $0xa8] sm:$0xff]  ;;  %v11116_v29 = vld [vmem:[#allocation13 + $0x100] sm:$0xff] }
0x203f   :  { %v19756_v62 = vpack.c.bf16 %v10790_v36, %v10789_v42  ;;  %v11206_v36 = vld [vmem:[#allocation14 + $0x118] sm:$0xff] }
0x2040   :  { %17584 = vmatmul.mubr.msk.f32.vlgmr.msra.gmra.mrb[112].mxu0 %vm171_vm1, %v22395_v56  ;;  %17603 = vmatmul.mubr.msk.f32.vlgmr.msra.gmra.mrb[112].mxu1 %vm171_vm1, %v22395_v56 }
0x2041   :  { %19751 = vmatpush3.bf16.msra.mxu0 %v19750_v33  ;;  %19763 = vmatpush3.bf16.msra.mxu1 %v19762_v34  ;;  %v11117_v33 = vld [vmem:[#allocation13 + $0x108] sm:$0xff]  ;;  %v11203_v34 = vld [vmem:[#allocation14 + $0x100] sm:$0xff] }
0x2042   :  { %19752 = vmatprep.subr.bf16.mxu0 %v20803_v0  ;;  %19764 = vmatprep.subr.bf16.mxu1 %v20803_v0  ;;  %v19798_v35 = vpack.c.bf16 %v11117_v33, %v11116_v29  ;;  %v19810_v58 = vpack.c.bf16 %v11204_v40, %v11203_v34 }
0x2043   :  { %17621 = vmatprep.mubr.msk.f32.mxu0 %vm20804_vm0, %v20805_v1  ;;  %17640 = vmatprep.mubr.msk.f32.mxu1 %vm20804_vm0, %v20805_v1 }
0x2045   :  { %19754 = vmatpush3.bf16.msra.mxu0 %v19753_v45  ;;  %19766 = vmatpush3.bf16.msra.mxu1 %v19765_v60  ;;  %v11119_v45 = vld [vmem:[#allocation13 + $0x118] sm:$0xff]  ;;  %v11205_v60 = vld [vmem:[#allocation14 + $0x110] sm:$0xff] }
0x2046   :  { %19755 = vmatprep.subr.bf16.mxu0 %v20803_v0  ;;  %19767 = vmatprep.subr.bf16.mxu1 %v20803_v0  ;;  %v19801_v42 = vpack.c.bf16 %v11119_v45, %v11118_v28  ;;  %v19813_v63 = vpack.c.bf16 %v11206_v36, %v11205_v60 }
0x2049   :  { %19757 = vmatpush3.bf16.msra.mxu0 %v19756_v62  ;;  %19769 = vmatpush3.bf16.msra.mxu1 %v19768_v30  ;;  %v11121_v62 = vld [vmem:[#allocation13 + $0x128] sm:$0xff]  ;;  %v11207_v30 = vld [vmem:[#allocation14 + $0x120] sm:$0xff] }
0x204a   :  { %19758 = vmatprep.subr.bf16.mxu0 %v20803_v0  ;;  %19770 = vmatprep.subr.bf16.mxu1 %v20803_v0  ;;  %v19804_v3 = vpack.c.bf16 %v11121_v62, %v11120_v2  ;;  %v19816_v6 = vpack.c.bf16 %v11208_v4, %v11207_v30  ;;  %v11285_v2 = vld [vmem:[#allocation13 + $0x140] sm:$0xff]  ;;  %v11286_v62 = vld [vmem:[#allocation13 + $0x148] sm:$0xff] }
0x204b   :  { %v11372_v30 = vld [vmem:[#allocation14 + $0x140] sm:$0xff]  ;;  %v11373_v4 = vld [vmem:[#allocation14 + $0x148] sm:$0xff] }
0x204d   :  { %19760 = vmatpush3.bf16.msra.mxu0 %v19759_v8  ;;  %19772 = vmatpush3.bf16.msra.mxu1 %v19771_v10  ;;  %v11123_v8 = vld [vmem:[#allocation13 + $0x138] sm:$0xff]  ;;  %v11209_v10 = vld [vmem:[#allocation14 + $0x130] sm:$0xff] }
0x204e   :  { %19773 = vmatprep.subr.bf16.mxu0 %v20803_v0  ;;  %19785 = vmatprep.subr.bf16.mxu1 %v20803_v0  ;;  %v19807_v11 = vpack.c.bf16 %v11123_v8, %v11122_v7  ;;  %v19819_v15 = vpack.c.bf16 %v11210_v14, %v11209_v10  ;;  %v11287_v7 = vld [vmem:[#allocation13 + $0x150] sm:$0xff]  ;;  %v11288_v8 = vld [vmem:[#allocation13 + $0x158] sm:$0xff] }
0x204f   :  { %v11374_v10 = vld [vmem:[#allocation14 + $0x150] sm:$0xff]  ;;  %v11375_v14 = vld [vmem:[#allocation14 + $0x158] sm:$0xff] }
0x2050   :  { %17622 = vmatmul.mubr.msk.f32.vlgmr.msra.gmra.mrb[114].mxu0 %vm171_vm1, %v22395_v56  ;;  %17641 = vmatmul.mubr.msk.f32.vlgmr.msra.gmra.mrb[114].mxu1 %vm171_vm1, %v22395_v56 }
0x2051   :  { %19775 = vmatpush3.bf16.msra.mxu0 %v19774_v20  ;;  %19787 = vmatpush3.bf16.msra.mxu1 %v19786_v21 }
0x2052   :  { %19776 = vmatprep.subr.bf16.mxu0 %v20803_v0  ;;  %19788 = vmatprep.subr.bf16.mxu1 %v20803_v0 }
0x2053   :  { %17659 = vmatprep.mubr.msk.f32.mxu0 %vm20804_vm0, %v20805_v1  ;;  %17678 = vmatprep.mubr.msk.f32.mxu1 %vm20804_vm0, %v20805_v1 }
0x2055   :  { %19778 = vmatpush3.bf16.msra.mxu0 %v19777_v39  ;;  %19790 = vmatpush3.bf16.msra.mxu1 %v19789_v55 }
0x2056   :  { %19779 = vmatprep.subr.bf16.mxu0 %v20803_v0  ;;  %19791 = vmatprep.subr.bf16.mxu1 %v20803_v0 }
0x2059   :  { %19781 = vmatpush3.bf16.msra.mxu0 %v19780_v52  ;;  %19793 = vmatpush3.bf16.msra.mxu1 %v19792_v51 }
0x205a   :  { %19782 = vmatprep.subr.bf16.mxu0 %v20803_v0  ;;  %19794 = vmatprep.subr.bf16.mxu1 %v20803_v0 }
0x205d   :  { %19784 = vmatpush3.bf16.msra.mxu0 %v19783_v22  ;;  %19796 = vmatpush3.bf16.msra.mxu1 %v19795_v27 }
0x205e   :  { %19797 = vmatprep.subr.bf16.mxu0 %v20803_v0  ;;  %19809 = vmatprep.subr.bf16.mxu1 %v20803_v0 }
0x2060   :  { %17660 = vmatmul.mubr.msk.f32.vlgmr.msra.gmra.mrb[116].mxu0 %vm171_vm1, %v22395_v56  ;;  %17679 = vmatmul.mubr.msk.f32.vlgmr.msra.gmra.mrb[116].mxu1 %vm171_vm1, %v22395_v56 }
0x2061   :  { %17697 = vmatprep.mubr.msk.f32.mxu0 %vm20804_vm0, %v20805_v1  ;;  %17716 = vmatprep.mubr.msk.f32.mxu1 %vm20804_vm0, %v20805_v1 }
0x2062   :  { %19799 = vmatpush3.bf16.msra.mxu0 %v19798_v35  ;;  %19811 = vmatpush3.bf16.msra.mxu1 %v19810_v58 }
0x2063   :  { %19800 = vmatprep.subr.bf16.mxu0 %v20803_v0  ;;  %19812 = vmatprep.subr.bf16.mxu1 %v20803_v0 }
0x2066   :  { %19802 = vmatpush3.bf16.msra.mxu0 %v19801_v42  ;;  %19814 = vmatpush3.bf16.msra.mxu1 %v19813_v63 }
0x2067   :  { %19803 = vmatprep.subr.bf16.mxu0 %v20803_v0  ;;  %19815 = vmatprep.subr.bf16.mxu1 %v20803_v0 }
0x206a   :  { %19805 = vmatpush3.bf16.msra.mxu0 %v19804_v3  ;;  %19817 = vmatpush3.bf16.msra.mxu1 %v19816_v6  ;;  %v19822_v3 = vpack.c.bf16 %v11286_v62, %v11285_v2  ;;  %v19834_v6 = vpack.c.bf16 %v11373_v4, %v11372_v30  ;;  %v11462_v62 = vld [vmem:[#allocation13 + $0x198] sm:$0xff]  ;;  %v11548_v30 = vld [vmem:[#allocation14 + $0x190] sm:$0xff] }
0x206b   :  { %19806 = vmatprep.subr.bf16.mxu0 %v20803_v0  ;;  %19818 = vmatprep.subr.bf16.mxu1 %v20803_v0 }
0x206e   :  { %19808 = vmatpush3.bf16.msra.mxu0 %v19807_v11  ;;  %19820 = vmatpush3.bf16.msra.mxu1 %v19819_v15  ;;  %v19825_v11 = vpack.c.bf16 %v11288_v8, %v11287_v7  ;;  %v19837_v15 = vpack.c.bf16 %v11375_v14, %v11374_v10  ;;  %v11463_v7 = vld [vmem:[#allocation13 + $0x1a0] sm:$0xff]  ;;  %v11464_v8 = vld [vmem:[#allocation13 + $0x1a8] sm:$0xff] }
0x206f   :  { %19821 = vmatprep.subr.bf16.mxu0 %v20803_v0  ;;  %19833 = vmatprep.subr.bf16.mxu1 %v20803_v0  ;;  %v11550_v10 = vld [vmem:[#allocation14 + $0x1a0] sm:$0xff]  ;;  %v19852_v14 = vpack.c.bf16 %v11464_v8, %v11463_v7 }
0x2113   :  { %v10693_v16 = vpop.f32.mrb[112].mxu0  ;;  %v10777_v20 = vpop.f32.mrb[112].mxu1 }
0x2114   :  { %v13681_v21 = vmul.f32 -1.442695, %v10693_v16  ;;  %v17585_v26 = vpop.f32.mrb[113].mxu0  ;;  %v17604_v47 = vpop.f32.mrb[113].mxu1  ;;  %v10781_v59 = vmax.f32 %v10777_v20, 0.0  ;;  %v11289_v16 = vld [vmem:[#allocation13 + $0x160] sm:$0xff] }
0x2115   :  { %v11290_v20 = vld [vmem:[#allocation13 + $0x168] sm:$0xff] }
0x2116   :  { %20495 = vpow2.f32 %v13681_v21  ;;  %v10782_v52 = vsub.f32 %v10781_v59, %v22395_v56  ;;  %v11376_v21 = vld [vmem:[#allocation14 + $0x160] sm:$0xff]  ;;  %v19828_v26 = vpack.c.bf16 %v11290_v20, %v11289_v16  ;;  %v11377_v47 = vld [vmem:[#allocation14 + $0x168] sm:$0xff]  ;;  %v11465_v16 = vld [vmem:[#allocation13 + $0x1b0] sm:$0xff] }
0x2117   :  { %v11466_v20 = vld [vmem:[#allocation13 + $0x1b8] sm:$0xff] }
0x2120   :  { %v20496_v23 = vpop.eup %20495 }
0x2121   :  { %v10700_v53 = vadd.f32 1.0, %v20496_v23  ;;  %v19840_v23 = vpack.c.bf16 %v11377_v47, %v11376_v21  ;;  %v11552_v21 = vld [vmem:[#allocation14 + $0x1b0] sm:$0xff]  ;;  %v19855_v47 = vpack.c.bf16 %v11466_v20, %v11465_v16 }
0x2123   :  { %20497 = vrcp.f32 %v10700_v53  ;;  %v10859_v39 = vpop.f32.mrb[114].mxu0  ;;  %v10943_v55 = vpop.f32.mrb[114].mxu1  ;;  %v11291_v53 = vld [vmem:[#allocation13 + $0x170] sm:$0xff] }
0x2124   :  { %v13684_v41 = vmul.f32 -1.442695, %v10859_v39  ;;  %v17623_v57 = vpop.f32.mrb[115].mxu0  ;;  %v17642_v46 = vpop.f32.mrb[115].mxu1  ;;  %v10947_v35 = vmax.f32 %v10943_v55, 0.0  ;;  %v11292_v39 = vld [vmem:[#allocation13 + $0x178] sm:$0xff] }
0x2125   :  { %v11378_v55 = vld [vmem:[#allocation14 + $0x170] sm:$0xff]  ;;  %v11379_v57 = vld [vmem:[#allocation14 + $0x178] sm:$0xff] }
0x2126   :  { %20499 = vpow2.f32 %v13684_v41  ;;  %v10948_v40 = vsub.f32 %v10947_v35, %v22395_v56  ;;  %v19831_v41 = vpack.c.bf16 %v11292_v39, %v11291_v53  ;;  %v19843_v46 = vpack.c.bf16 %v11379_v57, %v11378_v55  ;;  %v11546_v35 = vld [vmem:[#allocation14 + $0x180] sm:$0xff]  ;;  %v11629_v39 = vld [vmem:[#allocation13 + $0x1c8] sm:$0xff] }
0x2127   :  { %v11628_v53 = vld [vmem:[#allocation13 + $0x1c0] sm:$0xff] }
0x2128   :  { %v11712_v55 = vld [vmem:[#allocation14 + $0x1c0] sm:$0xff]  ;;  %v19870_v57 = vpack.c.bf16 %v11629_v39, %v11628_v53 }
0x212d   :  { %v20498_v51 = vpop.eup %20497 }
0x212e   :  { %v10783_v61 = vmul.f32 %v20498_v51, %v10782_v52 }
0x2130   :  { %v20500_v17 = vpop.eup %20499  ;;  %v22447_v54 = vadd.f32 %v10783_v61, %v22395_v56 }
0x2131   :  { %v10866_v48 = vadd.f32 1.0, %v20500_v17 }
0x2132   :  { %17698 = vmatmul.mubr.msk.f32.vlgmr.msra.gmra.mrb[118].mxu0 %vm171_vm1, %v22447_v54  ;;  %17717 = vmatmul.mubr.msk.f32.vlgmr.msra.gmra.mrb[118].mxu1 %vm171_vm1, %v22447_v54 }
0x2133   :  { %20501 = vrcp.f32 %v10866_v48  ;;  %v11025_v22 = vpop.f32.mrb[116].mxu0  ;;  %v11109_v27 = vpop.f32.mrb[116].mxu1  ;;  %17735 = vmatprep.mubr.msk.f32.mxu0 %vm20804_vm0, %v20805_v1  ;;  %17754 = vmatprep.mubr.msk.f32.mxu1 %vm20804_vm0, %v20805_v1 }
0x2134   :  { %v13687_v29 = vmul.f32 -1.442695, %v11025_v22  ;;  %v17661_v33 = vpop.f32.mrb[117].mxu0  ;;  %v17680_v34 = vpop.f32.mrb[117].mxu1  ;;  %v11113_v42 = vsub.f32 %v11109_v27, %v22395_v56  ;;  %19823 = vmatpush3.bf16.msra.mxu0 %v19822_v3  ;;  %19835 = vmatpush3.bf16.msra.mxu1 %v19834_v6  ;;  %v11549_v3 = vld [vmem:[#allocation14 + $0x198] sm:$0xff] }
0x2135   :  { %19824 = vmatprep.subr.bf16.mxu0 %v20803_v0  ;;  %19836 = vmatprep.subr.bf16.mxu1 %v20803_v0  ;;  %v11460_v34 = vld [vmem:[#allocation13 + $0x188] sm:$0xff]  ;;  %v19861_v6 = vpack.c.bf16 %v11549_v3, %v11548_v30 }
0x2136   :  { %20503 = vpow2.f32 %v13687_v29  ;;  %v11459_v29 = vld [vmem:[#allocation13 + $0x180] sm:$0xff] }
0x2138   :  { %19826 = vmatpush3.bf16.msra.mxu0 %v19825_v11  ;;  %19838 = vmatpush3.bf16.msra.mxu1 %v19837_v15  ;;  %v11551_v11 = vld [vmem:[#allocation14 + $0x1a8] sm:$0xff] }
0x2139   :  { %19827 = vmatprep.subr.bf16.mxu0 %v20803_v0  ;;  %19839 = vmatprep.subr.bf16.mxu1 %v20803_v0  ;;  %v19864_v15 = vpack.c.bf16 %v11551_v11, %v11550_v10  ;;  %v11794_v11 = vadd.f32 %v22447_v54, %v22395_v56 }
0x213c   :  { %19829 = vmatpush3.bf16.msra.mxu0 %v19828_v26  ;;  %19841 = vmatpush3.bf16.msra.mxu1 %v19840_v23  ;;  %v11553_v26 = vld [vmem:[#allocation14 + $0x1b8] sm:$0xff] }
0x213d   :  { %v20502_v58 = vpop.eup %20501  ;;  %19830 = vmatprep.subr.bf16.mxu0 %v20803_v0  ;;  %19842 = vmatprep.subr.bf16.mxu1 %v20803_v0  ;;  %v19867_v23 = vpack.c.bf16 %v11553_v26, %v11552_v21 }
0x213e   :  { %v22458_v28 = vmul.f32 %v20502_v58, %v10948_v40  ;;  %v11547_v40 = vld [vmem:[#allocation14 + $0x188] sm:$0xff] }
0x2140   :  { %v20504_v45 = vpop.eup %20503  ;;  %19832 = vmatpush3.bf16.msra.mxu0 %v19831_v41  ;;  %19844 = vmatpush3.bf16.msra.mxu1 %v19843_v46  ;;  %v11713_v41 = vld [vmem:[#allocation14 + $0x1c8] sm:$0xff] }
0x2141   :  { %v11032_v60 = vadd.f32 1.0, %v20504_v45  ;;  %19845 = vmatprep.subr.bf16.mxu0 %v20803_v0  ;;  %19857 = vmatprep.subr.bf16.mxu1 %v20803_v0  ;;  %v19882_v46 = vpack.c.bf16 %v11713_v41, %v11712_v55 }
0x2143   :  { %20505 = vrcp.f32 %v11032_v60  ;;  %v19846_v60 = vpack.c.bf16 %v11460_v34, %v11459_v29  ;;  %v11716_v29 = vld [vmem:[#allocation14 + $0x1e0] sm:$0xff] }
0x214d   :  { %v20506_v36 = vpop.eup %20505 }
0x214e   :  { %v22461_v63 = vmul.f32 %v20506_v36, %v11113_v42  ;;  %v19858_v42 = vpack.c.bf16 %v11547_v40, %v11546_v35  ;;  %v11461_v36 = vld [vmem:[#allocation13 + $0x190] sm:$0xff] }
0x214f   :  { %v19849_v4 = vpack.c.bf16 %v11462_v62, %v11461_v36  ;;  %v11634_v40 = vld [vmem:[#allocation13 + $0x1f0] sm:$0xff] }
0x2150   :  { %v11115_v10 = vadd.f32 %v22461_v63, %v22395_v56 }
0x2205   :  { %v11193_v59 = vpop.f32.mrb[118].mxu0  ;;  %v11277_v52 = vpop.f32.mrb[118].mxu1 }
0x2206   :  { %v13690_v51 = vmul.f32 -1.442695, %v11193_v59  ;;  %v17699_v61 = vpop.f32.mrb[119].mxu0  ;;  %v17718_v17 = vpop.f32.mrb[119].mxu1  ;;  %v11630_v59 = vld [vmem:[#allocation13 + $0x1d0] sm:$0xff] }
0x2207   :  { %v11714_v61 = vld [vmem:[#allocation14 + $0x1d0] sm:$0xff]  ;;  %v11715_v17 = vld [vmem:[#allocation14 + $0x1d8] sm:$0xff] }
0x2208   :  { %20507 = vpow2.f32 %v13690_v51  ;;  %v11631_v51 = vld [vmem:[#allocation13 + $0x1d8] sm:$0xff] }
0x2209   :  { %20509 = vtanh.f32 %v11277_v52  ;;  %v22491_v52 = vadd.f32 %v22458_v28, %v22395_v56  ;;  %v11633_v28 = vld [vmem:[#allocation13 + $0x1e8] sm:$0xff] }
0x220b   :  { %v11795_v16 = vadd.f32 %v11794_v11, %v22491_v52 }
0x220d   :  { %v11796_v26 = vadd.f32 %v11795_v16, %v11115_v10 }
0x2212   :  { %v20508_v48 = vpop.eup %20507 }
0x2213   :  { %v11200_v22 = vadd.f32 1.0, %v20508_v48  ;;  %v20510_v27 = vpop.eup %20509  ;;  %v19873_v48 = vpack.c.bf16 %v11631_v51, %v11630_v59 }
0x2214   :  { %v11282_v33 = vsub.f32 %v20510_v27, %v22447_v54  ;;  %v11632_v27 = vld [vmem:[#allocation13 + $0x1e0] sm:$0xff] }
0x2215   :  { %20511 = vrcp.f32 %v11200_v22  ;;  %v19885_v22 = vpack.c.bf16 %v11715_v17, %v11714_v61  ;;  %v19876_v34 = vpack.c.bf16 %v11633_v28, %v11632_v27 }
0x221f   :  { %v20512_v58 = vpop.eup %20511 }
0x2220   :  { %v11283_v45 = vmul.f32 %v20512_v58, %v11282_v33  ;;  %v11717_v33 = vld [vmem:[#allocation14 + $0x1e8] sm:$0xff]  ;;  %v11635_v58 = vld [vmem:[#allocation13 + $0x1f8] sm:$0xff] }
0x2221   :  { %v19888_v35 = vpack.c.bf16 %v11717_v33, %v11716_v29 }
0x2222   :  { %v22473_v2 = vadd.f32 %v11283_v45, %v22447_v54  ;;  %v11718_v45 = vld [vmem:[#allocation14 + $0x1f0] sm:$0xff] }
0x2224   :  { %17736 = vmatmul.mubr.msk.f32.vlgmr.msra.gmra.mrb[120].mxu0 %vm171_vm1, %v22473_v2  ;;  %17755 = vmatmul.mubr.msk.f32.vlgmr.msra.gmra.mrb[120].mxu1 %vm171_vm1, %v22473_v2  ;;  %v11797_v63 = vadd.f32 %v11796_v26, %v22473_v2 }
0x2225   :  { %19847 = vmatpush3.bf16.msra.mxu0 %v19846_v60  ;;  %19859 = vmatpush3.bf16.msra.mxu1 %v19858_v42  ;;  %v11719_v60 = vld [vmem:[#allocation14 + $0x1f8] sm:$0xff]  ;;  %v19879_v42 = vpack.c.bf16 %v11635_v58, %v11634_v40 }
0x2226   :  { %19848 = vmatprep.subr.bf16.mxu0 %v20803_v0  ;;  %19860 = vmatprep.subr.bf16.mxu1 %v20803_v0  ;;  %v19891_v36 = vpack.c.bf16 %v11719_v60, %v11718_v45  ;;  %v12192_v60 = vld [vmem:[#allocation14 + $0x18] sm:$0xff] }
0x2227   :  { %17773 = vmatprep.mubr.msk.f32.mxu0 %vm20804_vm0, %v20805_v1  ;;  %17792 = vmatprep.mubr.msk.f32.mxu1 %vm20804_vm0, %v20805_v1 }
0x2229   :  { %19850 = vmatpush3.bf16.msra.mxu0 %v19849_v4  ;;  %19862 = vmatpush3.bf16.msra.mxu1 %v19861_v6 }
0x222a   :  { %19851 = vmatprep.subr.bf16.mxu0 %v20803_v0  ;;  %19863 = vmatprep.subr.bf16.mxu1 %v20803_v0 }
0x222d   :  { %19853 = vmatpush3.bf16.msra.mxu0 %v19852_v14  ;;  %19865 = vmatpush3.bf16.msra.mxu1 %v19864_v15 }
0x222e   :  { %19854 = vmatprep.subr.bf16.mxu0 %v20803_v0  ;;  %19866 = vmatprep.subr.bf16.mxu1 %v20803_v0 }
0x2231   :  { %19856 = vmatpush3.bf16.msra.mxu0 %v19855_v47  ;;  %19868 = vmatpush3.bf16.msra.mxu1 %v19867_v23 }
0x2232   :  { %19869 = vmatprep.subr.bf16.mxu0 %v20803_v0  ;;  %19881 = vmatprep.subr.bf16.mxu1 %v20803_v0 }
0x2234   :  { %17774 = vmatmul.mubr.msk.f32.vlgmr.msra.gmra.mrb[122].mxu0 %vm171_vm1, %v22491_v52  ;;  %17793 = vmatmul.mubr.msk.f32.vlgmr.msra.gmra.mrb[122].mxu1 %vm171_vm1, %v22491_v52 }
0x2235   :  { %19871 = vmatpush3.bf16.msra.mxu0 %v19870_v57  ;;  %19883 = vmatpush3.bf16.msra.mxu1 %v19882_v46 }
0x2236   :  { %19872 = vmatprep.subr.bf16.mxu0 %v20803_v0  ;;  %19884 = vmatprep.subr.bf16.mxu1 %v20803_v0 }
0x2237   :  { %17811 = vmatprep.mubr.msk.f32.mxu0 %vm20804_vm0, %v20805_v1  ;;  %17830 = vmatprep.mubr.msk.f32.mxu1 %vm20804_vm0, %v20805_v1 }
0x2239   :  { %19874 = vmatpush3.bf16.msra.mxu0 %v19873_v48  ;;  %19886 = vmatpush3.bf16.msra.mxu1 %v19885_v22 }
0x223a   :  { %19875 = vmatprep.subr.bf16.mxu0 %v20803_v0  ;;  %19887 = vmatprep.subr.bf16.mxu1 %v20803_v0 }
0x223d   :  { %19877 = vmatpush3.bf16.msra.mxu0 %v19876_v34  ;;  %19889 = vmatpush3.bf16.msra.mxu1 %v19888_v35 }
0x223e   :  { %19878 = vmatprep.subr.bf16.mxu0 %v20803_v0  ;;  %19890 = vmatprep.subr.bf16.mxu1 %v20803_v0 }
0x2241   :  { %19880 = vmatpush3.bf16.msra.mxu0 %v19879_v42  ;;  %19892 = vmatpush3.bf16.msra.mxu1 %v19891_v36  ;;  %v12106_v36 = vld [vmem:[#allocation13 + $0x20] sm:$0xff] }
0x2242   :  { %19893 = vmatprep.subr.bf16.mxu0 %v20803_v0  ;;  %19917 = vmatprep.subr.bf16.mxu1 %v20803_v0 }
0x2244   :  { %17812 = vmatmul.mubr.msk.f32.vlgmr.msra.gmra.mrb[124].mxu0 %vm171_vm1, %v22473_v2  ;;  %17831 = vmatmul.mubr.msk.f32.vlgmr.msra.gmra.mrb[124].mxu1 %vm171_vm1, %v22473_v2 }
0x2245   :  { %19895 = vmatpush3.bf16.msra.mxu0 %v20989_v5  ;;  %19919 = vmatpush3.bf16.msra.mxu1 %v20991_v9 }
0x2246   :  { %19896 = vmatprep.subr.bf16.mxu0 %v20803_v0  ;;  %19920 = vmatprep.subr.bf16.mxu1 %v20803_v0 }
0x2247   :  { %17849 = vmatprep.mubr.msk.f32.mxu0 %vm20804_vm0, %v20805_v1  ;;  %17887 = vmatprep.mubr.msk.f32.mxu1 %vm20804_vm0, %v20805_v1 }
0x2249   :  { %19898 = vmatpush3.bf16.msra.mxu0 %v20994_v12  ;;  %19922 = vmatpush3.bf16.msra.mxu1 %v20998_v13 }
0x224a   :  { %19899 = vmatprep.subr.bf16.mxu0 %v20803_v0  ;;  %19923 = vmatprep.subr.bf16.mxu1 %v20803_v0 }
0x224d   :  { %19901 = vmatpush3.bf16.msra.mxu0 %v21002_v18  ;;  %19925 = vmatpush3.bf16.msra.mxu1 %v21006_v19 }
0x224e   :  { %19902 = vmatprep.subr.bf16.mxu0 %v20803_v0  ;;  %19926 = vmatprep.subr.bf16.mxu1 %v20803_v0 }
0x2251   :  { %19904 = vmatpush3.bf16.msra.mxu0 %v21010_v24  ;;  %19928 = vmatpush3.bf16.msra.mxu1 %v21014_v25 }
0x2252   :  { %19905 = vmatprep.subr.bf16.mxu0 %v20803_v0  ;;  %19929 = vmatprep.subr.bf16.mxu1 %v20803_v0 }
0x22f7   :  { %v11362_v5 = vpop.f32.mrb[120].mxu0  ;;  %v11446_v9 = vpop.f32.mrb[120].mxu1 }
0x22f8   :  { %v13693_v12 = vmul.f32 -1.442695, %v11362_v5  ;;  %v13695_v13 = vmul.f32 -1.442695, %v11446_v9  ;;  %v17737_v62 = vpop.f32.mrb[121].mxu0  ;;  %v17756_v18 = vpop.f32.mrb[121].mxu1 }
0x22f9   :  { %v12107_v5 = vld [vmem:[#allocation13 + $0x28] sm:$0xff]  ;;  %v12193_v9 = vld [vmem:[#allocation14 + $0x20] sm:$0xff]  ;;  %v12108_v18 = vld [vmem:[#allocation13 + $0x30] sm:$0xff] }
0x22fa   :  { %20513 = vpow2.f32 %v13693_v12  ;;  %v19948_v12 = vpack.c.bf16 %v12107_v5, %v12106_v36  ;;  %v12529_v36 = vld [vmem:[#allocation14 + $0x80] sm:$0xff]  ;;  %v12530_v5 = vld [vmem:[#allocation14 + $0x88] sm:$0xff] }
0x22fb   :  { %20515 = vpow2.f32 %v13695_v13  ;;  %v12194_v13 = vld [vmem:[#allocation14 + $0x28] sm:$0xff] }
0x22fc   :  { %v19960_v62 = vpack.c.bf16 %v12194_v13, %v12193_v9 }
0x2304   :  { %v20514_v19 = vpop.eup %20513 }
0x2305   :  { %v20516_v30 = vpop.eup %20515  ;;  %v11369_v3 = vadd.f32 1.0, %v20514_v19  ;;  %v12109_v19 = vld [vmem:[#allocation13 + $0x38] sm:$0xff] }
0x2306   :  { %v11453_v4 = vadd.f32 1.0, %v20516_v30  ;;  %v12195_v30 = vld [vmem:[#allocation14 + $0x30] sm:$0xff] }
0x2307   :  { %v11536_v6 = vpop.f32.mrb[122].mxu0  ;;  %v11620_v24 = vpop.f32.mrb[122].mxu1 }
0x2308   :  { %20517 = vrcp.f32 %v11453_v4  ;;  %v13697_v25 = vmul.f32 -1.442695, %v11536_v6  ;;  %v17775_v7 = vpop.f32.mrb[123].mxu0  ;;  %v17794_v8 = vpop.f32.mrb[123].mxu1  ;;  %v12196_v4 = vld [vmem:[#allocation14 + $0x38] sm:$0xff] }
0x2309   :  { %20519 = vrcp.f32 %v11369_v3  ;;  %v19951_v3 = vpack.c.bf16 %v12109_v19, %v12108_v18  ;;  %v19963_v6 = vpack.c.bf16 %v12196_v4, %v12195_v30  ;;  %v12447_v18 = vld [vmem:[#allocation13 + $0x90] sm:$0xff]  ;;  %v12448_v30 = vld [vmem:[#allocation13 + $0x98] sm:$0xff] }
0x230a   :  { %20521 = vpow2.f32 %v13697_v25  ;;  %v12532_v4 = vld [vmem:[#allocation14 + $0x98] sm:$0xff] }
0x230b   :  { %20523 = vtanh.f32 %v11620_v24 }
0x2312   :  { %v20518_v14 = vpop.eup %20517 }
0x2313   :  { %v20520_v15 = vpop.eup %20519  ;;  %v11456_v20 = vsub.f32 %v20518_v14, %v22473_v2 }
0x2314   :  { %v20522_v21 = vpop.eup %20521 }
0x2315   :  { %v11543_v47 = vadd.f32 1.0, %v20522_v21  ;;  %v11457_v23 = vmul.f32 %v20520_v15, %v11456_v20  ;;  %v20524_v46 = vpop.eup %20523 }
0x2316   :  { %v11625_v59 = vsub.f32 %v20524_v46, %v22491_v52  ;;  %v12366_v46 = vld [vmem:[#allocation14 + $0x58] sm:$0xff] }
0x2317   :  { %20525 = vrcp.f32 %v11543_v47  ;;  %v11702_v53 = vpop.f32.mrb[124].mxu0  ;;  %v11458_v39 = vadd.f32 %v11457_v23, %v22473_v2  ;;  %v11786_v55 = vpop.f32.mrb[124].mxu1  ;;  %v12276_v47 = vld [vmem:[#allocation13 + $0x40] sm:$0xff]  ;;  %v12277_v23 = vld [vmem:[#allocation13 + $0x48] sm:$0xff] }
0x2318   :  { %v13700_v41 = vmul.f32 -1.442695, %v11702_v53  ;;  %v17813_v56 = vpop.f32.mrb[125].mxu0  ;;  %v17832_v54 = vpop.f32.mrb[125].mxu1  ;;  %v11790_v28 = vmax.f32 %v11786_v55, 0.0  ;;  %v12363_v53 = vld [vmem:[#allocation14 + $0x40] sm:$0xff] }
0x2319   :  { %v11798_v57 = vadd.f32 %v11797_v63, %v11458_v39  ;;  %v19966_v39 = vpack.c.bf16 %v12277_v23, %v12276_v47  ;;  %v12364_v55 = vld [vmem:[#allocation14 + $0x48] sm:$0xff]  ;;  %v12279_v56 = vld [vmem:[#allocation13 + $0x58] sm:$0xff]  ;;  %v12365_v54 = vld [vmem:[#allocation14 + $0x50] sm:$0xff] }
0x231a   :  { %20527 = vpow2.f32 %v13700_v41  ;;  %v11791_v29 = vsub.f32 %v11790_v28, %v22473_v2  ;;  %v19978_v63 = vpack.c.bf16 %v12364_v55, %v12363_v53  ;;  %v12278_v41 = vld [vmem:[#allocation13 + $0x50] sm:$0xff]  ;;  %v12611_v23 = vld [vmem:[#allocation13 + $0xc0] sm:$0xff]  ;;  %v12612_v53 = vld [vmem:[#allocation13 + $0xc8] sm:$0xff] }
0x231b   :  { %v12282_v28 = vld [vmem:[#allocation13 + $0x70] sm:$0xff]  ;;  %v12696_v55 = vld [vmem:[#allocation14 + $0xc8] sm:$0xff] }
0x2321   :  { %v20526_v51 = vpop.eup %20525 }
0x2322   :  { %v11626_v61 = vmul.f32 %v20526_v51, %v11625_v59  ;;  %v19981_v59 = vpack.c.bf16 %v12366_v46, %v12365_v54  ;;  %v12280_v51 = vld [vmem:[#allocation13 + $0x60] sm:$0xff]  ;;  %v12614_v54 = vld [vmem:[#allocation13 + $0xd8] sm:$0xff] }
0x2323   :  { %v12698_v46 = vld [vmem:[#allocation14 + $0xd8] sm:$0xff] }
0x2324   :  { %v20528_v17 = vpop.eup %20527  ;;  %v11627_v48 = vadd.f32 %v11626_v61, %v22491_v52  ;;  %v12191_v52 = vld [vmem:[#allocation14 + $0x10] sm:$0xff]  ;;  %v12281_v61 = vld [vmem:[#allocation13 + $0x68] sm:$0xff] }
0x2325   :  { %v11709_v22 = vadd.f32 1.0, %v20528_v17  ;;  %v19957_v42 = vpack.c.bf16 %v12192_v60, %v12191_v52  ;;  %v12367_v17 = vld [vmem:[#allocation14 + $0x60] sm:$0xff] }
0x2326   :  { %v11799_v27 = vadd.f32 %v11798_v57, %v11627_v48  ;;  %v19969_v57 = vpack.c.bf16 %v12279_v56, %v12278_v41  ;;  %v19972_v48 = vpack.c.bf16 %v12281_v61, %v12280_v51  ;;  %v12613_v56 = vld [vmem:[#allocation13 + $0xd0] sm:$0xff]  ;;  %v12615_v61 = vld [vmem:[#allocation13 + $0xe0] sm:$0xff] }
0x2327   :  { %20529 = vrcp.f32 %v11709_v22  ;;  %v12368_v22 = vld [vmem:[#allocation14 + $0x68] sm:$0xff] }
0x2331   :  { %v20530_v33 = vpop.eup %20529 }
0x2332   :  { %v11792_v34 = vmul.f32 %v20530_v33, %v11791_v29  ;;  %v12283_v29 = vld [vmem:[#allocation13 + $0x78] sm:$0xff]  ;;  %v12369_v33 = vld [vmem:[#allocation14 + $0x70] sm:$0xff] }
0x2334   :  { %v11793_v35 = vadd.f32 %v11792_v34, %v22473_v2  ;;  %v12105_v2 = vld [vmem:[#allocation13 + $0x18] sm:$0xff]  ;;  %v19975_v34 = vpack.c.bf16 %v12283_v29, %v12282_v28  ;;  %v12617_v29 = vld [vmem:[#allocation13 + $0xf0] sm:$0xff] }
0x2336   :  { %v11800_v40 = vadd.f32 %v11799_v27, %v11793_v35  ;;  %v19984_v27 = vpack.c.bf16 %v12368_v22, %v12367_v17  ;;  %v12370_v35 = vld [vmem:[#allocation14 + $0x78] sm:$0xff]  ;;  %v12616_v17 = vld [vmem:[#allocation13 + $0xe8] sm:$0xff] }
0x2337   :  { %v12700_v22 = vld [vmem:[#allocation14 + $0xe8] sm:$0xff] }
0x2338   :  { %v22547_v58 = vmul.f32 0.125, %v11800_v40  ;;  %v19987_v40 = vpack.c.bf16 %v12370_v35, %v12369_v33  ;;  %v12618_v33 = vld [vmem:[#allocation13 + $0xf8] sm:$0xff] }
0x2339   :  { %v12702_v35 = vld [vmem:[#allocation14 + $0xf8] sm:$0xff] }
0x233a   :  { %11803 = vst.msk [vmem:[#allocation16 + $0x18] sm:$0xf] %vm1842_vm2, %v22547_v58  ;;  %17850 = vmatmul.mubr.msk.f32.vlgmr.msra.gmra.mrb[126].mxu0 %vm171_vm1, %v22547_v58  ;;  %17888 = vmatmul.mubr.msk.f32.vlgmr.msra.gmra.mrb[126].mxu1 %vm171_vm1, %v22547_v58 }
0x233b   :  { %19907 = vmatpush3.bf16.msra.mxu0 %v21020_v31  ;;  %19931 = vmatpush3.bf16.msra.mxu1 %v21024_v32  ;;  %v11805_v31 = vld [vmem:[#allocation2 + $0x1c] sm:$0xf]  ;;  %v12102_v32 = vld [vmem:[#allocation13] sm:$0xff] }
0x233c   :  { %19908 = vmatprep.subr.bf16.mxu0 %v20803_v0  ;;  %19932 = vmatprep.subr.bf16.mxu1 %v20803_v0 }
0x233d   :  { %17868 = vmatprep.mubr.msk.f32.mxu0 %vm20804_vm0, %v20805_v1  ;;  %17906 = vmatprep.mubr.msk.f32.mxu1 %vm20804_vm0, %v20805_v1 }
0x233f   :  { %19910 = vmatpush3.bf16.msra.mxu0 %v21032_v37  ;;  %19934 = vmatpush3.bf16.msra.mxu1 %v21036_v38  ;;  %v12103_v37 = vld [vmem:[#allocation13 + $0x8] sm:$0xff]  ;;  %v12189_v38 = vld [vmem:[#allocation14] sm:$0xff] }
0x2340   :  { %19911 = vmatprep.subr.bf16.mxu0 %v20803_v0  ;;  %19935 = vmatprep.subr.bf16.mxu1 %v20803_v0 }
0x2343   :  { %19913 = vmatpush3.bf16.msra.mxu0 %v21044_v43  ;;  %19937 = vmatpush3.bf16.msra.mxu1 %v21048_v44  ;;  %v19942_v43 = vpack.c.bf16 %v12103_v37, %v12102_v32  ;;  %v12190_v44 = vld [vmem:[#allocation14 + $0x8] sm:$0xff] }
0x2344   :  { %19914 = vmatprep.subr.bf16.mxu0 %v20803_v0  ;;  %19938 = vmatprep.subr.bf16.mxu1 %v20803_v0 }
0x2347   :  { %19916 = vmatpush3.bf16.msra.mxu0 %v21052_v49  ;;  %19940 = vmatpush3.bf16.msra.mxu1 %v21056_v50  ;;  %v19954_v49 = vpack.c.bf16 %v12190_v44, %v12189_v38  ;;  %v12104_v50 = vld [vmem:[#allocation13 + $0x10] sm:$0xff] }
0x2348   :  { %19941 = vmatprep.subr.bf16.mxu0 %v20803_v0  ;;  %19953 = vmatprep.subr.bf16.mxu1 %v20803_v0  ;;  %v19945_v45 = vpack.c.bf16 %v12105_v2, %v12104_v50 }
0x234a   :  { %17869 = vmatmul.mubr.msk.f32.vlgmr.msra.gmra.mrb[126].mxu0 %vm171_vm1, %v11805_v31  ;;  %17907 = vmatmul.mubr.msk.f32.vlgmr.msra.gmra.mrb[126].mxu1 %vm171_vm1, %v11805_v31 }
0x234b   :  { %17925 = vmatprep.mubr.msk.f32.mxu0 %vm20804_vm0, %v20805_v1  ;;  %17944 = vmatprep.mubr.msk.f32.mxu1 %vm20804_vm0, %v20805_v1 }
0x234c   :  { %19943 = vmatpush3.bf16.msra.mxu0 %v19942_v43  ;;  %19955 = vmatpush3.bf16.msra.mxu1 %v19954_v49 }
0x234d   :  { %19944 = vmatprep.subr.bf16.mxu0 %v20803_v0  ;;  %19956 = vmatprep.subr.bf16.mxu1 %v20803_v0 }
0x2350   :  { %19946 = vmatpush3.bf16.msra.mxu0 %v19945_v45  ;;  %19958 = vmatpush3.bf16.msra.mxu1 %v19957_v42  ;;  %v12445_v45 = vld [vmem:[#allocation13 + $0x80] sm:$0xff]  ;;  %v12446_v42 = vld [vmem:[#allocation13 + $0x88] sm:$0xff] }
0x2351   :  { %19947 = vmatprep.subr.bf16.mxu0 %v20803_v0  ;;  %19959 = vmatprep.subr.bf16.mxu1 %v20803_v0  ;;  %v19990_v13 = vpack.c.bf16 %v12446_v42, %v12445_v45  ;;  %v12866_v45 = vld [vmem:[#allocation14 + $0x118] sm:$0xff]  ;;  %v12780_v42 = vld [vmem:[#allocation13 + $0x120] sm:$0xff] }
0x2354   :  { %19949 = vmatpush3.bf16.msra.mxu0 %v19948_v12  ;;  %19961 = vmatpush3.bf16.msra.mxu1 %v19960_v62  ;;  %v20002_v62 = vpack.c.bf16 %v12530_v5, %v12529_v36  ;;  %v12781_v36 = vld [vmem:[#allocation13 + $0x128] sm:$0xff]  ;;  %v12867_v5 = vld [vmem:[#allocation14 + $0x120] sm:$0xff] }
0x2355   :  { %19950 = vmatprep.subr.bf16.mxu0 %v20803_v0  ;;  %19962 = vmatprep.subr.bf16.mxu1 %v20803_v0 }
0x2358   :  { %19952 = vmatpush3.bf16.msra.mxu0 %v19951_v3  ;;  %19964 = vmatpush3.bf16.msra.mxu1 %v19963_v6  ;;  %v12531_v3 = vld [vmem:[#allocation14 + $0x90] sm:$0xff]  ;;  %v19993_v6 = vpack.c.bf16 %v12448_v30, %v12447_v18  ;;  %v12783_v18 = vld [vmem:[#allocation13 + $0x138] sm:$0xff] }
0x2359   :  { %19965 = vmatprep.subr.bf16.mxu0 %v20803_v0  ;;  %19977 = vmatprep.subr.bf16.mxu1 %v20803_v0  ;;  %v12869_v30 = vld [vmem:[#allocation14 + $0x130] sm:$0xff] }
0x241d   :  { %v11948_v24 = vpop.f32.mrb[126].mxu0  ;;  %v12094_v25 = vpop.f32.mrb[126].mxu1 }
0x241e   :  { %v13704_v7 = vmul.f32 -1.442695, %v11948_v24  ;;  %v17870_v8 = vpop.f32.mrb[127].mxu0  ;;  %v17908_v10 = vpop.f32.mrb[127].mxu1  ;;  %v20005_v24 = vpack.c.bf16 %v12532_v4, %v12531_v3  ;;  %v12870_v4 = vld [vmem:[#allocation14 + $0x138] sm:$0xff] }
0x241f   :  { %v12533_v8 = vld [vmem:[#allocation14 + $0xa0] sm:$0xff]  ;;  %v12534_v10 = vld [vmem:[#allocation14 + $0xa8] sm:$0xff] }
0x2420   :  { %20531 = vpow2.f32 %v13704_v7  ;;  %v12450_v7 = vld [vmem:[#allocation13 + $0xa8] sm:$0xff] }
0x2421   :  { %20533 = vtanh.f32 %v12094_v25  ;;  %v12449_v25 = vld [vmem:[#allocation13 + $0xa0] sm:$0xff] }
0x242a   :  { %v20532_v11 = vpop.eup %20531 }
0x242b   :  { %v11955_v14 = vadd.f32 1.0, %v20532_v11  ;;  %v20534_v15 = vpop.eup %20533  ;;  %v19996_v11 = vpack.c.bf16 %v12450_v7, %v12449_v25 }
0x242c   :  { %v12099_v16 = vsub.f32 %v20534_v15, %v22547_v58  ;;  %v12451_v15 = vld [vmem:[#allocation13 + $0xb0] sm:$0xff] }
0x242d   :  { %20535 = vrcp.f32 %v11955_v14  ;;  %v20008_v14 = vpack.c.bf16 %v12534_v10, %v12533_v8 }
0x2437   :  { %v20536_v20 = vpop.eup %20535 }
0x2438   :  { %v12100_v21 = vmul.f32 %v20536_v20, %v12099_v16  ;;  %v12452_v16 = vld [vmem:[#allocation13 + $0xb8] sm:$0xff]  ;;  %v12535_v20 = vld [vmem:[#allocation14 + $0xb0] sm:$0xff] }
0x243a   :  { %v22591_v26 = vadd.f32 %v12100_v21, %v22547_v58  ;;  %v12536_v21 = vld [vmem:[#allocation14 + $0xb8] sm:$0xff] }
0x243b   :  { %v20011_v47 = vpack.c.bf16 %v12536_v21, %v12535_v20 }
0x243c   :  { %17926 = vmatmul.mubr.msk.f32.vlgmr.msra.gmra.mrb[128].mxu0 %vm171_vm1, %v22591_v26  ;;  %17945 = vmatmul.mubr.msk.f32.vlgmr.msra.gmra.mrb[128].mxu1 %vm171_vm1, %v22591_v26 }
0x243d   :  { %17963 = vmatprep.mubr.msk.f32.mxu0 %vm20804_vm0, %v20805_v1  ;;  %17982 = vmatprep.mubr.msk.f32.mxu1 %vm20804_vm0, %v20805_v1 }
0x243e   :  { %19967 = vmatpush3.bf16.msra.mxu0 %v19966_v39  ;;  %19979 = vmatpush3.bf16.msra.mxu1 %v19978_v63  ;;  %v12695_v39 = vld [vmem:[#allocation14 + $0xc0] sm:$0xff]  ;;  %v20014_v63 = vpack.c.bf16 %v12612_v53, %v12611_v23 }
0x243f   :  { %19968 = vmatprep.subr.bf16.mxu0 %v20803_v0  ;;  %19980 = vmatprep.subr.bf16.mxu1 %v20803_v0  ;;  %v20026_v41 = vpack.c.bf16 %v12696_v55, %v12695_v39 }
0x2442   :  { %19970 = vmatpush3.bf16.msra.mxu0 %v19969_v57  ;;  %19982 = vmatpush3.bf16.msra.mxu1 %v19981_v59  ;;  %v12697_v57 = vld [vmem:[#allocation14 + $0xd0] sm:$0xff]  ;;  %v20017_v59 = vpack.c.bf16 %v12614_v54, %v12613_v56 }
0x2443   :  { %19971 = vmatprep.subr.bf16.mxu0 %v20803_v0  ;;  %19983 = vmatprep.subr.bf16.mxu1 %v20803_v0  ;;  %v20029_v51 = vpack.c.bf16 %v12698_v46, %v12697_v57 }
0x2446   :  { %19973 = vmatpush3.bf16.msra.mxu0 %v19972_v48  ;;  %19985 = vmatpush3.bf16.msra.mxu1 %v19984_v27  ;;  %v12699_v48 = vld [vmem:[#allocation14 + $0xe0] sm:$0xff]  ;;  %v20020_v27 = vpack.c.bf16 %v12616_v17, %v12615_v61 }
0x2447   :  { %19974 = vmatprep.subr.bf16.mxu0 %v20803_v0  ;;  %19986 = vmatprep.subr.bf16.mxu1 %v20803_v0  ;;  %v20032_v28 = vpack.c.bf16 %v12700_v22, %v12699_v48 }
0x244a   :  { %19976 = vmatpush3.bf16.msra.mxu0 %v19975_v34  ;;  %19988 = vmatpush3.bf16.msra.mxu1 %v19987_v40  ;;  %v12701_v34 = vld [vmem:[#allocation14 + $0xf0] sm:$0xff]  ;;  %v20023_v40 = vpack.c.bf16 %v12618_v33, %v12617_v29 }
0x244b   :  { %19989 = vmatprep.subr.bf16.mxu0 %v20803_v0  ;;  %20001 = vmatprep.subr.bf16.mxu1 %v20803_v0 }
0x250f   :  { %v12179_v58 = vpop.f32.mrb[128].mxu0  ;;  %v12263_v31 = vpop.f32.mrb[128].mxu1 }
0x2510   :  { %v13708_v32 = vmul.f32 -1.442695, %v12179_v58  ;;  %v13710_v37 = vmul.f32 -1.442695, %v12263_v31  ;;  %v17927_v38 = vpop.f32.mrb[129].mxu0  ;;  %v17946_v43 = vpop.f32.mrb[129].mxu1  ;;  %v20035_v58 = vpack.c.bf16 %v12702_v35, %v12701_v34 }
0x2511   :  { %v12776_v31 = vld [vmem:[#allocation13 + $0x100] sm:$0xff]  ;;  %v12864_v43 = vld [vmem:[#allocation14 + $0x108] sm:$0xff] }
0x2512   :  { %20537 = vpow2.f32 %v13708_v32  ;;  %v12777_v32 = vld [vmem:[#allocation13 + $0x108] sm:$0xff]  ;;  %v12945_v34 = vld [vmem:[#allocation13 + $0x140] sm:$0xff] }
0x2513   :  { %20539 = vpow2.f32 %v13710_v37  ;;  %v12863_v37 = vld [vmem:[#allocation14 + $0x100] sm:$0xff]  ;;  %v20038_v38 = vpack.c.bf16 %v12777_v32, %v12776_v31  ;;  %v12946_v35 = vld [vmem:[#allocation13 + $0x148] sm:$0xff] }
0x2514   :  { %v13033_v31 = vld [vmem:[#allocation14 + $0x148] sm:$0xff] }
0x251c   :  { %v20538_v44 = vpop.eup %20537 }
0x251d   :  { %v20540_v49 = vpop.eup %20539  ;;  %v12186_v50 = vadd.f32 1.0, %v20538_v44  ;;  %v20050_v44 = vpack.c.bf16 %v12864_v43, %v12863_v37  ;;  %v12947_v37 = vld [vmem:[#allocation13 + $0x150] sm:$0xff] }
0x251e   :  { %v12270_v2 = vadd.f32 1.0, %v20540_v49  ;;  %v12778_v49 = vld [vmem:[#allocation13 + $0x110] sm:$0xff] }
0x251f   :  { %v13034_v43 = vld [vmem:[#allocation14 + $0x150] sm:$0xff] }
0x2520   :  { %20541 = vrcp.f32 %v12270_v2  ;;  %v12865_v2 = vld [vmem:[#allocation14 + $0x110] sm:$0xff] }
0x2521   :  { %20543 = vrcp.f32 %v12186_v50  ;;  %v12779_v50 = vld [vmem:[#allocation13 + $0x118] sm:$0xff] }
0x252a   :  { %v20542_v52 = vpop.eup %20541 }
0x252b   :  { %v12273_v60 = vsub.f32 %v20542_v52, %v22591_v26  ;;  %v20544_v9 = vpop.eup %20543  ;;  %v20041_v52 = vpack.c.bf16 %v12779_v50, %v12778_v49  ;;  %v13035_v49 = vld [vmem:[#allocation14 + $0x158] sm:$0xff] }
0x252c   :  { %v20077_v50 = vpack.c.bf16 %v13035_v49, %v13034_v43  ;;  %v13290_v43 = vld [vmem:[#allocation13 + $0x1d0] sm:$0xff]  ;;  %v13291_v49 = vld [vmem:[#allocation13 + $0x1d8] sm:$0xff] }
0x252d   :  { %v12274_v12 = vmul.f32 %v20544_v9, %v12273_v60  ;;  %v20053_v60 = vpack.c.bf16 %v12866_v45, %v12865_v2  ;;  %v20044_v9 = vpack.c.bf16 %v12781_v36, %v12780_v42  ;;  %v12949_v2 = vld [vmem:[#allocation13 + $0x160] sm:$0xff]  ;;  %v13037_v42 = vld [vmem:[#allocation14 + $0x168] sm:$0xff] }
0x252e   :  { %v13036_v45 = vld [vmem:[#allocation14 + $0x160] sm:$0xff] }
0x252f   :  { %v22611_v19 = vadd.f32 %v12274_v12, %v22591_v26  ;;  %v19999_v26 = vpack.c.bf16 %v12452_v16, %v12451_v15  ;;  %v12868_v12 = vld [vmem:[#allocation14 + $0x128] sm:$0xff]  ;;  %v20080_v36 = vpack.c.bf16 %v13037_v42, %v13036_v45  ;;  %v13376_v42 = vld [vmem:[#allocation14 + $0x1e0] sm:$0xff] }
0x2531   :  { %17964 = vmatmul.mubr.msk.f32.vlgmr.msra.gmra.mrb[130].mxu0 %vm171_vm1, %v22611_v19  ;;  %17983 = vmatmul.mubr.msk.f32.vlgmr.msra.gmra.mrb[130].mxu1 %vm171_vm1, %v22611_v19 }
0x2532   :  { %19991 = vmatpush3.bf16.msra.mxu0 %v19990_v13  ;;  %20003 = vmatpush3.bf16.msra.mxu1 %v20002_v62  ;;  %v20056_v13 = vpack.c.bf16 %v12868_v12, %v12867_v5  ;;  %v12782_v62 = vld [vmem:[#allocation13 + $0x130] sm:$0xff] }
0x2533   :  { %19992 = vmatprep.subr.bf16.mxu0 %v20803_v0  ;;  %20004 = vmatprep.subr.bf16.mxu1 %v20803_v0  ;;  %v20047_v3 = vpack.c.bf16 %v12783_v18, %v12782_v62  ;;  %v12951_v5 = vld [vmem:[#allocation13 + $0x170] sm:$0xff]  ;;  %v13039_v62 = vld [vmem:[#allocation14 + $0x178] sm:$0xff] }
0x2534   :  { %18001 = vmatprep.mubr.msk.f32.mxu0 %vm20804_vm0, %v20805_v1  ;;  %18020 = vmatprep.mubr.msk.f32.mxu1 %vm20804_vm0, %v20805_v1  ;;  %v13038_v12 = vld [vmem:[#allocation14 + $0x170] sm:$0xff] }
0x2535   :  { %v20083_v18 = vpack.c.bf16 %v13039_v62, %v13038_v12  ;;  %v13294_v12 = vld [vmem:[#allocation13 + $0x1f0] sm:$0xff] }
0x2536   :  { %19994 = vmatpush3.bf16.msra.mxu0 %v19993_v6  ;;  %20006 = vmatpush3.bf16.msra.mxu1 %v20005_v24  ;;  %v20059_v6 = vpack.c.bf16 %v12870_v4, %v12869_v30  ;;  %v13378_v62 = vld [vmem:[#allocation14 + $0x1f0] sm:$0xff] }
0x2537   :  { %19995 = vmatprep.subr.bf16.mxu0 %v20803_v0  ;;  %20007 = vmatprep.subr.bf16.mxu1 %v20803_v0 }
0x253a   :  { %19997 = vmatpush3.bf16.msra.mxu0 %v19996_v11  ;;  %20009 = vmatpush3.bf16.msra.mxu1 %v20008_v14 }
0x253b   :  { %19998 = vmatprep.subr.bf16.mxu0 %v20803_v0  ;;  %20010 = vmatprep.subr.bf16.mxu1 %v20803_v0 }
0x253e   :  { %20000 = vmatpush3.bf16.msra.mxu0 %v19999_v26  ;;  %20012 = vmatpush3.bf16.msra.mxu1 %v20011_v47 }
0x253f   :  { %20013 = vmatprep.subr.bf16.mxu0 %v20803_v0  ;;  %20025 = vmatprep.subr.bf16.mxu1 %v20803_v0 }
0x2541   :  { %18002 = vmatmul.mubr.msk.f32.vlgmr.msra.gmra.mrb[132].mxu0 %vm171_vm1, %v22611_v19  ;;  %18021 = vmatmul.mubr.msk.f32.vlgmr.msra.gmra.mrb[132].mxu1 %vm171_vm1, %v22611_v19 }
0x2542   :  { %20015 = vmatpush3.bf16.msra.mxu0 %v20014_v63  ;;  %20027 = vmatpush3.bf16.msra.mxu1 %v20026_v41 }
0x2543   :  { %20016 = vmatprep.subr.bf16.mxu0 %v20803_v0  ;;  %20028 = vmatprep.subr.bf16.mxu1 %v20803_v0 }
0x2544   :  { %18039 = vmatprep.mubr.msk.f32.mxu0 %vm20804_vm0, %v20805_v1  ;;  %18058 = vmatprep.mubr.msk.f32.mxu1 %vm20804_vm0, %v20805_v1 }
0x2546   :  { %20018 = vmatpush3.bf16.msra.mxu0 %v20017_v59  ;;  %20030 = vmatpush3.bf16.msra.mxu1 %v20029_v51 }
0x2547   :  { %20019 = vmatprep.subr.bf16.mxu0 %v20803_v0  ;;  %20031 = vmatprep.subr.bf16.mxu1 %v20803_v0 }
0x254a   :  { %20021 = vmatpush3.bf16.msra.mxu0 %v20020_v27  ;;  %20033 = vmatpush3.bf16.msra.mxu1 %v20032_v28 }
0x254b   :  { %20022 = vmatprep.subr.bf16.mxu0 %v20803_v0  ;;  %20034 = vmatprep.subr.bf16.mxu1 %v20803_v0 }
0x254e   :  { %20024 = vmatpush3.bf16.msra.mxu0 %v20023_v40  ;;  %20036 = vmatpush3.bf16.msra.mxu1 %v20035_v58  ;;  %v13032_v40 = vld [vmem:[#allocation14 + $0x140] sm:$0xff]  ;;  %v20062_v58 = vpack.c.bf16 %v12946_v35, %v12945_v34 }
0x254f   :  { %20037 = vmatprep.subr.bf16.mxu0 %v20803_v0  ;;  %20049 = vmatprep.subr.bf16.mxu1 %v20803_v0  ;;  %v20074_v32 = vpack.c.bf16 %v13033_v31, %v13032_v40  ;;  %v13288_v40 = vld [vmem:[#allocation13 + $0x1c0] sm:$0xff] }
0x2550   :  { %v13372_v31 = vld [vmem:[#allocation14 + $0x1c0] sm:$0xff] }
0x2551   :  { %18040 = vmatmul.mubr.msk.f32.vlgmr.msra.gmra.mrb[134].mxu0 %vm171_vm1, %v22611_v19  ;;  %18059 = vmatmul.mubr.msk.f32.vlgmr.msra.gmra.mrb[134].mxu1 %vm171_vm1, %v22611_v19 }
0x2552   :  { %18077 = vmatprep.mubr.msk.f32.mxu0 %vm20804_vm0, %v20805_v1  ;;  %18096 = vmatprep.mubr.msk.f32.mxu1 %vm20804_vm0, %v20805_v1 }
0x2553   :  { %20039 = vmatpush3.bf16.msra.mxu0 %v20038_v38  ;;  %20051 = vmatpush3.bf16.msra.mxu1 %v20050_v44  ;;  %v12948_v38 = vld [vmem:[#allocation13 + $0x158] sm:$0xff] }
0x2554   :  { %20040 = vmatprep.subr.bf16.mxu0 %v20803_v0  ;;  %20052 = vmatprep.subr.bf16.mxu1 %v20803_v0  ;;  %v20065_v44 = vpack.c.bf16 %v12948_v38, %v12947_v37 }
0x2557   :  { %20042 = vmatpush3.bf16.msra.mxu0 %v20041_v52  ;;  %20054 = vmatpush3.bf16.msra.mxu1 %v20053_v60  ;;  %v12950_v52 = vld [vmem:[#allocation13 + $0x168] sm:$0xff] }
0x2558   :  { %20043 = vmatprep.subr.bf16.mxu0 %v20803_v0  ;;  %20055 = vmatprep.subr.bf16.mxu1 %v20803_v0  ;;  %v20068_v60 = vpack.c.bf16 %v12950_v52, %v12949_v2  ;;  %v13375_v2 = vld [vmem:[#allocation14 + $0x1d8] sm:$0xff]  ;;  %v20113_v52 = vpack.c.bf16 %v13291_v49, %v13290_v43 }
0x255b   :  { %20045 = vmatpush3.bf16.msra.mxu0 %v20044_v9  ;;  %20057 = vmatpush3.bf16.msra.mxu1 %v20056_v13  ;;  %v12952_v9 = vld [vmem:[#allocation13 + $0x178] sm:$0xff] }
0x255c   :  { %20046 = vmatprep.subr.bf16.mxu0 %v20803_v0  ;;  %20058 = vmatprep.subr.bf16.mxu1 %v20803_v0  ;;  %v20071_v13 = vpack.c.bf16 %v12952_v9, %v12951_v5 }
0x255f   :  { %20048 = vmatpush3.bf16.msra.mxu0 %v20047_v3  ;;  %20060 = vmatpush3.bf16.msra.mxu1 %v20059_v6 }
0x2560   :  { %20061 = vmatprep.subr.bf16.mxu0 %v20803_v0  ;;  %20073 = vmatprep.subr.bf16.mxu1 %v20803_v0 }
0x2604   :  { %v12353_v24 = vpop.f32.mrb[130].mxu0  ;;  %v12437_v25 = vpop.f32.mrb[130].mxu1 }
0x2605   :  { %v13712_v7 = vmul.f32 -1.442695, %v12353_v24  ;;  %v17965_v8 = vpop.f32.mrb[131].mxu0  ;;  %v17984_v10 = vpop.f32.mrb[131].mxu1  ;;  %v12441_v47 = vmax.f32 %v12437_v25, 0.0 }
0x2606   :  { %v13119_v10 = vld [vmem:[#allocation13 + $0x180] sm:$0xff] }
0x2607   :  { %20545 = vpow2.f32 %v13712_v7  ;;  %v12442_v23 = vsub.f32 %v12441_v47, %v22611_v19 }
0x2611   :  { %v20546_v11 = vpop.eup %20545 }
0x2612   :  { %v12360_v14 = vadd.f32 1.0, %v20546_v11 }
0x2614   :  { %20547 = vrcp.f32 %v12360_v14  ;;  %v12519_v15 = vpop.f32.mrb[132].mxu0  ;;  %v12603_v16 = vpop.f32.mrb[132].mxu1  ;;  %v13120_v14 = vld [vmem:[#allocation13 + $0x188] sm:$0xff] }
0x2615   :  { %v13715_v20 = vmul.f32 -1.442695, %v12519_v15  ;;  %v18003_v21 = vpop.f32.mrb[133].mxu0  ;;  %v18022_v26 = vpop.f32.mrb[133].mxu1  ;;  %v12607_v51 = vmax.f32 %v12603_v16, 0.0  ;;  %v13206_v15 = vld [vmem:[#allocation14 + $0x180] sm:$0xff] }
0x2616   :  { %v13207_v16 = vld [vmem:[#allocation14 + $0x188] sm:$0xff]  ;;  %v20086_v26 = vpack.c.bf16 %v13120_v14, %v13119_v10 }
0x2617   :  { %20549 = vpow2.f32 %v13715_v20  ;;  %v12608_v61 = vsub.f32 %v12607_v51, %v22611_v19  ;;  %v20098_v47 = vpack.c.bf16 %v13207_v16, %v13206_v15  ;;  %v13211_v51 = vld [vmem:[#allocation14 + $0x1a8] sm:$0xff] }
0x261e   :  { %v20548_v53 = vpop.eup %20547 }
0x261f   :  { %v12443_v39 = vmul.f32 %v20548_v53, %v12442_v23  ;;  %v13121_v23 = vld [vmem:[#allocation13 + $0x190] sm:$0xff] }
0x2621   :  { %v20550_v55 = vpop.eup %20549  ;;  %v22663_v63 = vadd.f32 %v12443_v39, %v22611_v19  ;;  %v13122_v39 = vld [vmem:[#allocation13 + $0x198] sm:$0xff] }
0x2622   :  { %v12526_v41 = vadd.f32 1.0, %v20550_v55  ;;  %v13208_v55 = vld [vmem:[#allocation14 + $0x190] sm:$0xff] }
0x2623   :  { %18078 = vmatmul.mubr.msk.f32.vlgmr.msra.gmra.mrb[136].mxu0 %vm171_vm1, %v22663_v63  ;;  %18097 = vmatmul.mubr.msk.f32.vlgmr.msra.gmra.mrb[136].mxu1 %vm171_vm1, %v22663_v63 }
0x2624   :  { %20551 = vrcp.f32 %v12526_v41  ;;  %v12685_v56 = vpop.f32.mrb[134].mxu0  ;;  %v12769_v54 = vpop.f32.mrb[134].mxu1  ;;  %18115 = vmatprep.mubr.msk.f32.mxu0 %vm20804_vm0, %v20805_v1  ;;  %18134 = vmatprep.mubr.msk.f32.mxu1 %vm20804_vm0, %v20805_v1  ;;  %v13209_v41 = vld [vmem:[#allocation14 + $0x198] sm:$0xff] }
0x2625   :  { %v13718_v57 = vmul.f32 -1.442695, %v12685_v56  ;;  %v18041_v46 = vpop.f32.mrb[135].mxu0  ;;  %v18060_v59 = vpop.f32.mrb[135].mxu1  ;;  %v12773_v28 = vsub.f32 %v12769_v54, %v22611_v19  ;;  %20063 = vmatpush3.bf16.msra.mxu0 %v20062_v58  ;;  %20075 = vmatpush3.bf16.msra.mxu1 %v20074_v32  ;;  %v20089_v56 = vpack.c.bf16 %v13122_v39, %v13121_v23  ;;  %v20101_v54 = vpack.c.bf16 %v13209_v41, %v13208_v55  ;;  %v13289_v58 = vld [vmem:[#allocation13 + $0x1c8] sm:$0xff] }
0x2626   :  { %20064 = vmatprep.subr.bf16.mxu0 %v20803_v0  ;;  %20076 = vmatprep.subr.bf16.mxu1 %v20803_v0  ;;  %v13124_v46 = vld [vmem:[#allocation13 + $0x1a8] sm:$0xff]  ;;  %v13210_v59 = vld [vmem:[#allocation14 + $0x1a0] sm:$0xff]  ;;  %v20110_v37 = vpack.c.bf16 %v13289_v58, %v13288_v40 }
0x2627   :  { %20553 = vpow2.f32 %v13718_v57  ;;  %v13123_v57 = vld [vmem:[#allocation13 + $0x1a0] sm:$0xff]  ;;  %v13373_v32 = vld [vmem:[#allocation14 + $0x1c8] sm:$0xff] }
0x2628   :  { %v20122_v38 = vpack.c.bf16 %v13373_v32, %v13372_v31 }
0x2629   :  { %20066 = vmatpush3.bf16.msra.mxu0 %v20065_v44  ;;  %20078 = vmatpush3.bf16.msra.mxu1 %v20077_v50  ;;  %v13374_v50 = vld [vmem:[#allocation14 + $0x1d0] sm:$0xff] }
0x262a   :  { %20067 = vmatprep.subr.bf16.mxu0 %v20803_v0  ;;  %20079 = vmatprep.subr.bf16.mxu1 %v20803_v0  ;;  %v20125_v45 = vpack.c.bf16 %v13375_v2, %v13374_v50 }
0x262d   :  { %20069 = vmatpush3.bf16.msra.mxu0 %v20068_v60  ;;  %20081 = vmatpush3.bf16.msra.mxu1 %v20080_v36  ;;  %v13292_v60 = vld [vmem:[#allocation13 + $0x1e0] sm:$0xff]  ;;  %v13377_v36 = vld [vmem:[#allocation14 + $0x1e8] sm:$0xff] }
0x262e   :  { %v20552_v17 = vpop.eup %20551  ;;  %20070 = vmatprep.subr.bf16.mxu0 %v20803_v0  ;;  %20082 = vmatprep.subr.bf16.mxu1 %v20803_v0  ;;  %v20128_v9 = vpack.c.bf16 %v13377_v36, %v13376_v42 }
0x262f   :  { %v22674_v48 = vmul.f32 %v20552_v17, %v12608_v61  ;;  %v20092_v61 = vpack.c.bf16 %v13124_v46, %v13123_v57  ;;  %v20104_v17 = vpack.c.bf16 %v13211_v51, %v13210_v59 }
0x2631   :  { %v20554_v22 = vpop.eup %20553  ;;  %20072 = vmatpush3.bf16.msra.mxu0 %v20071_v13  ;;  %20084 = vmatpush3.bf16.msra.mxu1 %v20083_v18  ;;  %v22707_v44 = vadd.f32 %v22674_v48, %v22611_v19  ;;  %v13293_v48 = vld [vmem:[#allocation13 + $0x1e8] sm:$0xff]  ;;  %v13295_v13 = vld [vmem:[#allocation13 + $0x1f8] sm:$0xff] }
0x2632   :  { %v12692_v27 = vadd.f32 1.0, %v20554_v22  ;;  %20085 = vmatprep.subr.bf16.mxu0 %v20803_v0  ;;  %20097 = vmatprep.subr.bf16.mxu1 %v20803_v0  ;;  %v13125_v22 = vld [vmem:[#allocation13 + $0x1b0] sm:$0xff]  ;;  %v20116_v5 = vpack.c.bf16 %v13293_v48, %v13292_v60  ;;  %v13379_v18 = vld [vmem:[#allocation14 + $0x1f8] sm:$0xff] }
0x2634   :  { %20555 = vrcp.f32 %v12692_v27  ;;  %v13126_v27 = vld [vmem:[#allocation13 + $0x1b8] sm:$0xff] }
0x2635   :  { %v20095_v34 = vpack.c.bf16 %v13126_v27, %v13125_v22 }
0x263e   :  { %v20556_v29 = vpop.eup %20555 }
0x263f   :  { %v22677_v33 = vmul.f32 %v20556_v29, %v12773_v28  ;;  %v13212_v28 = vld [vmem:[#allocation14 + $0x1b0] sm:$0xff]  ;;  %v13213_v29 = vld [vmem:[#allocation14 + $0x1b8] sm:$0xff] }
0x2640   :  { %v20107_v35 = vpack.c.bf16 %v13213_v29, %v13212_v28 }
0x26f6   :  { %v12853_v30 = vpop.f32.mrb[136].mxu0  ;;  %v12937_v3 = vpop.f32.mrb[136].mxu1 }
0x26f7   :  { %v13721_v4 = vmul.f32 -1.442695, %v12853_v30  ;;  %v18079_v6 = vpop.f32.mrb[137].mxu0  ;;  %v18098_v24 = vpop.f32.mrb[137].mxu1  ;;  %v20119_v30 = vpack.c.bf16 %v13295_v13, %v13294_v12 }
0x26f9   :  { %20557 = vpow2.f32 %v13721_v4 }
0x26fa   :  { %20559 = vtanh.f32 %v12937_v3  ;;  %v20131_v3 = vpack.c.bf16 %v13379_v18, %v13378_v62 }
0x2703   :  { %v20558_v25 = vpop.eup %20557 }
0x2704   :  { %v12860_v7 = vadd.f32 1.0, %v20558_v25  ;;  %v20560_v8 = vpop.eup %20559 }
0x2705   :  { %v12942_v11 = vsub.f32 %v20560_v8, %v22663_v63 }
0x2706   :  { %20561 = vrcp.f32 %v12860_v7 }
0x2710   :  { %v20562_v20 = vpop.eup %20561 }
0x2711   :  { %v12943_v21 = vmul.f32 %v20562_v20, %v12942_v11 }
0x2713   :  { %v22689_v53 = vadd.f32 %v12943_v21, %v22663_v63 }
0x2715   :  { %18116 = vmatmul.mubr.msk.f32.vlgmr.msra.gmra.mrb[138].mxu0 %vm171_vm1, %v22689_v53  ;;  %18135 = vmatmul.mubr.msk.f32.vlgmr.msra.gmra.mrb[138].mxu1 %vm171_vm1, %v22689_v53 }
0x2716   :  { %20087 = vmatpush3.bf16.msra.mxu0 %v20086_v26  ;;  %20099 = vmatpush3.bf16.msra.mxu1 %v20098_v47  ;;  %v12775_v26 = vadd.f32 %v22677_v33, %v22611_v19  ;;  %v13454_v47 = vadd.f32 %v22663_v63, %v22611_v19 }
0x2717   :  { %20088 = vmatprep.subr.bf16.mxu0 %v20803_v0  ;;  %20100 = vmatprep.subr.bf16.mxu1 %v20803_v0 }
0x2718   :  { %18153 = vmatprep.mubr.msk.f32.mxu0 %vm20804_vm0, %v20805_v1  ;;  %18172 = vmatprep.mubr.msk.f32.mxu1 %vm20804_vm0, %v20805_v1  ;;  %v13455_v55 = vadd.f32 %v13454_v47, %v22707_v44 }
0x271a   :  { %20090 = vmatpush3.bf16.msra.mxu0 %v20089_v56  ;;  %20102 = vmatpush3.bf16.msra.mxu1 %v20101_v54  ;;  %v13456_v54 = vadd.f32 %v13455_v55, %v12775_v26 }
0x271b   :  { %20091 = vmatprep.subr.bf16.mxu0 %v20803_v0  ;;  %20103 = vmatprep.subr.bf16.mxu1 %v20803_v0 }
0x271c   :  { %v13457_v33 = vadd.f32 %v13456_v54, %v22689_v53 }
0x271e   :  { %20093 = vmatpush3.bf16.msra.mxu0 %v20092_v61  ;;  %20105 = vmatpush3.bf16.msra.mxu1 %v20104_v17 }
0x271f   :  { %20094 = vmatprep.subr.bf16.mxu0 %v20803_v0  ;;  %20106 = vmatprep.subr.bf16.mxu1 %v20803_v0 }
0x2722   :  { %20096 = vmatpush3.bf16.msra.mxu0 %v20095_v34  ;;  %20108 = vmatpush3.bf16.msra.mxu1 %v20107_v35 }
0x2723   :  { %20109 = vmatprep.subr.bf16.mxu0 %v20803_v0  ;;  %20121 = vmatprep.subr.bf16.mxu1 %v20803_v0 }
0x2725   :  { %18154 = vmatmul.mubr.msk.f32.vlgmr.msra.gmra.mrb[140].mxu0 %vm171_vm1, %v22707_v44  ;;  %18173 = vmatmul.mubr.msk.f32.vlgmr.msra.gmra.mrb[140].mxu1 %vm171_vm1, %v22707_v44 }
0x2726   :  { %20111 = vmatpush3.bf16.msra.mxu0 %v20110_v37  ;;  %20123 = vmatpush3.bf16.msra.mxu1 %v20122_v38 }
0x2727   :  { %20112 = vmatprep.subr.bf16.mxu0 %v20803_v0  ;;  %20124 = vmatprep.subr.bf16.mxu1 %v20803_v0 }
0x2728   :  { %18191 = vmatprep.mubr.msk.f32.mxu0 %vm20804_vm0, %v20805_v1  ;;  %18210 = vmatprep.mubr.msk.f32.mxu1 %vm20804_vm0, %v20805_v1 }
0x272a   :  { %20114 = vmatpush3.bf16.msra.mxu0 %v20113_v52  ;;  %20126 = vmatpush3.bf16.msra.mxu1 %v20125_v45 }
0x272b   :  { %20115 = vmatprep.subr.bf16.mxu0 %v20803_v0  ;;  %20127 = vmatprep.subr.bf16.mxu1 %v20803_v0 }
0x272e   :  { %20117 = vmatpush3.bf16.msra.mxu0 %v20116_v5  ;;  %20129 = vmatpush3.bf16.msra.mxu1 %v20128_v9 }
0x272f   :  { %20118 = vmatprep.subr.bf16.mxu0 %v20803_v0  ;;  %20130 = vmatprep.subr.bf16.mxu1 %v20803_v0 }
0x2732   :  { %20120 = vmatpush3.bf16.msra.mxu0 %v20119_v30  ;;  %20132 = vmatpush3.bf16.msra.mxu1 %v20131_v3 }
0x2735   :  { %18192 = vmatmul.mubr.msk.f32.vlgmr.msra.gmra.mrb[142].mxu0 %vm171_vm1, %v22689_v53  ;;  %18211 = vmatmul.mubr.msk.f32.vlgmr.msra.gmra.mrb[142].mxu1 %vm171_vm1, %v22689_v53 }
0x27e8   :  { %v13022_v1 = vpop.f32.mrb[138].mxu0  ;;  %v13106_v4 = vpop.f32.mrb[138].mxu1 }
0x27e9   :  { %v13724_v6 = vmul.f32 -1.442695, %v13022_v1  ;;  %v13726_v24 = vmul.f32 -1.442695, %v13106_v4  ;;  %v18117_v25 = vpop.f32.mrb[139].mxu0  ;;  %v18136_v7 = vpop.f32.mrb[139].mxu1 }
0x27eb   :  { %20563 = vpow2.f32 %v13724_v6 }
0x27ec   :  { %20565 = vpow2.f32 %v13726_v24 }
0x27f5   :  { %v20564_v8 = vpop.eup %20563 }
0x27f6   :  { %v20566_v10 = vpop.eup %20565  ;;  %v13029_v11 = vadd.f32 1.0, %v20564_v8 }
0x27f7   :  { %v13113_v0 = vadd.f32 1.0, %v20566_v10 }
0x27f8   :  { %v13196_v14 = vpop.f32.mrb[140].mxu0  ;;  %v13280_v15 = vpop.f32.mrb[140].mxu1 }
0x27f9   :  { %20567 = vrcp.f32 %v13113_v0  ;;  %v13728_v16 = vmul.f32 -1.442695, %v13196_v14  ;;  %v18155_v20 = vpop.f32.mrb[141].mxu0  ;;  %v18174_v21 = vpop.f32.mrb[141].mxu1 }
0x27fa   :  { %20569 = vrcp.f32 %v13029_v11 }
0x27fb   :  { %20571 = vpow2.f32 %v13728_v16 }
0x27fc   :  { %20573 = vtanh.f32 %v13280_v15 }
0x2803   :  { %v20568_v23 = vpop.eup %20567 }
0x2804   :  { %v20570_v39 = vpop.eup %20569  ;;  %v13116_v41 = vsub.f32 %v20568_v23, %v22689_v53 }
0x2805   :  { %v20572_v56 = vpop.eup %20571 }
0x2806   :  { %v13203_v57 = vadd.f32 1.0, %v20572_v56  ;;  %v13117_v46 = vmul.f32 %v20570_v39, %v13116_v41  ;;  %v20574_v27 = vpop.eup %20573 }
0x2807   :  { %v13285_v28 = vsub.f32 %v20574_v27, %v22707_v44 }
0x2808   :  { %20575 = vrcp.f32 %v13203_v57  ;;  %v13362_v59 = vpop.f32.mrb[142].mxu0  ;;  %v13118_v51 = vadd.f32 %v13117_v46, %v22689_v53  ;;  %v13446_v61 = vpop.f32.mrb[142].mxu1 }
0x2809   :  { %v13731_v17 = vmul.f32 -1.442695, %v13362_v59  ;;  %v18193_v19 = vpop.f32.mrb[143].mxu0  ;;  %v18212_v63 = vpop.f32.mrb[143].mxu1  ;;  %v13450_v32 = vmax.f32 %v13446_v61, 0.0 }
0x280a   :  { %v13458_v22 = vadd.f32 %v13457_v33, %v13118_v51 }
0x280b   :  { %20577 = vpow2.f32 %v13731_v17  ;;  %v13451_v37 = vsub.f32 %v13450_v32, %v22689_v53 }
0x2812   :  { %v20576_v29 = vpop.eup %20575 }
0x2813   :  { %v13286_v34 = vmul.f32 %v20576_v29, %v13285_v28 }
0x2815   :  { %v20578_v35 = vpop.eup %20577  ;;  %v13287_v40 = vadd.f32 %v13286_v34, %v22707_v44 }
0x2816   :  { %v13369_v58 = vadd.f32 1.0, %v20578_v35 }
0x2817   :  { %v13459_v31 = vadd.f32 %v13458_v22, %v13287_v40 }
0x2818   :  { %20579 = vrcp.f32 %v13369_v58 }
0x2822   :  { %v20580_v38 = vpop.eup %20579 }
0x2823   :  { %v13452_v43 = vmul.f32 %v20580_v38, %v13451_v37 }
0x2825   :  { %v13453_v49 = vadd.f32 %v13452_v43, %v22689_v53 }
0x2827   :  { %v13460_v50 = vadd.f32 %v13459_v31, %v13453_v49 }
0x2829   :  { %v13461_v2 = vmul.f32 0.125, %v13460_v50 }
0x282b   :  { %13463 = vst.msk [vmem:[#allocation16 + $0x1c] sm:$0xf] %vm1842_vm2, %v13461_v2 }
0x282c   :  { %20768 = shalt.err (!%p20765_p12)
}
0x282d   :  { %s20769_s13 = scalar_lea.hbm %s22765_s8, 512 }
0x282e   :  { %p20770_p13 = scmp.ne.s32.totalorder %s22765_s8, %s20769_s13  ;;  %p20773_p0 = scmp.lt.u32.totalorder %s20769_s13, %s22765_s8 }
0x2830   :  { %p20775_p1 = pnand %p20773_p0, %p20770_p13 }
0x2832   :  { %20778 = shalt.err (!%p20775_p1)
}
0x2833   :  { %13475 = dma.vmem_to_hbm [thread:$0]  %s13470_s28, 512, %s22765_s8, [#allocation4], %s20797_s5, %s20797_s5, %s20798_s20  }
0x2834   :  { %20789 = dma.done.wait [#allocation4], 512  }
0x2835   :  { %20790 = vsyncadd [#allocation4], 4294966784 }
0x2836   :  { %13479 = vsyncpa [#allocation3], 1 }
0x2837   :  { %13480 = vsyncpa [#allocation6], 1 }
0x2838   :  { %13481 = vsyncpa [#allocation9], 1 }
0x2839   :  { %13482 = vsyncpa [#allocation12], 1 }
0x283a   :  { %13483 = vsyncpa [#allocation15], 1 }
0x283b   :  { %13484 = vsyncpa [#allocation4], 1 }

</bundles_post_ra>
